<compile_context>
chip_gen: v7x
topology: tpu7x:2x2x1
jax: 0.10.0
libtpu: 0.0.40
codegen_flags: <defaults>
</compile_context>

<pallas_src>
import math

import jax
import jax.numpy as jnp
from jax.experimental import pallas as pl
from jax.experimental.pallas import tpu as pltpu


# ----------------------------- Pallas kernels ------------------------------

def _make_fused_bn1_conv1_kernel(m_total, eps):
    """Two-phase kernel over grid (phase, m_tile):
       phase 0: accumulate per-channel sum / sum-of-squares of x into VMEM scratch.
       phase 1: fold BN1 scale/shift once, then BN1-normalize + ELU + 1x1 conv (bf16
                MXU, f32 accumulate), write h as bf16, accumulate BN2 partial stats."""
    inv_m = 1.0 / float(m_total)

    def kernel(x_ref, g1_ref, bt1_ref, w_ref, b_ref,
               h_ref, hsum_ref, hsq_ref,
               xsum_sc, xsq_sc, sc1_sc, sh1_sc):
        phase = pl.program_id(0)
        step = pl.program_id(1)

        @pl.when((phase == 0) & (step == 0))
        def _init_x_stats():
            xsum_sc[...] = jnp.zeros(xsum_sc.shape, xsum_sc.dtype)
            xsq_sc[...] = jnp.zeros(xsq_sc.shape, xsq_sc.dtype)

        @pl.when(phase == 0)
        def _accum_x_stats():
            x = x_ref[...]
            xsum_sc[...] += jnp.sum(x, axis=0, keepdims=True)
            xsq_sc[...] += jnp.sum(x * x, axis=0, keepdims=True)

        @pl.when((phase == 1) & (step == 0))
        def _fold_bn1_and_init_h_stats():
            mean = xsum_sc[...] * inv_m
            var = xsq_sc[...] * inv_m - mean * mean
            sc = g1_ref[...] * jax.lax.rsqrt(var + eps)
            sc1_sc[...] = sc
            sh1_sc[...] = bt1_ref[...] - mean * sc
            hsum_ref[...] = jnp.zeros(hsum_ref.shape, hsum_ref.dtype)
            hsq_ref[...] = jnp.zeros(hsq_ref.shape, hsq_ref.dtype)

        @pl.when(phase == 1)
        def _bn1_elu_conv1():
            a = x_ref[...] * sc1_sc[...] + sh1_sc[...]                  # BN1 (folded)
            a = jnp.where(a > 0, a, jnp.exp(jnp.minimum(a, 0.0)) - 1.0)  # ELU
            h = jnp.dot(a.astype(w_ref.dtype), w_ref[...],
                        preferred_element_type=jnp.float32) + b_ref[...]  # 1x1 conv
            h_ref[...] = h.astype(h_ref.dtype)                           # bf16 writeback
            hsum_ref[...] += jnp.sum(h, axis=0, keepdims=True)           # BN2 stats
            hsq_ref[...] += jnp.sum(h * h, axis=0, keepdims=True)        # (from f32 acc)

    return kernel


def _bn_elu_conv3x3_concat_kernel(x_ref, h_ref, sc_ref, sh_ref, w_ref, b_ref, o_ref):
    """Fused BN2-normalize + ELU + 3x3 conv + concat([x, y], channel axis).

    3x3 conv strategy (no padded scratch, no unaligned sublane tap loads):
      * stack the dy in {-1,0,+1} row taps on the LANE axis (aligned slices/concats)
        -> S of shape (H, W, 3*C4) in bf16 (one cast total),
      * one bf16 MXU matmul against weights repacked as (3*C4, 3*Npad) gives all three
        dx partials at once with a lane-dense f32 accumulator,
      * the dx = +-1 column shifts become two shifted f32 adds on the partials."""
    _, hh, ww, c4 = h_ref.shape
    gr = b_ref.shape[1]
    npad = w_ref.shape[1] // 3

    sc = sc_ref[...].reshape(1, 1, c4)
    sh = sh_ref[...].reshape(1, 1, c4)
    a = h_ref[0].astype(jnp.float32) * sc + sh                       # BN2 (folded affine)
    a = jnp.where(a > 0, a, jnp.exp(jnp.minimum(a, 0.0)) - 1.0)      # ELU
    abf = a.astype(jnp.bfloat16)                                     # single bf16 cast

    zrow = jnp.zeros((1, ww, c4), jnp.bfloat16)
    a_dn = jnp.concatenate([zrow, abf[:hh - 1]], axis=0)             # a[y-1] (zero top)
    a_up = jnp.concatenate([abf[1:], zrow], axis=0)                  # a[y+1] (zero bottom)
    s = jnp.concatenate([a_dn, abf, a_up], axis=-1)                  # (H, W, 3*C4), aligned
    s2 = s.reshape(hh * ww, 3 * c4)

    # Single K = 3*C4 matmul -> the three dx partials, each lane-dense (npad = 128).
    p = jnp.dot(s2, w_ref[...], preferred_element_type=jnp.float32)  # (H*W, 3*npad)
    p = p.reshape(hh, ww, 3 * npad)
    p_m1 = p[:, :, 0 * npad:1 * npad]     # dx = -1 partial: contributes at x from x-1
    p_c = p[:, :, 1 * npad:2 * npad]      # dx =  0 partial
    p_p1 = p[:, :, 2 * npad:3 * npad]     # dx = +1 partial: contributes at x from x+1

    zcol = jnp.zeros((hh, 1, npad), jnp.float32)
    y_full = (p_c
              + jnp.concatenate([zcol, p_m1[:, :ww - 1, :]], axis=1)
              + jnp.concatenate([p_p1[:, 1:, :], zcol], axis=1))

    y = y_full[:, :, :gr] + b_ref[...].reshape(1, 1, gr)
    # Dense concat written in place: single (C_in + growth_rate)-wide store.
    o_ref[0] = jnp.concatenate([x_ref[0], y], axis=-1)


# --------------------------- pallas_call wrappers ---------------------------

def _pick_tile_m(m, target=2048):
    """Largest tile <= target that divides m.  target=2048 keeps ~2*tm*(C+C4)*4 of
    double-buffered input + 2*tm*C4*2 of output well under 8 MiB for C <= 256.
    Never falls back to tm == m for awkward m (VMEM-safe)."""
    for t in (target, 1024, 512, 256, 128, 64, 32, 16, 8):
        if t <= m and m % t == 0:
            return t
    for t in range(min(target, m), 0, -1):
        if m % t == 0:
            return t
    return 1


def pallas_fused_stats_bn1_conv1(x2, gamma1, beta1, w1_bf16, b1, tm, eps):
    m, c = x2.shape
    c4 = w1_bf16.shape[1]
    k = m // tm
    kernel = _make_fused_bn1_conv1_kernel(m, eps)
    return pl.pallas_call(
        kernel,
        out_shape=(jax.ShapeDtypeStruct((m, c4), jnp.bfloat16),      # h (bf16 round-trip)
                   jax.ShapeDtypeStruct((1, c4), jnp.float32),       # sum(h)
                   jax.ShapeDtypeStruct((1, c4), jnp.float32)),      # sum(h*h)
        grid_spec=pltpu.PrefetchScalarGridSpec(
            num_scalar_prefetch=0,
            grid=(2, k),                                             # (phase, m tile)
            in_specs=[
                pl.BlockSpec((tm, c), lambda p, i: (i, 0)),
                pl.BlockSpec((1, c), lambda p, i: (0, 0)),
                pl.BlockSpec((1, c), lambda p, i: (0, 0)),
                pl.BlockSpec((c, c4), lambda p, i: (0, 0)),
                pl.BlockSpec((1, c4), lambda p, i: (0, 0)),
            ],
            # h blocks stay parked on block 0 during phase 0 (never spuriously cycled),
            # then advance with i during phase 1.
            out_specs=(pl.BlockSpec((tm, c4), lambda p, i: (p * i, 0)),
                       pl.BlockSpec((1, c4), lambda p, i: (0, 0)),
                       pl.BlockSpec((1, c4), lambda p, i: (0, 0))),
            scratch_shapes=[pltpu.VMEM((1, c), jnp.float32),   # sum(x)
                            pltpu.VMEM((1, c), jnp.float32),   # sum(x*x)
                            pltpu.VMEM((1, c), jnp.float32),   # folded scale1
                            pltpu.VMEM((1, c), jnp.float32)],  # folded shift1
        ),
        compiler_params=pltpu.CompilerParams(
            dimension_semantics=("arbitrary", "arbitrary")),
    )(x2, gamma1, beta1, w1_bf16, b1)


def pallas_bn_elu_conv3x3_concat(x, hmap, scale2, shift2, w2cat, b2):
    n, h, w, c = x.shape
    c4 = hmap.shape[3]
    gr = b2.shape[1]
    wcols = w2cat.shape[1]                       # 3 * npad
    return pl.pallas_call(
        _bn_elu_conv3x3_concat_kernel,
        out_shape=jax.ShapeDtypeStruct((n, h, w, c + gr), jnp.float32),
        grid_spec=pltpu.PrefetchScalarGridSpec(
            num_scalar_prefetch=0,
            grid=(n,),
            in_specs=[
                pl.BlockSpec((1, h, w, c), lambda i: (i, 0, 0, 0)),
                pl.BlockSpec((1, h, w, c4), lambda i: (i, 0, 0, 0)),
                pl.BlockSpec((1, c4), lambda i: (0, 0)),
                pl.BlockSpec((1, c4), lambda i: (0, 0)),
                pl.BlockSpec((3 * c4, wcols), lambda i: (0, 0)),
                pl.BlockSpec((1, gr), lambda i: (0, 0)),
            ],
            out_specs=pl.BlockSpec((1, h, w, c + gr), lambda i: (i, 0, 0, 0)),
        ),
        compiler_params=pltpu.CompilerParams(
            dimension_semantics=("parallel",)),
    )(x, hmap, scale2, shift2, w2cat, b2)


# ------------------------------- forward pass --------------------------------

def bottleneck_forward(x_nchw, params):
    """BottleneckLayer forward: BN->ELU->1x1 conv->BN->ELU->3x3 conv, concat([x, y])."""
    eps = 1e-5
    # NCHW -> NHWC (channels ride the 128-lane axis).  Kept at the boundary so the
    # module keeps its PyTorch NCHW interface; a DenseNet block that stays NHWC
    # end-to-end would drop both transposes.
    x = jnp.transpose(x_nchw, (0, 2, 3, 1)).astype(jnp.float32)
    n, h, w, c = x.shape
    c4 = params["w1"].shape[1]
    gr = params["w2"].shape[3]
    m = n * h * w
    tm = _pick_tile_m(m)

    x2 = x.reshape(m, c)

    # Fused pass 1+2: x stats -> BN1 + ELU + 1x1 conv (h in bf16) + BN2 partial stats.
    w1 = params["w1"].astype(jnp.bfloat16)
    h2, hsum, hsq = pallas_fused_stats_bn1_conv1(
        x2, params["gamma1"], params["beta1"], w1, params["b1"], tm, eps)

    # Tiny (1, C4) glue: fold BN2 into scale/shift.
    mean2 = hsum / m
    var2 = hsq / m - mean2 * mean2
    scale2 = params["gamma2"] * jax.lax.rsqrt(var2 + eps)
    shift2 = params["beta2"] - mean2 * scale2

    hmap = h2.reshape(n, h, w, c4)

    # Repack 3x3 weights: (3,3,C4,gr) -> (dy, c, dx, n) -> pad n to 128 -> (3*C4, 3*128)
    # so the kernel's single matmul yields lane-dense per-dx partials.
    npad = ((gr + 127) // 128) * 128
    w2p = jnp.transpose(params["w2"], (0, 2, 1, 3))
    w2p = jnp.pad(w2p, ((0, 0), (0, 0), (0, 0), (0, npad - gr)))
    w2cat = w2p.reshape(3 * c4, 3 * npad).astype(jnp.bfloat16)

    # Pass 3: BN2-normalize + ELU + 3x3 conv + concat-with-input, fused.
    out = pallas_bn_elu_conv3x3_concat(x, hmap, scale2, shift2, w2cat, params["b2"])
    return jnp.transpose(out, (0, 3, 1, 2))                        # NHWC -> NCHW


# ---------------------------- plain-JAX reference ----------------------------

def reference_forward(x_nchw, params):
    """Reference with lax/jnp ops, mirroring the kernel's precision choices
    (bf16 matmul inputs / f32 accumulate, h round-tripped through bf16, BN2 stats
    taken from the f32 accumulator)."""
    eps = 1e-5
    x = jnp.transpose(x_nchw, (0, 2, 3, 1)).astype(jnp.float32)

    def elu(t):
        return jnp.where(t > 0, t, jnp.exp(jnp.minimum(t, 0.0)) - 1.0)

    mean1 = jnp.mean(x, axis=(0, 1, 2), keepdims=True)
    var1 = jnp.mean(jnp.square(x), axis=(0, 1, 2), keepdims=True) - jnp.square(mean1)
    a1 = elu((x - mean1) * jax.lax.rsqrt(var1 + eps) * params["gamma1"]
             + params["beta1"])
    h = jnp.einsum("nhwc,cd->nhwd", a1.astype(jnp.bfloat16),
                   params["w1"].astype(jnp.bfloat16),
                   preferred_element_type=jnp.float32) + params["b1"]

    mean2 = jnp.mean(h, axis=(0, 1, 2), keepdims=True)
    var2 = jnp.mean(jnp.square(h), axis=(0, 1, 2), keepdims=True) - jnp.square(mean2)
    hq = h.astype(jnp.bfloat16).astype(jnp.float32)        # h stored in HBM as bf16
    a2 = elu((hq - mean2) * jax.lax.rsqrt(var2 + eps) * params["gamma2"]
             + params["beta2"])
    y = jax.lax.conv_general_dilated(
        a2.astype(jnp.bfloat16), params["w2"].astype(jnp.bfloat16),
        window_strides=(1, 1), padding=((1, 1), (1, 1)),
        dimension_numbers=("NHWC", "HWIO", "NHWC"),
        preferred_element_type=jnp.float32) + params["b2"]
    out = jnp.concatenate([x, y], axis=-1)
    return jnp.transpose(out, (0, 3, 1, 2))


# ----------------------------------- main ------------------------------------

def init_params(key, c_in, growth_rate):
    c4 = 4 * growth_rate
    ks = jax.random.split(key, 8)
    return {
        "gamma1": 1.0 + 0.1 * jax.random.normal(ks[0], (1, c_in), jnp.float32),
        "beta1": 0.1 * jax.random.normal(ks[1], (1, c_in), jnp.float32),
        "w1": jax.random.normal(ks[2], (c_in, c4), jnp.float32) / math.sqrt(c_in),
        "b1": 0.01 * jax.random.normal(ks[3], (1, c4), jnp.float32),
        "gamma2": 1.0 + 0.1 * jax.random.normal(ks[4], (1, c4), jnp.float32),
        "beta2": 0.1 * jax.random.normal(ks[5], (1, c4), jnp.float32),
        "w2": jax.random.normal(ks[6], (3, 3, c4, growth_rate), jnp.float32)
              / math.sqrt(9 * c4),
        "b2": 0.01 * jax.random.normal(ks[7], (1, growth_rate), jnp.float32),
    }


if __name__ == "__main__":
    N, C_IN, H, W = 2, 128, 16, 32
    GROWTH = 32

    root = jax.random.PRNGKey(0)
    kx, kp = jax.random.split(root)
    x = jax.random.normal(kx, (N, C_IN, H, W), jnp.float32)
    params = init_params(kp, C_IN, GROWTH)

    fwd = jax.jit(bottleneck_forward)
    out = jax.block_until_ready(fwd(x, params))

    ref = jax.block_until_ready(jax.jit(reference_forward)(x, params))

    if out.shape != (N, C_IN + GROWTH, H, W):
        raise SystemExit(f"bad output shape: {out.shape}")
    max_err = float(jnp.max(jnp.abs(out - ref)))
    if not math.isfinite(max_err) or max_err > 2e-2:
        raise SystemExit(f"mismatch vs reference: max abs err = {max_err}")
    print("KERNEL_OK")
</pallas_src>

<mosaic_0001>
module attributes {stable_mosaic.version = 11 : i64} {
  func.func @kernel(%arg0: i32, %arg1: i32, %arg2: memref<1024x128xf32, #tpu.memory_space<vmem>>, %arg3: memref<1x128xf32, #tpu.memory_space<vmem>>, %arg4: memref<1x128xf32, #tpu.memory_space<vmem>>, %arg5: memref<128x128xbf16, #tpu.memory_space<vmem>>, %arg6: memref<1x128xf32, #tpu.memory_space<vmem>>, %arg7: memref<1024x128xbf16, #tpu.memory_space<vmem>>, %arg8: memref<1x128xf32, #tpu.memory_space<vmem>>, %arg9: memref<1x128xf32, #tpu.memory_space<vmem>>, %arg10: memref<1x128xf32, #tpu.memory_space<vmem>>, %arg11: memref<1x128xf32, #tpu.memory_space<vmem>>, %arg12: memref<1x128xf32, #tpu.memory_space<vmem>>, %arg13: memref<1x128xf32, #tpu.memory_space<vmem>>) attributes {dimension_semantics = [#tpu.dimension_semantics<arbitrary>, #tpu.dimension_semantics<arbitrary>], iteration_bounds = array<i64: 2, 1>, scalar_prefetch = 0 : i64, scratch_operands = 4 : i64, tpu.core_type = #tpu.core_type<tc>, window_params = [{transform_indices = @transform_0, window_bounds = array<i64: 1024, 128>}, {pipeline_mode = #tpu.pipeline_mode<synchronous>, transform_indices = @transform_1, window_bounds = array<i64: 1, 128>}, {pipeline_mode = #tpu.pipeline_mode<synchronous>, transform_indices = @transform_2, window_bounds = array<i64: 1, 128>}, {pipeline_mode = #tpu.pipeline_mode<synchronous>, transform_indices = @transform_3, window_bounds = array<i64: 128, 128>}, {pipeline_mode = #tpu.pipeline_mode<synchronous>, transform_indices = @transform_4, window_bounds = array<i64: 1, 128>}, {transform_indices = @transform_5, window_bounds = array<i64: 1024, 128>}, {pipeline_mode = #tpu.pipeline_mode<synchronous>, transform_indices = @transform_6, window_bounds = array<i64: 1, 128>}, {pipeline_mode = #tpu.pipeline_mode<synchronous>, transform_indices = @transform_7, window_bounds = array<i64: 1, 128>}]} {
    %c0_i32 = arith.constant 0 : i32
    %0 = arith.cmpi eq, %arg0, %c0_i32 : i32
    %c0_i32_0 = arith.constant 0 : i32
    %1 = arith.cmpi eq, %arg1, %c0_i32_0 : i32
    %2 = arith.andi %0, %1 : i1
    %3 = arith.extui %2 : i1 to i32
    %c0_i32_1 = arith.constant 0 : i32
    %4 = arith.cmpi ne, %3, %c0_i32_1 : i32
    scf.if %4 {
      %cst = arith.constant 0.000000e+00 : f32
      %16 = vector.broadcast %cst : f32 to vector<1x128xf32>
      %c0 = arith.constant 0 : index
      %c0_8 = arith.constant 0 : index
      %17 = vector.load %arg10[%c0, %c0_8] : memref<1x128xf32, #tpu.memory_space<vmem>>, vector<1x128xf32>
      tpu.vector_store %arg10[%c0, %c0_8], %16 {strides = array<i32>} : memref<1x128xf32, #tpu.memory_space<vmem>>, vector<1x128xf32>,
      %cst_9 = arith.constant 0.000000e+00 : f32
      %18 = vector.broadcast %cst_9 : f32 to vector<1x128xf32>
      %c0_10 = arith.constant 0 : index
      %c0_11 = arith.constant 0 : index
      %19 = vector.load %arg11[%c0_10, %c0_11] : memref<1x128xf32, #tpu.memory_space<vmem>>, vector<1x128xf32>
      tpu.vector_store %arg11[%c0_10, %c0_11], %18 {strides = array<i32>} : memref<1x128xf32, #tpu.memory_space<vmem>>, vector<1x128xf32>,
    } else {
    }
    %c0_i32_2 = arith.constant 0 : i32
    %5 = arith.cmpi eq, %arg0, %c0_i32_2 : i32
    %6 = arith.extui %5 : i1 to i32
    %c0_i32_3 = arith.constant 0 : i32
    %7 = arith.cmpi ne, %6, %c0_i32_3 : i32
    scf.if %7 {
      %c0 = arith.constant 0 : index
      %c0_8 = arith.constant 0 : index
      %16 = vector.load %arg2[%c0, %c0_8] : memref<1024x128xf32, #tpu.memory_space<vmem>>, vector<1024x128xf32>
      %c0_9 = arith.constant 0 : index
      %c0_10 = arith.constant 0 : index
      %17 = vector.load %arg10[%c0_9, %c0_10] : memref<1x128xf32, #tpu.memory_space<vmem>>, vector<1x128xf32>
      %cst = arith.constant dense<0.000000e+00> : vector<128xf32>
      %18 = vector.multi_reduction <add>, %16, %cst [0] : vector<1024x128xf32> to vector<128xf32>
      %19 = vector.shape_cast %18 : vector<128xf32> to vector<1x128xf32>
      %20 = arith.addf %17, %19 : vector<1x128xf32>
      %c0_11 = arith.constant 0 : index
      %c0_12 = arith.constant 0 : index
      %21 = vector.load %arg10[%c0_11, %c0_12] : memref<1x128xf32, #tpu.memory_space<vmem>>, vector<1x128xf32>
      tpu.vector_store %arg10[%c0_11, %c0_12], %20 {strides = array<i32>} : memref<1x128xf32, #tpu.memory_space<vmem>>, vector<1x128xf32>,
      %c0_13 = arith.constant 0 : index
      %c0_14 = arith.constant 0 : index
      %22 = vector.load %arg11[%c0_13, %c0_14] : memref<1x128xf32, #tpu.memory_space<vmem>>, vector<1x128xf32>
      %23 = arith.mulf %16, %16 : vector<1024x128xf32>
      %cst_15 = arith.constant dense<0.000000e+00> : vector<128xf32>
      %24 = vector.multi_reduction <add>, %23, %cst_15 [0] : vector<1024x128xf32> to vector<128xf32>
      %25 = vector.shape_cast %24 : vector<128xf32> to vector<1x128xf32>
      %26 = arith.addf %22, %25 : vector<1x128xf32>
      %c0_16 = arith.constant 0 : index
      %c0_17 = arith.constant 0 : index
      %27 = vector.load %arg11[%c0_16, %c0_17] : memref<1x128xf32, #tpu.memory_space<vmem>>, vector<1x128xf32>
      tpu.vector_store %arg11[%c0_16, %c0_17], %26 {strides = array<i32>} : memref<1x128xf32, #tpu.memory_space<vmem>>, vector<1x128xf32>,
    } else {
    }
    %c1_i32 = arith.constant 1 : i32
    %8 = arith.cmpi eq, %arg0, %c1_i32 : i32
    %c0_i32_4 = arith.constant 0 : i32
    %9 = arith.cmpi eq, %arg1, %c0_i32_4 : i32
    %10 = arith.andi %8, %9 : i1
    %11 = arith.extui %10 : i1 to i32
    %c0_i32_5 = arith.constant 0 : i32
    %12 = arith.cmpi ne, %11, %c0_i32_5 : i32
    scf.if %12 {
      %c0 = arith.constant 0 : index
      %c0_8 = arith.constant 0 : index
      %16 = vector.load %arg10[%c0, %c0_8] : memref<1x128xf32, #tpu.memory_space<vmem>>, vector<1x128xf32>
      %cst = arith.constant 9.765625E-4 : f32
      %17 = vector.broadcast %cst : f32 to vector<1x128xf32>
      %18 = arith.mulf %16, %17 : vector<1x128xf32>
      %c0_9 = arith.constant 0 : index
      %c0_10 = arith.constant 0 : index
      %19 = vector.load %arg11[%c0_9, %c0_10] : memref<1x128xf32, #tpu.memory_space<vmem>>, vector<1x128xf32>
      %cst_11 = arith.constant 9.765625E-4 : f32
      %20 = vector.broadcast %cst_11 : f32 to vector<1x128xf32>
      %21 = arith.mulf %19, %20 : vector<1x128xf32>
      %22 = arith.mulf %18, %18 : vector<1x128xf32>
      %23 = arith.subf %21, %22 : vector<1x128xf32>
      %c0_12 = arith.constant 0 : index
      %c0_13 = arith.constant 0 : index
      %24 = vector.load %arg3[%c0_12, %c0_13] : memref<1x128xf32, #tpu.memory_space<vmem>>, vector<1x128xf32>
      %cst_14 = arith.constant 9.99999974E-6 : f32
      %25 = vector.broadcast %cst_14 : f32 to vector<1x128xf32>
      %26 = arith.addf %23, %25 : vector<1x128xf32>
      %27 = math.rsqrt %26 : vector<1x128xf32>
      %28 = arith.mulf %24, %27 : vector<1x128xf32>
      %c0_15 = arith.constant 0 : index
      %c0_16 = arith.constant 0 : index
      %29 = vector.load %arg12[%c0_15, %c0_16] : memref<1x128xf32, #tpu.memory_space<vmem>>, vector<1x128xf32>
      tpu.vector_store %arg12[%c0_15, %c0_16], %28 {strides = array<i32>} : memref<1x128xf32, #tpu.memory_space<vmem>>, vector<1x128xf32>,
      %c0_17 = arith.constant 0 : index
      %c0_18 = arith.constant 0 : index
      %30 = vector.load %arg4[%c0_17, %c0_18] : memref<1x128xf32, #tpu.memory_space<vmem>>, vector<1x128xf32>
      %31 = arith.mulf %18, %28 : vector<1x128xf32>
      %32 = arith.subf %30, %31 : vector<1x128xf32>
      %c0_19 = arith.constant 0 : index
      %c0_20 = arith.constant 0 : index
      %33 = vector.load %arg13[%c0_19, %c0_20] : memref<1x128xf32, #tpu.memory_space<vmem>>, vector<1x128xf32>
      tpu.vector_store %arg13[%c0_19, %c0_20], %32 {strides = array<i32>} : memref<1x128xf32, #tpu.memory_space<vmem>>, vector<1x128xf32>,
      %cst_21 = arith.constant 0.000000e+00 : f32
      %34 = vector.broadcast %cst_21 : f32 to vector<1x128xf32>
      %c0_22 = arith.constant 0 : index
      %c0_23 = arith.constant 0 : index
      %35 = vector.load %arg8[%c0_22, %c0_23] : memref<1x128xf32, #tpu.memory_space<vmem>>, vector<1x128xf32>
      tpu.vector_store %arg8[%c0_22, %c0_23], %34 {strides = array<i32>} : memref<1x128xf32, #tpu.memory_space<vmem>>, vector<1x128xf32>,
      %cst_24 = arith.constant 0.000000e+00 : f32
      %36 = vector.broadcast %cst_24 : f32 to vector<1x128xf32>
      %c0_25 = arith.constant 0 : index
      %c0_26 = arith.constant 0 : index
      %37 = vector.load %arg9[%c0_25, %c0_26] : memref<1x128xf32, #tpu.memory_space<vmem>>, vector<1x128xf32>
      tpu.vector_store %arg9[%c0_25, %c0_26], %36 {strides = array<i32>} : memref<1x128xf32, #tpu.memory_space<vmem>>, vector<1x128xf32>,
    } else {
    }
    %c1_i32_6 = arith.constant 1 : i32
    %13 = arith.cmpi eq, %arg0, %c1_i32_6 : i32
    %14 = arith.extui %13 : i1 to i32
    %c0_i32_7 = arith.constant 0 : i32
    %15 = arith.cmpi ne, %14, %c0_i32_7 : i32
    scf.if %15 {
      %c0 = arith.constant 0 : index
      %c0_8 = arith.constant 0 : index
      %16 = vector.load %arg2[%c0, %c0_8] : memref<1024x128xf32, #tpu.memory_space<vmem>>, vector<1024x128xf32>
      %c0_9 = arith.constant 0 : index
      %c0_10 = arith.constant 0 : index
      %17 = vector.load %arg12[%c0_9, %c0_10] : memref<1x128xf32, #tpu.memory_space<vmem>>, vector<1x128xf32>
      %18 = vector.broadcast %17 : vector<1x128xf32> to vector<1024x128xf32>
      %19 = arith.mulf %16, %18 : vector<1024x128xf32>
      %c0_11 = arith.constant 0 : index
      %c0_12 = arith.constant 0 : index
      %20 = vector.load %arg13[%c0_11, %c0_12] : memref<1x128xf32, #tpu.memory_space<vmem>>, vector<1x128xf32>
      %21 = vector.broadcast %20 : vector<1x128xf32> to vector<1024x128xf32>
      %22 = arith.addf %19, %21 : vector<1024x128xf32>
      %cst = arith.constant 0.000000e+00 : f32
      %23 = vector.broadcast %cst : f32 to vector<1024x128xf32>
      %24 = arith.cmpf ogt, %22, %23 : vector<1024x128xf32>
      %cst_13 = arith.constant 0.000000e+00 : f32
      %25 = vector.broadcast %cst_13 : f32 to vector<1024x128xf32>
      %26 = arith.minimumf %22, %25 : vector<1024x128xf32>
      %27 = math.exp %26 : vector<1024x128xf32>
      %cst_14 = arith.constant 1.000000e+00 : f32
      %28 = vector.broadcast %cst_14 : f32 to vector<1024x128xf32>
      %29 = arith.subf %27, %28 : vector<1024x128xf32>
      %30 = arith.select %24, %22, %29 : vector<1024x128xi1>, vector<1024x128xf32>
      %31 = arith.truncf %30 : vector<1024x128xf32> to vector<1024x128xbf16>
      %c0_15 = arith.constant 0 : index
      %c0_16 = arith.constant 0 : index
      %32 = vector.load %arg5[%c0_15, %c0_16] : memref<128x128xbf16, #tpu.memory_space<vmem>>, vector<128x128xbf16>
      %cst_17 = arith.constant dense<0.000000e+00> : vector<1024x128xf32>
      %33 = tpu.matmul %31, %32, %cst_17 {dimension_numbers = #tpu.dot_dimension_numbers<[1], [0], [0], [1], [0, 0, 1, 1], [], []>} : vector<1024x128xbf16>, vector<128x128xbf16>, vector<1024x128xf32> -> vector<1024x128xf32>
      %c0_18 = arith.constant 0 : index
      %c0_19 = arith.constant 0 : index
      %34 = vector.load %arg6[%c0_18, %c0_19] : memref<1x128xf32, #tpu.memory_space<vmem>>, vector<1x128xf32>
      %35 = vector.broadcast %34 : vector<1x128xf32> to vector<1024x128xf32>
      %36 = arith.addf %33, %35 : vector<1024x128xf32>
      %37 = arith.truncf %36 : vector<1024x128xf32> to vector<1024x128xbf16>
      %c0_20 = arith.constant 0 : index
      %c0_21 = arith.constant 0 : index
      %38 = vector.load %arg7[%c0_20, %c0_21] : memref<1024x128xbf16, #tpu.memory_space<vmem>>, vector<1024x128xbf16>
      tpu.vector_store %arg7[%c0_20, %c0_21], %37 {strides = array<i32>} : memref<1024x128xbf16, #tpu.memory_space<vmem>>, vector<1024x128xbf16>,
      %c0_22 = arith.constant 0 : index
      %c0_23 = arith.constant 0 : index
      %39 = vector.load %arg8[%c0_22, %c0_23] : memref<1x128xf32, #tpu.memory_space<vmem>>, vector<1x128xf32>
      %cst_24 = arith.constant dense<0.000000e+00> : vector<128xf32>
      %40 = vector.multi_reduction <add>, %36, %cst_24 [0] : vector<1024x128xf32> to vector<128xf32>
      %41 = vector.shape_cast %40 : vector<128xf32> to vector<1x128xf32>
      %42 = arith.addf %39, %41 : vector<1x128xf32>
      %c0_25 = arith.constant 0 : index
      %c0_26 = arith.constant 0 : index
      %43 = vector.load %arg8[%c0_25, %c0_26] : memref<1x128xf32, #tpu.memory_space<vmem>>, vector<1x128xf32>
      tpu.vector_store %arg8[%c0_25, %c0_26], %42 {strides = array<i32>} : memref<1x128xf32, #tpu.memory_space<vmem>>, vector<1x128xf32>,
      %c0_27 = arith.constant 0 : index
      %c0_28 = arith.constant 0 : index
      %44 = vector.load %arg9[%c0_27, %c0_28] : memref<1x128xf32, #tpu.memory_space<vmem>>, vector<1x128xf32>
      %45 = arith.mulf %36, %36 : vector<1024x128xf32>
      %cst_29 = arith.constant dense<0.000000e+00> : vector<128xf32>
      %46 = vector.multi_reduction <add>, %45, %cst_29 [0] : vector<1024x128xf32> to vector<128xf32>
      %47 = vector.shape_cast %46 : vector<128xf32> to vector<1x128xf32>
      %48 = arith.addf %44, %47 : vector<1x128xf32>
      %c0_30 = arith.constant 0 : index
      %c0_31 = arith.constant 0 : index
      %49 = vector.load %arg9[%c0_30, %c0_31] : memref<1x128xf32, #tpu.memory_space<vmem>>, vector<1x128xf32>
      tpu.vector_store %arg9[%c0_30, %c0_31], %48 {strides = array<i32>} : memref<1x128xf32, #tpu.memory_space<vmem>>, vector<1x128xf32>,
    } else {
    }
    return
  }
  func.func @transform_0(%arg0: i32, %arg1: i32) -> (i32, i32) {
    %c0_i32 = arith.constant 0 : i32
    %c0_i32_0 = arith.constant 0 : i32
    return %arg1, %c0_i32 : i32, i32
  }
  func.func @transform_1(%arg0: i32, %arg1: i32) -> (i32, i32) {
    %c0_i32 = arith.constant 0 : i32
    %c0_i32_0 = arith.constant 0 : i32
    %c0_i32_1 = arith.constant 0 : i32
    return %c0_i32, %c0_i32_0 : i32, i32
  }
  func.func @transform_2(%arg0: i32, %arg1: i32) -> (i32, i32) {
    %c0_i32 = arith.constant 0 : i32
    %c0_i32_0 = arith.constant 0 : i32
    %c0_i32_1 = arith.constant 0 : i32
    return %c0_i32, %c0_i32_0 : i32, i32
  }
  func.func @transform_3(%arg0: i32, %arg1: i32) -> (i32, i32) {
    %c0_i32 = arith.constant 0 : i32
    %c0_i32_0 = arith.constant 0 : i32
    %c0_i32_1 = arith.constant 0 : i32
    return %c0_i32, %c0_i32_0 : i32, i32
  }
  func.func @transform_4(%arg0: i32, %arg1: i32) -> (i32, i32) {
    %c0_i32 = arith.constant 0 : i32
    %c0_i32_0 = arith.constant 0 : i32
    %c0_i32_1 = arith.constant 0 : i32
    return %c0_i32, %c0_i32_0 : i32, i32
  }
  func.func @transform_5(%arg0: i32, %arg1: i32) -> (i32, i32) {
    %0 = arith.muli %arg0, %arg1 : i32
    %c0_i32 = arith.constant 0 : i32
    %c0_i32_0 = arith.constant 0 : i32
    return %0, %c0_i32 : i32, i32
  }
  func.func @transform_6(%arg0: i32, %arg1: i32) -> (i32, i32) {
    %c0_i32 = arith.constant 0 : i32
    %c0_i32_0 = arith.constant 0 : i32
    %c0_i32_1 = arith.constant 0 : i32
    return %c0_i32, %c0_i32_0 : i32, i32
  }
  func.func @transform_7(%arg0: i32, %arg1: i32) -> (i32, i32) {
    %c0_i32 = arith.constant 0 : i32
    %c0_i32_0 = arith.constant 0 : i32
    %c0_i32_1 = arith.constant 0 : i32
    return %c0_i32, %c0_i32_0 : i32, i32
  }
}

module attributes {stable_mosaic.version = 11 : i64} {
  func.func @_bn_elu_conv3x3_concat_kernel(%arg0: i32, %arg1: memref<1x16x32x128xf32, #tpu.memory_space<vmem>>, %arg2: memref<1x16x32x128xbf16, #tpu.memory_space<vmem>>, %arg3: memref<1x128xf32, #tpu.memory_space<vmem>>, %arg4: memref<1x128xf32, #tpu.memory_space<vmem>>, %arg5: memref<384x384xbf16, #tpu.memory_space<vmem>>, %arg6: memref<1x32xf32, #tpu.memory_space<vmem>>, %arg7: memref<1x16x32x160xf32, #tpu.memory_space<vmem>>) attributes {dimension_semantics = [#tpu.dimension_semantics<parallel>], iteration_bounds = array<i64: 2>, scalar_prefetch = 0 : i64, scratch_operands = 0 : i64, tpu.core_type = #tpu.core_type<tc>, window_params = [{transform_indices = @transform_0, window_bounds = array<i64: 1, 16, 32, 128>}, {transform_indices = @transform_1, window_bounds = array<i64: 1, 16, 32, 128>}, {pipeline_mode = #tpu.pipeline_mode<synchronous>, transform_indices = @transform_2, window_bounds = array<i64: 1, 128>}, {pipeline_mode = #tpu.pipeline_mode<synchronous>, transform_indices = @transform_3, window_bounds = array<i64: 1, 128>}, {pipeline_mode = #tpu.pipeline_mode<synchronous>, transform_indices = @transform_4, window_bounds = array<i64: 384, 384>}, {pipeline_mode = #tpu.pipeline_mode<synchronous>, transform_indices = @transform_5, window_bounds = array<i64: 1, 32>}, {transform_indices = @transform_6, window_bounds = array<i64: 1, 16, 32, 160>}]} {
    %c0 = arith.constant 0 : index
    %c0_0 = arith.constant 0 : index
    %0 = vector.load %arg3[%c0, %c0_0] : memref<1x128xf32, #tpu.memory_space<vmem>>, vector<1x128xf32>
    %1 = vector.shape_cast %0 : vector<1x128xf32> to vector<1x1x128xf32>
    %c0_1 = arith.constant 0 : index
    %c0_2 = arith.constant 0 : index
    %2 = vector.load %arg4[%c0_1, %c0_2] : memref<1x128xf32, #tpu.memory_space<vmem>>, vector<1x128xf32>
    %3 = vector.shape_cast %2 : vector<1x128xf32> to vector<1x1x128xf32>
    %c0_3 = arith.constant 0 : index
    %c0_4 = arith.constant 0 : index
    %c0_5 = arith.constant 0 : index
    %c0_6 = arith.constant 0 : index
    %4 = vector.load %arg2[%c0_3, %c0_4, %c0_5, %c0_6] : memref<1x16x32x128xbf16, #tpu.memory_space<vmem>>, vector<1x16x32x128xbf16>
    %5 = vector.shape_cast %4 : vector<1x16x32x128xbf16> to vector<16x32x128xbf16>
    %6 = arith.extf %5 : vector<16x32x128xbf16> to vector<16x32x128xf32>
    %7 = vector.broadcast %1 : vector<1x1x128xf32> to vector<16x32x128xf32>
    %8 = arith.mulf %6, %7 : vector<16x32x128xf32>
    %9 = vector.broadcast %3 : vector<1x1x128xf32> to vector<16x32x128xf32>
    %10 = arith.addf %8, %9 : vector<16x32x128xf32>
    %cst = arith.constant 0.000000e+00 : f32
    %11 = vector.broadcast %cst : f32 to vector<16x32x128xf32>
    %12 = arith.cmpf ogt, %10, %11 : vector<16x32x128xf32>
    %cst_7 = arith.constant 0.000000e+00 : f32
    %13 = vector.broadcast %cst_7 : f32 to vector<16x32x128xf32>
    %14 = arith.minimumf %10, %13 : vector<16x32x128xf32>
    %15 = math.exp %14 : vector<16x32x128xf32>
    %cst_8 = arith.constant 1.000000e+00 : f32
    %16 = vector.broadcast %cst_8 : f32 to vector<16x32x128xf32>
    %17 = arith.subf %15, %16 : vector<16x32x128xf32>
    %18 = arith.select %12, %10, %17 : vector<16x32x128xi1>, vector<16x32x128xf32>
    %19 = arith.truncf %18 : vector<16x32x128xf32> to vector<16x32x128xbf16>
    %cst_9 = arith.constant 0.000000e+00 : bf16
    %20 = vector.broadcast %cst_9 : bf16 to vector<1x32x128xbf16>
    %21 = vector.extract_strided_slice %19 {offsets = [0, 0, 0], sizes = [15, 32, 128], strides = [1, 1, 1]} : vector<16x32x128xbf16> to vector<15x32x128xbf16>
    %22 = tpu.concatenate %20, %21 in 0 : vector<1x32x128xbf16>, vector<15x32x128xbf16> -> vector<16x32x128xbf16>
    %23 = vector.extract_strided_slice %19 {offsets = [1, 0, 0], sizes = [15, 32, 128], strides = [1, 1, 1]} : vector<16x32x128xbf16> to vector<15x32x128xbf16>
    %24 = tpu.concatenate %23, %20 in 0 : vector<15x32x128xbf16>, vector<1x32x128xbf16> -> vector<16x32x128xbf16>
    %25 = tpu.concatenate %22, %19, %24 in 2 : vector<16x32x128xbf16>, vector<16x32x128xbf16>, vector<16x32x128xbf16> -> vector<16x32x384xbf16>
    %26 = vector.shape_cast %25 : vector<16x32x384xbf16> to vector<512x384xbf16>
    %c0_10 = arith.constant 0 : index
    %c0_11 = arith.constant 0 : index
    %27 = vector.load %arg5[%c0_10, %c0_11] : memref<384x384xbf16, #tpu.memory_space<vmem>>, vector<384x384xbf16>
    %cst_12 = arith.constant dense<0.000000e+00> : vector<512x384xf32>
    %28 = tpu.matmul %26, %27, %cst_12 {dimension_numbers = #tpu.dot_dimension_numbers<[1], [0], [0], [1], [0, 0, 1, 1], [], []>} : vector<512x384xbf16>, vector<384x384xbf16>, vector<512x384xf32> -> vector<512x384xf32>
    %29 = vector.shape_cast %28 : vector<512x384xf32> to vector<16x32x384xf32>
    %30 = vector.extract_strided_slice %29 {offsets = [0, 0, 0], sizes = [16, 32, 128], strides = [1, 1, 1]} : vector<16x32x384xf32> to vector<16x32x128xf32>
    %31 = vector.extract_strided_slice %29 {offsets = [0, 0, 128], sizes = [16, 32, 128], strides = [1, 1, 1]} : vector<16x32x384xf32> to vector<16x32x128xf32>
    %32 = vector.extract_strided_slice %29 {offsets = [0, 0, 256], sizes = [16, 32, 128], strides = [1, 1, 1]} : vector<16x32x384xf32> to vector<16x32x128xf32>
    %cst_13 = arith.constant 0.000000e+00 : f32
    %33 = vector.broadcast %cst_13 : f32 to vector<16x1x128xf32>
    %34 = vector.extract_strided_slice %30 {offsets = [0, 0, 0], sizes = [16, 31, 128], strides = [1, 1, 1]} : vector<16x32x128xf32> to vector<16x31x128xf32>
    %35 = tpu.concatenate %33, %34 in 1 : vector<16x1x128xf32>, vector<16x31x128xf32> -> vector<16x32x128xf32>
    %36 = arith.addf %31, %35 : vector<16x32x128xf32>
    %37 = vector.extract_strided_slice %32 {offsets = [0, 1, 0], sizes = [16, 31, 128], strides = [1, 1, 1]} : vector<16x32x128xf32> to vector<16x31x128xf32>
    %38 = tpu.concatenate %37, %33 in 1 : vector<16x31x128xf32>, vector<16x1x128xf32> -> vector<16x32x128xf32>
    %39 = arith.addf %36, %38 : vector<16x32x128xf32>
    %40 = vector.extract_strided_slice %39 {offsets = [0, 0, 0], sizes = [16, 32, 32], strides = [1, 1, 1]} : vector<16x32x128xf32> to vector<16x32x32xf32>
    %c0_14 = arith.constant 0 : index
    %c0_15 = arith.constant 0 : index
    %41 = vector.load %arg6[%c0_14, %c0_15] : memref<1x32xf32, #tpu.memory_space<vmem>>, vector<1x32xf32>
    %42 = vector.shape_cast %41 : vector<1x32xf32> to vector<1x1x32xf32>
    %43 = vector.broadcast %42 : vector<1x1x32xf32> to vector<16x32x32xf32>
    %44 = arith.addf %40, %43 : vector<16x32x32xf32>
    %c0_16 = arith.constant 0 : index
    %c0_17 = arith.constant 0 : index
    %c0_18 = arith.constant 0 : index
    %c0_19 = arith.constant 0 : index
    %45 = vector.load %arg1[%c0_16, %c0_17, %c0_18, %c0_19] : memref<1x16x32x128xf32, #tpu.memory_space<vmem>>, vector<1x16x32x128xf32>
    %46 = vector.shape_cast %45 : vector<1x16x32x128xf32> to vector<16x32x128xf32>
    %47 = tpu.concatenate %46, %44 in 2 : vector<16x32x128xf32>, vector<16x32x32xf32> -> vector<16x32x160xf32>
    %c0_20 = arith.constant 0 : index
    %c0_21 = arith.constant 0 : index
    %c0_22 = arith.constant 0 : index
    %c0_23 = arith.constant 0 : index
    %48 = vector.load %arg7[%c0_20, %c0_21, %c0_22, %c0_23] : memref<1x16x32x160xf32, #tpu.memory_space<vmem>>, vector<1x16x32x160xf32>
    %49 = vector.shape_cast %48 : vector<1x16x32x160xf32> to vector<16x32x160xf32>
    %50 = vector.shape_cast %47 : vector<16x32x160xf32> to vector<1x16x32x160xf32>
    tpu.vector_store %arg7[%c0_20, %c0_21, %c0_22, %c0_23], %50 {strides = array<i32>} : memref<1x16x32x160xf32, #tpu.memory_space<vmem>>, vector<1x16x32x160xf32>,
    return
  }
  func.func @transform_0(%arg0: i32) -> (i32, i32, i32, i32) {
    %c0_i32 = arith.constant 0 : i32
    %c0_i32_0 = arith.constant 0 : i32
    %c0_i32_1 = arith.constant 0 : i32
    %c0_i32_2 = arith.constant 0 : i32
    return %arg0, %c0_i32, %c0_i32_0, %c0_i32_1 : i32, i32, i32, i32
  }
  func.func @transform_1(%arg0: i32) -> (i32, i32, i32, i32) {
    %c0_i32 = arith.constant 0 : i32
    %c0_i32_0 = arith.constant 0 : i32
    %c0_i32_1 = arith.constant 0 : i32
    %c0_i32_2 = arith.constant 0 : i32
    return %arg0, %c0_i32, %c0_i32_0, %c0_i32_1 : i32, i32, i32, i32
  }
  func.func @transform_2(%arg0: i32) -> (i32, i32) {
    %c0_i32 = arith.constant 0 : i32
    %c0_i32_0 = arith.constant 0 : i32
    %c0_i32_1 = arith.constant 0 : i32
    return %c0_i32, %c0_i32_0 : i32, i32
  }
  func.func @transform_3(%arg0: i32) -> (i32, i32) {
    %c0_i32 = arith.constant 0 : i32
    %c0_i32_0 = arith.constant 0 : i32
    %c0_i32_1 = arith.constant 0 : i32
    return %c0_i32, %c0_i32_0 : i32, i32
  }
  func.func @transform_4(%arg0: i32) -> (i32, i32) {
    %c0_i32 = arith.constant 0 : i32
    %c0_i32_0 = arith.constant 0 : i32
    %c0_i32_1 = arith.constant 0 : i32
    return %c0_i32, %c0_i32_0 : i32, i32
  }
  func.func @transform_5(%arg0: i32) -> (i32, i32) {
    %c0_i32 = arith.constant 0 : i32
    %c0_i32_0 = arith.constant 0 : i32
    %c0_i32_1 = arith.constant 0 : i32
    return %c0_i32, %c0_i32_0 : i32, i32
  }
  func.func @transform_6(%arg0: i32) -> (i32, i32, i32, i32) {
    %c0_i32 = arith.constant 0 : i32
    %c0_i32_0 = arith.constant 0 : i32
    %c0_i32_1 = arith.constant 0 : i32
    %c0_i32_2 = arith.constant 0 : i32
    return %arg0, %c0_i32, %c0_i32_0, %c0_i32_1 : i32, i32, i32, i32
  }
}

</mosaic_0001>

<bundles_post_ra>
// kernel: bottleneck_forward.2
= control target key start
LH: loop header
LB: loop body
LE: loop exit
PB: predicated region body
PF: predicated region fallthrough
CT: control target
= control target key end

     0   :  { %13 = vsyncpa [#allocation7], 0  ;;  %s5266_s24 = smov 0   ;;  %s5268_s25 = smov 0   ;;  %s6906_s0 = inlined_call_operand.hbm [shape: f32[1024,128], index: 0, kind: input, shape index: {}]   ;;  %s6907_s1 = inlined_call_operand.vmem [shape: f32[1,128], index: 1, kind: input, shape index: {}]   ;;  %s6908_s2 = inlined_call_operand.vmem [shape: f32[1,128], index: 2, kind: input, shape index: {}]   ;;  %s6909_s3 = inlined_call_operand.vmem [shape: bf16[128,128], index: 3, kind: input, shape index: {}]   ;;  %s6910_s4 = inlined_call_operand.vmem [shape: f32[1,128], index: 4, kind: input, shape index: {}]   ;;  %s6911_s5 = inlined_call_operand.vmem [shape: bf16[1024,128], index: 5, kind: output, shape index: {0}]   ;;  %s6912_s6 = inlined_call_operand.vmem [shape: f32[1,128], index: 6, kind: output, shape index: {1}]   ;;  %s6913_s7 = inlined_call_operand.vmem [shape: f32[1,128], index: 7, kind: output, shape index: {2}]  }
   0x1   :  { %s5270_s26 = smov 0  }
   0x2 LB: > { %s3829_s27 = sadd.s32 4294967295, %s5219_s26   ;;  %s31_s28 = sadd.s32 1, %s5215_s25  ;;  %s5219_s26 = sphi %s5270_s26, %s19_s26   ;;  %s5215_s25 = sphi %s5268_s25, %s6923_s25   ;;  %s5211_s24 = sphi %s5266_s24, %s6922_s24  }
   0x3   : > { %p33_p0 = scmp.ge.s32.totalorder %s31_s28, 2  ;;  %p3831_p1 = scmp.ge.s32.totalorder %s5219_s26, 1 }
   0x4   : > { %p216_p2 = scmp.lt.s32.totalorder %s5219_s26, 3  ;;  %p5291_p4 = scmp.eq.s32.totalorder %s3829_s27, 0 }
   0x5   : > { %s6925_s28 = smov (%p33_p0, %s31_s28), 0  ;;  %s5221_s8 = smov [#allocation6]  }
   0x6   : > { %p5287_p3 = pnand %p3831_p1, %p216_p2  ;;  %s231_s9 = sshll.u32 %s5221_s8, 4  ;;  %s232_s9 = int_to_ptr.vmem [resolvable:$true] %s231_s9 }
   0x7   : > { %s6918_s30 = scalar_select %p5291_p4, 1, 0 }
   0x8   : > { %s6917_s29 = scalar_select %p5287_p3, 1, 0 }
   0x9   : > { %p4859_p5 = pneg %p5287_p3  ;;  %s5165_s13 = scalar_lea.hbm %s6906_s0, 16384 }
   0xa   : > { %p5166_p7 = scmp.ne.s32.totalorder %s6906_s0, %s5165_s13  ;;  %p5172_p11 = scmp.lt.u32.totalorder %s5165_s13, %s6906_s0 }
   0xb   : > { %p5299_p6 = pnand %p5291_p4, %p4859_p5 }
   0xd   : > { %p5167_p8 = pneg %p5299_p6 }
   0xf   : > { %p5168_p9 = pnand %p5167_p8, %p5166_p7 }
  0x11   : > { %p5169_p10 = pneg %p5168_p9 }
  0x13   : > { %p5174_p12 = pnand %p5172_p11, %p5169_p10 }
  0x15   : > { %5177 = shalt.err (!%p5174_p12)
}
  0x16   : > { %s5178_s18 = scalar_lea.vmem %s232_s9, 16384  ;;  %p5186_p2 = scmp.lt.s32.totalorder %s232_s9, %s232_s9 }
  0x17   : > { %p5179_p13 = scmp.ne.s32.totalorder %s232_s9, %s5178_s18  ;;  %p5187_p5 = scmp.lt.s32.totalorder %s5178_s18, %s5178_s18 }
  0x19   : > { %p5181_p0 = pnand %p5179_p13, %p5167_p8  ;;  %p5188_p4 = por %p5187_p5, %p5186_p2 }
  0x1b   : > { %p5182_p1 = pneg %p5181_p0 }
  0x1d   : > { %p5189_p3 = pnand %p5188_p4, %p5182_p1 }
  0x1f   : > { %5192 = shalt.err (!%p5189_p3)
}
  0x20   : > { %s5222_s19 = smov 128   ;;  %s5223_s20 = smov 8  }
  0x21   : > { %4862 = dma.hbm_to_vmem [thread:$0]  (!%p5299_p6), %s6906_s0, 16384, %s232_s9, [#allocation7], %s5222_s19, %s5222_s19, %s5223_s20  }
  0x22   : > { %p6920_p7 = scmp.ne.s32.totalorder %s6917_s29, 0 }
  0x23   : > { %p6921_p9 = scmp.ne.s32.totalorder (!%p6920_p7), %s6918_s30, 0 }
  0x24   : > { %259 = sbr.rel (%p6920_p7) target bundleno = 909 (0x38d), region = 40 }
  0x2b   : > { %5206 = dma.done.wait (%p6921_p9), [#allocation7], 16384  }
  0x2c   : > { %5208 = vsyncadd (%p6921_p9), [#allocation7], 4294950912  ;;  %p297_p4 = scmp.eq.s32.totalorder %s5211_s24, 0 }
  0x2d   : > { %v5224_v0 = vmov (%p297_p4), 0.0  }
  0x2e   : > { %302 = sbr.rel (!%p297_p4) target bundleno = 53 (0x35), region = 48  ;;  %303 = vst [vmem:[#allocation2] sm:$0x1] (%p297_p4), %v5224_v0  ;;  %304 = vst [vmem:[#allocation3] sm:$0x1] (%p297_p4), %v5224_v0 }
  0x35 PF: > { %p3836_p3 = scmp.ne.s32.totalorder %s5211_s24, 0 }
  0x36   : > { %v308_v1 = vld [vmem:[#allocation6] sm:$0xff] (!%p3836_p3)  ;;  %v309_v2 = vld [vmem:[#allocation6 + $0x8] sm:$0xff] (!%p3836_p3)  ;;  %v310_v3 = vld [vmem:[#allocation6 + $0x10] sm:$0xff] (!%p3836_p3) }
  0x37   : > { %307 = sbr.rel (%p3836_p3) target bundleno = 326 (0x146), region = 52  ;;  %v311_v4 = vld [vmem:[#allocation6 + $0x18] sm:$0xff] (!%p3836_p3)  ;;  %v437_v5 = vadd.f32 (!%p3836_p3), %v309_v2, %v308_v1  ;;  %v573_v6 = vmul.f32 (!%p3836_p3), %v308_v1, %v308_v1  ;;  %v574_v7 = vmul.f32 (!%p3836_p3), %v309_v2, %v309_v2  ;;  %v575_v8 = vmul.f32 (!%p3836_p3), %v310_v3, %v310_v3  ;;  %v312_v9 = vld [vmem:[#allocation6 + $0x20] sm:$0xff] (!%p3836_p3)  ;;  %v313_v13 = vld [vmem:[#allocation6 + $0x28] sm:$0xff] (!%p3836_p3) }
  0x38   : > { %v576_v11 = vmul.f32 (!%p3836_p3), %v311_v4, %v311_v4  ;;  %v577_v15 = vmul.f32 (!%p3836_p3), %v312_v9, %v312_v9  ;;  %v314_v17 = vld [vmem:[#allocation6 + $0x30] sm:$0xff] (!%p3836_p3)  ;;  %v578_v19 = vmul.f32 (!%p3836_p3), %v313_v13, %v313_v13  ;;  %v315_v21 = vld [vmem:[#allocation6 + $0x38] sm:$0xff] (!%p3836_p3)  ;;  %v316_v25 = vld [vmem:[#allocation6 + $0x40] sm:$0xff] (!%p3836_p3) }
  0x39   : > { %v438_v10 = vadd.f32 (!%p3836_p3), %v437_v5, %v310_v3  ;;  %v701_v12 = vadd.f32 (!%p3836_p3), %v574_v7, %v573_v6  ;;  %v579_v23 = vmul.f32 (!%p3836_p3), %v314_v17, %v314_v17  ;;  %v580_v27 = vmul.f32 (!%p3836_p3), %v315_v21, %v315_v21  ;;  %v317_v29 = vld [vmem:[#allocation6 + $0x48] sm:$0xff] (!%p3836_p3)  ;;  %v318_v33 = vld [vmem:[#allocation6 + $0x50] sm:$0xff] (!%p3836_p3)  ;;  %v319_v37 = vld [vmem:[#allocation6 + $0x58] sm:$0xff] (!%p3836_p3) }
  0x3a   : > { %v581_v31 = vmul.f32 (!%p3836_p3), %v316_v25, %v316_v25  ;;  %v582_v35 = vmul.f32 (!%p3836_p3), %v317_v29, %v317_v29  ;;  %v583_v39 = vmul.f32 (!%p3836_p3), %v318_v33, %v318_v33  ;;  %v320_v41 = vld [vmem:[#allocation6 + $0x60] sm:$0xff] (!%p3836_p3)  ;;  %v584_v43 = vmul.f32 (!%p3836_p3), %v319_v37, %v319_v37  ;;  %v321_v45 = vld [vmem:[#allocation6 + $0x68] sm:$0xff] (!%p3836_p3)  ;;  %v322_v49 = vld [vmem:[#allocation6 + $0x70] sm:$0xff] (!%p3836_p3) }
  0x3b   : > { %v439_v14 = vadd.f32 (!%p3836_p3), %v438_v10, %v311_v4  ;;  %v702_v16 = vadd.f32 (!%p3836_p3), %v701_v12, %v575_v8  ;;  %v585_v47 = vmul.f32 (!%p3836_p3), %v320_v41, %v320_v41  ;;  %v586_v51 = vmul.f32 (!%p3836_p3), %v321_v45, %v321_v45  ;;  %v323_v53 = vld [vmem:[#allocation6 + $0x78] sm:$0xff] (!%p3836_p3)  ;;  %v324_v57 = vld [vmem:[#allocation6 + $0x80] sm:$0xff] (!%p3836_p3)  ;;  %v325_v61 = vld [vmem:[#allocation6 + $0x88] sm:$0xff] (!%p3836_p3) }
  0x3c   : > { %v587_v55 = vmul.f32 (!%p3836_p3), %v322_v49, %v322_v49  ;;  %v588_v59 = vmul.f32 (!%p3836_p3), %v323_v53, %v323_v53  ;;  %v589_v63 = vmul.f32 (!%p3836_p3), %v324_v57, %v324_v57  ;;  %v326_v1 = vld [vmem:[#allocation6 + $0x90] sm:$0xff] (!%p3836_p3)  ;;  %v590_v3 = vmul.f32 (!%p3836_p3), %v325_v61, %v325_v61  ;;  %v327_v5 = vld [vmem:[#allocation6 + $0x98] sm:$0xff] (!%p3836_p3) }
  0x3d   : > { %v440_v18 = vadd.f32 (!%p3836_p3), %v439_v14, %v312_v9  ;;  %v703_v20 = vadd.f32 (!%p3836_p3), %v702_v16, %v576_v11  ;;  %v591_v7 = vmul.f32 (!%p3836_p3), %v326_v1, %v326_v1  ;;  %v328_v9 = vld [vmem:[#allocation6 + $0xa0] sm:$0xff] (!%p3836_p3)  ;;  %v592_v11 = vmul.f32 (!%p3836_p3), %v327_v5, %v327_v5 }
  0x3f   : > { %v441_v22 = vadd.f32 %v440_v18, %v313_v13  ;;  %v704_v24 = vadd.f32 %v703_v20, %v577_v15  ;;  %v329_v13 = vld [vmem:[#allocation6 + $0xa8] sm:$0xff]  ;;  %v593_v15 = vmul.f32 %v328_v9, %v328_v9 }
  0x41   : > { %v442_v26 = vadd.f32 %v441_v22, %v314_v17  ;;  %v705_v28 = vadd.f32 %v704_v24, %v578_v19  ;;  %v330_v17 = vld [vmem:[#allocation6 + $0xb0] sm:$0xff]  ;;  %v594_v19 = vmul.f32 %v329_v13, %v329_v13 }
  0x43   : > { %v443_v30 = vadd.f32 %v442_v26, %v315_v21  ;;  %v706_v32 = vadd.f32 %v705_v28, %v579_v23  ;;  %v331_v21 = vld [vmem:[#allocation6 + $0xb8] sm:$0xff]  ;;  %v595_v23 = vmul.f32 %v330_v17, %v330_v17 }
  0x45   : > { %v444_v34 = vadd.f32 %v443_v30, %v316_v25  ;;  %v707_v36 = vadd.f32 %v706_v32, %v580_v27  ;;  %v332_v25 = vld [vmem:[#allocation6 + $0xc0] sm:$0xff]  ;;  %v596_v27 = vmul.f32 %v331_v21, %v331_v21 }
  0x47   : > { %v445_v38 = vadd.f32 %v444_v34, %v317_v29  ;;  %v708_v40 = vadd.f32 %v707_v36, %v581_v31  ;;  %v333_v29 = vld [vmem:[#allocation6 + $0xc8] sm:$0xff]  ;;  %v597_v31 = vmul.f32 %v332_v25, %v332_v25 }
  0x49   : > { %v446_v42 = vadd.f32 %v445_v38, %v318_v33  ;;  %v709_v44 = vadd.f32 %v708_v40, %v582_v35  ;;  %v334_v33 = vld [vmem:[#allocation6 + $0xd0] sm:$0xff]  ;;  %v598_v35 = vmul.f32 %v333_v29, %v333_v29 }
  0x4b   : > { %v447_v46 = vadd.f32 %v446_v42, %v319_v37  ;;  %v710_v48 = vadd.f32 %v709_v44, %v583_v39  ;;  %v335_v37 = vld [vmem:[#allocation6 + $0xd8] sm:$0xff]  ;;  %v599_v39 = vmul.f32 %v334_v33, %v334_v33 }
  0x4d   : > { %v448_v50 = vadd.f32 %v447_v46, %v320_v41  ;;  %v711_v52 = vadd.f32 %v710_v48, %v584_v43  ;;  %v336_v41 = vld [vmem:[#allocation6 + $0xe0] sm:$0xff]  ;;  %v600_v43 = vmul.f32 %v335_v37, %v335_v37 }
  0x4f   : > { %v449_v54 = vadd.f32 %v448_v50, %v321_v45  ;;  %v712_v56 = vadd.f32 %v711_v52, %v585_v47  ;;  %v337_v45 = vld [vmem:[#allocation6 + $0xe8] sm:$0xff]  ;;  %v601_v47 = vmul.f32 %v336_v41, %v336_v41 }
  0x51   : > { %v450_v58 = vadd.f32 %v449_v54, %v322_v49  ;;  %v713_v60 = vadd.f32 %v712_v56, %v586_v51  ;;  %v338_v49 = vld [vmem:[#allocation6 + $0xf0] sm:$0xff]  ;;  %v602_v51 = vmul.f32 %v337_v45, %v337_v45 }
  0x53   : > { %v451_v62 = vadd.f32 %v450_v58, %v323_v53  ;;  %v714_v0 = vadd.f32 %v713_v60, %v587_v55  ;;  %v339_v53 = vld [vmem:[#allocation6 + $0xf8] sm:$0xff]  ;;  %v603_v55 = vmul.f32 %v338_v49, %v338_v49 }
  0x55   : > { %v452_v2 = vadd.f32 %v451_v62, %v324_v57  ;;  %v715_v4 = vadd.f32 %v714_v0, %v588_v59  ;;  %v340_v57 = vld [vmem:[#allocation6 + $0x100] sm:$0xff]  ;;  %v604_v59 = vmul.f32 %v339_v53, %v339_v53 }
  0x57   : > { %v453_v6 = vadd.f32 %v452_v2, %v325_v61  ;;  %v716_v8 = vadd.f32 %v715_v4, %v589_v63  ;;  %v341_v61 = vld [vmem:[#allocation6 + $0x108] sm:$0xff]  ;;  %v605_v63 = vmul.f32 %v340_v57, %v340_v57 }
  0x59   : > { %v454_v10 = vadd.f32 %v453_v6, %v326_v1  ;;  %v717_v12 = vadd.f32 %v716_v8, %v590_v3  ;;  %v342_v1 = vld [vmem:[#allocation6 + $0x110] sm:$0xff]  ;;  %v606_v3 = vmul.f32 %v341_v61, %v341_v61 }
  0x5b   : > { %v455_v14 = vadd.f32 %v454_v10, %v327_v5  ;;  %v718_v16 = vadd.f32 %v717_v12, %v591_v7  ;;  %v343_v5 = vld [vmem:[#allocation6 + $0x118] sm:$0xff]  ;;  %v607_v7 = vmul.f32 %v342_v1, %v342_v1 }
  0x5d   : > { %v456_v18 = vadd.f32 %v455_v14, %v328_v9  ;;  %v719_v20 = vadd.f32 %v718_v16, %v592_v11  ;;  %v344_v9 = vld [vmem:[#allocation6 + $0x120] sm:$0xff]  ;;  %v608_v11 = vmul.f32 %v343_v5, %v343_v5 }
  0x5f   : > { %v457_v22 = vadd.f32 %v456_v18, %v329_v13  ;;  %v720_v24 = vadd.f32 %v719_v20, %v593_v15  ;;  %v345_v13 = vld [vmem:[#allocation6 + $0x128] sm:$0xff]  ;;  %v609_v15 = vmul.f32 %v344_v9, %v344_v9 }
  0x61   : > { %v458_v26 = vadd.f32 %v457_v22, %v330_v17  ;;  %v721_v28 = vadd.f32 %v720_v24, %v594_v19  ;;  %v346_v17 = vld [vmem:[#allocation6 + $0x130] sm:$0xff]  ;;  %v610_v19 = vmul.f32 %v345_v13, %v345_v13 }
  0x63   : > { %v459_v30 = vadd.f32 %v458_v26, %v331_v21  ;;  %v722_v32 = vadd.f32 %v721_v28, %v595_v23  ;;  %v347_v21 = vld [vmem:[#allocation6 + $0x138] sm:$0xff]  ;;  %v611_v23 = vmul.f32 %v346_v17, %v346_v17 }
  0x65   : > { %v460_v34 = vadd.f32 %v459_v30, %v332_v25  ;;  %v723_v36 = vadd.f32 %v722_v32, %v596_v27  ;;  %v348_v25 = vld [vmem:[#allocation6 + $0x140] sm:$0xff]  ;;  %v612_v27 = vmul.f32 %v347_v21, %v347_v21 }
  0x67   : > { %v461_v38 = vadd.f32 %v460_v34, %v333_v29  ;;  %v724_v40 = vadd.f32 %v723_v36, %v597_v31  ;;  %v349_v29 = vld [vmem:[#allocation6 + $0x148] sm:$0xff]  ;;  %v613_v31 = vmul.f32 %v348_v25, %v348_v25 }
  0x69   : > { %v462_v42 = vadd.f32 %v461_v38, %v334_v33  ;;  %v725_v44 = vadd.f32 %v724_v40, %v598_v35  ;;  %v350_v33 = vld [vmem:[#allocation6 + $0x150] sm:$0xff]  ;;  %v614_v35 = vmul.f32 %v349_v29, %v349_v29 }
  0x6b   : > { %v463_v46 = vadd.f32 %v462_v42, %v335_v37  ;;  %v726_v48 = vadd.f32 %v725_v44, %v599_v39  ;;  %v351_v37 = vld [vmem:[#allocation6 + $0x158] sm:$0xff]  ;;  %v615_v39 = vmul.f32 %v350_v33, %v350_v33 }
  0x6d   : > { %v464_v50 = vadd.f32 %v463_v46, %v336_v41  ;;  %v727_v52 = vadd.f32 %v726_v48, %v600_v43  ;;  %v352_v41 = vld [vmem:[#allocation6 + $0x160] sm:$0xff]  ;;  %v616_v43 = vmul.f32 %v351_v37, %v351_v37 }
  0x6f   : > { %v465_v54 = vadd.f32 %v464_v50, %v337_v45  ;;  %v728_v56 = vadd.f32 %v727_v52, %v601_v47  ;;  %v353_v45 = vld [vmem:[#allocation6 + $0x168] sm:$0xff]  ;;  %v617_v47 = vmul.f32 %v352_v41, %v352_v41 }
  0x71   : > { %v466_v58 = vadd.f32 %v465_v54, %v338_v49  ;;  %v729_v60 = vadd.f32 %v728_v56, %v602_v51  ;;  %v354_v49 = vld [vmem:[#allocation6 + $0x170] sm:$0xff]  ;;  %v618_v51 = vmul.f32 %v353_v45, %v353_v45 }
  0x73   : > { %v467_v62 = vadd.f32 %v466_v58, %v339_v53  ;;  %v730_v0 = vadd.f32 %v729_v60, %v603_v55  ;;  %v355_v53 = vld [vmem:[#allocation6 + $0x178] sm:$0xff]  ;;  %v619_v55 = vmul.f32 %v354_v49, %v354_v49 }
  0x75   : > { %v468_v2 = vadd.f32 %v467_v62, %v340_v57  ;;  %v731_v4 = vadd.f32 %v730_v0, %v604_v59  ;;  %v356_v57 = vld [vmem:[#allocation6 + $0x180] sm:$0xff]  ;;  %v620_v59 = vmul.f32 %v355_v53, %v355_v53 }
  0x77   : > { %v469_v6 = vadd.f32 %v468_v2, %v341_v61  ;;  %v732_v8 = vadd.f32 %v731_v4, %v605_v63  ;;  %v357_v61 = vld [vmem:[#allocation6 + $0x188] sm:$0xff]  ;;  %v621_v63 = vmul.f32 %v356_v57, %v356_v57 }
  0x79   : > { %v470_v10 = vadd.f32 %v469_v6, %v342_v1  ;;  %v733_v12 = vadd.f32 %v732_v8, %v606_v3  ;;  %v358_v1 = vld [vmem:[#allocation6 + $0x190] sm:$0xff]  ;;  %v622_v3 = vmul.f32 %v357_v61, %v357_v61 }
  0x7b   : > { %v471_v14 = vadd.f32 %v470_v10, %v343_v5  ;;  %v734_v16 = vadd.f32 %v733_v12, %v607_v7  ;;  %v359_v5 = vld [vmem:[#allocation6 + $0x198] sm:$0xff]  ;;  %v623_v7 = vmul.f32 %v358_v1, %v358_v1 }
  0x7d   : > { %v472_v18 = vadd.f32 %v471_v14, %v344_v9  ;;  %v735_v20 = vadd.f32 %v734_v16, %v608_v11  ;;  %v360_v9 = vld [vmem:[#allocation6 + $0x1a0] sm:$0xff]  ;;  %v624_v11 = vmul.f32 %v359_v5, %v359_v5 }
  0x7f   : > { %v473_v22 = vadd.f32 %v472_v18, %v345_v13  ;;  %v736_v24 = vadd.f32 %v735_v20, %v609_v15  ;;  %v361_v13 = vld [vmem:[#allocation6 + $0x1a8] sm:$0xff]  ;;  %v625_v15 = vmul.f32 %v360_v9, %v360_v9 }
  0x81   : > { %v474_v26 = vadd.f32 %v473_v22, %v346_v17  ;;  %v737_v28 = vadd.f32 %v736_v24, %v610_v19  ;;  %v362_v17 = vld [vmem:[#allocation6 + $0x1b0] sm:$0xff]  ;;  %v626_v19 = vmul.f32 %v361_v13, %v361_v13 }
  0x83   : > { %v475_v30 = vadd.f32 %v474_v26, %v347_v21  ;;  %v738_v32 = vadd.f32 %v737_v28, %v611_v23  ;;  %v363_v21 = vld [vmem:[#allocation6 + $0x1b8] sm:$0xff]  ;;  %v627_v23 = vmul.f32 %v362_v17, %v362_v17 }
  0x85   : > { %v476_v34 = vadd.f32 %v475_v30, %v348_v25  ;;  %v739_v36 = vadd.f32 %v738_v32, %v612_v27  ;;  %v364_v25 = vld [vmem:[#allocation6 + $0x1c0] sm:$0xff]  ;;  %v628_v27 = vmul.f32 %v363_v21, %v363_v21 }
  0x87   : > { %v477_v38 = vadd.f32 %v476_v34, %v349_v29  ;;  %v740_v40 = vadd.f32 %v739_v36, %v613_v31  ;;  %v365_v29 = vld [vmem:[#allocation6 + $0x1c8] sm:$0xff]  ;;  %v629_v31 = vmul.f32 %v364_v25, %v364_v25 }
  0x89   : > { %v478_v42 = vadd.f32 %v477_v38, %v350_v33  ;;  %v741_v44 = vadd.f32 %v740_v40, %v614_v35  ;;  %v366_v33 = vld [vmem:[#allocation6 + $0x1d0] sm:$0xff]  ;;  %v630_v35 = vmul.f32 %v365_v29, %v365_v29 }
  0x8b   : > { %v479_v46 = vadd.f32 %v478_v42, %v351_v37  ;;  %v742_v48 = vadd.f32 %v741_v44, %v615_v39  ;;  %v367_v37 = vld [vmem:[#allocation6 + $0x1d8] sm:$0xff]  ;;  %v631_v39 = vmul.f32 %v366_v33, %v366_v33 }
  0x8d   : > { %v480_v50 = vadd.f32 %v479_v46, %v352_v41  ;;  %v743_v52 = vadd.f32 %v742_v48, %v616_v43  ;;  %v368_v41 = vld [vmem:[#allocation6 + $0x1e0] sm:$0xff]  ;;  %v632_v43 = vmul.f32 %v367_v37, %v367_v37 }
  0x8f   : > { %v481_v54 = vadd.f32 %v480_v50, %v353_v45  ;;  %v744_v56 = vadd.f32 %v743_v52, %v617_v47  ;;  %v369_v45 = vld [vmem:[#allocation6 + $0x1e8] sm:$0xff]  ;;  %v633_v47 = vmul.f32 %v368_v41, %v368_v41 }
  0x91   : > { %v482_v58 = vadd.f32 %v481_v54, %v354_v49  ;;  %v745_v60 = vadd.f32 %v744_v56, %v618_v51  ;;  %v370_v49 = vld [vmem:[#allocation6 + $0x1f0] sm:$0xff]  ;;  %v634_v51 = vmul.f32 %v369_v45, %v369_v45 }
  0x93   : > { %v483_v62 = vadd.f32 %v482_v58, %v355_v53  ;;  %v746_v0 = vadd.f32 %v745_v60, %v619_v55  ;;  %v371_v53 = vld [vmem:[#allocation6 + $0x1f8] sm:$0xff]  ;;  %v635_v55 = vmul.f32 %v370_v49, %v370_v49 }
  0x95   : > { %v484_v2 = vadd.f32 %v483_v62, %v356_v57  ;;  %v747_v4 = vadd.f32 %v746_v0, %v620_v59  ;;  %v372_v57 = vld [vmem:[#allocation6 + $0x200] sm:$0xff]  ;;  %v636_v59 = vmul.f32 %v371_v53, %v371_v53 }
  0x97   : > { %v485_v6 = vadd.f32 %v484_v2, %v357_v61  ;;  %v748_v8 = vadd.f32 %v747_v4, %v621_v63  ;;  %v373_v61 = vld [vmem:[#allocation6 + $0x208] sm:$0xff]  ;;  %v637_v63 = vmul.f32 %v372_v57, %v372_v57 }
  0x99   : > { %v486_v10 = vadd.f32 %v485_v6, %v358_v1  ;;  %v749_v12 = vadd.f32 %v748_v8, %v622_v3  ;;  %v374_v1 = vld [vmem:[#allocation6 + $0x210] sm:$0xff]  ;;  %v638_v3 = vmul.f32 %v373_v61, %v373_v61 }
  0x9b   : > { %v487_v14 = vadd.f32 %v486_v10, %v359_v5  ;;  %v750_v16 = vadd.f32 %v749_v12, %v623_v7  ;;  %v375_v5 = vld [vmem:[#allocation6 + $0x218] sm:$0xff]  ;;  %v639_v7 = vmul.f32 %v374_v1, %v374_v1 }
  0x9d   : > { %v488_v18 = vadd.f32 %v487_v14, %v360_v9  ;;  %v751_v20 = vadd.f32 %v750_v16, %v624_v11  ;;  %v376_v9 = vld [vmem:[#allocation6 + $0x220] sm:$0xff]  ;;  %v640_v11 = vmul.f32 %v375_v5, %v375_v5 }
  0x9f   : > { %v489_v22 = vadd.f32 %v488_v18, %v361_v13  ;;  %v752_v24 = vadd.f32 %v751_v20, %v625_v15  ;;  %v377_v13 = vld [vmem:[#allocation6 + $0x228] sm:$0xff]  ;;  %v641_v15 = vmul.f32 %v376_v9, %v376_v9 }
  0xa1   : > { %v490_v26 = vadd.f32 %v489_v22, %v362_v17  ;;  %v753_v28 = vadd.f32 %v752_v24, %v626_v19  ;;  %v378_v17 = vld [vmem:[#allocation6 + $0x230] sm:$0xff]  ;;  %v642_v19 = vmul.f32 %v377_v13, %v377_v13 }
  0xa3   : > { %v491_v30 = vadd.f32 %v490_v26, %v363_v21  ;;  %v754_v32 = vadd.f32 %v753_v28, %v627_v23  ;;  %v379_v21 = vld [vmem:[#allocation6 + $0x238] sm:$0xff]  ;;  %v643_v23 = vmul.f32 %v378_v17, %v378_v17 }
  0xa5   : > { %v492_v34 = vadd.f32 %v491_v30, %v364_v25  ;;  %v755_v36 = vadd.f32 %v754_v32, %v628_v27  ;;  %v380_v25 = vld [vmem:[#allocation6 + $0x240] sm:$0xff]  ;;  %v644_v27 = vmul.f32 %v379_v21, %v379_v21 }
  0xa7   : > { %v493_v38 = vadd.f32 %v492_v34, %v365_v29  ;;  %v756_v40 = vadd.f32 %v755_v36, %v629_v31  ;;  %v381_v29 = vld [vmem:[#allocation6 + $0x248] sm:$0xff]  ;;  %v645_v31 = vmul.f32 %v380_v25, %v380_v25 }
  0xa9   : > { %v494_v42 = vadd.f32 %v493_v38, %v366_v33  ;;  %v757_v44 = vadd.f32 %v756_v40, %v630_v35  ;;  %v382_v33 = vld [vmem:[#allocation6 + $0x250] sm:$0xff]  ;;  %v646_v35 = vmul.f32 %v381_v29, %v381_v29 }
  0xab   : > { %v495_v46 = vadd.f32 %v494_v42, %v367_v37  ;;  %v758_v48 = vadd.f32 %v757_v44, %v631_v39  ;;  %v383_v37 = vld [vmem:[#allocation6 + $0x258] sm:$0xff]  ;;  %v647_v39 = vmul.f32 %v382_v33, %v382_v33 }
  0xad   : > { %v496_v50 = vadd.f32 %v495_v46, %v368_v41  ;;  %v759_v52 = vadd.f32 %v758_v48, %v632_v43  ;;  %v384_v41 = vld [vmem:[#allocation6 + $0x260] sm:$0xff]  ;;  %v648_v43 = vmul.f32 %v383_v37, %v383_v37 }
  0xaf   : > { %v497_v54 = vadd.f32 %v496_v50, %v369_v45  ;;  %v760_v56 = vadd.f32 %v759_v52, %v633_v47  ;;  %v385_v45 = vld [vmem:[#allocation6 + $0x268] sm:$0xff]  ;;  %v649_v47 = vmul.f32 %v384_v41, %v384_v41 }
  0xb1   : > { %v498_v58 = vadd.f32 %v497_v54, %v370_v49  ;;  %v761_v60 = vadd.f32 %v760_v56, %v634_v51  ;;  %v386_v49 = vld [vmem:[#allocation6 + $0x270] sm:$0xff]  ;;  %v650_v51 = vmul.f32 %v385_v45, %v385_v45 }
  0xb3   : > { %v499_v62 = vadd.f32 %v498_v58, %v371_v53  ;;  %v762_v0 = vadd.f32 %v761_v60, %v635_v55  ;;  %v387_v53 = vld [vmem:[#allocation6 + $0x278] sm:$0xff]  ;;  %v651_v55 = vmul.f32 %v386_v49, %v386_v49 }
  0xb5   : > { %v500_v2 = vadd.f32 %v499_v62, %v372_v57  ;;  %v763_v4 = vadd.f32 %v762_v0, %v636_v59  ;;  %v388_v57 = vld [vmem:[#allocation6 + $0x280] sm:$0xff]  ;;  %v652_v59 = vmul.f32 %v387_v53, %v387_v53 }
  0xb7   : > { %v501_v6 = vadd.f32 %v500_v2, %v373_v61  ;;  %v764_v8 = vadd.f32 %v763_v4, %v637_v63  ;;  %v389_v61 = vld [vmem:[#allocation6 + $0x288] sm:$0xff]  ;;  %v653_v63 = vmul.f32 %v388_v57, %v388_v57 }
  0xb9   : > { %v502_v10 = vadd.f32 %v501_v6, %v374_v1  ;;  %v765_v12 = vadd.f32 %v764_v8, %v638_v3  ;;  %v390_v1 = vld [vmem:[#allocation6 + $0x290] sm:$0xff]  ;;  %v654_v3 = vmul.f32 %v389_v61, %v389_v61 }
  0xbb   : > { %v503_v14 = vadd.f32 %v502_v10, %v375_v5  ;;  %v766_v16 = vadd.f32 %v765_v12, %v639_v7  ;;  %v391_v5 = vld [vmem:[#allocation6 + $0x298] sm:$0xff]  ;;  %v655_v7 = vmul.f32 %v390_v1, %v390_v1 }
  0xbd   : > { %v504_v18 = vadd.f32 %v503_v14, %v376_v9  ;;  %v767_v20 = vadd.f32 %v766_v16, %v640_v11  ;;  %v392_v9 = vld [vmem:[#allocation6 + $0x2a0] sm:$0xff]  ;;  %v656_v11 = vmul.f32 %v391_v5, %v391_v5 }
  0xbf   : > { %v505_v22 = vadd.f32 %v504_v18, %v377_v13  ;;  %v768_v24 = vadd.f32 %v767_v20, %v641_v15  ;;  %v393_v13 = vld [vmem:[#allocation6 + $0x2a8] sm:$0xff]  ;;  %v657_v15 = vmul.f32 %v392_v9, %v392_v9 }
  0xc1   : > { %v506_v26 = vadd.f32 %v505_v22, %v378_v17  ;;  %v769_v28 = vadd.f32 %v768_v24, %v642_v19  ;;  %v394_v17 = vld [vmem:[#allocation6 + $0x2b0] sm:$0xff]  ;;  %v658_v19 = vmul.f32 %v393_v13, %v393_v13 }
  0xc3   : > { %v507_v30 = vadd.f32 %v506_v26, %v379_v21  ;;  %v770_v32 = vadd.f32 %v769_v28, %v643_v23  ;;  %v395_v21 = vld [vmem:[#allocation6 + $0x2b8] sm:$0xff]  ;;  %v659_v23 = vmul.f32 %v394_v17, %v394_v17 }
  0xc5   : > { %v508_v34 = vadd.f32 %v507_v30, %v380_v25  ;;  %v771_v36 = vadd.f32 %v770_v32, %v644_v27  ;;  %v396_v25 = vld [vmem:[#allocation6 + $0x2c0] sm:$0xff]  ;;  %v660_v27 = vmul.f32 %v395_v21, %v395_v21 }
  0xc7   : > { %v509_v38 = vadd.f32 %v508_v34, %v381_v29  ;;  %v772_v40 = vadd.f32 %v771_v36, %v645_v31  ;;  %v397_v29 = vld [vmem:[#allocation6 + $0x2c8] sm:$0xff]  ;;  %v661_v31 = vmul.f32 %v396_v25, %v396_v25 }
  0xc9   : > { %v510_v42 = vadd.f32 %v509_v38, %v382_v33  ;;  %v773_v44 = vadd.f32 %v772_v40, %v646_v35  ;;  %v398_v33 = vld [vmem:[#allocation6 + $0x2d0] sm:$0xff]  ;;  %v662_v35 = vmul.f32 %v397_v29, %v397_v29 }
  0xcb   : > { %v511_v46 = vadd.f32 %v510_v42, %v383_v37  ;;  %v774_v48 = vadd.f32 %v773_v44, %v647_v39  ;;  %v399_v37 = vld [vmem:[#allocation6 + $0x2d8] sm:$0xff]  ;;  %v663_v39 = vmul.f32 %v398_v33, %v398_v33 }
  0xcd   : > { %v512_v50 = vadd.f32 %v511_v46, %v384_v41  ;;  %v775_v52 = vadd.f32 %v774_v48, %v648_v43  ;;  %v400_v41 = vld [vmem:[#allocation6 + $0x2e0] sm:$0xff]  ;;  %v664_v43 = vmul.f32 %v399_v37, %v399_v37 }
  0xcf   : > { %v513_v54 = vadd.f32 %v512_v50, %v385_v45  ;;  %v776_v56 = vadd.f32 %v775_v52, %v649_v47  ;;  %v401_v45 = vld [vmem:[#allocation6 + $0x2e8] sm:$0xff]  ;;  %v665_v47 = vmul.f32 %v400_v41, %v400_v41 }
  0xd1   : > { %v514_v58 = vadd.f32 %v513_v54, %v386_v49  ;;  %v777_v60 = vadd.f32 %v776_v56, %v650_v51  ;;  %v402_v49 = vld [vmem:[#allocation6 + $0x2f0] sm:$0xff]  ;;  %v666_v51 = vmul.f32 %v401_v45, %v401_v45 }
  0xd3   : > { %v515_v62 = vadd.f32 %v514_v58, %v387_v53  ;;  %v778_v0 = vadd.f32 %v777_v60, %v651_v55  ;;  %v403_v53 = vld [vmem:[#allocation6 + $0x2f8] sm:$0xff]  ;;  %v667_v55 = vmul.f32 %v402_v49, %v402_v49 }
  0xd5   : > { %v516_v2 = vadd.f32 %v515_v62, %v388_v57  ;;  %v779_v4 = vadd.f32 %v778_v0, %v652_v59  ;;  %v404_v57 = vld [vmem:[#allocation6 + $0x300] sm:$0xff]  ;;  %v668_v59 = vmul.f32 %v403_v53, %v403_v53 }
  0xd7   : > { %v517_v6 = vadd.f32 %v516_v2, %v389_v61  ;;  %v780_v8 = vadd.f32 %v779_v4, %v653_v63  ;;  %v405_v61 = vld [vmem:[#allocation6 + $0x308] sm:$0xff]  ;;  %v669_v63 = vmul.f32 %v404_v57, %v404_v57 }
  0xd9   : > { %v518_v10 = vadd.f32 %v517_v6, %v390_v1  ;;  %v781_v12 = vadd.f32 %v780_v8, %v654_v3  ;;  %v406_v1 = vld [vmem:[#allocation6 + $0x310] sm:$0xff]  ;;  %v670_v3 = vmul.f32 %v405_v61, %v405_v61 }
  0xdb   : > { %v519_v14 = vadd.f32 %v518_v10, %v391_v5  ;;  %v782_v16 = vadd.f32 %v781_v12, %v655_v7  ;;  %v407_v5 = vld [vmem:[#allocation6 + $0x318] sm:$0xff]  ;;  %v671_v7 = vmul.f32 %v406_v1, %v406_v1 }
  0xdd   : > { %v520_v18 = vadd.f32 %v519_v14, %v392_v9  ;;  %v783_v20 = vadd.f32 %v782_v16, %v656_v11  ;;  %v408_v9 = vld [vmem:[#allocation6 + $0x320] sm:$0xff]  ;;  %v672_v11 = vmul.f32 %v407_v5, %v407_v5 }
  0xdf   : > { %v521_v22 = vadd.f32 %v520_v18, %v393_v13  ;;  %v784_v24 = vadd.f32 %v783_v20, %v657_v15  ;;  %v409_v13 = vld [vmem:[#allocation6 + $0x328] sm:$0xff]  ;;  %v673_v15 = vmul.f32 %v408_v9, %v408_v9 }
  0xe1   : > { %v522_v26 = vadd.f32 %v521_v22, %v394_v17  ;;  %v785_v28 = vadd.f32 %v784_v24, %v658_v19  ;;  %v410_v17 = vld [vmem:[#allocation6 + $0x330] sm:$0xff]  ;;  %v674_v19 = vmul.f32 %v409_v13, %v409_v13 }
  0xe3   : > { %v523_v30 = vadd.f32 %v522_v26, %v395_v21  ;;  %v786_v32 = vadd.f32 %v785_v28, %v659_v23  ;;  %v411_v21 = vld [vmem:[#allocation6 + $0x338] sm:$0xff]  ;;  %v675_v23 = vmul.f32 %v410_v17, %v410_v17 }
  0xe5   : > { %v524_v34 = vadd.f32 %v523_v30, %v396_v25  ;;  %v787_v36 = vadd.f32 %v786_v32, %v660_v27  ;;  %v412_v25 = vld [vmem:[#allocation6 + $0x340] sm:$0xff]  ;;  %v676_v27 = vmul.f32 %v411_v21, %v411_v21 }
  0xe7   : > { %v525_v38 = vadd.f32 %v524_v34, %v397_v29  ;;  %v788_v40 = vadd.f32 %v787_v36, %v661_v31  ;;  %v413_v29 = vld [vmem:[#allocation6 + $0x348] sm:$0xff]  ;;  %v677_v31 = vmul.f32 %v412_v25, %v412_v25 }
  0xe9   : > { %v526_v42 = vadd.f32 %v525_v38, %v398_v33  ;;  %v789_v44 = vadd.f32 %v788_v40, %v662_v35  ;;  %v414_v33 = vld [vmem:[#allocation6 + $0x350] sm:$0xff]  ;;  %v678_v35 = vmul.f32 %v413_v29, %v413_v29 }
  0xeb   : > { %v527_v46 = vadd.f32 %v526_v42, %v399_v37  ;;  %v790_v48 = vadd.f32 %v789_v44, %v663_v39  ;;  %v415_v37 = vld [vmem:[#allocation6 + $0x358] sm:$0xff]  ;;  %v679_v39 = vmul.f32 %v414_v33, %v414_v33 }
  0xed   : > { %v528_v50 = vadd.f32 %v527_v46, %v400_v41  ;;  %v791_v52 = vadd.f32 %v790_v48, %v664_v43  ;;  %v416_v41 = vld [vmem:[#allocation6 + $0x360] sm:$0xff]  ;;  %v680_v43 = vmul.f32 %v415_v37, %v415_v37 }
  0xef   : > { %v529_v54 = vadd.f32 %v528_v50, %v401_v45  ;;  %v792_v56 = vadd.f32 %v791_v52, %v665_v47  ;;  %v417_v45 = vld [vmem:[#allocation6 + $0x368] sm:$0xff]  ;;  %v681_v47 = vmul.f32 %v416_v41, %v416_v41 }
  0xf1   : > { %v530_v58 = vadd.f32 %v529_v54, %v402_v49  ;;  %v793_v60 = vadd.f32 %v792_v56, %v666_v51  ;;  %v418_v49 = vld [vmem:[#allocation6 + $0x370] sm:$0xff]  ;;  %v682_v51 = vmul.f32 %v417_v45, %v417_v45 }
  0xf3   : > { %v531_v62 = vadd.f32 %v530_v58, %v403_v53  ;;  %v794_v0 = vadd.f32 %v793_v60, %v667_v55  ;;  %v419_v53 = vld [vmem:[#allocation6 + $0x378] sm:$0xff]  ;;  %v683_v55 = vmul.f32 %v418_v49, %v418_v49 }
  0xf5   : > { %v532_v2 = vadd.f32 %v531_v62, %v404_v57  ;;  %v795_v4 = vadd.f32 %v794_v0, %v668_v59  ;;  %v420_v57 = vld [vmem:[#allocation6 + $0x380] sm:$0xff]  ;;  %v684_v59 = vmul.f32 %v419_v53, %v419_v53 }
  0xf7   : > { %v533_v6 = vadd.f32 %v532_v2, %v405_v61  ;;  %v796_v8 = vadd.f32 %v795_v4, %v669_v63  ;;  %v421_v61 = vld [vmem:[#allocation6 + $0x388] sm:$0xff]  ;;  %v685_v63 = vmul.f32 %v420_v57, %v420_v57 }
  0xf9   : > { %v534_v10 = vadd.f32 %v533_v6, %v406_v1  ;;  %v797_v12 = vadd.f32 %v796_v8, %v670_v3  ;;  %v422_v1 = vld [vmem:[#allocation6 + $0x390] sm:$0xff]  ;;  %v686_v3 = vmul.f32 %v421_v61, %v421_v61 }
  0xfb   : > { %v535_v14 = vadd.f32 %v534_v10, %v407_v5  ;;  %v798_v16 = vadd.f32 %v797_v12, %v671_v7  ;;  %v423_v5 = vld [vmem:[#allocation6 + $0x398] sm:$0xff]  ;;  %v687_v7 = vmul.f32 %v422_v1, %v422_v1 }
  0xfd   : > { %v536_v18 = vadd.f32 %v535_v14, %v408_v9  ;;  %v799_v20 = vadd.f32 %v798_v16, %v672_v11  ;;  %v424_v9 = vld [vmem:[#allocation6 + $0x3a0] sm:$0xff]  ;;  %v688_v11 = vmul.f32 %v423_v5, %v423_v5 }
  0xff   : > { %v537_v22 = vadd.f32 %v536_v18, %v409_v13  ;;  %v800_v24 = vadd.f32 %v799_v20, %v673_v15  ;;  %v425_v13 = vld [vmem:[#allocation6 + $0x3a8] sm:$0xff]  ;;  %v689_v15 = vmul.f32 %v424_v9, %v424_v9 }
 0x101   : > { %v538_v26 = vadd.f32 %v537_v22, %v410_v17  ;;  %v801_v28 = vadd.f32 %v800_v24, %v674_v19  ;;  %v426_v17 = vld [vmem:[#allocation6 + $0x3b0] sm:$0xff]  ;;  %v690_v19 = vmul.f32 %v425_v13, %v425_v13 }
 0x103   : > { %v539_v30 = vadd.f32 %v538_v26, %v411_v21  ;;  %v802_v32 = vadd.f32 %v801_v28, %v675_v23  ;;  %v427_v21 = vld [vmem:[#allocation6 + $0x3b8] sm:$0xff]  ;;  %v691_v23 = vmul.f32 %v426_v17, %v426_v17 }
 0x105   : > { %v540_v34 = vadd.f32 %v539_v30, %v412_v25  ;;  %v803_v36 = vadd.f32 %v802_v32, %v676_v27  ;;  %v428_v25 = vld [vmem:[#allocation6 + $0x3c0] sm:$0xff]  ;;  %v692_v27 = vmul.f32 %v427_v21, %v427_v21 }
 0x107   : > { %v541_v38 = vadd.f32 %v540_v34, %v413_v29  ;;  %v804_v40 = vadd.f32 %v803_v36, %v677_v31  ;;  %v429_v29 = vld [vmem:[#allocation6 + $0x3c8] sm:$0xff]  ;;  %v693_v31 = vmul.f32 %v428_v25, %v428_v25 }
 0x109   : > { %v542_v42 = vadd.f32 %v541_v38, %v414_v33  ;;  %v805_v44 = vadd.f32 %v804_v40, %v678_v35  ;;  %v430_v33 = vld [vmem:[#allocation6 + $0x3d0] sm:$0xff]  ;;  %v694_v35 = vmul.f32 %v429_v29, %v429_v29 }
 0x10b   : > { %v543_v46 = vadd.f32 %v542_v42, %v415_v37  ;;  %v806_v48 = vadd.f32 %v805_v44, %v679_v39  ;;  %v431_v37 = vld [vmem:[#allocation6 + $0x3d8] sm:$0xff]  ;;  %v695_v39 = vmul.f32 %v430_v33, %v430_v33 }
 0x10d   : > { %v544_v50 = vadd.f32 %v543_v46, %v416_v41  ;;  %v807_v52 = vadd.f32 %v806_v48, %v680_v43  ;;  %v432_v41 = vld [vmem:[#allocation6 + $0x3e0] sm:$0xff]  ;;  %v696_v43 = vmul.f32 %v431_v37, %v431_v37 }
 0x10f   : > { %v545_v54 = vadd.f32 %v544_v50, %v417_v45  ;;  %v808_v56 = vadd.f32 %v807_v52, %v681_v47  ;;  %v433_v45 = vld [vmem:[#allocation6 + $0x3e8] sm:$0xff]  ;;  %v697_v47 = vmul.f32 %v432_v41, %v432_v41 }
 0x111   : > { %v546_v58 = vadd.f32 %v545_v54, %v418_v49  ;;  %v809_v60 = vadd.f32 %v808_v56, %v682_v51  ;;  %v434_v49 = vld [vmem:[#allocation6 + $0x3f0] sm:$0xff]  ;;  %v698_v51 = vmul.f32 %v433_v45, %v433_v45 }
 0x113   : > { %v547_v62 = vadd.f32 %v546_v58, %v419_v53  ;;  %v810_v0 = vadd.f32 %v809_v60, %v683_v55  ;;  %v435_v53 = vld [vmem:[#allocation6 + $0x3f8] sm:$0xff]  ;;  %v699_v55 = vmul.f32 %v434_v49, %v434_v49 }
 0x114   : > { %v700_v58 = vmul.f32 %v435_v53, %v435_v53 }
 0x115   : > { %v548_v2 = vadd.f32 %v547_v62, %v420_v57  ;;  %v811_v4 = vadd.f32 %v810_v0, %v684_v59 }
 0x117   : > { %v549_v6 = vadd.f32 %v548_v2, %v421_v61  ;;  %v812_v8 = vadd.f32 %v811_v4, %v685_v63 }
 0x119   : > { %v550_v10 = vadd.f32 %v549_v6, %v422_v1  ;;  %v813_v12 = vadd.f32 %v812_v8, %v686_v3 }
 0x11b   : > { %v551_v14 = vadd.f32 %v550_v10, %v423_v5  ;;  %v814_v16 = vadd.f32 %v813_v12, %v687_v7  ;;  %v436_v7 = vld [vmem:[#allocation2] sm:$0x1]  ;;  %v572_v12 = vld [vmem:[#allocation3] sm:$0x1] }
 0x11d   : > { %v552_v18 = vadd.f32 %v551_v14, %v424_v9  ;;  %v815_v20 = vadd.f32 %v814_v16, %v688_v11 }
 0x11f   : > { %v553_v22 = vadd.f32 %v552_v18, %v425_v13  ;;  %v816_v24 = vadd.f32 %v815_v20, %v689_v15 }
 0x121   : > { %v554_v26 = vadd.f32 %v553_v22, %v426_v17  ;;  %v817_v28 = vadd.f32 %v816_v24, %v690_v19 }
 0x123   : > { %v555_v30 = vadd.f32 %v554_v26, %v427_v21  ;;  %v818_v32 = vadd.f32 %v817_v28, %v691_v23 }
 0x125   : > { %v556_v34 = vadd.f32 %v555_v30, %v428_v25  ;;  %v819_v36 = vadd.f32 %v818_v32, %v692_v27 }
 0x127   : > { %v557_v38 = vadd.f32 %v556_v34, %v429_v29  ;;  %v820_v40 = vadd.f32 %v819_v36, %v693_v31 }
 0x129   : > { %v558_v42 = vadd.f32 %v557_v38, %v430_v33  ;;  %v821_v44 = vadd.f32 %v820_v40, %v694_v35 }
 0x12b   : > { %v559_v46 = vadd.f32 %v558_v42, %v431_v37  ;;  %v822_v48 = vadd.f32 %v821_v44, %v695_v39 }
 0x12d   : > { %v560_v50 = vadd.f32 %v559_v46, %v432_v41  ;;  %v823_v52 = vadd.f32 %v822_v48, %v696_v43 }
 0x12f   : > { %v561_v54 = vadd.f32 %v560_v50, %v433_v45  ;;  %v824_v56 = vadd.f32 %v823_v52, %v697_v47 }
 0x131   : > { %v562_v57 = vadd.f32 %v561_v54, %v434_v49  ;;  %v825_v59 = vadd.f32 %v824_v56, %v698_v51 }
 0x133   : > { %v563_v60 = vadd.f32 %v562_v57, %v435_v53  ;;  %v826_v61 = vadd.f32 %v825_v59, %v699_v55 }
 0x135   : > { %v564_v62 = vrot.slane %v563_v60, 4  ;;  %v827_v63 = vadd.f32 %v826_v61, %v700_v58 }
 0x137   : > { %v565_v0 = vadd.f32 %v564_v62, %v563_v60  ;;  %v828_v1 = vrot.slane %v827_v63, 4 }
 0x139   : > { %v566_v2 = vrot.slane %v565_v0, 2  ;;  %v829_v3 = vadd.f32 %v828_v1, %v827_v63 }
 0x13b   : > { %v567_v4 = vadd.f32 %v566_v2, %v565_v0  ;;  %v830_v5 = vrot.slane %v829_v3, 2 }
 0x13d   : > { %v568_v6 = vrot.slane %v567_v4, 1  ;;  %v831_v8 = vadd.f32 %v830_v5, %v829_v3 }
 0x13f   : > { %v569_v9 = vadd.f32 %v568_v6, %v567_v4  ;;  %v832_v10 = vrot.slane %v831_v8, 1 }
 0x141   : > { %v570_v11 = vadd.f32 %v569_v9, %v436_v7  ;;  %v833_v13 = vadd.f32 %v832_v10, %v831_v8 }
 0x143   : > { %571 = vst [vmem:[#allocation2] sm:$0x1] %v570_v11  ;;  %v834_v14 = vadd.f32 %v833_v13, %v572_v12 }
 0x145   : > { %835 = vst [vmem:[#allocation3] sm:$0x1] %v834_v14 }
 0x146 PF: > { %p836_p6 = scmp.eq.s32.totalorder %s5211_s24, 1 }
 0x147   : > { %v5225_v19 = vmov (%p836_p6), 0.0   ;;  %v847_v23 = vld [vmem:[%s6907_s1] sm:$0x1] (%p836_p6) }
 0x148   : > { %840 = sbr.rel (!%p836_p6) target bundleno = 357 (0x165), region = 56  ;;  %856 = vst [vmem:[%s6912_s6] sm:$0x1] (%p836_p6), %v5225_v19  ;;  %857 = vst [vmem:[%s6913_s7] sm:$0x1] (%p836_p6), %v5225_v19  ;;  %v852_v26 = vld [vmem:[%s6908_s2] sm:$0x1] (%p836_p6) }
 0x14a   : > { %v841_v15 = vld [vmem:[#allocation2] sm:$0x1] (%p836_p6) }
 0x14b   : > { %v842_v17 = vmul.f32 (%p836_p6), 0.0009765625, %v841_v15 }
 0x14c   : > { %v843_v16 = vld [vmem:[#allocation3] sm:$0x1] (%p836_p6) }
 0x14d   : > { %v844_v18 = vmul.f32 (%p836_p6), 0.0009765625, %v843_v16  ;;  %v845_v20 = vmul.f32 (%p836_p6), %v842_v17, %v842_v17 }
 0x14f   : > { %v846_v21 = vsub.f32 %v844_v18, %v845_v20 }
 0x151   : > { %v848_v22 = vadd.f32 1e-05, %v846_v21 }
 0x153   : > { %4894 = vrsqrt.f32 %v848_v22 }
 0x15d   : > { %v4895_v24 = vpop.eup %4894 }
 0x15e   : > { %v850_v25 = vmul.f32 %v4895_v24, %v847_v23 }
 0x160   : > { %851 = vst [vmem:[#allocation4] sm:$0x1] %v850_v25  ;;  %v853_v27 = vmul.f32 %v850_v25, %v842_v17 }
 0x162   : > { %v854_v28 = vsub.f32 %v852_v26, %v853_v27 }
 0x164   : > { %855 = vst [vmem:[#allocation5] sm:$0x1] %v854_v28 }
 0x165 PF: > { %p3838_p8 = scmp.ne.s32.totalorder %s5211_s24, 1 }
 0x166   : > { %v4896_v29 = vld [vmem:[%s6909_s3] sm:$0xff] (!%p3838_p8)   ;;  %v4897_v30 = vld [vmem:[%s6909_s3 + $0x8] sm:$0xff] (!%p3838_p8)   ;;  %v4898_v31 = vld [vmem:[%s6909_s3 + $0x10] sm:$0xff] (!%p3838_p8)  }
 0x167   : > { %860 = sbr.rel (%p3838_p8) target bundleno = 909 (0x38d), region = 60  ;;  %4695 = vmatprep.subr.bf16.mxu0 (!%p3838_p8), %v4896_v29  ;;  %4839 = vmatprep.subr.bf16.mxu1 (!%p3838_p8), %v4896_v29  ;;  %v4899_v32 = vld [vmem:[%s6909_s3 + $0x18] sm:$0xff] (!%p3838_p8)   ;;  %v861_v33 = vld [vmem:[#allocation6] sm:$0xff] (!%p3838_p8)  ;;  %v862_v34 = vld [vmem:[#allocation6 + $0x8] sm:$0xff] (!%p3838_p8) }
 0x168   : > { %4696 = vmatpush3.bf16.msra.mxu0 (!%p3838_p8), %v4896_v29  ;;  %4847 = vmatpush3.bf16.msra.mxu1 (!%p3838_p8), %v4896_v29  ;;  %v5353_v35 = vld [vmem:[#allocation4] ss:$0 sm:$0xff] (!%p3838_p8)  ;;  %v863_v39 = vld [vmem:[#allocation6 + $0x10] sm:$0xff] (!%p3838_p8)  ;;  %v865_v43 = vld [vmem:[#allocation6 + $0x20] sm:$0xff] (!%p3838_p8) }
 0x169   : > { %4697 = vmatprep.subr.bf16.mxu0 (!%p3838_p8), %v4897_v30  ;;  %4840 = vmatprep.subr.bf16.mxu1 (!%p3838_p8), %v4897_v30  ;;  %v996_v36 = vmul.f32 (!%p3838_p8), %v5353_v35, %v861_v33  ;;  %v997_v37 = vmul.f32 (!%p3838_p8), %v5353_v35, %v862_v34  ;;  %v864_v40 = vld [vmem:[#allocation6 + $0x18] sm:$0xff] (!%p3838_p8)  ;;  %v998_v41 = vmul.f32 (!%p3838_p8), %v5353_v35, %v863_v39  ;;  %v866_v44 = vld [vmem:[#allocation6 + $0x28] sm:$0xff] (!%p3838_p8)  ;;  %v867_v45 = vld [vmem:[#allocation6 + $0x30] sm:$0xff] (!%p3838_p8) }
 0x16a   : > { %v999_v42 = vmul.f32 (!%p3838_p8), %v5353_v35, %v864_v40  ;;  %v1000_v48 = vmul.f32 (!%p3838_p8), %v5353_v35, %v865_v43  ;;  %v1001_v49 = vmul.f32 (!%p3838_p8), %v5353_v35, %v866_v44  ;;  %v868_v50 = vld [vmem:[#allocation6 + $0x38] sm:$0xff] (!%p3838_p8)  ;;  %v1002_v54 = vmul.f32 (!%p3838_p8), %v5353_v35, %v867_v45  ;;  %v4901_v0 = vld [vmem:[%s6909_s3 + $0x28] sm:$0xff] (!%p3838_p8)   ;;  %v871_v9 = vld [vmem:[#allocation6 + $0x50] sm:$0xff] (!%p3838_p8) }
 0x16b   : > { %v5357_v38 = vld [vmem:[#allocation5] ss:$0 sm:$0xff] (!%p3838_p8)  ;;  %v1003_v55 = vmul.f32 (!%p3838_p8), %v5353_v35, %v868_v50  ;;  %v869_v6 = vld [vmem:[#allocation6 + $0x40] sm:$0xff] (!%p3838_p8)  ;;  %v870_v7 = vld [vmem:[#allocation6 + $0x48] sm:$0xff] (!%p3838_p8)  ;;  %v1006_v22 = vmul.f32 (!%p3838_p8), %v5353_v35, %v871_v9 }
 0x16c   : > { %4698 = vmatpush3.bf16.msra.mxu0 (!%p3838_p8), %v4897_v30  ;;  %4848 = vmatpush3.bf16.msra.mxu1 (!%p3838_p8), %v4897_v30  ;;  %v5362_v46 = vadd.f32 (!%p3838_p8), %v5357_v38, %v996_v36  ;;  %v5365_v47 = vadd.f32 (!%p3838_p8), %v5357_v38, %v997_v37  ;;  %v4900_v51 = vld [vmem:[%s6909_s3 + $0x20] sm:$0xff] (!%p3838_p8)   ;;  %v5373_v52 = vadd.f32 (!%p3838_p8), %v5357_v38, %v998_v41  ;;  %v4902_v14 = vld [vmem:[%s6909_s3 + $0x30] sm:$0xff] (!%p3838_p8)   ;;  %v4903_v29 = vld [vmem:[%s6909_s3 + $0x38] sm:$0xff] (!%p3838_p8)  }
 0x16d   : > { %4699 = vmatprep.subr.bf16.mxu0 (!%p3838_p8), %v4898_v31  ;;  %4841 = vmatprep.subr.bf16.mxu1 (!%p3838_p8), %v4898_v31  ;;  %v5376_v53 = vadd.f32 (!%p3838_p8), %v5357_v38, %v999_v42  ;;  %v5385_v62 = vadd.f32 (!%p3838_p8), %v5357_v38, %v1000_v48  ;;  %v5388_v63 = vadd.f32 (!%p3838_p8), %v5357_v38, %v1001_v49  ;;  %v872_v13 = vld [vmem:[#allocation6 + $0x58] sm:$0xff] (!%p3838_p8)  ;;  %v873_v18 = vld [vmem:[#allocation6 + $0x60] sm:$0xff] (!%p3838_p8)  ;;  %v874_v19 = vld [vmem:[#allocation6 + $0x68] sm:$0xff] (!%p3838_p8) }
 0x16e   : > { %v1387_v56 = vmin.f32 %v5362_v46, 0.0  ;;  %v1388_v57 = vmin.f32 %v5365_v47, 0.0  ;;  %v1389_v58 = vmin.f32 %v5373_v52, 0.0  ;;  %v5394_v3 = vadd.f32 %v5357_v38, %v1002_v54  ;;  %v875_v34 = vld [vmem:[#allocation6 + $0x70] sm:$0xff] }
 0x16f   : > { %v1390_v59 = vmin.f32 %v5376_v53, 0.0  ;;  %v5397_v4 = vadd.f32 %v5357_v38, %v1003_v55  ;;  %v1391_v5 = vmin.f32 %v5385_v62, 0.0  ;;  %v1392_v8 = vmin.f32 %v5388_v63, 0.0 }
 0x170   : > { %4700 = vmatpush3.bf16.msra.mxu0 %v4898_v31  ;;  %4849 = vmatpush3.bf16.msra.mxu1 %v4898_v31  ;;  %v1515_v60 = vmul.f32 1.442695, %v1387_v56  ;;  %v1517_v61 = vmul.f32 1.442695, %v1388_v57  ;;  %v1519_v1 = vmul.f32 1.442695, %v1389_v58  ;;  %v1004_v16 = vmul.f32 %v5353_v35, %v869_v6 }
 0x171   : > { %4701 = vmatprep.subr.bf16.mxu0 %v4899_v32  ;;  %4842 = vmatprep.subr.bf16.mxu1 %v4899_v32  ;;  %v1521_v2 = vmul.f32 1.442695, %v1390_v59  ;;  %vm1259_vm0 = vcmp.gt.f32.partialorder %v5362_v46, 0.0  ;;  %v1523_v10 = vmul.f32 1.442695, %v1391_v5  ;;  %v1393_v11 = vmin.f32 %v5394_v3, 0.0 }
 0x172   : > { %4904 = vpow2.f32 %v1515_v60  ;;  %v1394_v12 = vmin.f32 %v5397_v4, 0.0  ;;  %vm1260_vm1 = vcmp.gt.f32.partialorder %v5365_v47, 0.0  ;;  %v1525_v15 = vmul.f32 1.442695, %v1392_v8  ;;  %v876_v59 = vld [vmem:[#allocation6 + $0x78] sm:$0xff] }
 0x173   : > { %4906 = vpow2.f32 %v1517_v61  ;;  %v1005_v17 = vmul.f32 %v5353_v35, %v870_v7  ;;  %v1527_v20 = vmul.f32 1.442695, %v1393_v11  ;;  %v5412_v23 = vadd.f32 %v5357_v38, %v1004_v16  ;;  %v877_v11 = vld [vmem:[#allocation6 + $0x80] sm:$0xff] }
 0x174   : > { %4702 = vmatpush3.bf16.msra.mxu0 %v4899_v32  ;;  %4850 = vmatpush3.bf16.msra.mxu1 %v4899_v32  ;;  %4908 = vpow2.f32 %v1519_v1  ;;  %v1529_v21 = vmul.f32 1.442695, %v1394_v12  ;;  %v1007_v25 = vmul.f32 %v5353_v35, %v872_v13  ;;  %v5419_v26 = vadd.f32 %v5357_v38, %v1006_v22  ;;  %v878_v12 = vld [vmem:[#allocation6 + $0x88] sm:$0xff] }
 0x175   : > { %4703 = vmatprep.subr.bf16.mxu0 %v4900_v51  ;;  %4843 = vmatprep.subr.bf16.mxu1 %v4900_v51  ;;  %4910 = vpow2.f32 %v1521_v2  ;;  %v5415_v24 = vadd.f32 %v5357_v38, %v1005_v17  ;;  %v1008_v27 = vmul.f32 %v5353_v35, %v873_v18  ;;  %v1009_v28 = vmul.f32 %v5353_v35, %v874_v19 }
 0x176   : > { %4912 = vpow2.f32 %v1523_v10  ;;  %vm1261_vm2 = vcmp.gt.f32.partialorder %v5373_v52, 0.0  ;;  %vm1262_vm3 = vcmp.gt.f32.partialorder %v5376_v53, 0.0  ;;  %v1395_v30 = vmin.f32 %v5412_v23, 0.0 }
 0x177   : > { %4914 = vpow2.f32 %v1525_v15  ;;  %vm1263_vm4 = vcmp.gt.f32.partialorder %v5385_v62, 0.0  ;;  %v1396_v31 = vmin.f32 %v5415_v24, 0.0  ;;  %v5432_v32 = vadd.f32 %v5357_v38, %v1007_v25 }
 0x178   : > { %4704 = vmatpush3.bf16.msra.mxu0 %v4900_v51  ;;  %4851 = vmatpush3.bf16.msra.mxu1 %v4900_v51  ;;  %4916 = vpow2.f32 %v1527_v20  ;;  %v1397_v33 = vmin.f32 %v5419_v26, 0.0  ;;  %vm1264_vm5 = vcmp.gt.f32.partialorder %v5388_v63, 0.0  ;;  %v1531_v36 = vmul.f32 1.442695, %v1395_v30 }
 0x179   : > { %4705 = vmatprep.subr.bf16.mxu0 %v4901_v0  ;;  %4844 = vmatprep.subr.bf16.mxu1 %v4901_v0  ;;  %4918 = vpow2.f32 %v1529_v21  ;;  %v5437_v37 = vadd.f32 %v5357_v38, %v1008_v27  ;;  %v5440_v39 = vadd.f32 %v5357_v38, %v1009_v28  ;;  %vm1265_vm6 = vcmp.gt.f32.partialorder %v5394_v3, 0.0  ;;  %v879_v21 = vld [vmem:[#allocation6 + $0x90] sm:$0xff]  ;;  %v880_v27 = vld [vmem:[#allocation6 + $0x98] sm:$0xff] }
 0x17a   : > { %v1533_v41 = vmul.f32 1.442695, %v1396_v31  ;;  %v1398_v42 = vmin.f32 %v5432_v32, 0.0  ;;  %v1535_v43 = vmul.f32 1.442695, %v1397_v33  ;;  %vm1266_vm7 = vcmp.gt.f32.partialorder %v5397_v4, 0.0 }
 0x17b   : > { %4920 = vpow2.f32 %v1531_v36  ;;  %v1010_v48 = vmul.f32 %v5353_v35, %v875_v34  ;;  %v1399_v54 = vmin.f32 %v5437_v37, 0.0  ;;  %vm1267_vm8 = vcmp.gt.f32.partialorder %v5412_v23, 0.0 }
 0x17c   : > { %4706 = vmatpush3.bf16.msra.mxu0 %v4901_v0  ;;  %4852 = vmatpush3.bf16.msra.mxu1 %v4901_v0  ;;  %v4905_v40 = vpop.eup %4904  ;;  %4922 = vpow2.f32 %v1533_v41  ;;  %v1537_v51 = vmul.f32 1.442695, %v1398_v42  ;;  %v1400_v58 = vmin.f32 %v5440_v39, 0.0  ;;  %vm1268_vm9 = vcmp.gt.f32.partialorder %v5415_v24, 0.0 }
 0x17d   : > { %4707 = vmatprep.subr.bf16.mxu0 %v4902_v14  ;;  %4845 = vmatprep.subr.bf16.mxu1 %v4902_v14  ;;  %v4907_v44 = vpop.eup %4906  ;;  %v3841_v45 = vadd.f32 -1.0, %v4905_v40  ;;  %4924 = vpow2.f32 %v1535_v43  ;;  %v1539_v1 = vmul.f32 1.442695, %v1399_v54  ;;  %v5470_v17 = vadd.f32 %v5357_v38, %v1010_v48 }
 0x17e   : > { %v4909_v49 = vpop.eup %4908  ;;  %v3842_v50 = vadd.f32 -1.0, %v4907_v44  ;;  %4926 = vpow2.f32 %v1537_v51  ;;  %v1541_v7 = vmul.f32 1.442695, %v1400_v58  ;;  %vm1269_vm10 = vcmp.gt.f32.partialorder %v5419_v26, 0.0 }
 0x17f   : > { %v4911_v55 = vpop.eup %4910  ;;  %v1899_v56 = vsel %vm1259_vm0, %v5362_v46, %v3841_v45  ;;  %v3843_v57 = vadd.f32 -1.0, %v4909_v49  ;;  %4928 = vpow2.f32 %v1539_v1  ;;  %v1012_v20 = vmul.f32 %v5353_v35, %v877_v11  ;;  %v881_v1 = vld [vmem:[#allocation6 + $0xa0] sm:$0xff] }
 0x180   : > { %4708 = vmatpush3.bf16.msra.mxu0 %v4902_v14  ;;  %4853 = vmatpush3.bf16.msra.mxu1 %v4902_v14  ;;  %v4913_v60 = vpop.eup %4912  ;;  %v1900_v61 = vsel %vm1260_vm1, %v5365_v47, %v3842_v50  ;;  %v3844_v0 = vadd.f32 -1.0, %v4911_v55  ;;  %v1011_v47 = vmul.f32 %v5353_v35, %v876_v59  ;;  %4930 = vpow2.f32 %v1541_v7 }
 0x181   : > { %4709 = vmatprep.subr.bf16.mxu0 %v4903_v29  ;;  %4846 = vmatprep.subr.bf16.mxu1 %v4903_v29  ;;  %v4915_v46 = vpop.eup %4914  ;;  %v2027_v2 = vpack.c.bf16 %v1900_v61, %v1899_v56  ;;  %v1901_v5 = vsel %vm1261_vm2, %v5373_v52, %v3843_v57  ;;  %v3845_v6 = vadd.f32 -1.0, %v4913_v60  ;;  %vm1270_vm11 = vcmp.gt.f32.partialorder %v5432_v32, 0.0 }
 0x182   : > { %v4917_v8 = vpop.eup %4916  ;;  %v1902_v9 = vsel %vm1262_vm3, %v5376_v53, %v3844_v0  ;;  %v3846_v10 = vadd.f32 -1.0, %v4915_v46  ;;  %v5473_v18 = vadd.f32 %v5357_v38, %v1011_v47  ;;  %v1401_v25 = vmin.f32 %v5470_v17, 0.0  ;;  %v882_v46 = vld [vmem:[#allocation6 + $0xa8] sm:$0xff] }
 0x183   : > { %v4919_v13 = vpop.eup %4918  ;;  %4711 = vmatprep.mubr.bf16.mxu0 %v2027_v2  ;;  %v2028_v14 = vpack.c.bf16 %v1902_v9, %v1901_v5  ;;  %v1903_v52 = vsel %vm1263_vm4, %v5385_v62, %v3845_v6  ;;  %v3847_v15 = vadd.f32 -1.0, %v4917_v8  ;;  %v1013_v62 = vmul.f32 %v5353_v35, %v878_v12  ;;  %v884_v5 = vld [vmem:[#allocation6 + $0xb8] sm:$0xff]  ;;  %v885_v8 = vld [vmem:[#allocation6 + $0xc0] sm:$0xff]  ;;  %v886_v12 = vld [vmem:[#allocation6 + $0xc8] sm:$0xff] }
 0x184   : > { %4710 = vmatpush3.bf16.msra.mxu0 %v4903_v29  ;;  %4854 = vmatpush3.bf16.msra.mxu1 %v4903_v29  ;;  %v1904_v53 = vsel %vm1264_vm5, %v5388_v63, %v3846_v10  ;;  %v3848_v16 = vadd.f32 -1.0, %v4919_v13  ;;  %vm1271_vm12 = vcmp.gt.f32.partialorder %v5437_v37, 0.0  ;;  %v1402_v29 = vmin.f32 %v5473_v18, 0.0 }
 0x185   : > { %v2029_v19 = vpack.c.bf16 %v1904_v53, %v1903_v52  ;;  %v1905_v63 = vsel %vm1265_vm6, %v5394_v3, %v3847_v15  ;;  %v4921_v28 = vpop.eup %4920  ;;  %v5489_v30 = vadd.f32 %v5357_v38, %v1012_v20  ;;  %v5492_v3 = vadd.f32 %v5357_v38, %v1013_v62 }
 0x186   : > { %v1906_v22 = vsel %vm1266_vm7, %v5397_v4, %v3848_v16  ;;  %v4923_v31 = vpop.eup %4922  ;;  %v3849_v33 = vadd.f32 -1.0, %v4921_v28  ;;  %vm1272_vm13 = vcmp.gt.f32.partialorder %v5440_v39, 0.0  ;;  %v1543_v4 = vmul.f32 1.442695, %v1401_v25 }
 0x187   : > { %4712 = vmatmul.mubr.bf16.vlgmr.msra.gmra.mrb[0].mxu0 %v2028_v14  ;;  %v1014_v34 = vmul.f32 %v5353_v35, %v879_v21  ;;  %v4925_v36 = vpop.eup %4924  ;;  %v2030_v40 = vpack.c.bf16 %v1906_v22, %v1905_v63  ;;  %v3850_v41 = vadd.f32 -1.0, %v4923_v31  ;;  %v1545_v42 = vmul.f32 1.442695, %v1402_v29 }
 0x188   : > { %4715 = vmatprep.mubr.bf16.mxu0 %v2029_v19  ;;  %v1015_v43 = vmul.f32 %v5353_v35, %v880_v27  ;;  %v4927_v44 = vpop.eup %4926  ;;  %v1907_v45 = vsel %vm1267_vm8, %v5412_v23, %v3849_v33  ;;  %v3851_v48 = vadd.f32 -1.0, %v4925_v36  ;;  %4932 = vpow2.f32 %v1543_v4 }
 0x189   : > { %v1403_v49 = vmin.f32 %v5489_v30, 0.0  ;;  %v1908_v50 = vsel %vm1268_vm9, %v5415_v24, %v3850_v41  ;;  %v3852_v51 = vadd.f32 -1.0, %v4927_v44  ;;  %4934 = vpow2.f32 %v1545_v42  ;;  %v4929_v55 = vpop.eup %4928 }
 0x18a   : > { %v1404_v54 = vmin.f32 %v5492_v3, 0.0  ;;  %v2031_v56 = vpack.c.bf16 %v1908_v50, %v1907_v45  ;;  %v1909_v57 = vsel %vm1269_vm10, %v5419_v26, %v3851_v48  ;;  %v5509_v23 = vadd.f32 %v5357_v38, %v1014_v34  ;;  %v4931_v59 = vpop.eup %4930  ;;  %v883_v26 = vld [vmem:[#allocation6 + $0xb0] sm:$0xff] }
 0x18b   : > { %v1547_v58 = vmul.f32 1.442695, %v1403_v49  ;;  %v1910_v24 = vsel %vm1270_vm11, %v5432_v32, %v3852_v51  ;;  %v3853_v60 = vadd.f32 -1.0, %v4929_v55  ;;  %v5515_v0 = vadd.f32 %v5357_v38, %v1015_v43  ;;  %v887_v45 = vld [vmem:[#allocation6 + $0xd0] sm:$0xff]  ;;  %v889_v51 = vld [vmem:[#allocation6 + $0xe0] sm:$0xff] }
 0x18c   : > { %v1549_v61 = vmul.f32 1.442695, %v1404_v54  ;;  %v3854_v2 = vadd.f32 -1.0, %v4931_v59  ;;  %vm1273_vm14 = vcmp.gt.f32.partialorder %v5470_v17, 0.0  ;;  %v2032_v6 = vpack.c.bf16 %v1910_v24, %v1909_v57 }
 0x18d   : > { %4936 = vpow2.f32 %v1547_v58  ;;  %v1911_v7 = vsel %vm1271_vm12, %v5437_v37, %v3853_v60  ;;  %v1405_v32 = vmin.f32 %v5509_v23, 0.0  ;;  %v1406_v10 = vmin.f32 %v5515_v0, 0.0 }
 0x18e   : > { %4938 = vpow2.f32 %v1549_v61  ;;  %v1912_v9 = vsel %vm1272_vm13, %v5440_v39, %v3854_v2  ;;  %v1016_v47 = vmul.f32 %v5353_v35, %v881_v1  ;;  %v1017_v11 = vmul.f32 %v5353_v35, %v882_v46 }
 0x18f   : > { %4716 = vmatmul.mubr.bf16.gmra.mrb[4].mxu0 %v2030_v40  ;;  %v2033_v13 = vpack.c.bf16 %v1912_v9, %v1911_v7  ;;  %v1551_v14 = vmul.f32 1.442695, %v1405_v32  ;;  %v1018_v52 = vmul.f32 %v5353_v35, %v883_v26  ;;  %v1019_v37 = vmul.f32 %v5353_v35, %v884_v5 }
 0x190   : > { %4719 = vmatprep.mubr.bf16.mxu0 %v2031_v56  ;;  %v1553_v15 = vmul.f32 1.442695, %v1406_v10  ;;  %v5531_v53 = vadd.f32 %v5357_v38, %v1016_v47  ;;  %v5534_v16 = vadd.f32 %v5357_v38, %v1017_v11  ;;  %v1020_v39 = vmul.f32 %v5353_v35, %v885_v8  ;;  %v890_v56 = vld [vmem:[#allocation6 + $0xe8] sm:$0xff]  ;;  %v891_v11 = vld [vmem:[#allocation6 + $0xf0] sm:$0xff] }
 0x191   : > { %4940 = vpow2.f32 %v1551_v14  ;;  %v5538_v19 = vadd.f32 %v5357_v38, %v1018_v52  ;;  %v5541_v20 = vadd.f32 %v5357_v38, %v1019_v37  ;;  %v1021_v62 = vmul.f32 %v5353_v35, %v886_v12  ;;  %v892_v52 = vld [vmem:[#allocation6 + $0xf8] sm:$0xff] }
 0x192   : > { %v4933_v21 = vpop.eup %4932  ;;  %vm1274_vm15 = vcmp.gt.f32.partialorder %v5473_v18, 0.0  ;;  %vm1275_vm0 = vcmp.gt.f32.partialorder %v5489_v30, 0.0  ;;  %4942 = vpow2.f32 %v1553_v15  ;;  %v1407_v63 = vmin.f32 %v5531_v53, 0.0 }
 0x193   : > { %v4935_v22 = vpop.eup %4934  ;;  %v3855_v25 = vadd.f32 -1.0, %v4933_v21  ;;  %vm1276_vm1 = vcmp.gt.f32.partialorder %v5492_v3, 0.0  ;;  %vm1277_vm2 = vcmp.gt.f32.partialorder %v5509_v23, 0.0  ;;  %v1408_v27 = vmin.f32 %v5534_v16, 0.0 }
 0x194   : > { %v3856_v28 = vadd.f32 -1.0, %v4935_v22  ;;  %v1555_v29 = vmul.f32 1.442695, %v1407_v63  ;;  %v1409_v31 = vmin.f32 %v5538_v19, 0.0  ;;  %v1410_v33 = vmin.f32 %v5541_v20, 0.0 }
 0x195   : > { %v1913_v4 = vsel %vm1273_vm14, %v5470_v17, %v3855_v25  ;;  %v1557_v34 = vmul.f32 1.442695, %v1408_v27  ;;  %v5556_v36 = vadd.f32 %v5357_v38, %v1020_v39  ;;  %v5559_v40 = vadd.f32 %v5357_v38, %v1021_v62  ;;  %v888_v17 = vld [vmem:[#allocation6 + $0xd8] sm:$0xff] }
 0x196   : > { %v1914_v42 = vsel %vm1274_vm15, %v5473_v18, %v3856_v28  ;;  %4944 = vpow2.f32 %v1555_v29  ;;  %v1559_v43 = vmul.f32 1.442695, %v1409_v31  ;;  %v1561_v44 = vmul.f32 1.442695, %v1410_v33 }
 0x197   : > { %4720 = vmatmul.mubr.bf16.gmra.mrb[8].mxu0 %v2032_v6  ;;  %v4937_v41 = vpop.eup %4936  ;;  %v2034_v49 = vpack.c.bf16 %v1914_v42, %v1913_v4  ;;  %vm1278_vm3 = vcmp.gt.f32.partialorder %v5515_v0, 0.0  ;;  %4946 = vpow2.f32 %v1557_v34  ;;  %vm1279_vm4 = vcmp.gt.f32.partialorder %v5531_v53, 0.0  ;;  %v893_v34 = vld [vmem:[#allocation6 + $0x100] sm:$0xff] }
 0x198   : > { %4723 = vmatprep.mubr.bf16.mxu0 %v2033_v13  ;;  %v4939_v48 = vpop.eup %4938  ;;  %v3857_v50 = vadd.f32 -1.0, %v4937_v41  ;;  %4948 = vpow2.f32 %v1559_v43  ;;  %v1411_v55 = vmin.f32 %v5556_v36, 0.0  ;;  %v1412_v57 = vmin.f32 %v5559_v40, 0.0 }
 0x199   : > { %v3858_v54 = vadd.f32 -1.0, %v4939_v48  ;;  %4950 = vpow2.f32 %v1561_v44  ;;  %v1022_v58 = vmul.f32 %v5353_v35, %v887_v45  ;;  %v1023_v60 = vmul.f32 %v5353_v35, %v888_v17  ;;  %v894_v44 = vld [vmem:[#allocation6 + $0x108] sm:$0xff] }
 0x19a   : > { %v1915_v18 = vsel %vm1275_vm0, %v5489_v30, %v3857_v50  ;;  %v1563_v24 = vmul.f32 1.442695, %v1411_v55  ;;  %v1024_v61 = vmul.f32 %v5353_v35, %v889_v51  ;;  %v1565_v2 = vmul.f32 1.442695, %v1412_v57 }
 0x19b   : > { %v1916_v59 = vsel %vm1276_vm1, %v5492_v3, %v3858_v54  ;;  %v4941_v1 = vpop.eup %4940  ;;  %v5578_v30 = vadd.f32 %v5357_v38, %v1022_v58  ;;  %v1025_v26 = vmul.f32 %v5353_v35, %v890_v56  ;;  %v5582_v7 = vadd.f32 %v5357_v38, %v1023_v60  ;;  %v896_v54 = vld [vmem:[#allocation6 + $0x118] sm:$0xff] }
 0x19c   : > { %v2035_v46 = vpack.c.bf16 %v1916_v59, %v1915_v18  ;;  %v4943_v5 = vpop.eup %4942  ;;  %v3859_v6 = vadd.f32 -1.0, %v4941_v1  ;;  %4952 = vpow2.f32 %v1563_v24  ;;  %v5585_v3 = vadd.f32 %v5357_v38, %v1024_v61 }
 0x19d   : > { %v3860_v32 = vadd.f32 -1.0, %v4943_v5  ;;  %vm1280_vm5 = vcmp.gt.f32.partialorder %v5534_v16, 0.0  ;;  %4954 = vpow2.f32 %v1565_v2  ;;  %v1413_v8 = vmin.f32 %v5578_v30, 0.0 }
 0x19e   : > { %v1917_v9 = vsel %vm1277_vm2, %v5509_v23, %v3859_v6  ;;  %vm1281_vm6 = vcmp.gt.f32.partialorder %v5538_v19, 0.0  ;;  %v1414_v10 = vmin.f32 %v5582_v7, 0.0  ;;  %v5595_v47 = vadd.f32 %v5357_v38, %v1025_v26  ;;  %v897_v26 = vld [vmem:[#allocation6 + $0x120] sm:$0xff] }
 0x19f   : > { %4724 = vmatmul.mubr.bf16.gmra.mrb[12].mxu0 %v2034_v49  ;;  %v1918_v12 = vsel %vm1278_vm3, %v5515_v0, %v3860_v32  ;;  %vm1282_vm7 = vcmp.gt.f32.partialorder %v5541_v20, 0.0  ;;  %v1567_v13 = vmul.f32 1.442695, %v1413_v8  ;;  %v1415_v14 = vmin.f32 %v5585_v3, 0.0  ;;  %v895_v49 = vld [vmem:[#allocation6 + $0x110] sm:$0xff] }
 0x1a0   : > { %4727 = vmatprep.mubr.bf16.mxu0 %v2035_v46  ;;  %v4945_v37 = vpop.eup %4944  ;;  %v2036_v23 = vpack.c.bf16 %v1918_v12, %v1917_v9  ;;  %vm1283_vm8 = vcmp.gt.f32.partialorder %v5556_v36, 0.0  ;;  %v1569_v15 = vmul.f32 1.442695, %v1414_v10  ;;  %v1416_v39 = vmin.f32 %v5595_v47, 0.0 }
 0x1a1   : > { %v4947_v62 = vpop.eup %4946  ;;  %v3861_v21 = vadd.f32 -1.0, %v4945_v37  ;;  %4956 = vpow2.f32 %v1567_v13  ;;  %v1571_v63 = vmul.f32 1.442695, %v1415_v14  ;;  %v1026_v22 = vmul.f32 %v5353_v35, %v891_v11 }
 0x1a2   : > { %v4949_v0 = vpop.eup %4948  ;;  %v3862_v25 = vadd.f32 -1.0, %v4947_v62  ;;  %4958 = vpow2.f32 %v1569_v15  ;;  %v1573_v27 = vmul.f32 1.442695, %v1416_v39  ;;  %v1027_v28 = vmul.f32 %v5353_v35, %v892_v52  ;;  %v898_v52 = vld [vmem:[#allocation6 + $0x128] sm:$0xff]  ;;  %v899_v62 = vld [vmem:[#allocation6 + $0x130] sm:$0xff] }
 0x1a3   : > { %v4951_v29 = vpop.eup %4950  ;;  %v1919_v31 = vsel %vm1279_vm4, %v5531_v53, %v3861_v21  ;;  %v3863_v33 = vadd.f32 -1.0, %v4949_v0  ;;  %4960 = vpow2.f32 %v1571_v63  ;;  %v5610_v4 = vadd.f32 %v5357_v38, %v1026_v22  ;;  %v900_v0 = vld [vmem:[#allocation6 + $0x138] sm:$0xff] }
 0x1a4   : > { %v1920_v41 = vsel %vm1280_vm5, %v5534_v16, %v3862_v25  ;;  %v3864_v42 = vadd.f32 -1.0, %v4951_v29  ;;  %4962 = vpow2.f32 %v1573_v27  ;;  %v5616_v43 = vadd.f32 %v5357_v38, %v1027_v28 }
 0x1a5   : > { %v2037_v45 = vpack.c.bf16 %v1920_v41, %v1919_v31  ;;  %v1921_v53 = vsel %vm1281_vm6, %v5538_v19, %v3863_v33  ;;  %vm1284_vm9 = vcmp.gt.f32.partialorder %v5559_v40, 0.0  ;;  %v1417_v48 = vmin.f32 %v5610_v4, 0.0 }
 0x1a6   : > { %v4953_v50 = vpop.eup %4952  ;;  %v1922_v16 = vsel %vm1282_vm7, %v5541_v20, %v3864_v42  ;;  %vm1285_vm10 = vcmp.gt.f32.partialorder %v5578_v30, 0.0  ;;  %v1418_v17 = vmin.f32 %v5616_v43, 0.0  ;;  %v1028_v51 = vmul.f32 %v5353_v35, %v893_v34 }
 0x1a7   : > { %4728 = vmatmul.mubr.bf16.gmra.mrb[16].mxu0 %v2036_v23  ;;  %v4955_v55 = vpop.eup %4954  ;;  %v2038_v19 = vpack.c.bf16 %v1922_v16, %v1921_v53  ;;  %v3865_v56 = vadd.f32 -1.0, %v4953_v50  ;;  %v1575_v18 = vmul.f32 1.442695, %v1417_v48  ;;  %v1029_v57 = vmul.f32 %v5353_v35, %v894_v44  ;;  %v901_v50 = vld [vmem:[#allocation6 + $0x140] sm:$0xff] }
 0x1a8   : > { %4731 = vmatprep.mubr.bf16.mxu0 %v2037_v45  ;;  %v3866_v58 = vadd.f32 -1.0, %v4955_v55  ;;  %v1577_v59 = vmul.f32 1.442695, %v1418_v17  ;;  %v5631_v24 = vadd.f32 %v5357_v38, %v1028_v51  ;;  %v1030_v20 = vmul.f32 %v5353_v35, %v895_v49 }
 0x1a9   : > { %v1923_v60 = vsel %vm1283_vm8, %v5556_v36, %v3865_v56  ;;  %4964 = vpow2.f32 %v1575_v18  ;;  %v5638_v61 = vadd.f32 %v5357_v38, %v1029_v57  ;;  %v1031_v1 = vmul.f32 %v5353_v35, %v896_v54  ;;  %v902_v54 = vld [vmem:[#allocation6 + $0x148] sm:$0xff]  ;;  %v903_v18 = vld [vmem:[#allocation6 + $0x150] sm:$0xff] }
 0x1aa   : > { %v1924_v46 = vsel %vm1284_vm9, %v5559_v40, %v3866_v58  ;;  %vm1286_vm11 = vcmp.gt.f32.partialorder %v5582_v7, 0.0  ;;  %4966 = vpow2.f32 %v1577_v59  ;;  %v1419_v2 = vmin.f32 %v5631_v24, 0.0 }
 0x1ab   : > { %v4957_v5 = vpop.eup %4956  ;;  %v2039_v6 = vpack.c.bf16 %v1924_v46, %v1923_v60  ;;  %vm1287_vm12 = vcmp.gt.f32.partialorder %v5585_v3, 0.0  ;;  %v1420_v36 = vmin.f32 %v5638_v61, 0.0  ;;  %v5649_v32 = vadd.f32 %v5357_v38, %v1030_v20  ;;  %v904_v20 = vld [vmem:[#allocation6 + $0x158] sm:$0xff] }
 0x1ac   : > { %v4959_v8 = vpop.eup %4958  ;;  %v3867_v9 = vadd.f32 -1.0, %v4957_v5  ;;  %vm1288_vm13 = vcmp.gt.f32.partialorder %v5595_v47, 0.0  ;;  %v1579_v40 = vmul.f32 1.442695, %v1419_v2  ;;  %v5653_v10 = vadd.f32 %v5357_v38, %v1031_v1 }
 0x1ad   : > { %v4961_v11 = vpop.eup %4960  ;;  %v3868_v12 = vadd.f32 -1.0, %v4959_v8  ;;  %v1581_v13 = vmul.f32 1.442695, %v1420_v36  ;;  %v1421_v14 = vmin.f32 %v5649_v32, 0.0  ;;  %v1032_v37 = vmul.f32 %v5353_v35, %v897_v26 }
 0x1ae   : > { %v4963_v23 = vpop.eup %4962  ;;  %v1925_v15 = vsel %vm1285_vm10, %v5578_v30, %v3867_v9  ;;  %v3869_v39 = vadd.f32 -1.0, %v4961_v11  ;;  %vm1289_vm14 = vcmp.gt.f32.partialorder %v5610_v4, 0.0  ;;  %4968 = vpow2.f32 %v1579_v40 }
 0x1af   : > { %4732 = vmatmul.mubr.bf16.gmra.mrb[20].mxu0 %v2038_v19  ;;  %v1926_v21 = vsel %vm1286_vm11, %v5582_v7, %v3868_v12  ;;  %v3870_v63 = vadd.f32 -1.0, %v4963_v23  ;;  %4970 = vpow2.f32 %v1581_v13  ;;  %v1422_v22 = vmin.f32 %v5653_v10, 0.0 }
 0x1b0   : > { %4735 = vmatprep.mubr.bf16.mxu0 %v2039_v6  ;;  %v2040_v25 = vpack.c.bf16 %v1926_v21, %v1925_v15  ;;  %v1927_v27 = vsel %vm1287_vm12, %v5585_v3, %v3869_v39  ;;  %v1583_v30 = vmul.f32 1.442695, %v1421_v14  ;;  %v1033_v28 = vmul.f32 %v5353_v35, %v898_v52 }
 0x1b1   : > { %v1928_v29 = vsel %vm1288_vm13, %v5595_v47, %v3870_v63  ;;  %v1585_v31 = vmul.f32 1.442695, %v1422_v22  ;;  %v5673_v7 = vadd.f32 %v5357_v38, %v1032_v37  ;;  %v1034_v33 = vmul.f32 %v5353_v35, %v899_v62  ;;  %v906_v62 = vld [vmem:[#allocation6 + $0x168] sm:$0xff]  ;;  %v907_v22 = vld [vmem:[#allocation6 + $0x170] sm:$0xff] }
 0x1b2   : > { %v2041_v34 = vpack.c.bf16 %v1928_v29, %v1927_v27  ;;  %4972 = vpow2.f32 %v1583_v30  ;;  %v5677_v41 = vadd.f32 %v5357_v38, %v1033_v28  ;;  %v1035_v3 = vmul.f32 %v5353_v35, %v900_v0  ;;  %v908_v30 = vld [vmem:[#allocation6 + $0x178] sm:$0xff] }
 0x1b3   : > { %v4965_v42 = vpop.eup %4964  ;;  %vm1290_vm15 = vcmp.gt.f32.partialorder %v5616_v43, 0.0  ;;  %4974 = vpow2.f32 %v1585_v31  ;;  %v1423_v47 = vmin.f32 %v5673_v7, 0.0  ;;  %v5683_v44 = vadd.f32 %v5357_v38, %v1034_v33 }
 0x1b4   : > { %v4967_v45 = vpop.eup %4966  ;;  %v3871_v53 = vadd.f32 -1.0, %v4965_v42  ;;  %vm1291_vm0 = vcmp.gt.f32.partialorder %v5631_v24, 0.0  ;;  %v1424_v48 = vmin.f32 %v5677_v41, 0.0  ;;  %v5688_v49 = vadd.f32 %v5357_v38, %v1035_v3 }
 0x1b5   : > { %v3872_v16 = vadd.f32 -1.0, %v4967_v45  ;;  %vm1292_vm1 = vcmp.gt.f32.partialorder %v5638_v61, 0.0  ;;  %v1587_v17 = vmul.f32 1.442695, %v1423_v47  ;;  %v1425_v51 = vmin.f32 %v5683_v44, 0.0 }
 0x1b6   : > { %v1929_v55 = vsel %vm1289_vm14, %v5610_v4, %v3871_v53  ;;  %vm1293_vm2 = vcmp.gt.f32.partialorder %v5649_v32, 0.0  ;;  %v1589_v19 = vmul.f32 1.442695, %v1424_v48  ;;  %v1426_v56 = vmin.f32 %v5688_v49, 0.0 }
 0x1b7   : > { %4736 = vmatmul.mubr.bf16.gmra.mrb[24].mxu0 %v2040_v25  ;;  %v1930_v57 = vsel %vm1290_vm15, %v5616_v43, %v3872_v16  ;;  %4976 = vpow2.f32 %v1587_v17  ;;  %v1591_v58 = vmul.f32 1.442695, %v1425_v51  ;;  %v1036_v59 = vmul.f32 %v5353_v35, %v901_v50 }
 0x1b8   : > { %4739 = vmatprep.mubr.bf16.mxu0 %v2041_v34  ;;  %v4969_v60 = vpop.eup %4968  ;;  %v2042_v1 = vpack.c.bf16 %v1930_v57, %v1929_v55  ;;  %4978 = vpow2.f32 %v1589_v19  ;;  %v1593_v46 = vmul.f32 1.442695, %v1426_v56  ;;  %v1037_v4 = vmul.f32 %v5353_v35, %v902_v54 }
 0x1b9   : > { %v4971_v2 = vpop.eup %4970  ;;  %v3873_v26 = vadd.f32 -1.0, %v4969_v60  ;;  %4980 = vpow2.f32 %v1591_v58  ;;  %v5703_v5 = vadd.f32 %v5357_v38, %v1036_v59  ;;  %v1038_v6 = vmul.f32 %v5353_v35, %v903_v18  ;;  %v910_v60 = vld [vmem:[#allocation6 + $0x188] sm:$0xff] }
 0x1ba   : > { %v3874_v43 = vadd.f32 -1.0, %v4971_v2  ;;  %4982 = vpow2.f32 %v1593_v46  ;;  %v5707_v36 = vadd.f32 %v5357_v38, %v1037_v4  ;;  %v1039_v8 = vmul.f32 %v5353_v35, %v904_v20  ;;  %v909_v20 = vld [vmem:[#allocation6 + $0x180] sm:$0xff]  ;;  %v912_v4 = vld [vmem:[#allocation6 + $0x198] sm:$0xff] }
 0x1bb   : > { %v1931_v9 = vsel %vm1291_vm0, %v5631_v24, %v3873_v26  ;;  %vm1294_vm3 = vcmp.gt.f32.partialorder %v5653_v10, 0.0  ;;  %v1427_v40 = vmin.f32 %v5703_v5, 0.0  ;;  %v5716_v11 = vadd.f32 %v5357_v38, %v1038_v6  ;;  %v905_v24 = vld [vmem:[#allocation6 + $0x160] sm:$0xff]  ;;  %v5772_v6 = vld [vmem:[#allocation4] ss:$0 sm:$0xff] }
 0x1bc   : > { %v4973_v12 = vpop.eup %4972  ;;  %v1932_v13 = vsel %vm1292_vm1, %v5638_v61, %v3874_v43  ;;  %vm1295_vm4 = vcmp.gt.f32.partialorder %v5673_v7, 0.0  ;;  %v1428_v14 = vmin.f32 %v5707_v36, 0.0  ;;  %v5724_v52 = vadd.f32 %v5357_v38, %v1039_v8 }
 0x1bd   : > { %v4975_v37 = vpop.eup %4974  ;;  %v2043_v23 = vpack.c.bf16 %v1932_v13, %v1931_v9  ;;  %v3875_v15 = vadd.f32 -1.0, %v4973_v12  ;;  %vm1296_vm5 = vcmp.gt.f32.partialorder %v5677_v41, 0.0  ;;  %v1595_v39 = vmul.f32 1.442695, %v1427_v40 }
 0x1be   : > { %v3876_v21 = vadd.f32 -1.0, %v4975_v37  ;;  %vm1297_vm6 = vcmp.gt.f32.partialorder %v5683_v44, 0.0  ;;  %v1597_v63 = vmul.f32 1.442695, %v1428_v14  ;;  %v1429_v61 = vmin.f32 %v5716_v11, 0.0  ;;  %v913_v14 = vld [vmem:[#allocation6 + $0x1a0] sm:$0xff] }
 0x1bf   : > { %4740 = vmatmul.mubr.bf16.gmra.mrb[28].mxu0 %v2042_v1  ;;  %v1933_v0 = vsel %vm1293_vm2, %v5649_v32, %v3875_v15  ;;  %4984 = vpow2.f32 %v1595_v39  ;;  %v1430_v25 = vmin.f32 %v5724_v52, 0.0  ;;  %v1040_v27 = vmul.f32 %v5353_v35, %v905_v24  ;;  %v911_v1 = vld [vmem:[#allocation6 + $0x190] sm:$0xff]  ;;  %v5779_v37 = vld [vmem:[#allocation5] ss:$0 sm:$0xff] }
 0x1c0   : > { %4743 = vmatprep.mubr.bf16.mxu0 %v2043_v23  ;;  %v1934_v28 = vsel %vm1294_vm3, %v5653_v10, %v3876_v21  ;;  %4986 = vpow2.f32 %v1597_v63  ;;  %v1599_v29 = vmul.f32 1.442695, %v1429_v61  ;;  %v1041_v31 = vmul.f32 %v5353_v35, %v906_v62 }
 0x1c1   : > { %v4977_v33 = vpop.eup %4976  ;;  %v2044_v34 = vpack.c.bf16 %v1934_v28, %v1933_v0  ;;  %v1601_v3 = vmul.f32 1.442695, %v1430_v25  ;;  %v5739_v42 = vadd.f32 %v5357_v38, %v1040_v27  ;;  %v1042_v32 = vmul.f32 %v5353_v35, %v907_v22 }
 0x1c2   : > { %v4979_v47 = vpop.eup %4978  ;;  %v3877_v45 = vadd.f32 -1.0, %v4977_v33  ;;  %4988 = vpow2.f32 %v1599_v29  ;;  %v5743_v53 = vadd.f32 %v5357_v38, %v1041_v31  ;;  %v1043_v10 = vmul.f32 %v5353_v35, %v908_v30  ;;  %v914_v29 = vld [vmem:[#allocation6 + $0x1a8] sm:$0xff]  ;;  %v915_v33 = vld [vmem:[#allocation6 + $0x1b0] sm:$0xff] }
 0x1c3   : > { %v4981_v48 = vpop.eup %4980  ;;  %v3878_v50 = vadd.f32 -1.0, %v4979_v47  ;;  %vm1298_vm7 = vcmp.gt.f32.partialorder %v5688_v49, 0.0  ;;  %4990 = vpow2.f32 %v1601_v3  ;;  %v1431_v16 = vmin.f32 %v5739_v42, 0.0 }
 0x1c4   : > { %v4983_v17 = vpop.eup %4982  ;;  %v1935_v51 = vsel %vm1295_vm4, %v5673_v7, %v3877_v45  ;;  %v3879_v54 = vadd.f32 -1.0, %v4981_v48  ;;  %vm1299_vm8 = vcmp.gt.f32.partialorder %v5703_v5, 0.0  ;;  %v1432_v55 = vmin.f32 %v5743_v53, 0.0 }
 0x1c5   : > { %v1936_v35 = vsel %vm1296_vm5, %v5677_v41, %v3878_v50  ;;  %v3880_v19 = vadd.f32 -1.0, %v4983_v17  ;;  %v1603_v56 = vmul.f32 1.442695, %v1431_v16  ;;  %v5757_v18 = vadd.f32 %v5357_v38, %v1042_v32  ;;  %v916_v16 = vld [vmem:[#allocation6 + $0x1b8] sm:$0xff] }
 0x1c6   : > { %v2045_v57 = vpack.c.bf16 %v1936_v35, %v1935_v51  ;;  %v1937_v58 = vsel %vm1297_vm6, %v5683_v44, %v3879_v54  ;;  %v1605_v7 = vmul.f32 1.442695, %v1432_v55  ;;  %v5763_v59 = vadd.f32 %v5357_v38, %v1043_v10 }
 0x1c7   : > { %4744 = vmatmul.mubr.bf16.gmra.mrb[32].mxu0 %v2044_v34  ;;  %v1938_v41 = vsel %vm1298_vm7, %v5688_v49, %v3880_v19  ;;  %vm1300_vm9 = vcmp.gt.f32.partialorder %v5707_v36, 0.0  ;;  %4992 = vpow2.f32 %v1603_v56  ;;  %v1433_v46 = vmin.f32 %v5757_v18, 0.0 }
 0x1c8   : > { %4747 = vmatprep.mubr.bf16.mxu0 %v2045_v57  ;;  %v2046_v2 = vpack.c.bf16 %v1938_v41, %v1937_v58  ;;  %vm1301_vm10 = vcmp.gt.f32.partialorder %v5716_v11, 0.0  ;;  %4994 = vpow2.f32 %v1605_v7  ;;  %v1434_v38 = vmin.f32 %v5763_v59, 0.0  ;;  %v917_v58 = vld [vmem:[#allocation6 + $0x1c0] sm:$0xff] }
 0x1c9   : > { %v4985_v44 = vpop.eup %4984  ;;  %v1607_v26 = vmul.f32 1.442695, %v1433_v46  ;;  %v1044_v43 = vmul.f32 %v5772_v6, %v909_v20  ;;  %v1045_v49 = vmul.f32 %v5772_v6, %v910_v60  ;;  %v1046_v8 = vmul.f32 %v5772_v6, %v911_v1 }
 0x1ca   : > { %v4987_v9 = vpop.eup %4986  ;;  %v3881_v40 = vadd.f32 -1.0, %v4985_v44  ;;  %vm1302_vm11 = vcmp.gt.f32.partialorder %v5724_v52, 0.0  ;;  %v1609_v12 = vmul.f32 1.442695, %v1434_v38  ;;  %v1047_v13 = vmul.f32 %v5772_v6, %v912_v4 }
 0x1cb   : > { %v3882_v24 = vadd.f32 -1.0, %v4987_v9  ;;  %4996 = vpow2.f32 %v1607_v26  ;;  %v5782_v23 = vadd.f32 %v5779_v37, %v1044_v43  ;;  %v5785_v15 = vadd.f32 %v5779_v37, %v1045_v49  ;;  %v918_v26 = vld [vmem:[#allocation6 + $0x1c8] sm:$0xff]  ;;  %v920_v9 = vld [vmem:[#allocation6 + $0x1d8] sm:$0xff] }
 0x1cc   : > { %v4989_v39 = vpop.eup %4988  ;;  %v1939_v62 = vsel %vm1299_vm8, %v5703_v5, %v3881_v40  ;;  %4998 = vpow2.f32 %v1609_v12  ;;  %v5791_v21 = vadd.f32 %v5779_v37, %v1046_v8  ;;  %v5794_v63 = vadd.f32 %v5779_v37, %v1047_v13  ;;  %v919_v8 = vld [vmem:[#allocation6 + $0x1d0] sm:$0xff] }
 0x1cd   : > { %v4991_v61 = vpop.eup %4990  ;;  %v1940_v22 = vsel %vm1300_vm9, %v5707_v36, %v3882_v24  ;;  %v3883_v0 = vadd.f32 -1.0, %v4989_v39  ;;  %vm1303_vm12 = vcmp.gt.f32.partialorder %v5739_v42, 0.0  ;;  %v1048_v25 = vmul.f32 %v5772_v6, %v913_v14 }
 0x1ce   : > { %v2047_v27 = vpack.c.bf16 %v1940_v22, %v1939_v62  ;;  %v3884_v30 = vadd.f32 -1.0, %v4991_v61  ;;  %v1435_v5 = vmin.f32 %v5782_v23, 0.0  ;;  %v1436_v28 = vmin.f32 %v5785_v15, 0.0 }
 0x1cf   : > { %4748 = vmatmul.mubr.bf16.gmra.mrb[36].mxu0 %v2046_v2  ;;  %v1941_v31 = vsel %vm1301_vm10, %v5716_v11, %v3883_v0  ;;  %vm1304_vm13 = vcmp.gt.f32.partialorder %v5743_v53, 0.0  ;;  %vm1305_vm14 = vcmp.gt.f32.partialorder %v5757_v18, 0.0  ;;  %v1437_v36 = vmin.f32 %v5791_v21, 0.0 }
 0x1d0   : > { %4751 = vmatprep.mubr.bf16.mxu0 %v2047_v27  ;;  %v1942_v34 = vsel %vm1302_vm11, %v5724_v52, %v3884_v30  ;;  %v1611_v3 = vmul.f32 1.442695, %v1435_v5  ;;  %v1613_v32 = vmul.f32 1.442695, %v1436_v28  ;;  %v1438_v47 = vmin.f32 %v5794_v63, 0.0 }
 0x1d1   : > { %v4993_v45 = vpop.eup %4992  ;;  %v2048_v10 = vpack.c.bf16 %v1942_v34, %v1941_v31  ;;  %v1615_v48 = vmul.f32 1.442695, %v1437_v36  ;;  %v1049_v11 = vmul.f32 %v5772_v6, %v914_v29  ;;  %v5815_v50 = vadd.f32 %v5779_v37, %v1048_v25 }
 0x1d2   : > { %v4995_v17 = vpop.eup %4994  ;;  %v3885_v51 = vadd.f32 -1.0, %v4993_v45  ;;  %5000 = vpow2.f32 %v1611_v3  ;;  %v1617_v54 = vmul.f32 1.442695, %v1438_v47  ;;  %v1050_v55 = vmul.f32 %v5772_v6, %v915_v33  ;;  %v922_v45 = vld [vmem:[#allocation6 + $0x1e8] sm:$0xff] }
 0x1d3   : > { %v3886_v52 = vadd.f32 -1.0, %v4995_v17  ;;  %vm1306_vm15 = vcmp.gt.f32.partialorder %v5763_v59, 0.0  ;;  %5002 = vpow2.f32 %v1613_v32  ;;  %v5820_v35 = vadd.f32 %v5779_v37, %v1049_v11 }
 0x1d4   : > { %v1943_v19 = vsel %vm1303_vm12, %v5739_v42, %v3885_v51  ;;  %5004 = vpow2.f32 %v1615_v48  ;;  %v1439_v56 = vmin.f32 %v5815_v50, 0.0  ;;  %v1051_v57 = vmul.f32 %v5772_v6, %v916_v16 }
 0x1d5   : > { %v4997_v7 = vpop.eup %4996  ;;  %v1944_v20 = vsel %vm1304_vm13, %v5743_v53, %v3886_v52  ;;  %vm1307_vm0 = vcmp.gt.f32.partialorder %v5782_v23, 0.0  ;;  %5006 = vpow2.f32 %v1617_v54  ;;  %v1440_v60 = vmin.f32 %v5820_v35, 0.0 }
 0x1d6   : > { %v4999_v1 = vpop.eup %4998  ;;  %v2049_v41 = vpack.c.bf16 %v1944_v20, %v1943_v19  ;;  %v3887_v46 = vadd.f32 -1.0, %v4997_v7  ;;  %v1619_v42 = vmul.f32 1.442695, %v1439_v56  ;;  %v5833_v4 = vadd.f32 %v5779_v37, %v1050_v55  ;;  %v923_v19 = vld [vmem:[#allocation6 + $0x1f0] sm:$0xff]  ;;  %v924_v56 = vld [vmem:[#allocation6 + $0x1f8] sm:$0xff] }
 0x1d7   : > { %4752 = vmatmul.mubr.bf16.gmra.mrb[40].mxu0 %v2048_v10  ;;  %v3888_v2 = vadd.f32 -1.0, %v4999_v1  ;;  %v1621_v38 = vmul.f32 1.442695, %v1440_v60  ;;  %v5836_v44 = vadd.f32 %v5779_v37, %v1051_v57  ;;  %v1052_v53 = vmul.f32 %v5772_v6, %v917_v58 }
 0x1d8   : > { %4755 = vmatprep.mubr.bf16.mxu0 %v2049_v41  ;;  %v1945_v43 = vsel %vm1305_vm14, %v5757_v18, %v3887_v46  ;;  %vm1308_vm1 = vcmp.gt.f32.partialorder %v5785_v15, 0.0  ;;  %5008 = vpow2.f32 %v1619_v42  ;;  %v1441_v49 = vmin.f32 %v5833_v4, 0.0 }
 0x1d9   : > { %v1946_v40 = vsel %vm1306_vm15, %v5763_v59, %v3888_v2  ;;  %vm1309_vm2 = vcmp.gt.f32.partialorder %v5791_v21, 0.0  ;;  %5010 = vpow2.f32 %v1621_v38  ;;  %v1442_v12 = vmin.f32 %v5836_v44, 0.0  ;;  %v921_v59 = vld [vmem:[#allocation6 + $0x1e0] sm:$0xff] }
 0x1da   : > { %v2050_v13 = vpack.c.bf16 %v1946_v40, %v1945_v43  ;;  %v1623_v14 = vmul.f32 1.442695, %v1441_v49  ;;  %v1053_v18 = vmul.f32 %v5772_v6, %v918_v26  ;;  %v5851_v24 = vadd.f32 %v5779_v37, %v1052_v53  ;;  %v925_v2 = vld [vmem:[#allocation6 + $0x200] sm:$0xff] }
 0x1db   : > { %vm1310_vm3 = vcmp.gt.f32.partialorder %v5794_v63, 0.0  ;;  %v1625_v39 = vmul.f32 1.442695, %v1442_v12  ;;  %v1054_v62 = vmul.f32 %v5772_v6, %v919_v8  ;;  %v1055_v61 = vmul.f32 %v5772_v6, %v920_v9 }
 0x1dc   : > { %v5001_v22 = vpop.eup %5000  ;;  %vm1311_vm4 = vcmp.gt.f32.partialorder %v5815_v50, 0.0  ;;  %5012 = vpow2.f32 %v1623_v14  ;;  %v5858_v0 = vadd.f32 %v5779_v37, %v1053_v18  ;;  %v1443_v25 = vmin.f32 %v5851_v24, 0.0  ;;  %v926_v14 = vld [vmem:[#allocation6 + $0x208] sm:$0xff] }
 0x1dd   : > { %v5003_v27 = vpop.eup %5002  ;;  %v3889_v30 = vadd.f32 -1.0, %v5001_v22  ;;  %5014 = vpow2.f32 %v1625_v39  ;;  %v5862_v5 = vadd.f32 %v5779_v37, %v1054_v62  ;;  %v5865_v28 = vadd.f32 %v5779_v37, %v1055_v61  ;;  %v927_v62 = vld [vmem:[#allocation6 + $0x210] sm:$0xff]  ;;  %v928_v61 = vld [vmem:[#allocation6 + $0x218] sm:$0xff] }
 0x1de   : > { %v5005_v29 = vpop.eup %5004  ;;  %v3890_v31 = vadd.f32 -1.0, %v5003_v27  ;;  %v1444_v36 = vmin.f32 %v5858_v0, 0.0  ;;  %v1627_v33 = vmul.f32 1.442695, %v1443_v25  ;;  %v1056_v34 = vmul.f32 %v5772_v6, %v921_v59 }
 0x1df   : > { %4756 = vmatmul.mubr.bf16.gmra.mrb[44].mxu0 %v2050_v13  ;;  %v5007_v3 = vpop.eup %5006  ;;  %v1947_v32 = vsel %vm1307_vm0, %v5782_v23, %v3889_v30  ;;  %v3891_v47 = vadd.f32 -1.0, %v5005_v29  ;;  %vm1312_vm5 = vcmp.gt.f32.partialorder %v5820_v35, 0.0  ;;  %vm1313_vm6 = vcmp.gt.f32.partialorder %v5833_v4, 0.0 }
 0x1e0   : > { %v1948_v10 = vsel %vm1308_vm1, %v5785_v15, %v3890_v31  ;;  %v3892_v48 = vadd.f32 -1.0, %v5007_v3  ;;  %5016 = vpow2.f32 %v1627_v33  ;;  %v1629_v11 = vmul.f32 1.442695, %v1444_v36 }
 0x1e1   : > { %v2051_v16 = vpack.c.bf16 %v1948_v10, %v1947_v32  ;;  %v1949_v17 = vsel %vm1309_vm2, %v5791_v21, %v3891_v47  ;;  %v1445_v23 = vmin.f32 %v5862_v5, 0.0  ;;  %v1446_v51 = vmin.f32 %v5865_v28, 0.0 }
 0x1e2   : > { %v5009_v54 = vpop.eup %5008  ;;  %v1950_v55 = vsel %vm1310_vm3, %v5794_v63, %v3892_v48  ;;  %5018 = vpow2.f32 %v1629_v11  ;;  %v1057_v15 = vmul.f32 %v5772_v6, %v922_v45  ;;  %v5887_v52 = vadd.f32 %v5779_v37, %v1056_v34 }
 0x1e3   : > { %v5011_v57 = vpop.eup %5010  ;;  %4759 = vmatprep.mubr.bf16.mxu0 %v2051_v16  ;;  %v2052_v21 = vpack.c.bf16 %v1950_v55, %v1949_v17  ;;  %v3893_v58 = vadd.f32 -1.0, %v5009_v54  ;;  %v1631_v7 = vmul.f32 1.442695, %v1445_v23  ;;  %v1633_v20 = vmul.f32 1.442695, %v1446_v51  ;;  %v929_v17 = vld [vmem:[#allocation6 + $0x220] sm:$0xff] }
 0x1e4   : > { %v3894_v60 = vadd.f32 -1.0, %v5011_v57  ;;  %vm1314_vm7 = vcmp.gt.f32.partialorder %v5836_v44, 0.0  ;;  %v5891_v1 = vadd.f32 %v5779_v37, %v1057_v15  ;;  %v1447_v63 = vmin.f32 %v5887_v52, 0.0  ;;  %v930_v15 = vld [vmem:[#allocation6 + $0x228] sm:$0xff] }
 0x1e5   : > { %v1951_v41 = vsel %vm1311_vm4, %v5815_v50, %v3893_v58  ;;  %5020 = vpow2.f32 %v1631_v7  ;;  %v1058_v46 = vmul.f32 %v5772_v6, %v923_v19  ;;  %v1059_v42 = vmul.f32 %v5772_v6, %v924_v56  ;;  %v931_v7 = vld [vmem:[#allocation6 + $0x230] sm:$0xff] }
 0x1e6   : > { %v5013_v38 = vpop.eup %5012  ;;  %v1952_v26 = vsel %vm1312_vm5, %v5820_v35, %v3894_v60  ;;  %vm1315_vm8 = vcmp.gt.f32.partialorder %v5851_v24, 0.0  ;;  %5022 = vpow2.f32 %v1633_v20  ;;  %v1448_v53 = vmin.f32 %v5891_v1, 0.0 }
 0x1e7   : > { %4760 = vmatmul.mubr.bf16.gmra.mrb[48].mxu0 %v2052_v21  ;;  %v5015_v43 = vpop.eup %5014  ;;  %v2053_v49 = vpack.c.bf16 %v1952_v26, %v1951_v41  ;;  %v3895_v8 = vadd.f32 -1.0, %v5013_v38  ;;  %v1635_v50 = vmul.f32 1.442695, %v1447_v63  ;;  %v5905_v9 = vadd.f32 %v5779_v37, %v1058_v46  ;;  %v932_v26 = vld [vmem:[#allocation6 + $0x238] sm:$0xff] }
 0x1e8   : > { %v3896_v40 = vadd.f32 -1.0, %v5015_v43  ;;  %v1637_v12 = vmul.f32 1.442695, %v1448_v53  ;;  %v5908_v13 = vadd.f32 %v5779_v37, %v1059_v42  ;;  %v1060_v35 = vmul.f32 %v5772_v6, %v925_v2 }
 0x1e9   : > { %4763 = vmatprep.mubr.bf16.mxu0 %v2053_v49  ;;  %v1953_v18 = vsel %vm1313_vm6, %v5833_v4, %v3895_v8  ;;  %vm1316_vm9 = vcmp.gt.f32.partialorder %v5858_v0, 0.0  ;;  %5024 = vpow2.f32 %v1635_v50  ;;  %v1449_v39 = vmin.f32 %v5905_v9, 0.0  ;;  %v933_v50 = vld [vmem:[#allocation6 + $0x240] sm:$0xff] }
 0x1ea   : > { %v5017_v59 = vpop.eup %5016  ;;  %v1954_v22 = vsel %vm1314_vm7, %v5836_v44, %v3896_v40  ;;  %vm1317_vm10 = vcmp.gt.f32.partialorder %v5862_v5, 0.0  ;;  %5026 = vpow2.f32 %v1637_v12  ;;  %v1450_v25 = vmin.f32 %v5908_v13, 0.0 }
 0x1eb   : > { %v2054_v27 = vpack.c.bf16 %v1954_v22, %v1953_v18  ;;  %v3897_v30 = vadd.f32 -1.0, %v5017_v59  ;;  %v1639_v4 = vmul.f32 1.442695, %v1449_v39  ;;  %v1061_v29 = vmul.f32 %v5772_v6, %v926_v14 }
 0x1ec   : > { %v5019_v31 = vpop.eup %5018  ;;  %v1641_v36 = vmul.f32 1.442695, %v1450_v25  ;;  %v5923_v33 = vadd.f32 %v5779_v37, %v1060_v35  ;;  %v1062_v34 = vmul.f32 %v5772_v6, %v927_v62  ;;  %v1063_v3 = vmul.f32 %v5772_v6, %v928_v61 }
 0x1ed   : > { %v3898_v44 = vadd.f32 -1.0, %v5019_v31  ;;  %v1955_v32 = vsel %vm1315_vm8, %v5851_v24, %v3897_v30  ;;  %5028 = vpow2.f32 %v1639_v4  ;;  %v5931_v47 = vadd.f32 %v5779_v37, %v1061_v29  ;;  %v935_v29 = vld [vmem:[#allocation6 + $0x250] sm:$0xff]  ;;  %v936_v31 = vld [vmem:[#allocation6 + $0x258] sm:$0xff] }
 0x1ee   : > { %vm1318_vm11 = vcmp.gt.f32.partialorder %v5865_v28, 0.0  ;;  %5030 = vpow2.f32 %v1641_v36  ;;  %v1451_v45 = vmin.f32 %v5923_v33, 0.0  ;;  %v5936_v10 = vadd.f32 %v5779_v37, %v1062_v34 }
 0x1ef   : > { %4764 = vmatmul.mubr.bf16.gmra.mrb[52].mxu0 %v2054_v27  ;;  %v5021_v48 = vpop.eup %5020  ;;  %v1956_v11 = vsel %vm1316_vm9, %v5858_v0, %v3898_v44  ;;  %vm1319_vm12 = vcmp.gt.f32.partialorder %v5887_v52, 0.0  ;;  %v1452_v24 = vmin.f32 %v5931_v47, 0.0  ;;  %v5944_v16 = vadd.f32 %v5779_v37, %v1063_v3  ;;  %v934_v27 = vld [vmem:[#allocation6 + $0x248] sm:$0xff] }
 0x1f0   : > { %v5023_v23 = vpop.eup %5022  ;;  %v2055_v51 = vpack.c.bf16 %v1956_v11, %v1955_v32  ;;  %v3899_v54 = vadd.f32 -1.0, %v5021_v48  ;;  %vm1320_vm13 = vcmp.gt.f32.partialorder %v5891_v1, 0.0  ;;  %v1643_v55 = vmul.f32 1.442695, %v1451_v45 }
 0x1f1   : > { %v3900_v19 = vadd.f32 -1.0, %v5023_v23  ;;  %vm1321_vm14 = vcmp.gt.f32.partialorder %v5905_v9, 0.0  ;;  %v1645_v56 = vmul.f32 1.442695, %v1452_v24  ;;  %v1453_v0 = vmin.f32 %v5936_v10, 0.0 }
 0x1f2   : > { %4767 = vmatprep.mubr.bf16.mxu0 %v2055_v51  ;;  %v1957_v57 = vsel %vm1317_vm10, %v5862_v5, %v3899_v54  ;;  %5032 = vpow2.f32 %v1643_v55  ;;  %v1454_v21 = vmin.f32 %v5944_v16, 0.0  ;;  %v1064_v58 = vmul.f32 %v5772_v6, %v929_v17 }
 0x1f3   : > { %v5025_v20 = vpop.eup %5024  ;;  %v1958_v60 = vsel %vm1318_vm11, %v5865_v28, %v3900_v19  ;;  %5034 = vpow2.f32 %v1645_v56  ;;  %v1647_v63 = vmul.f32 1.442695, %v1453_v0  ;;  %v1065_v41 = vmul.f32 %v5772_v6, %v930_v15 }
 0x1f4   : > { %v5027_v46 = vpop.eup %5026  ;;  %v2056_v42 = vpack.c.bf16 %v1958_v60, %v1957_v57  ;;  %v3901_v2 = vadd.f32 -1.0, %v5025_v20  ;;  %v1649_v38 = vmul.f32 1.442695, %v1454_v21  ;;  %v5959_v5 = vadd.f32 %v5779_v37, %v1064_v58  ;;  %v937_v60 = vld [vmem:[#allocation6 + $0x260] sm:$0xff] }
 0x1f5   : > { %v3902_v53 = vadd.f32 -1.0, %v5027_v46  ;;  %5036 = vpow2.f32 %v1647_v63  ;;  %v5962_v43 = vadd.f32 %v5779_v37, %v1065_v41  ;;  %v1066_v49 = vmul.f32 %v5772_v6, %v931_v7  ;;  %v938_v46 = vld [vmem:[#allocation6 + $0x268] sm:$0xff] }
 0x1f6   : > { %v1959_v28 = vsel %vm1319_vm12, %v5887_v52, %v3901_v2  ;;  %vm1322_vm15 = vcmp.gt.f32.partialorder %v5908_v13, 0.0  ;;  %5038 = vpow2.f32 %v1649_v38  ;;  %v1455_v8 = vmin.f32 %v5959_v5, 0.0 }
 0x1f7   : > { %4768 = vmatmul.mubr.bf16.gmra.mrb[56].mxu0 %v2056_v42  ;;  %v5029_v40 = vpop.eup %5028  ;;  %v1960_v12 = vsel %vm1320_vm13, %v5891_v1, %v3902_v53  ;;  %vm1323_vm0 = vcmp.gt.f32.partialorder %v5923_v33, 0.0  ;;  %v1456_v14 = vmin.f32 %v5962_v43, 0.0  ;;  %v1067_v35 = vmul.f32 %v5772_v6, %v932_v26  ;;  %v939_v42 = vld [vmem:[#allocation6 + $0x270] sm:$0xff]  ;;  %v940_v26 = vld [vmem:[#allocation6 + $0x278] sm:$0xff] }
 0x1f8   : > { %v5031_v18 = vpop.eup %5030  ;;  %v2057_v39 = vpack.c.bf16 %v1960_v12, %v1959_v28  ;;  %v3903_v52 = vadd.f32 -1.0, %v5029_v40  ;;  %v1651_v62 = vmul.f32 1.442695, %v1455_v8  ;;  %v5977_v61 = vadd.f32 %v5779_v37, %v1066_v49 }
 0x1f9   : > { %v3904_v59 = vadd.f32 -1.0, %v5031_v18  ;;  %v1653_v22 = vmul.f32 1.442695, %v1456_v14  ;;  %v5980_v25 = vadd.f32 %v5779_v37, %v1067_v35  ;;  %v1068_v1 = vmul.f32 %v5772_v6, %v933_v50 }
 0x1fa   : > { %4771 = vmatprep.mubr.bf16.mxu0 %v2057_v39  ;;  %v1961_v30 = vsel %vm1321_vm14, %v5905_v9, %v3903_v52  ;;  %vm1324_vm1 = vcmp.gt.f32.partialorder %v5931_v47, 0.0  ;;  %5040 = vpow2.f32 %v1651_v62  ;;  %v1457_v4 = vmin.f32 %v5977_v61, 0.0 }
 0x1fb   : > { %v1962_v36 = vsel %vm1322_vm15, %v5908_v13, %v3904_v59  ;;  %vm1325_vm2 = vcmp.gt.f32.partialorder %v5936_v10, 0.0  ;;  %5042 = vpow2.f32 %v1653_v22  ;;  %v1458_v34 = vmin.f32 %v5980_v25, 0.0 }
 0x1fc   : > { %v5033_v3 = vpop.eup %5032  ;;  %v2058_v44 = vpack.c.bf16 %v1962_v36, %v1961_v30  ;;  %v1655_v32 = vmul.f32 1.442695, %v1457_v4  ;;  %v1069_v9 = vmul.f32 %v5772_v6, %v934_v27  ;;  %v5995_v45 = vadd.f32 %v5779_v37, %v1068_v1  ;;  %v942_v36 = vld [vmem:[#allocation6 + $0x288] sm:$0xff] }
 0x1fd   : > { %v5035_v48 = vpop.eup %5034  ;;  %v3905_v11 = vadd.f32 -1.0, %v5033_v3  ;;  %v1657_v24 = vmul.f32 1.442695, %v1458_v34  ;;  %v1070_v17 = vmul.f32 %v5772_v6, %v935_v29  ;;  %v1071_v13 = vmul.f32 %v5772_v6, %v936_v31  ;;  %v941_v31 = vld [vmem:[#allocation6 + $0x280] sm:$0xff] }
 0x1fe   : > { %v3906_v23 = vadd.f32 -1.0, %v5035_v48  ;;  %vm1326_vm3 = vcmp.gt.f32.partialorder %v5944_v16, 0.0  ;;  %5044 = vpow2.f32 %v1655_v32  ;;  %v6001_v51 = vadd.f32 %v5779_v37, %v1069_v9  ;;  %v943_v48 = vld [vmem:[#allocation6 + $0x290] sm:$0xff] }
 0x1ff   : > { %4772 = vmatmul.mubr.bf16.gmra.mrb[60].mxu0 %v2058_v44  ;;  %v5037_v54 = vpop.eup %5036  ;;  %v1963_v55 = vsel %vm1323_vm0, %v5923_v33, %v3905_v11  ;;  %5046 = vpow2.f32 %v1657_v24  ;;  %v1459_v15 = vmin.f32 %v5995_v45, 0.0  ;;  %v6008_v19 = vadd.f32 %v5779_v37, %v1070_v17 }
 0x200   : > { %v5039_v56 = vpop.eup %5038  ;;  %v1964_v0 = vsel %vm1324_vm1, %v5931_v47, %v3906_v23  ;;  %v3907_v57 = vadd.f32 -1.0, %v5037_v54  ;;  %vm1327_vm4 = vcmp.gt.f32.partialorder %v5959_v5, 0.0  ;;  %v1460_v21 = vmin.f32 %v6001_v51, 0.0 }
 0x201   : > { %v2059_v58 = vpack.c.bf16 %v1964_v0, %v1963_v55  ;;  %v3908_v7 = vadd.f32 -1.0, %v5039_v56  ;;  %v1659_v20 = vmul.f32 1.442695, %v1459_v15  ;;  %v6016_v33 = vadd.f32 %v5779_v37, %v1071_v13  ;;  %v944_v13 = vld [vmem:[#allocation6 + $0x298] sm:$0xff]  ;;  %v945_v15 = vld [vmem:[#allocation6 + $0x2a0] sm:$0xff] }
 0x202   : > { %v1965_v63 = vsel %vm1325_vm2, %v5936_v10, %v3907_v57  ;;  %vm1328_vm5 = vcmp.gt.f32.partialorder %v5962_v43, 0.0  ;;  %v1661_v41 = vmul.f32 1.442695, %v1460_v21  ;;  %v1461_v47 = vmin.f32 %v6008_v19, 0.0 }
 0x203   : > { %4775 = vmatprep.mubr.bf16.mxu1 %v2059_v58  ;;  %v1966_v2 = vsel %vm1326_vm3, %v5944_v16, %v3908_v7  ;;  %vm1329_vm6 = vcmp.gt.f32.partialorder %v5977_v61, 0.0  ;;  %5048 = vpow2.f32 %v1659_v20  ;;  %v1462_v38 = vmin.f32 %v6016_v33, 0.0 }
 0x204   : > { %v5041_v53 = vpop.eup %5040  ;;  %v2060_v10 = vpack.c.bf16 %v1966_v2, %v1965_v63  ;;  %5050 = vpow2.f32 %v1661_v41  ;;  %v1663_v49 = vmul.f32 1.442695, %v1461_v47  ;;  %v1072_v28 = vmul.f32 %v5772_v6, %v937_v60  ;;  %v946_v63 = vld [vmem:[#allocation6 + $0x2a8] sm:$0xff] }
 0x205   : > { %v5043_v8 = vpop.eup %5042  ;;  %v3909_v50 = vadd.f32 -1.0, %v5041_v53  ;;  %v1665_v40 = vmul.f32 1.442695, %v1462_v38  ;;  %v1073_v12 = vmul.f32 %v5772_v6, %v938_v46  ;;  %v1074_v14 = vmul.f32 %v5772_v6, %v939_v42 }
 0x206   : > { %4776 = vmatmul.mubr.bf16.vlgmr.msra.gmra.mrb[0].mxu1 %v2060_v10  ;;  %v3910_v16 = vadd.f32 -1.0, %v5043_v8  ;;  %5052 = vpow2.f32 %v1663_v49  ;;  %v6032_v35 = vadd.f32 %v5779_v37, %v1072_v28  ;;  %v1075_v18 = vmul.f32 %v5772_v6, %v940_v26 }
 0x207   : > { %v1967_v39 = vsel %vm1327_vm4, %v5959_v5, %v3909_v50  ;;  %5054 = vpow2.f32 %v1665_v40  ;;  %v6039_v52 = vadd.f32 %v5779_v37, %v1073_v12  ;;  %v6042_v62 = vadd.f32 %v5779_v37, %v1074_v14  ;;  %v947_v50 = vld [vmem:[#allocation6 + $0x2b0] sm:$0xff] }
 0x208   : > { %v5045_v59 = vpop.eup %5044  ;;  %v1968_v22 = vsel %vm1328_vm5, %v5962_v43, %v3910_v16  ;;  %vm1330_vm7 = vcmp.gt.f32.partialorder %v5980_v25, 0.0  ;;  %v1463_v27 = vmin.f32 %v6032_v35, 0.0  ;;  %v6050_v1 = vadd.f32 %v5779_v37, %v1075_v18 }
 0x209   : > { %v5047_v5 = vpop.eup %5046  ;;  %v2061_v30 = vpack.c.bf16 %v1968_v22, %v1967_v39  ;;  %v3911_v4 = vadd.f32 -1.0, %v5045_v59  ;;  %vm1331_vm8 = vcmp.gt.f32.partialorder %v5995_v45, 0.0  ;;  %v1464_v29 = vmin.f32 %v6039_v52, 0.0 }
 0x20a   : > { %v3912_v34 = vadd.f32 -1.0, %v5047_v5  ;;  %vm1332_vm9 = vcmp.gt.f32.partialorder %v6001_v51, 0.0  ;;  %vm1333_vm10 = vcmp.gt.f32.partialorder %v6008_v19, 0.0  ;;  %v1667_v43 = vmul.f32 1.442695, %v1463_v27 }
 0x20b   : > { %4779 = vmatprep.mubr.bf16.mxu1 %v2061_v30  ;;  %v1969_v3 = vsel %vm1329_vm6, %v5977_v61, %v3911_v4  ;;  %v1669_v44 = vmul.f32 1.442695, %v1464_v29  ;;  %v1465_v32 = vmin.f32 %v6042_v62, 0.0  ;;  %v1466_v9 = vmin.f32 %v6050_v1, 0.0 }
 0x20c   : > { %v1970_v11 = vsel %vm1330_vm7, %v5980_v25, %v3912_v34  ;;  %5056 = vpow2.f32 %v1667_v43  ;;  %v1076_v24 = vmul.f32 %v5772_v6, %v941_v31  ;;  %v1077_v17 = vmul.f32 %v5772_v6, %v942_v36 }
 0x20d   : > { %v5049_v23 = vpop.eup %5048  ;;  %v2062_v54 = vpack.c.bf16 %v1970_v11, %v1969_v3  ;;  %5058 = vpow2.f32 %v1669_v44  ;;  %v1671_v61 = vmul.f32 1.442695, %v1465_v32  ;;  %v1673_v55 = vmul.f32 1.442695, %v1466_v9 }
 0x20e   : > { %v5051_v56 = vpop.eup %5050  ;;  %v3913_v0 = vadd.f32 -1.0, %v5049_v23  ;;  %v6067_v57 = vadd.f32 %v5779_v37, %v1076_v24  ;;  %v6070_v21 = vadd.f32 %v5779_v37, %v1077_v17  ;;  %v1078_v25 = vmul.f32 %v5772_v6, %v943_v48  ;;  %v949_v24 = vld [vmem:[#allocation6 + $0x2c0] sm:$0xff]  ;;  %v950_v23 = vld [vmem:[#allocation6 + $0x2c8] sm:$0xff] }
 0x20f   : > { %4780 = vmatmul.mubr.bf16.gmra.mrb[4].mxu1 %v2062_v54  ;;  %v3914_v58 = vadd.f32 -1.0, %v5051_v56  ;;  %vm1334_vm11 = vcmp.gt.f32.partialorder %v6016_v33, 0.0  ;;  %5060 = vpow2.f32 %v1671_v61  ;;  %v1079_v7 = vmul.f32 %v5772_v6, %v944_v13  ;;  %v951_v54 = vld [vmem:[#allocation6 + $0x2d0] sm:$0xff] }
 0x210   : > { %v5053_v20 = vpop.eup %5052  ;;  %v1971_v60 = vsel %vm1331_vm8, %v5995_v45, %v3913_v0  ;;  %vm1335_vm12 = vcmp.gt.f32.partialorder %v6032_v35, 0.0  ;;  %5062 = vpow2.f32 %v1673_v55  ;;  %v1080_v41 = vmul.f32 %v5772_v6, %v945_v15  ;;  %v952_v55 = vld [vmem:[#allocation6 + $0x2d8] sm:$0xff] }
 0x211   : > { %v5055_v47 = vpop.eup %5054  ;;  %v1972_v46 = vsel %vm1332_vm9, %v6001_v51, %v3914_v58  ;;  %v3915_v42 = vadd.f32 -1.0, %v5053_v20  ;;  %v1467_v2 = vmin.f32 %v6067_v57, 0.0  ;;  %v1468_v38 = vmin.f32 %v6070_v21, 0.0 }
 0x212   : > { %v2063_v26 = vpack.c.bf16 %v1972_v46, %v1971_v60  ;;  %v3916_v53 = vadd.f32 -1.0, %v5055_v47  ;;  %v6086_v45 = vadd.f32 %v5779_v37, %v1078_v25  ;;  %v6089_v10 = vadd.f32 %v5779_v37, %v1079_v7 }
 0x213   : > { %v1973_v49 = vsel %vm1333_vm10, %v6008_v19, %v3915_v42  ;;  %v1675_v28 = vmul.f32 1.442695, %v1467_v2  ;;  %v1677_v8 = vmul.f32 1.442695, %v1468_v38  ;;  %v1081_v51 = vmul.f32 %v5772_v6, %v946_v63 }
 0x214   : > { %4783 = vmatprep.mubr.bf16.mxu1 %v2063_v26  ;;  %v1974_v40 = vsel %vm1334_vm11, %v6016_v33, %v3916_v53  ;;  %vm1336_vm13 = vcmp.gt.f32.partialorder %v6039_v52, 0.0  ;;  %vm1337_vm14 = vcmp.gt.f32.partialorder %v6042_v62, 0.0  ;;  %v1469_v12 = vmin.f32 %v6086_v45, 0.0  ;;  %v948_v33 = vld [vmem:[#allocation6 + $0x2b8] sm:$0xff]  ;;  %v953_v26 = vld [vmem:[#allocation6 + $0x2e0] sm:$0xff] }
 0x215   : > { %v2064_v14 = vpack.c.bf16 %v1974_v40, %v1973_v49  ;;  %5064 = vpow2.f32 %v1675_v28  ;;  %v1470_v19 = vmin.f32 %v6089_v10, 0.0  ;;  %v6103_v16 = vadd.f32 %v5779_v37, %v1080_v41 }
 0x216   : > { %v5057_v18 = vpop.eup %5056  ;;  %5066 = vpow2.f32 %v1677_v8  ;;  %v1679_v39 = vmul.f32 1.442695, %v1469_v12  ;;  %v6106_v59 = vadd.f32 %v5779_v37, %v1081_v51  ;;  %v1082_v22 = vmul.f32 %v5772_v6, %v947_v50 }
 0x217   : > { %v5059_v27 = vpop.eup %5058  ;;  %4784 = vmatmul.mubr.bf16.gmra.mrb[8].mxu1 %v2064_v14  ;;  %v3917_v5 = vadd.f32 -1.0, %v5057_v18  ;;  %vm1338_vm15 = vcmp.gt.f32.partialorder %v6050_v1, 0.0  ;;  %v1681_v30 = vmul.f32 1.442695, %v1470_v19  ;;  %v1471_v4 = vmin.f32 %v6103_v16, 0.0  ;;  %v954_v14 = vld [vmem:[#allocation6 + $0x2e8] sm:$0xff] }
 0x218   : > { %v3918_v29 = vadd.f32 -1.0, %v5059_v27  ;;  %vm1339_vm0 = vcmp.gt.f32.partialorder %v6067_v57, 0.0  ;;  %5068 = vpow2.f32 %v1679_v39  ;;  %v1472_v31 = vmin.f32 %v6106_v59, 0.0 }
 0x219   : > { %v5061_v36 = vpop.eup %5060  ;;  %v1975_v34 = vsel %vm1335_vm12, %v6032_v35, %v3917_v5  ;;  %5070 = vpow2.f32 %v1681_v30  ;;  %v1683_v43 = vmul.f32 1.442695, %v1471_v4  ;;  %v1083_v3 = vmul.f32 %v5772_v6, %v948_v33  ;;  %v955_v5 = vld [vmem:[#allocation6 + $0x2f0] sm:$0xff] }
 0x21a   : > { %v5063_v44 = vpop.eup %5062  ;;  %v1976_v32 = vsel %vm1336_vm13, %v6039_v52, %v3918_v29  ;;  %v3919_v9 = vadd.f32 -1.0, %v5061_v36  ;;  %v1685_v48 = vmul.f32 1.442695, %v1472_v31  ;;  %v6121_v11 = vadd.f32 %v5779_v37, %v1082_v22  ;;  %v956_v36 = vld [vmem:[#allocation6 + $0x2f8] sm:$0xff] }
 0x21b   : > { %v2065_v17 = vpack.c.bf16 %v1976_v32, %v1975_v34  ;;  %v3920_v13 = vadd.f32 -1.0, %v5063_v44  ;;  %5072 = vpow2.f32 %v1683_v43  ;;  %v6124_v35 = vadd.f32 %v5779_v37, %v1083_v3  ;;  %v957_v34 = vld [vmem:[#allocation6 + $0x300] sm:$0xff] }
 0x21c   : > { %v1977_v61 = vsel %vm1337_vm14, %v6042_v62, %v3919_v9  ;;  %vm1340_vm1 = vcmp.gt.f32.partialorder %v6070_v21, 0.0  ;;  %5074 = vpow2.f32 %v1685_v48  ;;  %v1473_v52 = vmin.f32 %v6121_v11, 0.0 }
 0x21d   : > { %4787 = vmatprep.mubr.bf16.mxu1 %v2065_v17  ;;  %v1978_v15 = vsel %vm1338_vm15, %v6050_v1, %v3920_v13  ;;  %vm1341_vm2 = vcmp.gt.f32.partialorder %v6086_v45, 0.0  ;;  %v1474_v56 = vmin.f32 %v6124_v35, 0.0  ;;  %v1084_v0 = vmul.f32 %v5772_v6, %v949_v24  ;;  %v958_v13 = vld [vmem:[#allocation6 + $0x308] sm:$0xff] }
 0x21e   : > { %v2066_v25 = vpack.c.bf16 %v1978_v15, %v1977_v61  ;;  %v1687_v58 = vmul.f32 1.442695, %v1473_v52  ;;  %v1085_v62 = vmul.f32 %v5772_v6, %v950_v23  ;;  %v1086_v7 = vmul.f32 %v5772_v6, %v951_v54 }
 0x21f   : > { %v5065_v20 = vpop.eup %5064  ;;  %vm1342_vm3 = vcmp.gt.f32.partialorder %v6089_v10, 0.0  ;;  %v1689_v60 = vmul.f32 1.442695, %v1474_v56  ;;  %v6141_v63 = vadd.f32 %v5779_v37, %v1084_v0  ;;  %v1087_v1 = vmul.f32 %v5772_v6, %v952_v55  ;;  %v6200_v0 = vld [vmem:[#allocation4] ss:$0 sm:$0xff] }
 0x220   : > { %v5067_v41 = vpop.eup %5066  ;;  %4788 = vmatmul.mubr.bf16.gmra.mrb[12].mxu1 %v2066_v25  ;;  %v3921_v47 = vadd.f32 -1.0, %v5065_v20  ;;  %vm1343_vm4 = vcmp.gt.f32.partialorder %v6103_v16, 0.0  ;;  %5076 = vpow2.f32 %v1687_v58  ;;  %v6146_v46 = vadd.f32 %v5779_v37, %v1085_v62 }
 0x221   : > { %v3922_v42 = vadd.f32 -1.0, %v5067_v41  ;;  %5078 = vpow2.f32 %v1689_v60  ;;  %v1475_v2 = vmin.f32 %v6141_v63, 0.0  ;;  %v6150_v38 = vadd.f32 %v5779_v37, %v1086_v7 }
 0x222   : > { %v5069_v53 = vpop.eup %5068  ;;  %v1979_v49 = vsel %vm1339_vm0, %v6067_v57, %v3921_v47  ;;  %vm1344_vm5 = vcmp.gt.f32.partialorder %v6106_v59, 0.0  ;;  %v1476_v28 = vmin.f32 %v6146_v46, 0.0  ;;  %v6158_v8 = vadd.f32 %v5779_v37, %v1087_v1 }
 0x223   : > { %v5071_v51 = vpop.eup %5070  ;;  %v1980_v50 = vsel %vm1340_vm1, %v6070_v21, %v3922_v42  ;;  %v3923_v40 = vadd.f32 -1.0, %v5069_v53  ;;  %vm1345_vm6 = vcmp.gt.f32.partialorder %v6121_v11, 0.0  ;;  %v1691_v12 = vmul.f32 1.442695, %v1475_v2  ;;  %v959_v2 = vld [vmem:[#allocation6 + $0x310] sm:$0xff] }
 0x224   : > { %v2067_v19 = vpack.c.bf16 %v1980_v50, %v1979_v49  ;;  %v3924_v18 = vadd.f32 -1.0, %v5071_v51  ;;  %v1693_v57 = vmul.f32 1.442695, %v1476_v28  ;;  %v1088_v39 = vmul.f32 %v5772_v6, %v953_v26  ;;  %v960_v26 = vld [vmem:[#allocation6 + $0x318] sm:$0xff] }
 0x225   : > { %v5073_v33 = vpop.eup %5072  ;;  %v1981_v22 = vsel %vm1341_vm2, %v6086_v45, %v3923_v40  ;;  %5080 = vpow2.f32 %v1691_v12  ;;  %v1477_v27 = vmin.f32 %v6150_v38, 0.0  ;;  %v1478_v21 = vmin.f32 %v6158_v8, 0.0 }
 0x226   : > { %v5075_v30 = vpop.eup %5074  ;;  %4791 = vmatprep.mubr.bf16.mxu1 %v2067_v19  ;;  %v1982_v4 = vsel %vm1342_vm3, %v6089_v10, %v3924_v18  ;;  %v3925_v29 = vadd.f32 -1.0, %v5073_v33  ;;  %5082 = vpow2.f32 %v1693_v57  ;;  %v1089_v31 = vmul.f32 %v5772_v6, %v954_v14  ;;  %v961_v18 = vld [vmem:[#allocation6 + $0x320] sm:$0xff]  ;;  %v962_v57 = vld [vmem:[#allocation6 + $0x328] sm:$0xff] }
 0x227   : > { %v2068_v43 = vpack.c.bf16 %v1982_v4, %v1981_v22  ;;  %v3926_v45 = vadd.f32 -1.0, %v5075_v30  ;;  %v1695_v3 = vmul.f32 1.442695, %v1477_v27  ;;  %v1697_v44 = vmul.f32 1.442695, %v1478_v21 }
 0x228   : > { %v1983_v32 = vsel %vm1343_vm4, %v6103_v16, %v3925_v29  ;;  %v6178_v9 = vadd.f32 %v5779_v37, %v1088_v39  ;;  %v6181_v48 = vadd.f32 %v5779_v37, %v1089_v31  ;;  %v1090_v10 = vmul.f32 %v5772_v6, %v955_v5 }
 0x229   : > { %4792 = vmatmul.mubr.bf16.gmra.mrb[16].mxu1 %v2068_v43  ;;  %v1984_v24 = vsel %vm1344_vm5, %v6106_v59, %v3926_v45  ;;  %5084 = vpow2.f32 %v1695_v3  ;;  %v1091_v17 = vmul.f32 %v5772_v6, %v956_v36  ;;  %v1092_v23 = vmul.f32 %v5772_v6, %v957_v34  ;;  %v963_v34 = vld [vmem:[#allocation6 + $0x330] sm:$0xff] }
 0x22a   : > { %v5077_v16 = vpop.eup %5076  ;;  %v2069_v54 = vpack.c.bf16 %v1984_v24, %v1983_v32  ;;  %vm1346_vm7 = vcmp.gt.f32.partialorder %v6124_v35, 0.0  ;;  %vm1347_vm8 = vcmp.gt.f32.partialorder %v6141_v63, 0.0  ;;  %5086 = vpow2.f32 %v1697_v44 }
 0x22b   : > { %v5079_v61 = vpop.eup %5078  ;;  %v3927_v52 = vadd.f32 -1.0, %v5077_v16  ;;  %v1479_v55 = vmin.f32 %v6178_v9, 0.0  ;;  %v1480_v15 = vmin.f32 %v6181_v48, 0.0  ;;  %v6194_v59 = vadd.f32 %v5779_v37, %v1090_v10 }
 0x22c   : > { %4795 = vmatprep.mubr.bf16.mxu1 %v2069_v54  ;;  %v3928_v56 = vadd.f32 -1.0, %v5079_v61  ;;  %vm1348_vm9 = vcmp.gt.f32.partialorder %v6146_v46, 0.0  ;;  %v6198_v6 = vadd.f32 %v5779_v37, %v1091_v17  ;;  %v1093_v25 = vmul.f32 %v6200_v0, %v958_v13 }
 0x22d   : > { %v1985_v58 = vsel %vm1345_vm6, %v6121_v11, %v3927_v52  ;;  %v1699_v62 = vmul.f32 1.442695, %v1479_v55  ;;  %v1701_v7 = vmul.f32 1.442695, %v1480_v15  ;;  %v6207_v20 = vadd.f32 %v5779_v37, %v1092_v23  ;;  %v6216_v11 = vld [vmem:[#allocation5] ss:$0 sm:$0xff] }
 0x22e   : > { %v1986_v60 = vsel %vm1346_vm7, %v6124_v35, %v3928_v56  ;;  %vm1349_vm10 = vcmp.gt.f32.partialorder %v6150_v38, 0.0  ;;  %v1481_v1 = vmin.f32 %v6194_v59, 0.0  ;;  %v1482_v41 = vmin.f32 %v6198_v6, 0.0 }
 0x22f   : > { %v5081_v47 = vpop.eup %5080  ;;  %v2070_v42 = vpack.c.bf16 %v1986_v60, %v1985_v58  ;;  %vm1350_vm11 = vcmp.gt.f32.partialorder %v6158_v8, 0.0  ;;  %5088 = vpow2.f32 %v1699_v62  ;;  %v6219_v37 = vadd.f32 %v6216_v11, %v1093_v25  ;;  %v965_v60 = vld [vmem:[#allocation6 + $0x340] sm:$0xff] }
 0x230   : > { %v5083_v53 = vpop.eup %5082  ;;  %v3929_v35 = vadd.f32 -1.0, %v5081_v47  ;;  %5090 = vpow2.f32 %v1701_v7  ;;  %v1703_v49 = vmul.f32 1.442695, %v1481_v1  ;;  %v1705_v28 = vmul.f32 1.442695, %v1482_v41  ;;  %v966_v1 = vld [vmem:[#allocation6 + $0x348] sm:$0xff] }
 0x231   : > { %4796 = vmatmul.mubr.bf16.gmra.mrb[20].mxu1 %v2070_v42  ;;  %v3930_v51 = vadd.f32 -1.0, %v5083_v53  ;;  %vm1351_vm12 = vcmp.gt.f32.partialorder %v6178_v9, 0.0  ;;  %v1483_v50 = vmin.f32 %v6207_v20, 0.0  ;;  %v1484_v40 = vmin.f32 %v6219_v37, 0.0 }
 0x232   : > { %v1987_v12 = vsel %vm1347_vm8, %v6141_v63, %v3929_v35  ;;  %5092 = vpow2.f32 %v1703_v49  ;;  %v1094_v14 = vmul.f32 %v6200_v0, %v959_v2  ;;  %v1095_v19 = vmul.f32 %v6200_v0, %v960_v26  ;;  %v967_v2 = vld [vmem:[#allocation6 + $0x350] sm:$0xff] }
 0x233   : > { %v5085_v39 = vpop.eup %5084  ;;  %v1988_v33 = vsel %vm1348_vm9, %v6146_v46, %v3930_v51  ;;  %5094 = vpow2.f32 %v1705_v28  ;;  %v1707_v22 = vmul.f32 1.442695, %v1483_v50  ;;  %v1709_v27 = vmul.f32 1.442695, %v1484_v40  ;;  %v964_v46 = vld [vmem:[#allocation6 + $0x338] sm:$0xff] }
 0x234   : > { %v5087_v21 = vpop.eup %5086  ;;  %v2071_v5 = vpack.c.bf16 %v1988_v33, %v1987_v12  ;;  %v3931_v30 = vadd.f32 -1.0, %v5085_v39  ;;  %v6233_v63 = vadd.f32 %v6216_v11, %v1094_v14  ;;  %v6236_v4 = vadd.f32 %v6216_v11, %v1095_v19  ;;  %v968_v50 = vld [vmem:[#allocation6 + $0x358] sm:$0xff] }
 0x235   : > { %v3932_v29 = vadd.f32 -1.0, %v5087_v21  ;;  %5096 = vpow2.f32 %v1707_v22  ;;  %v1096_v31 = vmul.f32 %v6200_v0, %v961_v18  ;;  %v1097_v36 = vmul.f32 %v6200_v0, %v962_v57  ;;  %v969_v21 = vld [vmem:[#allocation6 + $0x360] sm:$0xff] }
 0x236   : > { %4799 = vmatprep.mubr.bf16.mxu1 %v2071_v5  ;;  %v1989_v43 = vsel %vm1349_vm10, %v6150_v38, %v3931_v30  ;;  %vm1352_vm13 = vcmp.gt.f32.partialorder %v6181_v48, 0.0  ;;  %vm1353_vm14 = vcmp.gt.f32.partialorder %v6194_v59, 0.0  ;;  %5098 = vpow2.f32 %v1709_v27 }
 0x237   : > { %v1990_v45 = vsel %vm1350_vm11, %v6158_v8, %v3932_v29  ;;  %v1485_v3 = vmin.f32 %v6233_v63, 0.0  ;;  %v1486_v44 = vmin.f32 %v6236_v4, 0.0  ;;  %v6251_v32 = vadd.f32 %v6216_v11, %v1096_v31  ;;  %v970_v29 = vld [vmem:[#allocation6 + $0x368] sm:$0xff] }
 0x238   : > { %v2072_v10 = vpack.c.bf16 %v1990_v45, %v1989_v43  ;;  %v6254_v24 = vadd.f32 %v6216_v11, %v1097_v36  ;;  %v1098_v38 = vmul.f32 %v6200_v0, %v963_v34  ;;  %v1099_v17 = vmul.f32 %v6200_v0, %v964_v46 }
 0x239   : > { %v5089_v13 = vpop.eup %5088  ;;  %vm1354_vm15 = vcmp.gt.f32.partialorder %v6198_v6, 0.0  ;;  %v1711_v23 = vmul.f32 1.442695, %v1485_v3  ;;  %v1713_v8 = vmul.f32 1.442695, %v1486_v44  ;;  %v1487_v16 = vmin.f32 %v6251_v32, 0.0 }
 0x23a   : > { %v5091_v54 = vpop.eup %5090  ;;  %4800 = vmatmul.mubr.bf16.gmra.mrb[24].mxu1 %v2072_v10  ;;  %v3933_v61 = vadd.f32 -1.0, %v5089_v13  ;;  %vm1355_vm0 = vcmp.gt.f32.partialorder %v6207_v20, 0.0  ;;  %v1488_v52 = vmin.f32 %v6254_v24, 0.0  ;;  %v6263_v55 = vadd.f32 %v6216_v11, %v1098_v38 }
 0x23b   : > { %v3934_v15 = vadd.f32 -1.0, %v5091_v54  ;;  %5100 = vpow2.f32 %v1711_v23  ;;  %v1715_v56 = vmul.f32 1.442695, %v1487_v16  ;;  %v6266_v25 = vadd.f32 %v6216_v11, %v1099_v17 }
 0x23c   : > { %v5093_v58 = vpop.eup %5092  ;;  %v1991_v62 = vsel %vm1351_vm12, %v6178_v9, %v3933_v61  ;;  %vm1356_vm1 = vcmp.gt.f32.partialorder %v6219_v37, 0.0  ;;  %5102 = vpow2.f32 %v1713_v8  ;;  %v1717_v7 = vmul.f32 1.442695, %v1488_v52 }
 0x23d   : > { %v5095_v41 = vpop.eup %5094  ;;  %v1992_v47 = vsel %vm1352_vm13, %v6181_v48, %v3934_v15  ;;  %v3935_v42 = vadd.f32 -1.0, %v5093_v58  ;;  %vm1357_vm2 = vcmp.gt.f32.partialorder %v6233_v63, 0.0  ;;  %5104 = vpow2.f32 %v1715_v56 }
 0x23e   : > { %v2073_v26 = vpack.c.bf16 %v1992_v47, %v1991_v62  ;;  %v3936_v53 = vadd.f32 -1.0, %v5095_v41  ;;  %vm1358_vm3 = vcmp.gt.f32.partialorder %v6236_v4, 0.0  ;;  %5106 = vpow2.f32 %v1717_v7  ;;  %v971_v62 = vld [vmem:[#allocation6 + $0x370] sm:$0xff]  ;;  %v973_v41 = vld [vmem:[#allocation6 + $0x380] sm:$0xff] }
 0x23f   : > { %v1489_v9 = vmin.f32 %v6263_v55, 0.0  ;;  %v5097_v35 = vpop.eup %5096  ;;  %v1993_v49 = vsel %vm1353_vm14, %v6194_v59, %v3935_v42  ;;  %v1490_v28 = vmin.f32 %v6266_v25, 0.0  ;;  %v1100_v48 = vmul.f32 %v6200_v0, %v965_v60  ;;  %v974_v42 = vld [vmem:[#allocation6 + $0x388] sm:$0xff] }
 0x240   : > { %v1101_v51 = vmul.f32 %v6200_v0, %v966_v1  ;;  %v5099_v40 = vpop.eup %5098  ;;  %4803 = vmatprep.mubr.bf16.mxu1 %v2073_v26  ;;  %v1994_v12 = vsel %vm1354_vm15, %v6198_v6, %v3936_v53  ;;  %v3937_v14 = vadd.f32 -1.0, %v5097_v35  ;;  %v1102_v18 = vmul.f32 %v6200_v0, %v967_v2  ;;  %v972_v1 = vld [vmem:[#allocation6 + $0x378] sm:$0xff] }
 0x241   : > { %v1719_v19 = vmul.f32 1.442695, %v1489_v9  ;;  %v2074_v57 = vpack.c.bf16 %v1994_v12, %v1993_v49  ;;  %v3938_v39 = vadd.f32 -1.0, %v5099_v40  ;;  %v1721_v59 = vmul.f32 1.442695, %v1490_v28 }
 0x242   : > { %v6289_v33 = vadd.f32 %v6216_v11, %v1100_v48  ;;  %v1995_v22 = vsel %vm1355_vm0, %v6207_v20, %v3937_v14  ;;  %v6295_v27 = vadd.f32 %v6216_v11, %v1101_v51  ;;  %v1103_v6 = vmul.f32 %v6200_v0, %v968_v50 }
 0x243   : > { %5108 = vpow2.f32 %v1719_v19  ;;  %4804 = vmatmul.mubr.bf16.gmra.mrb[28].mxu1 %v2074_v57  ;;  %v1996_v5 = vsel %vm1356_vm1, %v6219_v37, %v3938_v39  ;;  %vm1359_vm4 = vcmp.gt.f32.partialorder %v6251_v32, 0.0  ;;  %vm1360_vm5 = vcmp.gt.f32.partialorder %v6254_v24, 0.0 }
 0x244   : > { %5110 = vpow2.f32 %v1721_v59  ;;  %v1491_v30 = vmin.f32 %v6289_v33, 0.0  ;;  %v2075_v31 = vpack.c.bf16 %v1996_v5, %v1995_v22  ;;  %v1492_v20 = vmin.f32 %v6295_v27, 0.0 }
 0x245   : > { %v6306_v36 = vadd.f32 %v6216_v11, %v1102_v18  ;;  %v5101_v34 = vpop.eup %5100  ;;  %vm1361_vm6 = vcmp.gt.f32.partialorder %v6263_v55, 0.0  ;;  %v6310_v37 = vadd.f32 %v6216_v11, %v1103_v6  ;;  %v1104_v43 = vmul.f32 %v6200_v0, %v969_v21  ;;  %v975_v6 = vld [vmem:[#allocation6 + $0x390] sm:$0xff] }
 0x246   : > { %v1723_v46 = vmul.f32 1.442695, %v1491_v30  ;;  %v5103_v45 = vpop.eup %5102  ;;  %4807 = vmatprep.mubr.bf16.mxu1 %v2075_v31  ;;  %v3939_v3 = vadd.f32 -1.0, %v5101_v34  ;;  %v1725_v44 = vmul.f32 1.442695, %v1492_v20  ;;  %v1105_v38 = vmul.f32 %v6200_v0, %v970_v29  ;;  %v976_v34 = vld [vmem:[#allocation6 + $0x398] sm:$0xff] }
 0x247   : > { %v1493_v10 = vmin.f32 %v6306_v36, 0.0  ;;  %v5105_v17 = vpop.eup %5104  ;;  %v3940_v13 = vadd.f32 -1.0, %v5103_v45  ;;  %vm1362_vm7 = vcmp.gt.f32.partialorder %v6266_v25, 0.0  ;;  %v1494_v23 = vmin.f32 %v6310_v37, 0.0  ;;  %v6375_v45 = vld [vmem:[%s6910_s4] ss:$0 sm:$0xff] }
 0x248   : > { %5112 = vpow2.f32 %v1723_v46  ;;  %v5107_v8 = vpop.eup %5106  ;;  %v1997_v16 = vsel %vm1357_vm2, %v6233_v63, %v3939_v3  ;;  %v3941_v54 = vadd.f32 -1.0, %v5105_v17  ;;  %v6324_v58 = vadd.f32 %v6216_v11, %v1104_v43 }
 0x249   : > { %5114 = vpow2.f32 %v1725_v44  ;;  %v1727_v61 = vmul.f32 1.442695, %v1493_v10  ;;  %v1998_v52 = vsel %vm1358_vm3, %v6236_v4, %v3940_v13  ;;  %v3942_v15 = vadd.f32 -1.0, %v5107_v8 }
 0x24a   : > { %v1729_v56 = vmul.f32 1.442695, %v1494_v23  ;;  %v2076_v7 = vpack.c.bf16 %v1998_v52, %v1997_v16  ;;  %v1999_v60 = vsel %vm1359_vm4, %v6251_v32, %v3941_v54  ;;  %v6330_v63 = vadd.f32 %v6216_v11, %v1105_v38 }
 0x24b   : > { %5116 = vpow2.f32 %v1727_v61  ;;  %v2000_v4 = vsel %vm1360_vm5, %v6254_v24, %v3942_v15  ;;  %vm1363_vm8 = vcmp.gt.f32.partialorder %v6289_v33, 0.0  ;;  %v1495_v47 = vmin.f32 %v6324_v58, 0.0 }
 0x24c   : > { %5118 = vpow2.f32 %v1729_v56  ;;  %4808 = vmatmul.mubr.bf16.gmra.mrb[32].mxu1 %v2076_v7  ;;  %v2077_v26 = vpack.c.bf16 %v2000_v4, %v1999_v60  ;;  %vm1364_vm9 = vcmp.gt.f32.partialorder %v6295_v27, 0.0  ;;  %v1496_v32 = vmin.f32 %v6330_v63, 0.0 }
 0x24d   : > { %v5109_v2 = vpop.eup %5108  ;;  %v1106_v53 = vmul.f32 %v6200_v0, %v971_v62  ;;  %v1731_v49 = vmul.f32 1.442695, %v1495_v47  ;;  %v1107_v24 = vmul.f32 %v6200_v0, %v972_v1  ;;  %v1108_v28 = vmul.f32 %v6200_v0, %v973_v41 }
 0x24e   : > { %v5111_v9 = vpop.eup %5110  ;;  %v3943_v35 = vadd.f32 -1.0, %v5109_v2  ;;  %4811 = vmatprep.mubr.bf16.mxu1 %v2077_v26  ;;  %v1733_v51 = vmul.f32 1.442695, %v1496_v32  ;;  %v1109_v40 = vmul.f32 %v6200_v0, %v974_v42  ;;  %vm1365_vm10 = vcmp.gt.f32.partialorder %v6306_v36, 0.0 }
 0x24f   : > { %v3944_v48 = vadd.f32 -1.0, %v5111_v9  ;;  %v6343_v50 = vadd.f32 %v6216_v11, %v1106_v53  ;;  %5120 = vpow2.f32 %v1731_v49  ;;  %v6350_v14 = vadd.f32 %v6216_v11, %v1107_v24  ;;  %v978_v49 = vld [vmem:[#allocation6 + $0x3a8] sm:$0xff] }
 0x250   : > { %v2001_v12 = vsel %vm1361_vm6, %v6263_v55, %v3943_v35  ;;  %v6353_v19 = vadd.f32 %v6216_v11, %v1108_v28  ;;  %5122 = vpow2.f32 %v1733_v51  ;;  %vm1366_vm11 = vcmp.gt.f32.partialorder %v6310_v37, 0.0 }
 0x251   : > { %v2002_v18 = vsel %vm1362_vm7, %v6266_v25, %v3944_v48  ;;  %v1497_v57 = vmin.f32 %v6343_v50, 0.0  ;;  %v1498_v55 = vmin.f32 %v6350_v14, 0.0  ;;  %v6363_v22 = vadd.f32 %v6216_v11, %v1109_v40 }
 0x252   : > { %v5113_v39 = vpop.eup %5112  ;;  %v2078_v59 = vpack.c.bf16 %v2002_v18, %v2001_v12  ;;  %vm1367_vm12 = vcmp.gt.f32.partialorder %v6324_v58, 0.0  ;;  %v1499_v30 = vmin.f32 %v6353_v19, 0.0  ;;  %vm1368_vm13 = vcmp.gt.f32.partialorder %v6330_v63, 0.0 }
 0x253   : > { %v5115_v21 = vpop.eup %5114  ;;  %v3945_v5 = vadd.f32 -1.0, %v5113_v39  ;;  %v1735_v25 = vmul.f32 1.442695, %v1497_v57  ;;  %v1737_v31 = vmul.f32 1.442695, %v1498_v55  ;;  %v1500_v20 = vmin.f32 %v6363_v22, 0.0 }
 0x254   : > { %v3946_v29 = vadd.f32 -1.0, %v5115_v21  ;;  %4812 = vmatmul.mubr.bf16.gmra.mrb[36].mxu1 %v2078_v59  ;;  %v1739_v3 = vmul.f32 1.442695, %v1499_v30  ;;  %v1110_v44 = vmul.f32 %v6200_v0, %v975_v6  ;;  %v1111_v16 = vmul.f32 %v6200_v0, %v976_v34 }
 0x255   : > { %v5117_v46 = vpop.eup %5116  ;;  %v2003_v43 = vsel %vm1363_vm8, %v6289_v33, %v3945_v5  ;;  %5124 = vpow2.f32 %v1735_v25  ;;  %v1741_v13 = vmul.f32 1.442695, %v1500_v20  ;;  %vm1369_vm14 = vcmp.gt.f32.partialorder %v6343_v50, 0.0 }
 0x256   : > { %v5119_v10 = vpop.eup %5118  ;;  %v2004_v38 = vsel %vm1364_vm9, %v6295_v27, %v3946_v29  ;;  %v3947_v17 = vadd.f32 -1.0, %v5117_v46  ;;  %5126 = vpow2.f32 %v1737_v31  ;;  %v6387_v15 = vadd.f32 %v6216_v11, %v1110_v44  ;;  %v977_v27 = vld [vmem:[#allocation6 + $0x3a0] sm:$0xff] }
 0x257   : > { %v2079_v23 = vpack.c.bf16 %v2004_v38, %v2003_v43  ;;  %v3948_v8 = vadd.f32 -1.0, %v5119_v10  ;;  %5128 = vpow2.f32 %v1739_v3  ;;  %vm1370_vm15 = vcmp.gt.f32.partialorder %v6350_v14, 0.0 }
 0x258   : > { %v2005_v54 = vsel %vm1365_vm10, %v6306_v36, %v3947_v17  ;;  %5130 = vpow2.f32 %v1741_v13  ;;  %vm1371_vm0 = vcmp.gt.f32.partialorder %v6353_v19, 0.0  ;;  %v6398_v4 = vadd.f32 %v6216_v11, %v1111_v16 }
 0x259   : > { %4815 = vmatprep.mubr.bf16.mxu1 %v2079_v23  ;;  %v2006_v56 = vsel %vm1366_vm11, %v6310_v37, %v3948_v8  ;;  %v5121_v36 = vpop.eup %5120  ;;  %vm1372_vm1 = vcmp.gt.f32.partialorder %v6363_v22, 0.0  ;;  %v1112_v26 = vmul.f32 %v6200_v0, %v977_v27  ;;  %v1501_v35 = vmin.f32 %v6387_v15, 0.0 }
 0x25a   : > { %v4713_v33 = vpop.f32.mrb[0].mxu0  ;;  %v2080_v60 = vpack.c.bf16 %v2006_v56, %v2005_v54  ;;  %v5123_v47 = vpop.eup %5122  ;;  %v3949_v37 = vadd.f32 -1.0, %v5121_v36  ;;  %v1502_v18 = vmin.f32 %v6398_v4, 0.0  ;;  %v1113_v21 = vmul.f32 %v6200_v0, %v978_v49 }
 0x25b   : > { %v2205_v61 = vadd.f32 %v4713_v33, %v6375_v45  ;;  %v2196_v52 = vpop.f32.mrb[1].mxu0  ;;  %v3950_v53 = vadd.f32 -1.0, %v5123_v47  ;;  %v1743_v57 = vmul.f32 1.442695, %v1501_v35  ;;  %v6419_v29 = vadd.f32 %v6216_v11, %v1112_v26 }
 0x25c   : > { %v2197_v62 = vadd.f32 %v6375_v45, %v2196_v52  ;;  %v4714_v7 = vpop.f32.mrb[2].mxu0  ;;  %4816 = vmatmul.mubr.bf16.gmra.mrb[40].mxu1 %v2080_v60  ;;  %v2007_v24 = vsel %vm1367_vm12, %v6324_v58, %v3949_v37  ;;  %v1745_v30 = vmul.f32 1.442695, %v1502_v18  ;;  %vm1373_vm2 = vcmp.gt.f32.partialorder %v6387_v15, 0.0 }
 0x25d   : > { %v2208_v1 = vadd.f32 %v4714_v7, %v6375_v45  ;;  %v2199_v41 = vpop.f32.mrb[3].mxu0  ;;  %v3486_v42 = vmul.f32 %v2205_v61, %v2205_v61  ;;  %v2008_v40 = vsel %vm1368_vm13, %v6330_v63, %v3950_v53  ;;  %5132 = vpow2.f32 %v1743_v57 }
 0x25e   : > { %v2200_v2 = vadd.f32 %v6375_v45, %v2199_v41  ;;  %v3484_v32 = vmul.f32 %v2197_v62, %v2197_v62  ;;  %v2081_v59 = vpack.c.bf16 %v2008_v40, %v2007_v24  ;;  %5134 = vpow2.f32 %v1745_v30  ;;  %v980_v24 = vld [vmem:[#allocation6 + $0x3b8] sm:$0xff]  ;;  %v982_v30 = vld [vmem:[#allocation6 + $0x3c8] sm:$0xff] }
 0x25f   : > { %v4248_v9 = vpack.c.bf16 %v2208_v1, %v2205_v61  ;;  %v3487_v12 = vmul.f32 %v2208_v1, %v2208_v1  ;;  %v5125_v39 = vpop.eup %5124  ;;  %v1503_v36 = vmin.f32 %v6419_v29, 0.0  ;;  %vm1374_vm3 = vcmp.gt.f32.partialorder %v6398_v4, 0.0 }
 0x260   : > { %v4243_v28 = vpack.c.bf16 %v2200_v2, %v2197_v62  ;;  %v3348_v48 = vadd.f32 %v2200_v2, %v2197_v62  ;;  %v3485_v51 = vmul.f32 %v2200_v2, %v2200_v2  ;;  %v5127_v63 = vpop.eup %5126  ;;  %v3951_v5 = vadd.f32 -1.0, %v5125_v39  ;;  %4819 = vmatprep.mubr.bf16.mxu1 %v2081_v59 }
 0x261   : > { %4560 = vst [vmem:[%s6911_s5 + $0x8] sm:$0xff] %v4248_v9   ;;  %v5129_v31 = vpop.eup %5128  ;;  %v3952_v20 = vadd.f32 -1.0, %v5127_v63  ;;  %vm1375_vm4 = vcmp.gt.f32.partialorder %v6419_v29, 0.0 }
 0x262   : > { %4244 = vst [vmem:[%s6911_s5] sm:$0xff] %v4243_v28   ;;  %v3349_v58 = vadd.f32 %v3348_v48, %v2205_v61  ;;  %v3612_v55 = vadd.f32 %v3485_v51, %v3484_v32  ;;  %v4717_v6 = vpop.f32.mrb[4].mxu0  ;;  %v5131_v44 = vpop.eup %5130  ;;  %v2009_v10 = vsel %vm1369_vm14, %v6343_v50, %v3951_v5  ;;  %v3953_v17 = vadd.f32 -1.0, %v5129_v31 }
 0x263   : > { %v2212_v25 = vpop.f32.mrb[5].mxu0  ;;  %v2221_v38 = vadd.f32 %v4717_v6, %v6375_v45  ;;  %v2010_v8 = vsel %vm1370_vm15, %v6350_v14, %v3952_v20  ;;  %v3954_v52 = vadd.f32 -1.0, %v5131_v44  ;;  %v6441_v14 = vadd.f32 %v6216_v11, %v1113_v21 }
 0x264   : > { %v3350_v34 = vadd.f32 %v3349_v58, %v2208_v1  ;;  %v3613_v46 = vadd.f32 %v3612_v55, %v3486_v42  ;;  %v2213_v43 = vadd.f32 %v6375_v45, %v2212_v25  ;;  %v4718_v3 = vpop.f32.mrb[6].mxu0  ;;  %v2082_v61 = vpack.c.bf16 %v2010_v8, %v2009_v10  ;;  %v981_v55 = vld [vmem:[#allocation6 + $0x3c0] sm:$0xff] }
 0x265   : > { %v2224_v13 = vadd.f32 %v4718_v3, %v6375_v45  ;;  %v2215_v23 = vpop.f32.mrb[7].mxu0  ;;  %v2011_v27 = vsel %vm1371_vm0, %v6353_v19, %v3953_v17  ;;  %v2012_v7 = vsel %vm1372_vm1, %v6363_v22, %v3954_v52  ;;  %v979_v19 = vld [vmem:[#allocation6 + $0x3b0] sm:$0xff]  ;;  %v3490_v37 = vmul.f32 %v2221_v38, %v2221_v38 }
 0x266   : > { %v3614_v33 = vadd.f32 %v3613_v46, %v3487_v12  ;;  %v3351_v16 = vadd.f32 %v3350_v34, %v2213_v43  ;;  %v3488_v54 = vmul.f32 %v2213_v43, %v2213_v43  ;;  %v2216_v62 = vadd.f32 %v6375_v45, %v2215_v23  ;;  %4820 = vmatmul.mubr.bf16.gmra.mrb[44].mxu1 %v2082_v61 }
 0x267   : > { %v4258_v50 = vpack.c.bf16 %v2224_v13, %v2221_v38  ;;  %v2083_v60 = vpack.c.bf16 %v2012_v7, %v2011_v27  ;;  %v3491_v2 = vmul.f32 %v2224_v13, %v2224_v13  ;;  %v1504_v22 = vmin.f32 %v6441_v14, 0.0  ;;  %v5133_v48 = vpop.eup %5132  ;;  %v983_v27 = vld [vmem:[#allocation6 + $0x3d0] sm:$0xff] }
 0x268   : > { %v3615_v56 = vadd.f32 %v3614_v33, %v3488_v54  ;;  %v4253_v1 = vpack.c.bf16 %v2216_v62, %v2213_v43  ;;  %v3352_v41 = vadd.f32 %v3351_v16, %v2216_v62  ;;  %v3489_v47 = vmul.f32 %v2216_v62, %v2216_v62  ;;  %v5135_v46 = vpop.eup %5134 }
 0x269   : > { %4562 = vst [vmem:[%s6911_s5 + $0x18] sm:$0xff] %v4258_v50   ;;  %v1747_v32 = vmul.f32 1.442695, %v1503_v36  ;;  %4823 = vmatprep.mubr.bf16.mxu1 %v2083_v60  ;;  %v1114_v28 = vmul.f32 %v6200_v0, %v979_v19  ;;  %v1749_v40 = vmul.f32 1.442695, %v1504_v22  ;;  %v3955_v57 = vadd.f32 -1.0, %v5133_v48 }
 0x26a   : > { %v4721_v42 = vpop.f32.mrb[8].mxu0  ;;  %4561 = vst [vmem:[%s6911_s5 + $0x10] sm:$0xff] %v4253_v1   ;;  %v3353_v53 = vadd.f32 %v3352_v41, %v2221_v38  ;;  %v3616_v9 = vadd.f32 %v3615_v56, %v3489_v47  ;;  %v1115_v21 = vmul.f32 %v6200_v0, %v980_v24  ;;  %v1116_v34 = vmul.f32 %v6200_v0, %v981_v55 }
 0x26b   : > { %v2228_v26 = vpop.f32.mrb[9].mxu0  ;;  %v2237_v51 = vadd.f32 %v4721_v42, %v6375_v45  ;;  %5136 = vpow2.f32 %v1747_v32  ;;  %v6456_v25 = vadd.f32 %v6216_v11, %v1114_v28  ;;  %v2013_v43 = vsel %vm1373_vm2, %v6387_v15, %v3955_v57 }
 0x26c   : > { %v2229_v35 = vadd.f32 %v6375_v45, %v2228_v26  ;;  %v4722_v49 = vpop.f32.mrb[10].mxu0  ;;  %v3354_v39 = vadd.f32 %v3353_v53, %v2224_v13  ;;  %v3617_v59 = vadd.f32 %v3616_v9, %v3490_v37  ;;  %5138 = vpow2.f32 %v1749_v40 }
 0x26d   : > { %v2240_v12 = vadd.f32 %v4722_v49, %v6375_v45  ;;  %v2231_v18 = vpop.f32.mrb[11].mxu0  ;;  %v6463_v31 = vadd.f32 %v6216_v11, %v1115_v21  ;;  %vm1376_vm5 = vcmp.gt.f32.partialorder %v6441_v14, 0.0  ;;  %v1505_v44 = vmin.f32 %v6456_v25, 0.0  ;;  %v984_v49 = vld [vmem:[#allocation6 + $0x3d8] sm:$0xff] }
 0x26e   : > { %v3492_v58 = vmul.f32 %v2229_v35, %v2229_v35  ;;  %v3618_v63 = vadd.f32 %v3617_v59, %v3491_v2  ;;  %v3355_v5 = vadd.f32 %v3354_v39, %v2229_v35  ;;  %v2232_v20 = vadd.f32 %v6375_v45, %v2231_v18 }
 0x26f   : > { %v4268_v6 = vpack.c.bf16 %v2240_v12, %v2237_v51  ;;  %v3956_v38 = vadd.f32 -1.0, %v5135_v46  ;;  %v1506_v17 = vmin.f32 %v6463_v31, 0.0  ;;  %v1117_v8 = vmul.f32 %v6200_v0, %v982_v30 }
 0x270   : > { %v3619_v3 = vadd.f32 %v3618_v63, %v3492_v58  ;;  %v4263_v13 = vpack.c.bf16 %v2232_v20, %v2229_v35  ;;  %v3494_v33 = vmul.f32 %v2237_v51, %v2237_v51  ;;  %v1751_v16 = vmul.f32 1.442695, %v1505_v44 }
 0x271   : > { %4564 = vst [vmem:[%s6911_s5 + $0x28] sm:$0xff] %v4268_v6   ;;  %v3356_v54 = vadd.f32 %v3355_v5, %v2232_v20  ;;  %v3493_v61 = vmul.f32 %v2232_v20, %v2232_v20  ;;  %v2014_v15 = vsel %vm1374_vm3, %v6398_v4, %v3956_v38  ;;  %v1753_v50 = vmul.f32 1.442695, %v1506_v17 }
 0x272   : > { %v4725_v10 = vpop.f32.mrb[12].mxu0  ;;  %4563 = vst [vmem:[%s6911_s5 + $0x20] sm:$0xff] %v4263_v13   ;;  %v6480_v62 = vadd.f32 %v6216_v11, %v1116_v34  ;;  %v2084_v36 = vpack.c.bf16 %v2014_v15, %v2013_v43  ;;  %5140 = vpow2.f32 %v1751_v16  ;;  %v3495_v41 = vmul.f32 %v2240_v12, %v2240_v12  ;;  %v985_v34 = vld [vmem:[#allocation6 + $0x3e0] sm:$0xff] }
 0x273   : > { %v2244_v23 = vpop.f32.mrb[13].mxu0  ;;  %v3357_v19 = vadd.f32 %v3356_v54, %v2237_v51  ;;  %v3620_v60 = vadd.f32 %v3619_v3, %v3493_v61  ;;  %5142 = vpow2.f32 %v1753_v50  ;;  %v6483_v4 = vadd.f32 %v6216_v11, %v1117_v8  ;;  %v986_v8 = vld [vmem:[#allocation6 + $0x3e8] sm:$0xff] }
 0x274   : > { %v4726_v52 = vpop.f32.mrb[14].mxu0  ;;  %v2245_v56 = vadd.f32 %v6375_v45, %v2244_v23  ;;  %v1118_v47 = vmul.f32 %v6200_v0, %v983_v27  ;;  %4824 = vmatmul.mubr.bf16.gmra.mrb[48].mxu1 %v2084_v36  ;;  %v2253_v32 = vadd.f32 %v4725_v10, %v6375_v45  ;;  %v1507_v53 = vmin.f32 %v6480_v62, 0.0 }
 0x275   : > { %v2247_v7 = vpop.f32.mrb[15].mxu0  ;;  %v5137_v1 = vpop.eup %5136  ;;  %v3358_v37 = vadd.f32 %v3357_v19, %v2240_v12  ;;  %v3621_v2 = vadd.f32 %v3620_v60, %v3494_v33  ;;  %v1508_v9 = vmin.f32 %v6483_v4, 0.0  ;;  %v2256_v35 = vadd.f32 %v4726_v52, %v6375_v45 }
 0x276   : > { %v3957_v42 = vadd.f32 -1.0, %v5137_v1  ;;  %v3496_v26 = vmul.f32 %v2245_v56, %v2245_v56  ;;  %v5139_v22 = vpop.eup %5138  ;;  %vm1377_vm6 = vcmp.gt.f32.partialorder %v6456_v25, 0.0  ;;  %v1755_v12 = vmul.f32 1.442695, %v1507_v53  ;;  %v988_v53 = vld [vmem:[#allocation6 + $0x3f8] sm:$0xff] }
 0x277   : > { %v3958_v24 = vadd.f32 -1.0, %v5139_v22  ;;  %v3622_v48 = vadd.f32 %v3621_v2, %v3495_v41  ;;  %v3359_v51 = vadd.f32 %v3358_v37, %v2245_v56  ;;  %v1757_v18 = vmul.f32 1.442695, %v1508_v9  ;;  %v987_v37 = vld [vmem:[#allocation6 + $0x3f0] sm:$0xff] }
 0x278   : > { %v2015_v28 = vsel %vm1375_vm4, %v6419_v29, %v3957_v42  ;;  %v4278_v57 = vpack.c.bf16 %v2256_v35, %v2253_v32  ;;  %v1119_v55 = vmul.f32 %v6200_v0, %v984_v49  ;;  %v6499_v6 = vadd.f32 %v6216_v11, %v1118_v47 }
 0x279   : > { %v2016_v59 = vsel %vm1376_vm5, %v6441_v14, %v3958_v24  ;;  %v3623_v58 = vadd.f32 %v3622_v48, %v3496_v26  ;;  %vm1378_vm7 = vcmp.gt.f32.partialorder %v6463_v31, 0.0  ;;  %5144 = vpow2.f32 %v1755_v12 }
 0x27a   : > { %v4729_v40 = vpop.f32.mrb[16].mxu0  ;;  %v2085_v21 = vpack.c.bf16 %v2016_v59, %v2015_v28  ;;  %4566 = vst [vmem:[%s6911_s5 + $0x38] sm:$0xff] %v4278_v57   ;;  %v2248_v63 = vadd.f32 %v6375_v45, %v2247_v7  ;;  %v3498_v30 = vmul.f32 %v2253_v32, %v2253_v32  ;;  %5146 = vpow2.f32 %v1757_v18 }
 0x27b   : > { %v2260_v39 = vpop.f32.mrb[17].mxu0  ;;  %v6507_v14 = vadd.f32 %v6216_v11, %v1119_v55  ;;  %v1509_v20 = vmin.f32 %v6499_v6, 0.0  ;;  %v3499_v46 = vmul.f32 %v2256_v35, %v2256_v35  ;;  %v6512_v13 = vadd.f32 %v4729_v40, %v6375_v45 }
 0x27c   : > { %v4730_v29 = vpop.f32.mrb[18].mxu0  ;;  %4827 = vmatprep.mubr.bf16.mxu1 %v2085_v21  ;;  %v4273_v43 = vpack.c.bf16 %v2248_v63, %v2245_v56  ;;  %v3360_v3 = vadd.f32 %v3359_v51, %v2248_v63  ;;  %v3497_v44 = vmul.f32 %v2248_v63, %v2248_v63  ;;  %v5141_v10 = vpop.eup %5140  ;;  %v6515_v23 = vadd.f32 %v6375_v45, %v2260_v39 }
 0x27d   : > { %v2263_v5 = vpop.f32.mrb[19].mxu0  ;;  %v1510_v38 = vmin.f32 %v6507_v14, 0.0  ;;  %v1759_v17 = vmul.f32 1.442695, %v1509_v20  ;;  %v5143_v33 = vpop.eup %5142  ;;  %v3959_v16 = vadd.f32 -1.0, %v5141_v10  ;;  %v1120_v52 = vmul.f32 %v6200_v0, %v985_v34 }
 0x27e   : > { %4565 = vst [vmem:[%s6911_s5 + $0x30] sm:$0xff] %v4273_v43   ;;  %v3361_v54 = vadd.f32 %v3360_v3, %v2253_v32  ;;  %v3624_v61 = vadd.f32 %v3623_v58, %v3497_v44  ;;  %v3960_v27 = vadd.f32 -1.0, %v5143_v33  ;;  %v3500_v50 = vmul.f32 %v6515_v23, %v6515_v23 }
 0x27f   : > { %5148 = vpow2.f32 %v1759_v17  ;;  %v1761_v15 = vmul.f32 1.442695, %v1510_v38  ;;  %v2017_v7 = vsel %vm1377_vm6, %v6456_v25, %v3959_v16  ;;  %v1121_v60 = vmul.f32 %v6200_v0, %v986_v8 }
 0x280   : > { %v3362_v36 = vadd.f32 %v3361_v54, %v2256_v35  ;;  %v3625_v19 = vadd.f32 %v3624_v61, %v3498_v30  ;;  %v2018_v41 = vsel %vm1378_vm7, %v6463_v31, %v3960_v27  ;;  %v6531_v47 = vadd.f32 %v6216_v11, %v1120_v52 }
 0x281   : > { %5150 = vpow2.f32 %v1761_v15  ;;  %v2272_v42 = vadd.f32 %v4730_v29, %v6375_v45  ;;  %v2086_v26 = vpack.c.bf16 %v2018_v41, %v2017_v7  ;;  %v6536_v32 = vadd.f32 %v6216_v11, %v1121_v60 }
 0x282   : > { %v4733_v56 = vpop.f32.mrb[20].mxu0  ;;  %v3626_v22 = vadd.f32 %v3625_v19, %v3499_v46  ;;  %v3363_v25 = vadd.f32 %v3362_v36, %v6515_v23  ;;  %vm1379_vm8 = vcmp.gt.f32.partialorder %v6480_v62, 0.0  ;;  %v1511_v31 = vmin.f32 %v6531_v47, 0.0 }
 0x283   : > { %v2276_v1 = vpop.f32.mrb[21].mxu0  ;;  %v4288_v35 = vpack.c.bf16 %v2272_v42, %v6512_v13  ;;  %v5145_v49 = vpop.eup %5144  ;;  %4828 = vmatmul.mubr.bf16.gmra.mrb[52].mxu1 %v2086_v26  ;;  %vm1380_vm9 = vcmp.gt.f32.partialorder %v6483_v4, 0.0  ;;  %v1512_v28 = vmin.f32 %v6536_v32, 0.0  ;;  %v1122_v48 = vmul.f32 %v6200_v0, %v987_v37 }
 0x284   : > { %v4734_v2 = vpop.f32.mrb[22].mxu0  ;;  %v3627_v24 = vadd.f32 %v3626_v22, %v3500_v50  ;;  %v5147_v51 = vpop.eup %5146  ;;  %v3961_v40 = vadd.f32 -1.0, %v5145_v49  ;;  %v1763_v12 = vmul.f32 1.442695, %v1511_v31  ;;  %v1123_v18 = vmul.f32 %v6200_v0, %v988_v53 }
 0x285   : > { %v2279_v9 = vpop.f32.mrb[23].mxu0  ;;  %4568 = vst [vmem:[%s6911_s5 + $0x48] sm:$0xff] %v4288_v35   ;;  %v2264_v57 = vadd.f32 %v6375_v45, %v2263_v5  ;;  %v3962_v39 = vadd.f32 -1.0, %v5147_v51  ;;  %vm1381_vm10 = vcmp.gt.f32.partialorder %v6499_v6, 0.0  ;;  %v1765_v59 = vmul.f32 1.442695, %v1512_v28 }
 0x286   : > { %v6551_v58 = vadd.f32 %v6216_v11, %v1122_v48  ;;  %v2019_v55 = vsel %vm1379_vm8, %v6480_v62, %v3961_v40  ;;  %5152 = vpow2.f32 %v1763_v12  ;;  %v6557_v29 = vadd.f32 %v6216_v11, %v1123_v18 }
 0x287   : > { %v4283_v21 = vpack.c.bf16 %v2264_v57, %v6515_v23  ;;  %v2020_v63 = vsel %vm1380_vm9, %v6483_v4, %v3962_v39  ;;  %v3502_v5 = vmul.f32 %v6512_v13, %v6512_v13  ;;  %5154 = vpow2.f32 %v1765_v59 }
 0x288   : > { %v1513_v30 = vmin.f32 %v6551_v58, 0.0  ;;  %v2087_v62 = vpack.c.bf16 %v2020_v63, %v2019_v55  ;;  %vm1382_vm11 = vcmp.gt.f32.partialorder %v6507_v14, 0.0  ;;  %v1514_v11 = vmin.f32 %v6557_v29, 0.0 }
 0x289   : > { %v5149_v34 = vpop.eup %5148  ;;  %4567 = vst [vmem:[%s6911_s5 + $0x40] sm:$0xff] %v4283_v21   ;;  %v3364_v46 = vadd.f32 %v3363_v25, %v2264_v57  ;;  %v3501_v44 = vmul.f32 %v2264_v57, %v2264_v57  ;;  %v2285_v10 = vadd.f32 %v4733_v56, %v6375_v45  ;;  %v2277_v33 = vadd.f32 %v6375_v45, %v2276_v1 }
 0x28a   : > { %v4737_v0 = vpop.f32.mrb[24].mxu0  ;;  %v3963_v4 = vadd.f32 -1.0, %v5149_v34  ;;  %v1767_v3 = vmul.f32 1.442695, %v1513_v30  ;;  %4831 = vmatprep.mubr.bf16.mxu1 %v2087_v62  ;;  %v1769_v23 = vmul.f32 1.442695, %v1514_v11  ;;  %v2288_v16 = vadd.f32 %v4734_v2, %v6375_v45 }
 0x28b   : > { %v2292_v20 = vpop.f32.mrb[25].mxu0  ;;  %v5151_v17 = vpop.eup %5150  ;;  %v3365_v8 = vadd.f32 %v3364_v46, %v6512_v13  ;;  %v3628_v52 = vadd.f32 %v3627_v24, %v3501_v44  ;;  %v3503_v27 = vmul.f32 %v2272_v42, %v2272_v42  ;;  %v3504_v7 = vmul.f32 %v2277_v33, %v2277_v33 }
 0x28c   : > { %v4738_v43 = vpop.f32.mrb[26].mxu0  ;;  %v3964_v54 = vadd.f32 -1.0, %v5151_v17  ;;  %v2021_v61 = vsel %vm1381_vm10, %v6499_v6, %v3963_v4  ;;  %5156 = vpow2.f32 %v1767_v3  ;;  %v4298_v50 = vpack.c.bf16 %v2288_v16, %v2285_v10 }
 0x28d   : > { %v2295_v38 = vpop.f32.mrb[27].mxu0  ;;  %5158 = vpow2.f32 %v1769_v23  ;;  %v3366_v15 = vadd.f32 %v3365_v8, %v2272_v42  ;;  %v3629_v13 = vadd.f32 %v3628_v52, %v3502_v5  ;;  %v2280_v36 = vadd.f32 %v6375_v45, %v2279_v9 }
 0x28e   : > { %v2022_v56 = vsel %vm1382_vm11, %v6507_v14, %v3964_v54  ;;  %vm1383_vm12 = vcmp.gt.f32.partialorder %v6531_v47, 0.0  ;;  %4570 = vst [vmem:[%s6911_s5 + $0x58] sm:$0xff] %v4298_v50   ;;  %v6587_v6 = vadd.f32 %v4737_v0, %v6375_v45  ;;  %v6590_v14 = vadd.f32 %v4738_v43, %v6375_v45 }
 0x28f   : > { %v2088_v19 = vpack.c.bf16 %v2022_v56, %v2021_v61  ;;  %v3367_v60 = vadd.f32 %v3366_v15, %v2277_v33  ;;  %v3630_v41 = vadd.f32 %v3629_v13, %v3503_v27  ;;  %v4293_v42 = vpack.c.bf16 %v2280_v36, %v2277_v33 }
 0x290   : > { %v3505_v37 = vmul.f32 %v2280_v36, %v2280_v36  ;;  %v5153_v26 = vpop.eup %5152  ;;  %vm1384_vm13 = vcmp.gt.f32.partialorder %v6536_v32, 0.0  ;;  %v2293_v25 = vadd.f32 %v6375_v45, %v2292_v20  ;;  %v2296_v53 = vadd.f32 %v6375_v45, %v2295_v38 }
 0x291   : > { %4832 = vmatmul.mubr.bf16.gmra.mrb[56].mxu1 %v2088_v19  ;;  %v3368_v22 = vadd.f32 %v3367_v60, %v2280_v36  ;;  %v5155_v31 = vpop.eup %5154  ;;  %v3965_v35 = vadd.f32 -1.0, %v5153_v26  ;;  %vm1385_vm14 = vcmp.gt.f32.partialorder %v6551_v58, 0.0  ;;  %v3631_v49 = vadd.f32 %v3630_v41, %v3504_v7  ;;  %4569 = vst [vmem:[%s6911_s5 + $0x50] sm:$0xff] %v4293_v42  }
 0x292   : > { %v4741_v1 = vpop.f32.mrb[28].mxu0  ;;  %v4308_v24 = vpack.c.bf16 %v6590_v14, %v6587_v6  ;;  %v3966_v48 = vadd.f32 -1.0, %v5155_v31  ;;  %v3506_v51 = vmul.f32 %v2285_v10, %v2285_v10  ;;  %v4303_v12 = vpack.c.bf16 %v2296_v53, %v2293_v25 }
 0x293   : > { %v2308_v2 = vpop.f32.mrb[29].mxu0  ;;  %v3369_v40 = vadd.f32 %v3368_v22, %v2285_v10  ;;  %v2023_v18 = vsel %vm1383_vm12, %v6531_v47, %v3965_v35  ;;  %v3507_v57 = vmul.f32 %v2288_v16, %v2288_v16  ;;  %v3632_v39 = vadd.f32 %v3631_v49, %v3505_v37 }
 0x294   : > { %v4742_v9 = vpop.f32.mrb[30].mxu0  ;;  %4572 = vst [vmem:[%s6911_s5 + $0x68] sm:$0xff] %v4308_v24   ;;  %v2317_v59 = vadd.f32 %v4741_v1, %v6375_v45  ;;  %v2024_v55 = vsel %vm1384_vm13, %v6536_v32, %v3966_v48  ;;  %4571 = vst [vmem:[%s6911_s5 + $0x60] sm:$0xff] %v4303_v12   ;;  %v3508_v20 = vmul.f32 %v2293_v25, %v2293_v25  ;;  %vm1386_vm15 = vcmp.gt.f32.partialorder %v6557_v29, 0.0 }
 0x295   : > { %v2311_v28 = vpop.f32.mrb[31].mxu0  ;;  %v3370_v21 = vadd.f32 %v3369_v40, %v2288_v16  ;;  %v6615_v0 = vadd.f32 %v4742_v9, %v6375_v45  ;;  %v2089_v5 = vpack.c.bf16 %v2024_v55, %v2023_v18  ;;  %v3633_v30 = vadd.f32 %v3632_v39, %v3506_v51 }
 0x296   : > { %v2312_v47 = vadd.f32 %v6375_v45, %v2311_v28  ;;  %v5157_v63 = vpop.eup %5156  ;;  %v2309_v34 = vadd.f32 %v6375_v45, %v2308_v2  ;;  %v3509_v44 = vmul.f32 %v2296_v53, %v2296_v53  ;;  %v3511_v36 = vmul.f32 %v6590_v14, %v6590_v14 }
 0x297   : > { %v5159_v62 = vpop.eup %5158  ;;  %v3967_v32 = vadd.f32 -1.0, %v5157_v63  ;;  %v3371_v11 = vadd.f32 %v3370_v21, %v2293_v25  ;;  %v4318_v46 = vpack.c.bf16 %v6615_v0, %v2317_v59  ;;  %4835 = vmatprep.mubr.bf16.mxu1 %v2089_v5  ;;  %v3634_v3 = vadd.f32 %v3633_v30, %v3507_v57 }
 0x298   : > { %v3968_v4 = vadd.f32 -1.0, %v5159_v62  ;;  %v4313_v10 = vpack.c.bf16 %v2312_v47, %v2309_v34  ;;  %v3512_v60 = vmul.f32 %v2309_v34, %v2309_v34  ;;  %v3513_v37 = vmul.f32 %v2312_v47, %v2312_v47 }
 0x299   : > { %v2025_v17 = vsel %vm1385_vm14, %v6551_v58, %v3967_v32  ;;  %v3372_v23 = vadd.f32 %v3371_v11, %v2296_v53  ;;  %4574 = vst [vmem:[%s6911_s5 + $0x78] sm:$0xff] %v4318_v46   ;;  %v3635_v16 = vadd.f32 %v3634_v3, %v3508_v20  ;;  %v3510_v58 = vmul.f32 %v6587_v6, %v6587_v6 }
 0x29a   : > { %v4745_v43 = vpop.f32.mrb[32].mxu0  ;;  %v2026_v33 = vsel %vm1386_vm15, %v6557_v29, %v3968_v4  ;;  %4573 = vst [vmem:[%s6911_s5 + $0x70] sm:$0xff] %v4313_v10   ;;  %v3514_v24 = vmul.f32 %v2317_v59, %v2317_v59  ;;  %v3515_v12 = vmul.f32 %v6615_v0, %v6615_v0 }
 0x29b   : > { %v2324_v38 = vpop.f32.mrb[33].mxu0  ;;  %v2333_v54 = vadd.f32 %v4745_v43, %v6375_v45  ;;  %v2090_v27 = vpack.c.bf16 %v2026_v33, %v2025_v17  ;;  %v3373_v15 = vadd.f32 %v3372_v23, %v6587_v6  ;;  %v3636_v50 = vadd.f32 %v3635_v16, %v3509_v44 }
 0x29c   : > { %v4746_v8 = vpop.f32.mrb[34].mxu0  ;;  %v2325_v56 = vadd.f32 %v6375_v45, %v2324_v38 }
 0x29d   : > { %v2336_v61 = vadd.f32 %v4746_v8, %v6375_v45  ;;  %v2327_v52 = vpop.f32.mrb[35].mxu0  ;;  %4836 = vmatmul.mubr.bf16.gmra.mrb[60].mxu1 %v2090_v27  ;;  %v3374_v7 = vadd.f32 %v3373_v15, %v6590_v14  ;;  %v3637_v19 = vadd.f32 %v3636_v50, %v3510_v58  ;;  %v3518_v46 = vmul.f32 %v2333_v54, %v2333_v54 }
 0x29e   : > { %v2328_v13 = vadd.f32 %v6375_v45, %v2327_v52  ;;  %v3516_v57 = vmul.f32 %v2325_v56, %v2325_v56 }
 0x29f   : > { %v4328_v29 = vpack.c.bf16 %v2336_v61, %v2333_v54  ;;  %v3375_v6 = vadd.f32 %v3374_v7, %v2309_v34  ;;  %v3638_v42 = vadd.f32 %v3637_v19, %v3511_v36  ;;  %v3519_v10 = vmul.f32 %v2336_v61, %v2336_v61 }
 0x2a0   : > { %v4323_v1 = vpack.c.bf16 %v2328_v13, %v2325_v56  ;;  %v3517_v21 = vmul.f32 %v2328_v13, %v2328_v13 }
 0x2a1   : > { %4576 = vst [vmem:[%s6911_s5 + $0x88] sm:$0xff] %v4328_v29   ;;  %v3376_v26 = vadd.f32 %v3375_v6, %v2312_v47  ;;  %v3639_v25 = vadd.f32 %v3638_v42, %v3512_v60 }
 0x2a2   : > { %v4749_v41 = vpop.f32.mrb[36].mxu0  ;;  %4575 = vst [vmem:[%s6911_s5 + $0x80] sm:$0xff] %v4323_v1  }
 0x2a3   : > { %v2340_v2 = vpop.f32.mrb[37].mxu0  ;;  %v2349_v14 = vadd.f32 %v4749_v41, %v6375_v45  ;;  %v3377_v31 = vadd.f32 %v3376_v26, %v2317_v59  ;;  %v3640_v28 = vadd.f32 %v3639_v25, %v3513_v37 }
 0x2a4   : > { %v4750_v22 = vpop.f32.mrb[38].mxu0  ;;  %v2341_v35 = vadd.f32 %v6375_v45, %v2340_v2 }
 0x2a5   : > { %v2352_v53 = vadd.f32 %v4750_v22, %v6375_v45  ;;  %v2343_v9 = vpop.f32.mrb[39].mxu0  ;;  %v3378_v51 = vadd.f32 %v3377_v31, %v6615_v0  ;;  %v3641_v18 = vadd.f32 %v3640_v28, %v3514_v24  ;;  %v3522_v29 = vmul.f32 %v2349_v14, %v2349_v14 }
 0x2a6   : > { %v2344_v49 = vadd.f32 %v6375_v45, %v2343_v9  ;;  %v3520_v17 = vmul.f32 %v2341_v35, %v2341_v35 }
 0x2a7   : > { %v4338_v48 = vpack.c.bf16 %v2352_v53, %v2349_v14  ;;  %v3379_v39 = vadd.f32 %v3378_v51, %v2325_v56  ;;  %v3642_v55 = vadd.f32 %v3641_v18, %v3515_v12  ;;  %v3523_v1 = vmul.f32 %v2352_v53, %v2352_v53 }
 0x2a8   : > { %v4333_v40 = vpack.c.bf16 %v2344_v49, %v2341_v35  ;;  %v3521_v33 = vmul.f32 %v2344_v49, %v2344_v49 }
 0x2a9   : > { %4578 = vst [vmem:[%s6911_s5 + $0x98] sm:$0xff] %v4338_v48   ;;  %v3380_v63 = vadd.f32 %v3379_v39, %v2328_v13  ;;  %v3643_v30 = vadd.f32 %v3642_v55, %v3516_v57 }
 0x2aa   : > { %4577 = vst [vmem:[%s6911_s5 + $0x90] sm:$0xff] %v4333_v40   ;;  %v4753_v59 = vpop.f32.mrb[40].mxu0 }
 0x2ab   : > { %v2356_v47 = vpop.f32.mrb[41].mxu0  ;;  %v2365_v0 = vadd.f32 %v4753_v59, %v6375_v45  ;;  %v3381_v62 = vadd.f32 %v3380_v63, %v2333_v54  ;;  %v3644_v43 = vadd.f32 %v3643_v30, %v3517_v21 }
 0x2ac   : > { %v4754_v5 = vpop.f32.mrb[42].mxu0  ;;  %v2357_v32 = vadd.f32 %v6375_v45, %v2356_v47 }
 0x2ad   : > { %v2368_v20 = vadd.f32 %v4754_v5, %v6375_v45  ;;  %v2359_v34 = vpop.f32.mrb[43].mxu0  ;;  %v3382_v3 = vadd.f32 %v3381_v62, %v2336_v61  ;;  %v3645_v38 = vadd.f32 %v3644_v43, %v3518_v46 }
 0x2ae   : > { %v2360_v11 = vadd.f32 %v6375_v45, %v2359_v34  ;;  %v3524_v41 = vmul.f32 %v2357_v32, %v2357_v32 }
 0x2af   : > { %v4348_v4 = vpack.c.bf16 %v2368_v20, %v2365_v0  ;;  %v3383_v23 = vadd.f32 %v3382_v3, %v2341_v35  ;;  %v3646_v8 = vadd.f32 %v3645_v38, %v3519_v10  ;;  %v3526_v35 = vmul.f32 %v2365_v0, %v2365_v0 }
 0x2b0   : > { %v4343_v44 = vpack.c.bf16 %v2360_v11, %v2357_v32  ;;  %v3525_v26 = vmul.f32 %v2360_v11, %v2360_v11  ;;  %v3527_v18 = vmul.f32 %v2368_v20, %v2368_v20 }
 0x2b1   : > { %4580 = vst [vmem:[%s6911_s5 + $0xa8] sm:$0xff] %v4348_v4   ;;  %v3384_v54 = vadd.f32 %v3383_v23, %v2344_v49  ;;  %v3647_v27 = vadd.f32 %v3646_v8, %v3520_v17 }
 0x2b2   : > { %4579 = vst [vmem:[%s6911_s5 + $0xa0] sm:$0xff] %v4343_v44   ;;  %v4757_v16 = vpop.f32.mrb[44].mxu0 }
 0x2b3   : > { %v2372_v52 = vpop.f32.mrb[45].mxu0  ;;  %v3385_v15 = vadd.f32 %v3384_v54, %v2349_v14  ;;  %v2381_v61 = vadd.f32 %v4757_v16, %v6375_v45  ;;  %v3648_v13 = vadd.f32 %v3647_v27, %v3521_v33 }
 0x2b4   : > { %v4758_v58 = vpop.f32.mrb[46].mxu0  ;;  %v2373_v7 = vadd.f32 %v6375_v45, %v2372_v52 }
 0x2b5   : > { %v2384_v50 = vadd.f32 %v4758_v58, %v6375_v45  ;;  %v2375_v56 = vpop.f32.mrb[47].mxu0  ;;  %v3386_v19 = vadd.f32 %v3385_v15, %v2352_v53  ;;  %v3649_v6 = vadd.f32 %v3648_v13, %v3522_v29 }
 0x2b6   : > { %v2376_v36 = vadd.f32 %v6375_v45, %v2375_v56  ;;  %v3528_v39 = vmul.f32 %v2373_v7, %v2373_v7 }
 0x2b7   : > { %v4358_v60 = vpack.c.bf16 %v2384_v50, %v2381_v61  ;;  %v3387_v37 = vadd.f32 %v3386_v19, %v2357_v32  ;;  %v3650_v2 = vadd.f32 %v3649_v6, %v3523_v1  ;;  %v3530_v32 = vmul.f32 %v2381_v61, %v2381_v61 }
 0x2b8   : > { %v4353_v42 = vpack.c.bf16 %v2376_v36, %v2373_v7  ;;  %v3529_v63 = vmul.f32 %v2376_v36, %v2376_v36  ;;  %v3531_v38 = vmul.f32 %v2384_v50, %v2384_v50 }
 0x2b9   : > { %4582 = vst [vmem:[%s6911_s5 + $0xb8] sm:$0xff] %v4358_v60   ;;  %v3388_v22 = vadd.f32 %v3387_v37, %v2360_v11  ;;  %v3651_v14 = vadd.f32 %v3650_v2, %v3524_v41 }
 0x2ba   : > { %4581 = vst [vmem:[%s6911_s5 + $0xb0] sm:$0xff] %v4353_v42   ;;  %v4761_v25 = vpop.f32.mrb[48].mxu0 }
 0x2bb   : > { %v2388_v9 = vpop.f32.mrb[49].mxu0  ;;  %v3389_v31 = vadd.f32 %v3388_v22, %v2365_v0  ;;  %v3652_v49 = vadd.f32 %v3651_v14, %v3525_v26  ;;  %v2397_v24 = vadd.f32 %v4761_v25, %v6375_v45 }
 0x2bc   : > { %v4762_v53 = vpop.f32.mrb[50].mxu0  ;;  %v2389_v40 = vadd.f32 %v6375_v45, %v2388_v9 }
 0x2bd   : > { %v2400_v28 = vadd.f32 %v4762_v53, %v6375_v45  ;;  %v2391_v48 = vpop.f32.mrb[51].mxu0  ;;  %v3390_v51 = vadd.f32 %v3389_v31, %v2368_v20  ;;  %v3653_v57 = vadd.f32 %v3652_v49, %v3526_v35 }
 0x2be   : > { %v2392_v12 = vadd.f32 %v6375_v45, %v2391_v48  ;;  %v3532_v23 = vmul.f32 %v2389_v40, %v2389_v40 }
 0x2bf   : > { %v4368_v59 = vpack.c.bf16 %v2400_v28, %v2397_v24  ;;  %v3391_v55 = vadd.f32 %v3390_v51, %v2373_v7  ;;  %v3654_v47 = vadd.f32 %v3653_v57, %v3527_v18  ;;  %v3535_v13 = vmul.f32 %v2400_v28, %v2400_v28 }
 0x2c0   : > { %v4363_v21 = vpack.c.bf16 %v2392_v12, %v2389_v40  ;;  %v3533_v52 = vmul.f32 %v2392_v12, %v2392_v12 }
 0x2c1   : > { %4584 = vst [vmem:[%s6911_s5 + $0xc8] sm:$0xff] %v4368_v59   ;;  %v3392_v5 = vadd.f32 %v3391_v55, %v2376_v36  ;;  %v3655_v0 = vadd.f32 %v3654_v47, %v3528_v39  ;;  %v6703_v36 = vld [vmem:[%s6910_s4] ss:$0 sm:$0xff] }
 0x2c2   : > { %4583 = vst [vmem:[%s6911_s5 + $0xc0] sm:$0xff] %v4363_v21   ;;  %v4765_v30 = vpop.f32.mrb[52].mxu0 }
 0x2c3   : > { %v2404_v34 = vpop.f32.mrb[53].mxu0  ;;  %v3393_v20 = vadd.f32 %v3392_v5, %v2381_v61  ;;  %v3656_v11 = vadd.f32 %v3655_v0, %v3529_v63  ;;  %v2413_v46 = vadd.f32 %v4765_v30, %v6375_v45 }
 0x2c4   : > { %v4766_v62 = vpop.f32.mrb[54].mxu0  ;;  %v2405_v44 = vadd.f32 %v6375_v45, %v2404_v34 }
 0x2c5   : > { %v2416_v43 = vadd.f32 %v4766_v62, %v6375_v45  ;;  %v2407_v4 = vpop.f32.mrb[55].mxu0  ;;  %v3394_v3 = vadd.f32 %v3393_v20, %v2384_v50  ;;  %v3657_v17 = vadd.f32 %v3656_v11, %v3530_v32  ;;  %v3534_v50 = vmul.f32 %v2397_v24, %v2397_v24 }
 0x2c6   : > { %v2408_v10 = vadd.f32 %v6375_v45, %v2407_v4  ;;  %v3536_v41 = vmul.f32 %v2405_v44, %v2405_v44 }
 0x2c7   : > { %v4378_v8 = vpack.c.bf16 %v2416_v43, %v2413_v46  ;;  %v3395_v33 = vadd.f32 %v3394_v3, %v2389_v40  ;;  %v3658_v54 = vadd.f32 %v3657_v17, %v3531_v38  ;;  %v3539_v51 = vmul.f32 %v2416_v43, %v2416_v43 }
 0x2c8   : > { %v4373_v16 = vpack.c.bf16 %v2408_v10, %v2405_v44  ;;  %v3537_v25 = vmul.f32 %v2408_v10, %v2408_v10 }
 0x2c9   : > { %4586 = vst [vmem:[%s6911_s5 + $0xd8] sm:$0xff] %v4378_v8   ;;  %v3396_v27 = vadd.f32 %v3395_v33, %v2392_v12  ;;  %v3659_v58 = vadd.f32 %v3658_v54, %v3532_v23 }
 0x2ca   : > { %4585 = vst [vmem:[%s6911_s5 + $0xd0] sm:$0xff] %v4373_v16   ;;  %v4769_v15 = vpop.f32.mrb[56].mxu0 }
 0x2cb   : > { %v3397_v45 = vadd.f32 %v3396_v27, %v2397_v24  ;;  %v2420_v61 = vpop.f32.mrb[57].mxu0  ;;  %v3660_v56 = vadd.f32 %v3659_v58, %v3533_v52  ;;  %v2429_v19 = vadd.f32 %v6703_v36, %v4769_v15  ;;  %v3538_v24 = vmul.f32 %v2413_v46, %v2413_v46 }
 0x2cc   : > { %v4770_v29 = vpop.f32.mrb[58].mxu0  ;;  %v2421_v42 = vadd.f32 %v6703_v36, %v2420_v61 }
 0x2cd   : > { %v3398_v7 = vadd.f32 %v3397_v45, %v2400_v28  ;;  %v2432_v60 = vadd.f32 %v6703_v36, %v4770_v29  ;;  %v2423_v1 = vpop.f32.mrb[59].mxu0  ;;  %v3661_v6 = vadd.f32 %v3660_v56, %v3534_v50 }
 0x2ce   : > { %v2424_v37 = vadd.f32 %v6703_v36, %v2423_v1  ;;  %v3540_v59 = vmul.f32 %v2421_v42, %v2421_v42 }
 0x2cf   : > { %v3399_v2 = vadd.f32 %v3398_v7, %v2405_v44  ;;  %v4388_v26 = vpack.c.bf16 %v2432_v60, %v2429_v19  ;;  %v3662_v22 = vadd.f32 %v3661_v6, %v3535_v13  ;;  %v3543_v23 = vmul.f32 %v2432_v60, %v2432_v60 }
 0x2d0   : > { %v4383_v14 = vpack.c.bf16 %v2424_v37, %v2421_v42  ;;  %v3541_v30 = vmul.f32 %v2424_v37, %v2424_v37 }
 0x2d1   : > { %v3400_v9 = vadd.f32 %v3399_v2, %v2408_v10  ;;  %4588 = vst [vmem:[%s6911_s5 + $0xe8] sm:$0xff] %v4388_v26   ;;  %v3663_v31 = vadd.f32 %v3662_v22, %v3536_v41 }
 0x2d2   : > { %4587 = vst [vmem:[%s6911_s5 + $0xe0] sm:$0xff] %v4383_v14   ;;  %v4773_v53 = vpop.f32.mrb[60].mxu0 }
 0x2d3   : > { %v3401_v35 = vadd.f32 %v3400_v9, %v2413_v46  ;;  %v2436_v49 = vpop.f32.mrb[61].mxu0  ;;  %v3664_v28 = vadd.f32 %v3663_v31, %v3537_v25  ;;  %v2445_v12 = vadd.f32 %v6703_v36, %v4773_v53 }
 0x2d4   : > { %v4774_v48 = vpop.f32.mrb[62].mxu0  ;;  %v2437_v55 = vadd.f32 %v6703_v36, %v2436_v49 }
 0x2d5   : > { %v3402_v40 = vadd.f32 %v3401_v35, %v2416_v43  ;;  %v2448_v18 = vadd.f32 %v6703_v36, %v4774_v48  ;;  %v2439_v57 = vpop.f32.mrb[63].mxu0  ;;  %v3665_v39 = vadd.f32 %v3664_v28, %v3538_v24  ;;  %v3542_v43 = vmul.f32 %v2429_v19, %v2429_v19 }
 0x2d6   : > { %v2440_v21 = vadd.f32 %v6703_v36, %v2439_v57  ;;  %v3544_v33 = vmul.f32 %v2437_v55, %v2437_v55  ;;  %v3546_v29 = vmul.f32 %v2445_v12, %v2445_v12 }
 0x2d7   : > { %v3403_v47 = vadd.f32 %v3402_v40, %v2421_v42  ;;  %v4398_v63 = vpack.c.bf16 %v2448_v18, %v2445_v12  ;;  %v3666_v5 = vadd.f32 %v3665_v39, %v3539_v51  ;;  %v3547_v41 = vmul.f32 %v2448_v18, %v2448_v18 }
 0x2d8   : > { %v4393_v0 = vpack.c.bf16 %v2440_v21, %v2437_v55  ;;  %v3545_v58 = vmul.f32 %v2440_v21, %v2440_v21 }
 0x2d9   : > { %v3404_v34 = vadd.f32 %v3403_v47, %v2424_v37  ;;  %4590 = vst [vmem:[%s6911_s5 + $0xf8] sm:$0xff] %v4398_v63   ;;  %v3667_v20 = vadd.f32 %v3666_v5, %v3540_v59  ;;  %v4777_v62 = vpop.f32.mrb[0].mxu1 }
 0x2da   : > { %4589 = vst [vmem:[%s6911_s5 + $0xf0] sm:$0xff] %v4393_v0   ;;  %v2461_v11 = vadd.f32 %v6703_v36, %v4777_v62  ;;  %v2452_v46 = vpop.f32.mrb[1].mxu1 }
 0x2db   : > { %v3405_v32 = vadd.f32 %v3404_v34, %v2429_v19  ;;  %v3668_v4 = vadd.f32 %v3667_v20, %v3541_v30  ;;  %v2453_v3 = vadd.f32 %v6703_v36, %v2452_v46  ;;  %v4778_v44 = vpop.f32.mrb[2].mxu1 }
 0x2dc   : > { %v2464_v38 = vadd.f32 %v6703_v36, %v4778_v44  ;;  %v2455_v17 = vpop.f32.mrb[3].mxu1  ;;  %v3550_v48 = vmul.f32 %v2461_v11, %v2461_v11 }
 0x2dd   : > { %v3406_v10 = vadd.f32 %v3405_v32, %v2432_v60  ;;  %v3669_v8 = vadd.f32 %v3668_v4, %v3542_v43  ;;  %v2456_v16 = vadd.f32 %v6703_v36, %v2455_v17  ;;  %v3548_v37 = vmul.f32 %v2453_v3, %v2453_v3 }
 0x2de   : > { %v4408_v52 = vpack.c.bf16 %v2464_v38, %v2461_v11  ;;  %v3551_v59 = vmul.f32 %v2464_v38, %v2464_v38 }
 0x2df   : > { %v3407_v54 = vadd.f32 %v3406_v10, %v2437_v55  ;;  %v3670_v27 = vadd.f32 %v3669_v8, %v3543_v23  ;;  %v4403_v15 = vpack.c.bf16 %v2456_v16, %v2453_v3  ;;  %v3549_v49 = vmul.f32 %v2456_v16, %v2456_v16 }
 0x2e0   : > { %4592 = vst [vmem:[%s6911_s5 + $0x108] sm:$0xff] %v4408_v52  }
 0x2e1   : > { %v3408_v45 = vadd.f32 %v3407_v54, %v2440_v21  ;;  %v3671_v61 = vadd.f32 %v3670_v27, %v3544_v33  ;;  %4591 = vst [vmem:[%s6911_s5 + $0x100] sm:$0xff] %v4403_v15  }
 0x2e2   : > { %v4781_v56 = vpop.f32.mrb[4].mxu1 }
 0x2e3   : > { %v3409_v50 = vadd.f32 %v3408_v45, %v2445_v12  ;;  %v3672_v13 = vadd.f32 %v3671_v61, %v3545_v58  ;;  %v2477_v7 = vadd.f32 %v6703_v36, %v4781_v56  ;;  %v2468_v19 = vpop.f32.mrb[5].mxu1 }
 0x2e4   : > { %v2469_v1 = vadd.f32 %v6703_v36, %v2468_v19  ;;  %v4782_v6 = vpop.f32.mrb[6].mxu1 }
 0x2e5   : > { %v3410_v60 = vadd.f32 %v3409_v50, %v2448_v18  ;;  %v3673_v42 = vadd.f32 %v3672_v13, %v3546_v29  ;;  %v2480_v2 = vadd.f32 %v6703_v36, %v4782_v6  ;;  %v2471_v26 = vpop.f32.mrb[7].mxu1  ;;  %v3554_v43 = vmul.f32 %v2477_v7, %v2477_v7 }
 0x2e6   : > { %v2472_v25 = vadd.f32 %v6703_v36, %v2471_v26  ;;  %v3552_v21 = vmul.f32 %v2469_v1, %v2469_v1 }
 0x2e7   : > { %v3411_v22 = vadd.f32 %v3410_v60, %v2453_v3  ;;  %v3674_v14 = vadd.f32 %v3673_v42, %v3547_v41  ;;  %v4418_v9 = vpack.c.bf16 %v2480_v2, %v2477_v7  ;;  %v3555_v17 = vmul.f32 %v2480_v2, %v2480_v2 }
 0x2e8   : > { %v4413_v53 = vpack.c.bf16 %v2472_v25, %v2469_v1 }
 0x2e9   : > { %v3412_v31 = vadd.f32 %v3411_v22, %v2456_v16  ;;  %v3675_v35 = vadd.f32 %v3674_v14, %v3548_v37  ;;  %4594 = vst [vmem:[%s6911_s5 + $0x118] sm:$0xff] %v4418_v9  }
 0x2ea   : > { %4593 = vst [vmem:[%s6911_s5 + $0x110] sm:$0xff] %v4413_v53   ;;  %v4785_v28 = vpop.f32.mrb[8].mxu1 }
 0x2eb   : > { %v3413_v24 = vadd.f32 %v3412_v31, %v2461_v11  ;;  %v3676_v51 = vadd.f32 %v3675_v35, %v3549_v49  ;;  %v2493_v40 = vadd.f32 %v6703_v36, %v4785_v28  ;;  %v2484_v12 = vpop.f32.mrb[9].mxu1  ;;  %v3553_v11 = vmul.f32 %v2472_v25, %v2472_v25 }
 0x2ec   : > { %v2485_v57 = vadd.f32 %v6703_v36, %v2484_v12  ;;  %v4786_v39 = vpop.f32.mrb[10].mxu1 }
 0x2ed   : > { %v3414_v18 = vadd.f32 %v3413_v24, %v2464_v38  ;;  %v3677_v55 = vadd.f32 %v3676_v51, %v3550_v48  ;;  %v2496_v47 = vadd.f32 %v6703_v36, %v4786_v39  ;;  %v2487_v63 = vpop.f32.mrb[11].mxu1 }
 0x2ee   : > { %v2488_v30 = vadd.f32 %v6703_v36, %v2487_v63  ;;  %v3556_v8 = vmul.f32 %v2485_v57, %v2485_v57 }
 0x2ef   : > { %v3415_v5 = vadd.f32 %v3414_v18, %v2469_v1  ;;  %v3678_v0 = vadd.f32 %v3677_v55, %v3551_v59  ;;  %v4428_v34 = vpack.c.bf16 %v2496_v47, %v2493_v40  ;;  %v3559_v6 = vmul.f32 %v2496_v47, %v2496_v47 }
 0x2f0   : > { %v4423_v62 = vpack.c.bf16 %v2488_v30, %v2485_v57  ;;  %v3557_v56 = vmul.f32 %v2488_v30, %v2488_v30 }
 0x2f1   : > { %v3416_v20 = vadd.f32 %v3415_v5, %v2472_v25  ;;  %v3679_v32 = vadd.f32 %v3678_v0, %v3552_v21  ;;  %4596 = vst [vmem:[%s6911_s5 + $0x128] sm:$0xff] %v4428_v34  }
 0x2f2   : > { %4595 = vst [vmem:[%s6911_s5 + $0x120] sm:$0xff] %v4423_v62  }
 0x2f3   : > { %v3417_v46 = vadd.f32 %v3416_v20, %v2477_v7  ;;  %v3680_v4 = vadd.f32 %v3679_v32, %v3553_v11  ;;  %v4789_v3 = vpop.f32.mrb[12].mxu1  ;;  %v3558_v7 = vmul.f32 %v2493_v40, %v2493_v40 }
 0x2f4   : > { %v2509_v10 = vadd.f32 %v6703_v36, %v4789_v3  ;;  %v2500_v38 = vpop.f32.mrb[13].mxu1 }
 0x2f5   : > { %v3418_v44 = vadd.f32 %v3417_v46, %v2480_v2  ;;  %v3681_v23 = vadd.f32 %v3680_v4, %v3554_v43  ;;  %v2501_v33 = vadd.f32 %v6703_v36, %v2500_v38  ;;  %v4790_v16 = vpop.f32.mrb[14].mxu1 }
 0x2f6   : > { %v2512_v52 = vadd.f32 %v6703_v36, %v4790_v16  ;;  %v2503_v27 = vpop.f32.mrb[15].mxu1 }
 0x2f7   : > { %v3419_v54 = vadd.f32 %v3418_v44, %v2485_v57  ;;  %v3682_v58 = vadd.f32 %v3681_v23, %v3555_v17  ;;  %v2504_v15 = vadd.f32 %v6703_v36, %v2503_v27  ;;  %v3560_v42 = vmul.f32 %v2501_v33, %v2501_v33 }
 0x2f8   : > { %v4438_v61 = vpack.c.bf16 %v2512_v52, %v2509_v10  ;;  %v3563_v39 = vmul.f32 %v2512_v52, %v2512_v52 }
 0x2f9   : > { %v3420_v45 = vadd.f32 %v3419_v54, %v2488_v30  ;;  %v3683_v50 = vadd.f32 %v3682_v58, %v3556_v8  ;;  %v4433_v29 = vpack.c.bf16 %v2504_v15, %v2501_v33  ;;  %v3561_v24 = vmul.f32 %v2504_v15, %v2504_v15 }
 0x2fa   : > { %4598 = vst [vmem:[%s6911_s5 + $0x138] sm:$0xff] %v4438_v61  }
 0x2fb   : > { %v3421_v13 = vadd.f32 %v3420_v45, %v2493_v40  ;;  %v3684_v19 = vadd.f32 %v3683_v50, %v3557_v56  ;;  %4597 = vst [vmem:[%s6911_s5 + $0x130] sm:$0xff] %v4433_v29   ;;  %v3562_v40 = vmul.f32 %v2509_v10, %v2509_v10 }
 0x2fc   : > { %v4793_v1 = vpop.f32.mrb[16].mxu1 }
 0x2fd   : > { %v3422_v60 = vadd.f32 %v3421_v13, %v2496_v47  ;;  %v3685_v41 = vadd.f32 %v3684_v19, %v3558_v7  ;;  %v2525_v37 = vadd.f32 %v6703_v36, %v4793_v1  ;;  %v2516_v2 = vpop.f32.mrb[17].mxu1 }
 0x2fe   : > { %v2517_v22 = vadd.f32 %v6703_v36, %v2516_v2  ;;  %v4794_v25 = vpop.f32.mrb[18].mxu1 }
 0x2ff   : > { %v3423_v26 = vadd.f32 %v3422_v60, %v2501_v33  ;;  %v3686_v14 = vadd.f32 %v3685_v41, %v3559_v6  ;;  %v2528_v9 = vadd.f32 %v6703_v36, %v4794_v25  ;;  %v2519_v31 = vpop.f32.mrb[19].mxu1  ;;  %v3566_v44 = vmul.f32 %v2525_v37, %v2525_v37 }
 0x300   : > { %v2520_v35 = vadd.f32 %v6703_v36, %v2519_v31  ;;  %v3564_v55 = vmul.f32 %v2517_v22, %v2517_v22 }
 0x301   : > { %v3424_v53 = vadd.f32 %v3423_v26, %v2504_v15  ;;  %v3687_v49 = vadd.f32 %v3686_v14, %v3560_v42  ;;  %v4448_v28 = vpack.c.bf16 %v2528_v9, %v2525_v37  ;;  %v3567_v17 = vmul.f32 %v2528_v9, %v2528_v9 }
 0x302   : > { %v4443_v51 = vpack.c.bf16 %v2520_v35, %v2517_v22  ;;  %v3565_v46 = vmul.f32 %v2520_v35, %v2520_v35 }
 0x303   : > { %v3425_v48 = vadd.f32 %v3424_v53, %v2509_v10  ;;  %v3688_v12 = vadd.f32 %v3687_v49, %v3561_v24  ;;  %4600 = vst [vmem:[%s6911_s5 + $0x148] sm:$0xff] %v4448_v28  }
 0x304   : > { %4599 = vst [vmem:[%s6911_s5 + $0x140] sm:$0xff] %v4443_v51   ;;  %v4797_v57 = vpop.f32.mrb[20].mxu1 }
 0x305   : > { %v3426_v18 = vadd.f32 %v3425_v48, %v2512_v52  ;;  %v3689_v59 = vadd.f32 %v3688_v12, %v3562_v40  ;;  %v2541_v21 = vadd.f32 %v6703_v36, %v4797_v57  ;;  %v2532_v47 = vpop.f32.mrb[21].mxu1 }
 0x306   : > { %v2533_v5 = vadd.f32 %v6703_v36, %v2532_v47  ;;  %v4798_v30 = vpop.f32.mrb[22].mxu1 }
 0x307   : > { %v3427_v63 = vadd.f32 %v3426_v18, %v2517_v22  ;;  %v3690_v0 = vadd.f32 %v3689_v59, %v3563_v39  ;;  %v2544_v34 = vadd.f32 %v6703_v36, %v4798_v30  ;;  %v2535_v20 = vpop.f32.mrb[23].mxu1  ;;  %v3570_v60 = vmul.f32 %v2541_v21, %v2541_v21 }
 0x308   : > { %v2536_v32 = vadd.f32 %v6703_v36, %v2535_v20  ;;  %v3568_v8 = vmul.f32 %v2533_v5, %v2533_v5 }
 0x309   : > { %v3428_v62 = vadd.f32 %v3427_v63, %v2520_v35  ;;  %v3691_v11 = vadd.f32 %v3690_v0, %v3564_v55  ;;  %v4458_v43 = vpack.c.bf16 %v2544_v34, %v2541_v21  ;;  %v3571_v42 = vmul.f32 %v2544_v34, %v2544_v34 }
 0x30a   : > { %v4453_v3 = vpack.c.bf16 %v2536_v32, %v2533_v5  ;;  %v3569_v29 = vmul.f32 %v2536_v32, %v2536_v32 }
 0x30b   : > { %v3429_v4 = vadd.f32 %v3428_v62, %v2525_v37  ;;  %v3692_v10 = vadd.f32 %v3691_v11, %v3565_v46  ;;  %4602 = vst [vmem:[%s6911_s5 + $0x158] sm:$0xff] %v4458_v43  }
 0x30c   : > { %4601 = vst [vmem:[%s6911_s5 + $0x150] sm:$0xff] %v4453_v3  }
 0x30d   : > { %v3430_v38 = vadd.f32 %v3429_v4, %v2528_v9  ;;  %v3693_v23 = vadd.f32 %v3692_v10, %v3566_v44  ;;  %v4801_v33 = vpop.f32.mrb[24].mxu1 }
 0x30e   : > { %v2557_v54 = vadd.f32 %v6703_v36, %v4801_v33  ;;  %v2548_v52 = vpop.f32.mrb[25].mxu1 }
 0x30f   : > { %v3431_v16 = vadd.f32 %v3430_v38, %v2533_v5  ;;  %v3694_v27 = vadd.f32 %v3693_v23, %v3567_v17  ;;  %v2549_v58 = vadd.f32 %v6703_v36, %v2548_v52  ;;  %v4802_v15 = vpop.f32.mrb[26].mxu1 }
 0x310   : > { %v2560_v61 = vadd.f32 %v6703_v36, %v4802_v15  ;;  %v2551_v50 = vpop.f32.mrb[27].mxu1  ;;  %v3574_v12 = vmul.f32 %v2557_v54, %v2557_v54 }
 0x311   : > { %v3432_v45 = vadd.f32 %v3431_v16, %v2536_v32  ;;  %v3695_v56 = vadd.f32 %v3694_v27, %v3568_v8  ;;  %v2552_v13 = vadd.f32 %v6703_v36, %v2551_v50  ;;  %v3572_v2 = vmul.f32 %v2549_v58, %v2549_v58 }
 0x312   : > { %v4468_v19 = vpack.c.bf16 %v2560_v61, %v2557_v54  ;;  %v3575_v55 = vmul.f32 %v2560_v61, %v2560_v61 }
 0x313   : > { %v3433_v7 = vadd.f32 %v3432_v45, %v2541_v21  ;;  %v3696_v1 = vadd.f32 %v3695_v56, %v3569_v29  ;;  %v4463_v6 = vpack.c.bf16 %v2552_v13, %v2549_v58  ;;  %v3573_v24 = vmul.f32 %v2552_v13, %v2552_v13 }
 0x314   : > { %4604 = vst [vmem:[%s6911_s5 + $0x168] sm:$0xff] %v4468_v19  }
 0x315   : > { %v3434_v41 = vadd.f32 %v3433_v7, %v2544_v34  ;;  %v3697_v37 = vadd.f32 %v3696_v1, %v3570_v60  ;;  %4603 = vst [vmem:[%s6911_s5 + $0x160] sm:$0xff] %v4463_v6  }
 0x316   : > { %v4805_v22 = vpop.f32.mrb[28].mxu1 }
 0x317   : > { %v3435_v26 = vadd.f32 %v3434_v41, %v2549_v58  ;;  %v3698_v25 = vadd.f32 %v3697_v37, %v3571_v42  ;;  %v2573_v14 = vadd.f32 %v6703_v36, %v4805_v22  ;;  %v2564_v9 = vpop.f32.mrb[29].mxu1 }
 0x318   : > { %v2565_v53 = vadd.f32 %v6703_v36, %v2564_v9  ;;  %v4806_v35 = vpop.f32.mrb[30].mxu1 }
 0x319   : > { %v3436_v31 = vadd.f32 %v3435_v26, %v2552_v13  ;;  %v3699_v49 = vadd.f32 %v3698_v25, %v3572_v2  ;;  %v2576_v28 = vadd.f32 %v6703_v36, %v4806_v35  ;;  %v2567_v48 = vpop.f32.mrb[31].mxu1  ;;  %v3578_v44 = vmul.f32 %v2573_v14, %v2573_v14 }
 0x31a   : > { %v2568_v40 = vadd.f32 %v6703_v36, %v2567_v48  ;;  %v3576_v47 = vmul.f32 %v2565_v53, %v2565_v53 }
 0x31b   : > { %v3437_v51 = vadd.f32 %v3436_v31, %v2557_v54  ;;  %v3700_v18 = vadd.f32 %v3699_v49, %v3573_v24  ;;  %v4478_v57 = vpack.c.bf16 %v2576_v28, %v2573_v14  ;;  %v3579_v8 = vmul.f32 %v2576_v28, %v2576_v28 }
 0x31c   : > { %v4473_v59 = vpack.c.bf16 %v2568_v40, %v2565_v53  ;;  %v3577_v32 = vmul.f32 %v2568_v40, %v2568_v40 }
 0x31d   : > { %v3438_v39 = vadd.f32 %v3437_v51, %v2560_v61  ;;  %v3701_v21 = vadd.f32 %v3700_v18, %v3574_v12  ;;  %4606 = vst [vmem:[%s6911_s5 + $0x178] sm:$0xff] %v4478_v57  }
 0x31e   : > { %4605 = vst [vmem:[%s6911_s5 + $0x170] sm:$0xff] %v4473_v59  }
 0x31f   : > { %v3439_v63 = vadd.f32 %v3438_v39, %v2565_v53  ;;  %v3702_v5 = vadd.f32 %v3701_v21, %v3575_v55  ;;  %v4809_v30 = vpop.f32.mrb[32].mxu1 }
 0x320   : > { %v2589_v34 = vadd.f32 %v6703_v36, %v4809_v30  ;;  %v2580_v20 = vpop.f32.mrb[33].mxu1 }
 0x321   : > { %v3440_v0 = vadd.f32 %v3439_v63, %v2568_v40  ;;  %v3703_v62 = vadd.f32 %v3702_v5, %v3576_v47  ;;  %v2581_v11 = vadd.f32 %v6703_v36, %v2580_v20  ;;  %v4810_v46 = vpop.f32.mrb[34].mxu1 }
 0x322   : > { %v2592_v4 = vadd.f32 %v6703_v36, %v4810_v46  ;;  %v2583_v3 = vpop.f32.mrb[35].mxu1  ;;  %v3582_v1 = vmul.f32 %v2589_v34, %v2589_v34 }
 0x323   : > { %v3441_v43 = vadd.f32 %v3440_v0, %v2573_v14  ;;  %v3704_v10 = vadd.f32 %v3703_v62, %v3577_v32  ;;  %v2584_v38 = vadd.f32 %v6703_v36, %v2583_v3  ;;  %v3580_v16 = vmul.f32 %v2581_v11, %v2581_v11 }
 0x324   : > { %v4488_v23 = vpack.c.bf16 %v2592_v4, %v2589_v34  ;;  %v3583_v2 = vmul.f32 %v2592_v4, %v2592_v4 }
 0x325   : > { %v3442_v17 = vadd.f32 %v3441_v43, %v2576_v28  ;;  %v3705_v33 = vadd.f32 %v3704_v10, %v3578_v44  ;;  %v4483_v54 = vpack.c.bf16 %v2584_v38, %v2581_v11  ;;  %v3581_v56 = vmul.f32 %v2584_v38, %v2584_v38 }
 0x326   : > { %4608 = vst [vmem:[%s6911_s5 + $0x188] sm:$0xff] %v4488_v23  }
 0x327   : > { %v3443_v52 = vadd.f32 %v3442_v17, %v2581_v11  ;;  %v3706_v27 = vadd.f32 %v3705_v33, %v3579_v8  ;;  %4607 = vst [vmem:[%s6911_s5 + $0x180] sm:$0xff] %v4483_v54   ;;  %v4813_v58 = vpop.f32.mrb[36].mxu1 }
 0x328   : > { %v2605_v45 = vadd.f32 %v6703_v36, %v4813_v58  ;;  %v2596_v61 = vpop.f32.mrb[37].mxu1 }
 0x329   : > { %v3444_v15 = vadd.f32 %v3443_v52, %v2584_v38  ;;  %v3707_v50 = vadd.f32 %v3706_v27, %v3580_v16  ;;  %v2597_v29 = vadd.f32 %v6703_v36, %v2596_v61  ;;  %v4814_v13 = vpop.f32.mrb[38].mxu1 }
 0x32a   : > { %v2608_v19 = vadd.f32 %v6703_v36, %v4814_v13  ;;  %v2599_v60 = vpop.f32.mrb[39].mxu1  ;;  %v3586_v57 = vmul.f32 %v2605_v45, %v2605_v45 }
 0x32b   : > { %v3445_v7 = vadd.f32 %v3444_v15, %v2589_v34  ;;  %v3708_v6 = vadd.f32 %v3707_v50, %v3581_v56  ;;  %v2600_v41 = vadd.f32 %v6703_v36, %v2599_v60  ;;  %v3584_v22 = vmul.f32 %v2597_v29, %v2597_v29 }
 0x32c   : > { %v4498_v37 = vpack.c.bf16 %v2608_v19, %v2605_v45  ;;  %v3587_v47 = vmul.f32 %v2608_v19, %v2608_v19 }
 0x32d   : > { %v3446_v42 = vadd.f32 %v3445_v7, %v2592_v4  ;;  %v3709_v26 = vadd.f32 %v3708_v6, %v3582_v1  ;;  %v4493_v25 = vpack.c.bf16 %v2600_v41, %v2597_v29  ;;  %v3585_v28 = vmul.f32 %v2600_v41, %v2600_v41 }
 0x32e   : > { %4610 = vst [vmem:[%s6911_s5 + $0x198] sm:$0xff] %v4498_v37  }
 0x32f   : > { %v3447_v14 = vadd.f32 %v3446_v42, %v2597_v29  ;;  %v3710_v9 = vadd.f32 %v3709_v26, %v3583_v2  ;;  %4609 = vst [vmem:[%s6911_s5 + $0x190] sm:$0xff] %v4493_v25   ;;  %v4817_v31 = vpop.f32.mrb[40].mxu1 }
 0x330   : > { %v2621_v35 = vadd.f32 %v6703_v36, %v4817_v31  ;;  %v2612_v49 = vpop.f32.mrb[41].mxu1 }
 0x331   : > { %v3448_v53 = vadd.f32 %v3447_v14, %v2600_v41  ;;  %v3711_v24 = vadd.f32 %v3710_v9, %v3584_v22  ;;  %v2613_v48 = vadd.f32 %v6703_v36, %v2612_v49  ;;  %v4818_v51 = vpop.f32.mrb[42].mxu1 }
 0x332   : > { %v2624_v12 = vadd.f32 %v6703_v36, %v4818_v51  ;;  %v2615_v18 = vpop.f32.mrb[43].mxu1  ;;  %v3590_v10 = vmul.f32 %v2621_v35, %v2621_v35 }
 0x333   : > { %v3449_v40 = vadd.f32 %v3448_v53, %v2605_v45  ;;  %v3712_v39 = vadd.f32 %v3711_v24, %v3585_v28  ;;  %v2616_v59 = vadd.f32 %v6703_v36, %v2615_v18  ;;  %v3588_v5 = vmul.f32 %v2613_v48, %v2613_v48 }
 0x334   : > { %v4508_v21 = vpack.c.bf16 %v2624_v12, %v2621_v35  ;;  %v3591_v16 = vmul.f32 %v2624_v12, %v2624_v12 }
 0x335   : > { %v3450_v55 = vadd.f32 %v3449_v40, %v2608_v19  ;;  %v3713_v63 = vadd.f32 %v3712_v39, %v3586_v57  ;;  %v4503_v30 = vpack.c.bf16 %v2616_v59, %v2613_v48  ;;  %v3589_v11 = vmul.f32 %v2616_v59, %v2616_v59 }
 0x336   : > { %4612 = vst [vmem:[%s6911_s5 + $0x1a8] sm:$0xff] %v4508_v21  }
 0x337   : > { %v3451_v0 = vadd.f32 %v3450_v55, %v2613_v48  ;;  %v3714_v34 = vadd.f32 %v3713_v63, %v3587_v47  ;;  %4611 = vst [vmem:[%s6911_s5 + $0x1a0] sm:$0xff] %v4503_v30  }
 0x339   : > { %v3452_v20 = vadd.f32 %v3451_v0, %v2616_v59  ;;  %v4821_v62 = vpop.f32.mrb[44].mxu1  ;;  %v3715_v32 = vadd.f32 %v3714_v34, %v3588_v5 }
 0x33a   : > { %v2637_v46 = vadd.f32 %v6703_v36, %v4821_v62  ;;  %v2628_v43 = vpop.f32.mrb[45].mxu1 }
 0x33b   : > { %v3453_v4 = vadd.f32 %v3452_v20, %v2621_v35  ;;  %v2629_v3 = vadd.f32 %v6703_v36, %v2628_v43  ;;  %v4822_v44 = vpop.f32.mrb[46].mxu1  ;;  %v3716_v38 = vadd.f32 %v3715_v32, %v3589_v11 }
 0x33c   : > { %v2640_v17 = vadd.f32 %v6703_v36, %v4822_v44  ;;  %v2631_v23 = vpop.f32.mrb[47].mxu1  ;;  %v3594_v13 = vmul.f32 %v2637_v46, %v2637_v46 }
 0x33d   : > { %v3454_v8 = vadd.f32 %v3453_v4, %v2624_v12  ;;  %v2632_v33 = vadd.f32 %v6703_v36, %v2631_v23  ;;  %v3717_v54 = vadd.f32 %v3716_v38, %v3590_v10  ;;  %v3592_v52 = vmul.f32 %v2629_v3, %v2629_v3 }
 0x33e   : > { %v4518_v27 = vpack.c.bf16 %v2640_v17, %v2637_v46  ;;  %v3595_v60 = vmul.f32 %v2640_v17, %v2640_v17 }
 0x33f   : > { %v3455_v58 = vadd.f32 %v3454_v8, %v2629_v3  ;;  %v4513_v15 = vpack.c.bf16 %v2632_v33, %v2629_v3  ;;  %v3718_v45 = vadd.f32 %v3717_v54, %v3591_v16  ;;  %v3593_v56 = vmul.f32 %v2632_v33, %v2632_v33 }
 0x340   : > { %4614 = vst [vmem:[%s6911_s5 + $0x1b8] sm:$0xff] %v4518_v27  }
 0x341   : > { %4613 = vst [vmem:[%s6911_s5 + $0x1b0] sm:$0xff] %v4513_v15   ;;  %v3456_v61 = vadd.f32 %v3455_v58, %v2632_v33  ;;  %v3719_v50 = vadd.f32 %v3718_v45, %v3592_v52 }
 0x343   : > { %v3457_v29 = vadd.f32 %v3456_v61, %v2637_v46  ;;  %v3720_v7 = vadd.f32 %v3719_v50, %v3593_v56 }
 0x345   : > { %v3458_v19 = vadd.f32 %v3457_v29, %v2640_v17  ;;  %v3721_v1 = vadd.f32 %v3720_v7, %v3594_v13 }
 0x347   : > { %v4825_v6 = vpop.f32.mrb[48].mxu1  ;;  %v3722_v41 = vadd.f32 %v3721_v1, %v3595_v60 }
 0x348   : > { %v2653_v42 = vadd.f32 %v6703_v36, %v4825_v6  ;;  %v2644_v37 = vpop.f32.mrb[49].mxu1 }
 0x349   : > { %v2645_v2 = vadd.f32 %v6703_v36, %v2644_v37  ;;  %v4826_v26 = vpop.f32.mrb[50].mxu1 }
 0x34a   : > { %v2656_v22 = vadd.f32 %v6703_v36, %v4826_v26  ;;  %v2647_v25 = vpop.f32.mrb[51].mxu1  ;;  %v3598_v48 = vmul.f32 %v2653_v42, %v2653_v42 }
 0x34b   : > { %v3459_v14 = vadd.f32 %v3458_v19, %v2645_v2  ;;  %v3596_v9 = vmul.f32 %v2645_v2, %v2645_v2  ;;  %v2648_v31 = vadd.f32 %v6703_v36, %v2647_v25 }
 0x34c   : > { %v4528_v53 = vpack.c.bf16 %v2656_v22, %v2653_v42  ;;  %v3599_v12 = vmul.f32 %v2656_v22, %v2656_v22 }
 0x34d   : > { %v3723_v35 = vadd.f32 %v3722_v41, %v3596_v9  ;;  %v4523_v49 = vpack.c.bf16 %v2648_v31, %v2645_v2  ;;  %v3460_v24 = vadd.f32 %v3459_v14, %v2648_v31  ;;  %v3597_v28 = vmul.f32 %v2648_v31, %v2648_v31 }
 0x34e   : > { %4616 = vst [vmem:[%s6911_s5 + $0x1c8] sm:$0xff] %v4528_v53  }
 0x34f   : > { %4615 = vst [vmem:[%s6911_s5 + $0x1c0] sm:$0xff] %v4523_v49   ;;  %v3461_v51 = vadd.f32 %v3460_v24, %v2653_v42  ;;  %v3724_v40 = vadd.f32 %v3723_v35, %v3597_v28 }
 0x351   : > { %v3725_v18 = vadd.f32 %v3724_v40, %v3598_v48  ;;  %v3462_v57 = vadd.f32 %v3461_v51, %v2656_v22 }
 0x353   : > { %v3726_v39 = vadd.f32 %v3725_v18, %v3599_v12 }
 0x356   : > { %v4829_v59 = vpop.f32.mrb[52].mxu1 }
 0x357   : > { %v2669_v55 = vadd.f32 %v6703_v36, %v4829_v59  ;;  %v2660_v21 = vpop.f32.mrb[53].mxu1 }
 0x358   : > { %v2661_v47 = vadd.f32 %v6703_v36, %v2660_v21  ;;  %v4830_v63 = vpop.f32.mrb[54].mxu1 }
 0x359   : > { %v2672_v5 = vadd.f32 %v6703_v36, %v4830_v63  ;;  %v2663_v30 = vpop.f32.mrb[55].mxu1  ;;  %v3602_v4 = vmul.f32 %v2669_v55, %v2669_v55 }
 0x35a   : > { %v3463_v0 = vadd.f32 %v3462_v57, %v2661_v47  ;;  %v3600_v34 = vmul.f32 %v2661_v47, %v2661_v47  ;;  %v2664_v20 = vadd.f32 %v6703_v36, %v2663_v30 }
 0x35b   : > { %v4538_v62 = vpack.c.bf16 %v2672_v5, %v2669_v55  ;;  %v3603_v10 = vmul.f32 %v2672_v5, %v2672_v5 }
 0x35c   : > { %v3727_v32 = vadd.f32 %v3726_v39, %v3600_v34  ;;  %v4533_v11 = vpack.c.bf16 %v2664_v20, %v2661_v47  ;;  %v3464_v46 = vadd.f32 %v3463_v0, %v2664_v20  ;;  %v3601_v43 = vmul.f32 %v2664_v20, %v2664_v20 }
 0x35d   : > { %4618 = vst [vmem:[%s6911_s5 + $0x1d8] sm:$0xff] %v4538_v62  }
 0x35e   : > { %4617 = vst [vmem:[%s6911_s5 + $0x1d0] sm:$0xff] %v4533_v11   ;;  %v3465_v3 = vadd.f32 %v3464_v46, %v2669_v55  ;;  %v3728_v44 = vadd.f32 %v3727_v32, %v3601_v43  ;;  %v3347_v32 = vld [vmem:[%s6912_s6] sm:$0x1] }
 0x35f   : > { %v3483_v43 = vld [vmem:[%s6913_s7] sm:$0x1] }
 0x360   : > { %v3729_v38 = vadd.f32 %v3728_v44, %v3602_v4  ;;  %v3466_v17 = vadd.f32 %v3465_v3, %v2672_v5 }
 0x362   : > { %v3730_v23 = vadd.f32 %v3729_v38, %v3603_v10 }
 0x364   : > { %v4833_v8 = vpop.f32.mrb[56].mxu1 }
 0x365   : > { %v2685_v33 = vadd.f32 %v6703_v36, %v4833_v8  ;;  %v2676_v16 = vpop.f32.mrb[57].mxu1 }
 0x366   : > { %v2677_v54 = vadd.f32 %v6703_v36, %v2676_v16  ;;  %v4834_v52 = vpop.f32.mrb[58].mxu1 }
 0x367   : > { %v2688_v27 = vadd.f32 %v6703_v36, %v4834_v52  ;;  %v2679_v58 = vpop.f32.mrb[59].mxu1  ;;  %v3606_v19 = vmul.f32 %v2685_v33, %v2685_v33 }
 0x368   : > { %v3467_v15 = vadd.f32 %v3466_v17, %v2677_v54  ;;  %v3604_v45 = vmul.f32 %v2677_v54, %v2677_v54  ;;  %v2680_v61 = vadd.f32 %v6703_v36, %v2679_v58 }
 0x369   : > { %v4548_v50 = vpack.c.bf16 %v2688_v27, %v2685_v33  ;;  %v3607_v6 = vmul.f32 %v2688_v27, %v2688_v27 }
 0x36a   : > { %v3731_v56 = vadd.f32 %v3730_v23, %v3604_v45  ;;  %v4543_v29 = vpack.c.bf16 %v2680_v61, %v2677_v54  ;;  %v3468_v13 = vadd.f32 %v3467_v15, %v2680_v61  ;;  %v3605_v7 = vmul.f32 %v2680_v61, %v2680_v61 }
 0x36b   : > { %4620 = vst [vmem:[%s6911_s5 + $0x1e8] sm:$0xff] %v4548_v50  }
 0x36c   : > { %4619 = vst [vmem:[%s6911_s5 + $0x1e0] sm:$0xff] %v4543_v29   ;;  %v3469_v60 = vadd.f32 %v3468_v13, %v2685_v33  ;;  %v3732_v1 = vadd.f32 %v3731_v56, %v3605_v7 }
 0x36e   : > { %v3733_v41 = vadd.f32 %v3732_v1, %v3606_v19  ;;  %v3470_v42 = vadd.f32 %v3469_v60, %v2688_v27 }
 0x370   : > { %v4837_v37 = vpop.f32.mrb[60].mxu1  ;;  %v3734_v2 = vadd.f32 %v3733_v41, %v3607_v6 }
 0x371   : > { %v2701_v26 = vadd.f32 %v6703_v36, %v4837_v37  ;;  %v2692_v22 = vpop.f32.mrb[61].mxu1 }
 0x372   : > { %v2693_v25 = vadd.f32 %v6703_v36, %v2692_v22  ;;  %v4838_v14 = vpop.f32.mrb[62].mxu1 }
 0x373   : > { %v2704_v9 = vadd.f32 %v6703_v36, %v4838_v14  ;;  %v2695_v31 = vpop.f32.mrb[63].mxu1  ;;  %v3610_v12 = vmul.f32 %v2701_v26, %v2701_v26 }
 0x374   : > { %v3471_v53 = vadd.f32 %v3470_v42, %v2693_v25  ;;  %v3608_v35 = vmul.f32 %v2693_v25, %v2693_v25  ;;  %v2696_v49 = vadd.f32 %v6703_v36, %v2695_v31 }
 0x375   : > { %v4558_v24 = vpack.c.bf16 %v2704_v9, %v2701_v26  ;;  %v3611_v39 = vmul.f32 %v2704_v9, %v2704_v9 }
 0x376   : > { %v3735_v28 = vadd.f32 %v3734_v2, %v3608_v35  ;;  %v4553_v48 = vpack.c.bf16 %v2696_v49, %v2693_v25  ;;  %v3472_v51 = vadd.f32 %v3471_v53, %v2696_v49  ;;  %v3609_v40 = vmul.f32 %v2696_v49, %v2696_v49 }
 0x377   : > { %4622 = vst [vmem:[%s6911_s5 + $0x1f8] sm:$0xff] %v4558_v24  }
 0x378   : > { %4621 = vst [vmem:[%s6911_s5 + $0x1f0] sm:$0xff] %v4553_v48   ;;  %v3473_v18 = vadd.f32 %v3472_v51, %v2701_v26  ;;  %v3736_v57 = vadd.f32 %v3735_v28, %v3609_v40 }
 0x37a   : > { %v3474_v59 = vadd.f32 %v3473_v18, %v2704_v9  ;;  %v3737_v55 = vadd.f32 %v3736_v57, %v3610_v12 }
 0x37c   : > { %v3475_v36 = vrot.slane %v3474_v59, 4  ;;  %v3738_v21 = vadd.f32 %v3737_v55, %v3611_v39 }
 0x37e   : > { %v3476_v47 = vadd.f32 %v3475_v36, %v3474_v59  ;;  %v3739_v63 = vrot.slane %v3738_v21, 4 }
 0x380   : > { %v3477_v5 = vrot.slane %v3476_v47, 2  ;;  %v3740_v30 = vadd.f32 %v3739_v63, %v3738_v21 }
 0x382   : > { %v3478_v0 = vadd.f32 %v3477_v5, %v3476_v47  ;;  %v3741_v34 = vrot.slane %v3740_v30, 2 }
 0x384   : > { %v3479_v20 = vrot.slane %v3478_v0, 1  ;;  %v3742_v62 = vadd.f32 %v3741_v34, %v3740_v30 }
 0x386   : > { %v3480_v11 = vadd.f32 %v3479_v20, %v3478_v0  ;;  %v3743_v46 = vrot.slane %v3742_v62, 1 }
 0x388   : > { %v3481_v4 = vadd.f32 %v3480_v11, %v3347_v32  ;;  %v3744_v3 = vadd.f32 %v3743_v46, %v3742_v62 }
 0x38a   : > { %3482 = vst [vmem:[%s6912_s6] sm:$0x1] %v3481_v4  ;;  %v3745_v44 = vadd.f32 %v3744_v3, %v3483_v43 }
 0x38c   : > { %3746 = vst [vmem:[%s6913_s7] sm:$0x1] %v3745_v44 }
 0x38d PF: > { %s19_s26 = sadd.s32 1, %s5219_s26   ;;  %s6922_s24 = smov %s5215_s25 }
 0x38e   : > { %p16_p10 = scmp.ge.s32.totalorder %s19_s26, 4   ;;  %s6923_s25 = smov %s6925_s28 }
 0x390   :  { %18 = sbr.rel (!%p16_p10) target bundleno = 2 (0x2), region = 105 }
 0x397   :  { %3784 = vsyncpa [#allocation7], 1 }
 0x398   :  { %3786 = vsyncpa [#allocation7 + $0x1], 1 }

// kernel: bottleneck_forward.3
= control target key start
LH: loop header
LB: loop body
LE: loop exit
PB: predicated region body
PF: predicated region fallthrough
CT: control target
= control target key end

     0   :  { %11 = vsyncpa [#allocation3], 0  ;;  %s6890_s0 = inlined_call_operand.vmem [shape: f32[2,16,32,128], index: 0, kind: input, shape index: {}]   ;;  %s6891_s1 = inlined_call_operand.vmem [shape: bf16[2,16,32,128], index: 1, kind: input, shape index: {}]   ;;  %s6892_s2 = inlined_call_operand.vmem [shape: f32[1,128], index: 2, kind: input, shape index: {}]   ;;  %s6893_s3 = inlined_call_operand.vmem [shape: f32[1,128], index: 3, kind: input, shape index: {}]   ;;  %s6894_s4 = inlined_call_operand.vmem [shape: bf16[384,384], index: 4, kind: input, shape index: {}]   ;;  %s6895_s5 = inlined_call_operand.vmem [shape: f32[1,32], index: 5, kind: input, shape index: {}]   ;;  %s6896_s6 = inlined_call_operand.hbm [shape: f32[2,16,32,160], index: 6, kind: output, shape index: {}]  }
   0x1   :  { %13 = vsyncpa [#allocation3 + $0x1], 0  ;;  %s4666_s21 = smov 0   ;;  %s4668_s22 = smov 0  }
   0x2   :  { %s4670_s23 = smov 0   ;;  %s4672_s24 = smov 0  }
   0x3 LB: > { %s4687_s25 = sadd.s32 4294967295, %s4625_s24   ;;  %s3715_s26 = sadd.s32 4294967294, %s4625_s24   ;;  %s4625_s24 = sphi %s4672_s24, %s7047_s24   ;;  %s4621_s23 = sphi %s4670_s23, %s7046_s23   ;;  %s4617_s22 = sphi %s4668_s22, %s7045_s22   ;;  %s4613_s21 = sphi %s4666_s21, %s7044_s21  }
   0x4   : > { %s4691_s27 = sadd.s32 1, %s4625_s24   ;;  %s162_s28 = sadd.s32 1, %s4621_s23 }
   0x5   : > { %s159_s29 = ssub.s32 %s4625_s24, %s4691_s27  ;;  %p172_p0 = scmp.ne.s32.totalorder %s4621_s23, %s4617_s22 }
   0x6   : > { %p160_p1 = scmp.eq.s32.totalorder %s159_s29, 0  ;;  %p173_p2 = scmp.eq.s32.totalorder %s4687_s25, 1 }
   0x7   : > { %p178_p3 = scmp.ne.s32.totalorder %s4617_s22, %s4613_s21  ;;  %p179_p4 = scmp.eq.s32.totalorder %s3715_s26, 1 }
   0x8   : > { %s4702_s30 = scalar_select %p160_p1, %s4621_s23, %s162_s28  }
   0x9   : > { %p4704_p5 = por %p173_p2, %p172_p0  ;;  %p4708_p6 = por %p179_p4, %p178_p3 }
   0xa   : > { %p3718_p7 = scmp.ge.s32.totalorder %s4625_s24, 1  ;;  %p225_p8 = scmp.lt.s32.totalorder %s4625_s24, 3 }
   0xc   : > { %p226_p9 = pnand %p3718_p7, %p225_p8 }
   0xe   : > { %229 = sbr.rel (%p226_p9) target bundleno = 758 (0x2f6), region = 44 }
  0x15   : > { %v4336_v0 = vld [vmem:[%s6894_s4 + $0x4] ss:$12 sps:$4 sm:$0xff]   ;;  %v6897_v2 = vmov 0   ;;  %v4340_v3 = vld [vmem:[%s6894_s4] ss:$12 sps:$4 sm:$0xff]   ;;  %p260_p10 = scmp.lt.s32.totalorder %s4687_s25, 1 }
  0x16   : > { %v4720_v1 = vld [vmem:[%s6894_s4 + $0x184] ss:$12 sps:$4 sm:$0xff]   ;;  %2042 = vmatprep.mubr.bf16.mxu1 %v6897_v2  ;;  %1437 = vmatprep.subr.bf16.mxu0 %v4336_v0  ;;  %v4729_v4 = vld [vmem:[%s6894_s4 + $0x180] ss:$12 sps:$4 sm:$0xff]   ;;  %v4342_v5 = vld [vmem:[%s6894_s4 + $0x1c] ss:$12 sps:$4 sm:$0xff]  }
  0x17   : > { %4150 = vmatprep.subr.bf16.mxu1 %v4720_v1  ;;  %1438 = vmatpush1.bf16.msra.mxu0 %v4340_v3  ;;  %v4739_v6 = vld [vmem:[%s6894_s4 + $0x19c] ss:$12 sps:$4 sm:$0xff]   ;;  %v4346_v7 = vld [vmem:[%s6894_s4 + $0x18] ss:$12 sps:$4 sm:$0xff]   ;;  %v4348_v9 = vld [vmem:[%s6894_s4 + $0x34] ss:$12 sps:$4 sm:$0xff]  }
  0x18   : > { %4158 = vmatpush1.bf16.msra.mxu1 %v4729_v4  ;;  %1439 = vmatprep.subr.bf16.mxu0 %v4342_v5  ;;  %v4747_v8 = vld [vmem:[%s6894_s4 + $0x198] ss:$12 sps:$4 sm:$0xff]   ;;  %v4756_v10 = vld [vmem:[%s6894_s4 + $0x1b4] ss:$12 sps:$4 sm:$0xff]   ;;  %v4352_v11 = vld [vmem:[%s6894_s4 + $0x30] ss:$12 sps:$4 sm:$0xff]  }
  0x19   : > { %4151 = vmatprep.subr.bf16.mxu1 %v4739_v6  ;;  %v4764_v12 = vld [vmem:[%s6894_s4 + $0x1b0] ss:$12 sps:$4 sm:$0xff]   ;;  %v4354_v13 = vld [vmem:[%s6894_s4 + $0x4c] ss:$12 sps:$4 sm:$0xff]   ;;  %v4358_v15 = vld [vmem:[%s6894_s4 + $0x48] ss:$12 sps:$4 sm:$0xff]  }
  0x1a   : > { %v4774_v14 = vld [vmem:[%s6894_s4 + $0x1cc] ss:$12 sps:$4 sm:$0xff]   ;;  %v4784_v16 = vld [vmem:[%s6894_s4 + $0x1c8] ss:$12 sps:$4 sm:$0xff]   ;;  %v4360_v17 = vld [vmem:[%s6894_s4 + $0x64] ss:$12 sps:$4 sm:$0xff]  }
  0x1b   : > { %1440 = vmatpush1.bf16.msra.mxu0 %v4346_v7  ;;  %v4793_v18 = vld [vmem:[%s6894_s4 + $0x1e4] ss:$12 sps:$4 sm:$0xff]   ;;  %s4796_s15 = scalar_select %p260_p10, %s4687_s25, 1  ;;  %v4364_v19 = vld [vmem:[%s6894_s4 + $0x60] ss:$12 sps:$4 sm:$0xff]  }
  0x1c   : > { %4159 = vmatpush1.bf16.msra.mxu1 %v4747_v8  ;;  %1441 = vmatprep.subr.bf16.mxu0 %v4348_v9  ;;  %v4804_v20 = vld [vmem:[%s6894_s4 + $0x1e0] ss:$12 sps:$4 sm:$0xff]   ;;  %v4366_v21 = vld [vmem:[%s6894_s4 + $0x7c] ss:$12 sps:$4 sm:$0xff]   ;;  %v4370_v23 = vld [vmem:[%s6894_s4 + $0x78] ss:$12 sps:$4 sm:$0xff]  }
  0x1d   : > { %4152 = vmatprep.subr.bf16.mxu1 %v4756_v10  ;;  %v4814_v22 = vld [vmem:[%s6894_s4 + $0x1fc] ss:$12 sps:$4 sm:$0xff]   ;;  %s3869_s9 = sshll.u32 %s4796_s15, 8  ;;  %v4824_v24 = vld [vmem:[%s6894_s4 + $0x1f8] ss:$12 sps:$4 sm:$0xff]   ;;  %s257_s16 = sand.u32 1, %s4617_s22  }
  0x1e   : > { %v4372_v25 = vld [vmem:[%s6894_s4 + $0x94] ss:$12 sps:$4 sm:$0xff]   ;;  %s4832_s19 = scalar_lea.vmem %s6891_s1, %s3869_s9  ;;  %v4376_v27 = vld [vmem:[%s6894_s4 + $0x90] ss:$12 sps:$4 sm:$0xff]   ;;  %v4378_v31 = vld [vmem:[%s6894_s4 + $0xac] ss:$12 sps:$4 sm:$0xff]  }
  0x1f   : > { %1442 = vmatpush1.bf16.msra.mxu0 %v4352_v11  ;;  %v4838_v26 = vld [vmem:[%s6894_s4 + $0x214] ss:$12 sps:$4 sm:$0xff]   ;;  %v4846_v28 = vld [vmem:[%s6894_s4 + $0x210] ss:$12 sps:$4 sm:$0xff]   ;;  %v4862_v34 = vld [vmem:[%s6894_s4 + $0x22c] ss:$12 sps:$4 sm:$0xff]  }
  0x20   : > { %4160 = vmatpush1.bf16.msra.mxu1 %v4764_v12  ;;  %1443 = vmatprep.subr.bf16.mxu0 %v4354_v13  ;;  %v4851_v29 = vld [vmem:[%s6892_s2] ss:$0 sm:$0xff]  ;;  %v4382_v38 = vld [vmem:[%s6894_s4 + $0xa8] ss:$12 sps:$4 sm:$0xff]   ;;  %v4384_v43 = vld [vmem:[%s6894_s4 + $0xc4] ss:$12 sps:$4 sm:$0xff]  }
  0x21   : > { %4153 = vmatprep.subr.bf16.mxu1 %v4774_v14  ;;  %v4022_v30 = vld [vmem:[%s4832_s19 + $0xc0] sm:$0xff]   ;;  %v4878_v39 = vld [vmem:[%s6894_s4 + $0x228] ss:$12 sps:$4 sm:$0xff]   ;;  %v4025_v11 = vld [vmem:[%s4832_s19 + $0xd8] sm:$0xff]   ;;  %s3868_s17 = sshll.u32 %s4796_s15, 9  ;;  %s6214_s18 = sshll.u32 %s257_s16, 10 }
  0x22   : > { %v3969_v32 = vunpack.c.l.bf16 %v4022_v30  ;;  %v3970_v33 = vunpack.c.h.bf16 %v4022_v30  ;;  %v4867_v35 = vld [vmem:[%s6893_s3] ss:$0 sm:$0xff]  ;;  %v4023_v42 = vld [vmem:[%s4832_s19 + $0xc8] sm:$0xff]   ;;  %v4024_v56 = vld [vmem:[%s4832_s19 + $0xd0] sm:$0xff]   ;;  %v3981_v13 = vunpack.c.l.bf16 %v4025_v11  ;;  %s6222_s28 = scalar_lea.vmem %s6890_s0, %s3868_s17  ;;  %s6243_s10 = scalar_lea.vmem [#allocation2], %s6214_s18 }
  0x23   : > { %1444 = vmatpush1.bf16.msra.mxu0 %v4358_v15  ;;  %v3973_v44 = vunpack.c.l.bf16 %v4023_v42  ;;  %v3974_v45 = vunpack.c.h.bf16 %v4023_v42  ;;  %v4386_v48 = vld [vmem:[%s6894_s4 + $0xc0] ss:$12 sps:$4 sm:$0xff]   ;;  %v4388_v53 = vld [vmem:[%s6894_s4 + $0xdc] ss:$12 sps:$4 sm:$0xff]   ;;  %v3977_v57 = vunpack.c.l.bf16 %v4024_v56  ;;  %v3978_v58 = vunpack.c.h.bf16 %v4024_v56  ;;  %v4390_v60 = vld [vmem:[%s6894_s4 + $0xd8] ss:$12 sps:$4 sm:$0xff]  }
  0x24   : > { %4161 = vmatpush1.bf16.msra.mxu1 %v4784_v16  ;;  %1445 = vmatprep.subr.bf16.mxu0 %v4360_v17  ;;  %v455_v36 = vmul.f32 %v3969_v32, %v4851_v29  ;;  %v456_v37 = vmul.f32 %v3970_v33, %v4851_v29  ;;  %v4392_v0 = vld [vmem:[%s6894_s4 + $0xf4] ss:$12 sps:$4 sm:$0xff]   ;;  %v3982_v15 = vunpack.c.h.bf16 %v4025_v11  ;;  %v4394_v17 = vld [vmem:[%s6894_s4 + $0xf0] ss:$12 sps:$4 sm:$0xff]   ;;  %s3870_s12 = sshll.u32 %s4687_s25, 14  ;;  %s3641_s13 = sshll.u32 %s6243_s10, 4  ;;  %s6840_s13 = int_to_ptr.vmem [resolvable:$true] %s3641_s13 }
  0x25   : > { %4154 = vmatprep.subr.bf16.mxu1 %v4793_v18  ;;  %v457_v49 = vmul.f32 %v3973_v44, %v4851_v29  ;;  %v458_v50 = vmul.f32 %v3974_v45, %v4851_v29  ;;  %v459_v62 = vmul.f32 %v3977_v57, %v4851_v29  ;;  %v460_v63 = vmul.f32 %v3978_v58, %v4851_v29  ;;  %v4026_v32 = vld [vmem:[%s4832_s19 + $0xe0] sm:$0xff]   ;;  %v4387_v57 = vld [vmem:[%s6894_s4 + $0x8] ss:$12 sps:$4 sm:$0xff]   ;;  %s6838_s14 = scalar_lea.hbm %s6896_s6, %s3870_s12  ;;  %s6849_s17 = scalar_lea.sflag [#allocation3], %s257_s16 }
  0x26   : > { %v4881_v40 = vadd.f32 %v4867_v35, %v455_v36  ;;  %v4884_v41 = vadd.f32 %v4867_v35, %v456_v37  ;;  %v3985_v45 = vunpack.c.l.bf16 %v4026_v32  ;;  %s4563_s18 = scalar_lea.vmem %s6840_s13, 16384  ;;  %s4628_s20 = smov [#allocation2]  }
  0x27   : > { %1446 = vmatpush1.bf16.msra.mxu0 %v4364_v19  ;;  %v4904_v54 = vadd.f32 %v4867_v35, %v457_v49  ;;  %v4907_v55 = vadd.f32 %v4867_v35, %v458_v50  ;;  %v4921_v7 = vadd.f32 %v4867_v35, %v459_v62  ;;  %v4924_v9 = vadd.f32 %v4867_v35, %v460_v63  ;;  %v4399_v49 = vld [vmem:[%s6894_s4 + $0x124] ss:$12 sps:$4 sm:$0xff]   ;;  %p4564_p11 = scmp.ne.s32.totalorder %s6840_s13, %s4563_s18  ;;  %s4567_s26 = sshll.u32 %s4628_s20, 4  ;;  %s4568_s26 = int_to_ptr.vmem [resolvable:$false] %s4567_s26 }
  0x28   : > { %4162 = vmatpush1.bf16.msra.mxu1 %v4804_v20  ;;  %1447 = vmatprep.subr.bf16.mxu0 %v4366_v21  ;;  %v653_v46 = vmin.f32 %v4881_v40, 0.0  ;;  %v654_v47 = vmin.f32 %v4884_v41, 0.0  ;;  %vm589_vm0 = vcmp.gt.f32.partialorder %v4881_v40, 0.0  ;;  %v4396_v21 = vld [vmem:[%s6894_s4 + $0x10c] ss:$12 sps:$4 sm:$0xff]   ;;  %vm590_vm1 = vcmp.gt.f32.partialorder %v4884_v41, 0.0  ;;  %p4570_p0 = scmp.lt.s32.totalorder %s6840_s13, %s4568_s26 }
  0x29   : > { %4155 = vmatprep.subr.bf16.mxu1 %v4814_v22  ;;  %v655_v59 = vmin.f32 %v4904_v54, 0.0  ;;  %v656_v61 = vmin.f32 %v4907_v55, 0.0  ;;  %v657_v19 = vmin.f32 %v4921_v7, 0.0  ;;  %vm591_vm2 = vcmp.gt.f32.partialorder %v4904_v54, 0.0  ;;  %p4565_p12 = pnand %p4564_p11, %p4704_p5 }
  0x2a   : > { %v765_v51 = vmul.f32 1.442695, %v653_v46  ;;  %v767_v52 = vmul.f32 1.442695, %v654_v47  ;;  %v3986_v46 = vunpack.c.h.bf16 %v4026_v32  ;;  %vm592_vm3 = vcmp.gt.f32.partialorder %v4907_v55, 0.0 }
  0x2b   : > { %1448 = vmatpush1.bf16.msra.mxu0 %v4370_v23  ;;  %v769_v3 = vmul.f32 1.442695, %v655_v59  ;;  %v771_v5 = vmul.f32 1.442695, %v656_v61  ;;  %v658_v23 = vmin.f32 %v4924_v9, 0.0  ;;  %v463_v59 = vmul.f32 %v3985_v45, %v4851_v29  ;;  %v4027_v45 = vld [vmem:[%s4832_s19 + $0xe8] sm:$0xff]   ;;  %p4566_p13 = pneg %p4565_p12 }
  0x2c   : > { %4163 = vmatpush1.bf16.msra.mxu1 %v4824_v24  ;;  %1449 = vmatprep.subr.bf16.mxu0 %v4372_v25  ;;  %4432 = vpow2.f32 %v765_v51  ;;  %v461_v25 = vmul.f32 %v3981_v13, %v4851_v29  ;;  %v773_v30 = vmul.f32 1.442695, %v657_v19  ;;  %vm593_vm4 = vcmp.gt.f32.partialorder %v4921_v7, 0.0 }
  0x2d   : > { %4156 = vmatprep.subr.bf16.mxu1 %v4838_v26  ;;  %4434 = vpow2.f32 %v767_v52  ;;  %v775_v33 = vmul.f32 1.442695, %v658_v23  ;;  %vm594_vm5 = vcmp.gt.f32.partialorder %v4924_v9, 0.0 }
  0x2e   : > { %4436 = vpow2.f32 %v769_v3  ;;  %v4941_v36 = vadd.f32 %v4867_v35, %v461_v25 }
  0x2f   : > { %1450 = vmatpush1.bf16.msra.mxu0 %v4376_v27  ;;  %4438 = vpow2.f32 %v771_v5  ;;  %v462_v27 = vmul.f32 %v3982_v15, %v4851_v29  ;;  %v4402_v5 = vld [vmem:[%s6894_s4 + $0x120] ss:$12 sps:$4 sm:$0xff]  }
  0x30   : > { %4164 = vmatpush1.bf16.msra.mxu1 %v4846_v28  ;;  %1451 = vmatprep.subr.bf16.mxu0 %v4378_v31  ;;  %v3872_v31 = vld [vmem:[%s4832_s19] sm:$0xff]   ;;  %4440 = vpow2.f32 %v773_v30  ;;  %v659_v51 = vmin.f32 %v4941_v36, 0.0  ;;  %vm595_vm6 = vcmp.gt.f32.partialorder %v4941_v36, 0.0 }
  0x31   : > { %4157 = vmatprep.subr.bf16.mxu1 %v4862_v34  ;;  %v4944_v37 = vadd.f32 %v4867_v35, %v462_v27  ;;  %v3874_v44 = vunpack.c.h.bf16 %v3872_v31  ;;  %4442 = vpow2.f32 %v775_v33  ;;  %v4405_v27 = vld [vmem:[%s6894_s4 + $0x138] ss:$12 sps:$4 sm:$0xff]   ;;  %v4407_v33 = vld [vmem:[%s6894_s4 + $0x154] ss:$12 sps:$4 sm:$0xff]  }
  0x32   : > { %v777_v62 = vmul.f32 1.442695, %v659_v51  ;;  %v4000_v51 = vld [vmem:[%s4832_s19 + $0x10] sm:$0xff]  }
  0x33   : > { %1452 = vmatpush1.bf16.msra.mxu0 %v4382_v38  ;;  %v3873_v38 = vunpack.c.l.bf16 %v3872_v31  ;;  %v660_v52 = vmin.f32 %v4944_v37, 0.0  ;;  %v408_v58 = vmul.f32 %v3874_v44, %v4851_v29  ;;  %v3999_v31 = vld [vmem:[%s4832_s19 + $0x8] sm:$0xff]   ;;  %vm596_vm7 = vcmp.gt.f32.partialorder %v4944_v37, 0.0 }
  0x34   : > { %4165 = vmatpush1.bf16.msra.mxu1 %v4878_v39  ;;  %1453 = vmatprep.subr.bf16.mxu0 %v4384_v43  ;;  %v4398_v43 = vld [vmem:[%s6894_s4 + $0x108] ss:$12 sps:$4 sm:$0xff]   ;;  %4444 = vpow2.f32 %v777_v62  ;;  %v4411_v62 = vld [vmem:[%s6894_s4 + $0x16c] ss:$12 sps:$4 sm:$0xff]  }
  0x35   : > { %2143 = vmatprep.subr.bf16.mxu1 %v6897_v2  ;;  %v779_v63 = vmul.f32 1.442695, %v660_v52  ;;  %v4976_v11 = vadd.f32 %v4867_v35, %v408_v58 }
  0x36   : > { %v4433_v42 = vpop.eup %4432 }
  0x37   : > { %1454 = vmatpush1.bf16.msra.mxu0 %v4386_v48  ;;  %v4435_v47 = vpop.eup %4434  ;;  %v3774_v48 = vadd.f32 -1.0, %v4433_v42  ;;  %4446 = vpow2.f32 %v779_v63  ;;  %v606_v30 = vmin.f32 %v4976_v11, 0.0  ;;  %v3990_v63 = vunpack.c.h.bf16 %v4027_v45 }
  0x38   : > { %1455 = vmatprep.subr.bf16.mxu0 %v4388_v53  ;;  %v3775_v50 = vadd.f32 -1.0, %v4435_v47  ;;  %v407_v53 = vmul.f32 %v3873_v38, %v4851_v29  ;;  %v4437_v3 = vpop.eup %4436  ;;  %vm542_vm9 = vcmp.gt.f32.partialorder %v4976_v11, 0.0 }
  0x39   : > { %v909_v56 = vsel %vm589_vm0, %v4881_v40, %v3774_v48  ;;  %v4439_v15 = vpop.eup %4438  ;;  %v3776_v19 = vadd.f32 -1.0, %v4437_v3  ;;  %v4395_v48 = vld [vmem:[%s6894_s4 + $0x38] ss:$12 sps:$4 sm:$0xff]   ;;  %v3881_v3 = vunpack.c.l.bf16 %v4000_v51 }
  0x3a   : > { %v910_v61 = vsel %vm590_vm1, %v4884_v41, %v3775_v50  ;;  %v4979_v41 = vadd.f32 %v4867_v35, %v463_v59  ;;  %v3777_v25 = vadd.f32 -1.0, %v4439_v15  ;;  %v3878_v50 = vunpack.c.h.bf16 %v3999_v31 }
  0x3b   : > { %1456 = vmatpush1.bf16.msra.mxu0 %v4390_v60  ;;  %v464_v60 = vmul.f32 %v3986_v46, %v4851_v29  ;;  %v4970_v40 = vpack.c.bf16 %v910_v61, %v909_v56  ;;  %v911_v32 = vsel %vm591_vm2, %v4904_v54, %v3776_v19  ;;  %v4441_v46 = vpop.eup %4440  ;;  %v3989_v61 = vunpack.c.l.bf16 %v4027_v45 }
  0x3c   : > { %1457 = vmatprep.subr.bf16.mxu0 %v4392_v0  ;;  %v4968_v0 = vadd.f32 %v4867_v35, %v407_v53  ;;  %v912_v42 = vsel %vm592_vm3, %v4907_v55, %v3777_v25  ;;  %v661_v54 = vmin.f32 %v4979_v41, 0.0  ;;  %v4443_v55 = vpop.eup %4442  ;;  %v3778_v52 = vadd.f32 -1.0, %v4441_v46  ;;  %v4409_v53 = vld [vmem:[%s6894_s4 + $0x150] ss:$12 sps:$4 sm:$0xff]  }
  0x3d   : > { %v4982_v13 = vadd.f32 %v4867_v35, %v464_v60  ;;  %2043 = vmatmul.mubr.bf16.vlgmr.msra.gmra.mrb[0].mxu1 %v4970_v40  ;;  %v5014_v47 = vpack.c.bf16 %v912_v42, %v911_v32  ;;  %v3779_v58 = vadd.f32 -1.0, %v4443_v55  ;;  %v410_v60 = vmul.f32 %v3878_v50, %v4851_v29 }
  0x3e   : > { %v605_v23 = vmin.f32 %v4968_v0, 0.0  ;;  %2144 = vmatpush1.bf16.msra.mxu1 %v4387_v57  ;;  %2052 = vmatprep.mubr.bf16.mxu1 %v6897_v2  ;;  %v781_v56 = vmul.f32 1.442695, %v661_v54  ;;  %v466_v19 = vmul.f32 %v3990_v63, %v4851_v29  ;;  %v913_v25 = vsel %vm593_vm4, %v4921_v7, %v3778_v52  ;;  %v4413_v7 = vld [vmem:[%s6894_s4 + $0x168] ss:$12 sps:$4 sm:$0xff]  }
  0x3f   : > { %1458 = vmatpush1.bf16.msra.mxu0 %v4394_v17  ;;  %v4391_v17 = vld [vmem:[%s6894_s4 + $0x20] ss:$12 sps:$4 sm:$0xff]   ;;  %2145 = vmatprep.subr.bf16.mxu1 %v6897_v2  ;;  %v662_v44 = vmin.f32 %v4982_v13, 0.0  ;;  %v5034_v15 = vadd.f32 %v4867_v35, %v410_v60  ;;  %vm541_vm8 = vcmp.gt.f32.partialorder %v4968_v0, 0.0  ;;  %v411_v42 = vmul.f32 %v3881_v3, %v4851_v29 }
  0x40   : > { %1459 = vmatprep.subr.bf16.mxu0 %v4396_v21  ;;  %v4403_v21 = vld [vmem:[%s6894_s4 + $0x13c] ss:$12 sps:$4 sm:$0xff]   ;;  %v669_v38 = vmul.f32 1.442695, %v605_v23  ;;  %v4445_v23 = vpop.eup %4444  ;;  %vm597_vm10 = vcmp.gt.f32.partialorder %v4979_v41, 0.0  ;;  %vm598_vm11 = vcmp.gt.f32.partialorder %v4982_v13, 0.0 }
  0x41   : > { %v783_v57 = vmul.f32 1.442695, %v662_v44  ;;  %v608_v32 = vmin.f32 %v5034_v15, 0.0  ;;  %v3780_v54 = vadd.f32 -1.0, %v4445_v23  ;;  %v5075_v52 = vadd.f32 %v4867_v35, %v411_v42  ;;  %v4410_v23 = vld [vmem:[%s6894_s4 + $0x80] ss:$12 sps:$4 sm:$0xff]  }
  0x42   : > { %4448 = vpow2.f32 %v669_v38  ;;  %2146 = vmatpush1.bf16.msra.mxu1 %v4391_v17  ;;  %v465_v17 = vmul.f32 %v3989_v61, %v4851_v29  ;;  %v5061_v38 = vadd.f32 %v4867_v35, %v466_v19  ;;  %vm544_vm13 = vcmp.gt.f32.partialorder %v5034_v15, 0.0 }
  0x43   : > { %1460 = vmatpush1.bf16.msra.mxu0 %v4398_v43  ;;  %v671_v43 = vmul.f32 1.442695, %v606_v30  ;;  %2147 = vmatprep.subr.bf16.mxu1 %v6897_v2  ;;  %v4401_v30 = vld [vmem:[%s6894_s4 + $0x50] ss:$12 sps:$4 sm:$0xff]   ;;  %v675_v45 = vmul.f32 1.442695, %v608_v32 }
  0x44   : > { %1461 = vmatprep.subr.bf16.mxu0 %v4399_v49  ;;  %v3877_v49 = vunpack.c.l.bf16 %v3999_v31  ;;  %v664_v55 = vmin.f32 %v5061_v38, 0.0  ;;  %vm600_vm15 = vcmp.gt.f32.partialorder %v5061_v38, 0.0  ;;  %vm545_vm0 = vcmp.gt.f32.partialorder %v5075_v52, 0.0 }
  0x45   : > { %4450 = vpow2.f32 %v671_v43  ;;  %2053 = vmatmul.mubr.bf16.gmra.mrb[4].mxu1 %v5014_v47  ;;  %v4406_v43 = vld [vmem:[%s6894_s4 + $0x68] ss:$12 sps:$4 sm:$0xff]  }
  0x46   : > { %v409_v59 = vmul.f32 %v3877_v49, %v4851_v29  ;;  %4452 = vpow2.f32 %v781_v56  ;;  %2148 = vmatpush1.bf16.msra.mxu1 %v4395_v48  ;;  %2062 = vmatprep.mubr.bf16.mxu1 %v6897_v2  ;;  %v787_v61 = vmul.f32 1.442695, %v664_v55 }
  0x47   : > { %1462 = vmatpush1.bf16.msra.mxu0 %v4402_v5  ;;  %4454 = vpow2.f32 %v783_v57  ;;  %2149 = vmatprep.subr.bf16.mxu1 %v6897_v2 }
  0x48   : > { %1463 = vmatprep.subr.bf16.mxu0 %v4403_v21  ;;  %v5031_v5 = vadd.f32 %v4867_v35, %v409_v59  ;;  %v3882_v21 = vunpack.c.h.bf16 %v4000_v51  ;;  %v915_v59 = vsel %vm595_vm6, %v4941_v36, %v3780_v54  ;;  %v609_v36 = vmin.f32 %v5075_v52, 0.0 }
  0x4a   : > { %v607_v31 = vmin.f32 %v5031_v5, 0.0  ;;  %v412_v46 = vmul.f32 %v3882_v21, %v4851_v29  ;;  %2150 = vmatpush1.bf16.msra.mxu1 %v4401_v30  ;;  %vm543_vm12 = vcmp.gt.f32.partialorder %v5031_v5, 0.0 }
  0x4b   : > { %1464 = vmatpush1.bf16.msra.mxu0 %v4405_v27  ;;  %v914_v27 = vsel %vm594_vm5, %v4924_v9, %v3779_v58  ;;  %v5058_v9 = vadd.f32 %v4867_v35, %v465_v17  ;;  %2151 = vmatprep.subr.bf16.mxu1 %v6897_v2  ;;  %v4001_v17 = vld [vmem:[%s4832_s19 + $0x18] sm:$0xff]  }
  0x4c   : > { %1465 = vmatprep.subr.bf16.mxu0 %v4407_v33  ;;  %v4447_v33 = vpop.eup %4446  ;;  %v673_v44 = vmul.f32 1.442695, %v607_v31  ;;  %v5068_v48 = vpack.c.bf16 %v914_v27, %v913_v25  ;;  %v4029_v27 = vld [vmem:[%s4832_s19 + $0xf8] sm:$0xff]   ;;  %v3885_v42 = vunpack.c.l.bf16 %v4001_v17 }
  0x4d   : > { %v663_v49 = vmin.f32 %v5058_v9, 0.0  ;;  %v4449_v50 = vpop.eup %4448  ;;  %v3781_v51 = vadd.f32 -1.0, %v4447_v33  ;;  %v677_v33 = vmul.f32 1.442695, %v609_v36  ;;  %vm599_vm14 = vcmp.gt.f32.partialorder %v5058_v9, 0.0 }
  0x4e   : > { %4456 = vpow2.f32 %v673_v44  ;;  %v3726_v57 = vadd.f32 -1.0, %v4449_v50  ;;  %2063 = vmatmul.mubr.bf16.gmra.mrb[8].mxu1 %v5068_v48  ;;  %v3886_v44 = vunpack.c.h.bf16 %v4001_v17  ;;  %v413_v50 = vmul.f32 %v3885_v42, %v4851_v29 }
  0x4f   : > { %1466 = vmatpush1.bf16.msra.mxu0 %v4409_v53  ;;  %v4028_v53 = vld [vmem:[%s4832_s19 + $0xf0] sm:$0xff]   ;;  %v4451_v56 = vpop.eup %4450  ;;  %4458 = vpow2.f32 %v675_v45  ;;  %v785_v58 = vmul.f32 1.442695, %v663_v49  ;;  %2152 = vmatpush1.bf16.msra.mxu1 %v4406_v43  ;;  %v916_v21 = vsel %vm596_vm7, %v4944_v37, %v3781_v51  ;;  %v3997_v49 = vunpack.c.l.bf16 %v4029_v27 }
  0x50   : > { %1467 = vmatprep.subr.bf16.mxu0 %v4411_v62  ;;  %v3727_v60 = vadd.f32 -1.0, %v4451_v56  ;;  %v5086_v62 = vadd.f32 %v4867_v35, %v412_v46  ;;  %v4453_v63 = vpop.eup %4452  ;;  %v861_v3 = vsel %vm541_vm8, %v4968_v0, %v3726_v57  ;;  %2072 = vmatprep.mubr.bf16.mxu1 %v6897_v2  ;;  %v3994_v37 = vunpack.c.h.bf16 %v4028_v53 }
  0x51   : > { %4460 = vpow2.f32 %v785_v58  ;;  %v4455_v19 = vpop.eup %4454  ;;  %v3782_v25 = vadd.f32 -1.0, %v4453_v63  ;;  %2153 = vmatprep.subr.bf16.mxu1 %v6897_v2  ;;  %v5111_v43 = vpack.c.bf16 %v916_v21, %v915_v59  ;;  %v414_v51 = vmul.f32 %v3886_v44, %v4851_v29  ;;  %v4003_v44 = vld [vmem:[%s4832_s19 + $0x28] sm:$0xff]  }
  0x52   : > { %v862_v0 = vsel %vm542_vm9, %v4976_v11, %v3727_v60  ;;  %4462 = vpow2.f32 %v787_v61  ;;  %v3783_v31 = vadd.f32 -1.0, %v4455_v19  ;;  %v610_v32 = vmin.f32 %v5086_v62, 0.0  ;;  %v4414_v11 = vld [vmem:[%s6894_s4 + $0x98] ss:$12 sps:$4 sm:$0xff]  }
  0x53   : > { %1468 = vmatpush1.bf16.msra.mxu0 %v4413_v7  ;;  %v5107_v30 = vpack.c.bf16 %v862_v0, %v861_v3  ;;  %4464 = vpow2.f32 %v677_v33  ;;  %2154 = vmatpush1.bf16.msra.mxu1 %v4410_v23  ;;  %v468_v45 = vmul.f32 %v3994_v37, %v4851_v29  ;;  %v3998_v55 = vunpack.c.h.bf16 %v4029_v27 }
  0x54   : > { %1790 = vmatprep.subr.bf16.mxu0 %v4720_v1  ;;  %v3993_v1 = vunpack.c.l.bf16 %v4028_v53  ;;  %v679_v54 = vmul.f32 1.442695, %v610_v32  ;;  %2155 = vmatprep.subr.bf16.mxu1 %v6897_v2  ;;  %v917_v56 = vsel %vm597_vm10, %v4979_v41, %v3782_v25  ;;  %v918_v57 = vsel %vm598_vm11, %v4982_v13, %v3783_v31  ;;  %v4415_v13 = vld [vmem:[%s6894_s4 + $0xb0] ss:$12 sps:$4 sm:$0xff]   ;;  %v4002_v32 = vld [vmem:[%s4832_s19 + $0x20] sm:$0xff]  }
  0x55   : > { %1469 = vmatprep.mubr.bf16.mxu0 %v5107_v30  ;;  %v5134_v58 = vadd.f32 %v4867_v35, %v468_v45  ;;  %v5140_v61 = vadd.f32 %v4867_v35, %v413_v50  ;;  %v5143_v41 = vadd.f32 %v4867_v35, %v414_v51  ;;  %v469_v63 = vmul.f32 %v3997_v49, %v4851_v29 }
  0x56   : > { %v467_v7 = vmul.f32 %v3993_v1, %v4851_v29  ;;  %1470 = vmatmul.mubr.bf16.vlgmr.msra.gmra.mrb[0].mxu0 %v6897_v2  ;;  %4466 = vpow2.f32 %v679_v54  ;;  %2073 = vmatmul.mubr.bf16.gmra.mrb[12].mxu1 %v5111_v43  ;;  %v470_v1 = vmul.f32 %v3998_v55, %v4851_v29  ;;  %v5152_v19 = vpack.c.bf16 %v918_v57, %v917_v56 }
  0x57   : > { %1791 = vmatpush1.bf16.msra.mxu0 %v4729_v4  ;;  %2082 = vmatprep.mubr.bf16.mxu1 %v6897_v2  ;;  %v666_v3 = vmin.f32 %v5134_v58, 0.0  ;;  %v611_v23 = vmin.f32 %v5140_v61, 0.0  ;;  %v612_v37 = vmin.f32 %v5143_v41, 0.0  ;;  %vm546_vm1 = vcmp.gt.f32.partialorder %v5086_v62, 0.0 }
  0x58   : > { %v5121_v46 = vadd.f32 %v4867_v35, %v467_v7  ;;  %v4457_v53 = vpop.eup %4456  ;;  %1792 = vmatprep.subr.bf16.mxu0 %v4739_v6  ;;  %2156 = vmatpush1.bf16.msra.mxu1 %v4414_v11  ;;  %v3889_v54 = vunpack.c.l.bf16 %v4002_v32  ;;  %v3890_v56 = vunpack.c.h.bf16 %v4002_v32  ;;  %vm602_vm3 = vcmp.gt.f32.partialorder %v5134_v58, 0.0 }
  0x59   : > { %v4459_v59 = vpop.eup %4458  ;;  %v3728_v60 = vadd.f32 -1.0, %v4457_v53  ;;  %2157 = vmatprep.subr.bf16.mxu1 %v6897_v2  ;;  %v791_v31 = vmul.f32 1.442695, %v666_v3  ;;  %v681_v7 = vmul.f32 1.442695, %v611_v23  ;;  %vm547_vm4 = vcmp.gt.f32.partialorder %v5140_v61, 0.0 }
  0x5a   : > { %v665_v4 = vmin.f32 %v5121_v46, 0.0  ;;  %v3729_v6 = vadd.f32 -1.0, %v4459_v59  ;;  %v683_v11 = vmul.f32 1.442695, %v612_v37  ;;  %vm601_vm2 = vcmp.gt.f32.partialorder %v5121_v46, 0.0 }
  0x5b   : > { %v4461_v17 = vpop.eup %4460  ;;  %v863_v21 = vsel %vm543_vm12, %v5031_v5, %v3728_v60  ;;  %1793 = vmatpush1.bf16.msra.mxu0 %v4747_v8  ;;  %v4416_v8 = vld [vmem:[%s6894_s4 + $0xc8] ss:$12 sps:$4 sm:$0xff]   ;;  %v3893_v59 = vunpack.c.l.bf16 %v4003_v44  ;;  %vm548_vm5 = vcmp.gt.f32.partialorder %v5143_v41, 0.0 }
  0x5c   : > { %v789_v36 = vmul.f32 1.442695, %v665_v4  ;;  %v4463_v0 = vpop.eup %4462  ;;  %v864_v25 = vsel %vm544_vm13, %v5034_v15, %v3729_v6  ;;  %v3784_v27 = vadd.f32 -1.0, %v4461_v17  ;;  %1794 = vmatprep.subr.bf16.mxu0 %v4756_v10  ;;  %2158 = vmatpush1.bf16.msra.mxu1 %v4415_v13  ;;  %v5174_v15 = vadd.f32 %v4867_v35, %v469_v63 }
  0x5d   : > { %v5166_v33 = vpack.c.bf16 %v864_v25, %v863_v21  ;;  %v3785_v5 = vadd.f32 -1.0, %v4463_v0  ;;  %v5177_v10 = vadd.f32 %v4867_v35, %v470_v1  ;;  %v4465_v42 = vpop.eup %4464  ;;  %2159 = vmatprep.subr.bf16.mxu1 %v6897_v2  ;;  %v415_v4 = vmul.f32 %v3889_v54, %v4851_v29  ;;  %v4004_v1 = vld [vmem:[%s4832_s19 + $0x30] sm:$0xff]  }
  0x5e   : > { %4468 = vpow2.f32 %v789_v36  ;;  %v919_v45 = vsel %vm599_vm14, %v5058_v9, %v3784_v27  ;;  %v3730_v50 = vadd.f32 -1.0, %v4465_v42  ;;  %2083 = vmatmul.mubr.bf16.gmra.mrb[16].mxu1 %v5152_v19  ;;  %v667_v55 = vmin.f32 %v5174_v15, 0.0  ;;  %v4417_v9 = vld [vmem:[%s6894_s4 + $0xe0] ss:$12 sps:$4 sm:$0xff]   ;;  %v4419_v54 = vld [vmem:[%s6894_s4 + $0x110] ss:$12 sps:$4 sm:$0xff]  }
  0x5f   : > { %4470 = vpow2.f32 %v791_v31  ;;  %1479 = vmatprep.mubr.bf16.mxu0 %v5166_v33  ;;  %v920_v49 = vsel %vm600_vm15, %v5061_v38, %v3785_v5  ;;  %v668_v53 = vmin.f32 %v5177_v10, 0.0  ;;  %1795 = vmatpush1.bf16.msra.mxu0 %v4764_v12  ;;  %v416_v63 = vmul.f32 %v3890_v56, %v4851_v29  ;;  %v4006_v56 = vld [vmem:[%s4832_s19 + $0x40] sm:$0xff]  }
  0x60   : > { %4472 = vpow2.f32 %v681_v7  ;;  %1480 = vmatmul.mubr.bf16.gmra.mrb[4].mxu0 %v6897_v2  ;;  %v4467_v51 = vpop.eup %4466  ;;  %2092 = vmatprep.mubr.bf16.mxu1 %v6897_v2  ;;  %v865_v57 = vsel %vm545_vm0, %v5075_v52, %v3730_v50  ;;  %v793_v60 = vmul.f32 1.442695, %v667_v55  ;;  %v3894_v13 = vunpack.c.h.bf16 %v4003_v44 }
  0x61   : > { %4474 = vpow2.f32 %v683_v11  ;;  %2160 = vmatpush1.bf16.msra.mxu1 %v4416_v8  ;;  %v3731_v38 = vadd.f32 -1.0, %v4467_v51  ;;  %v795_v12 = vmul.f32 1.442695, %v668_v53  ;;  %1796 = vmatprep.subr.bf16.mxu0 %v4774_v14  ;;  %v5206_v6 = vpack.c.bf16 %v920_v49, %v919_v45  ;;  %v4005_v51 = vld [vmem:[%s4832_s19 + $0x38] sm:$0xff]  }
  0x62   : > { %2161 = vmatprep.subr.bf16.mxu1 %v6897_v2  ;;  %v5212_v52 = vadd.f32 %v4867_v35, %v415_v4  ;;  %v417_v36 = vmul.f32 %v3893_v59, %v4851_v29  ;;  %4476 = vpow2.f32 %v793_v60  ;;  %v5219_v21 = vadd.f32 %v4867_v35, %v416_v63 }
  0x63   : > { %v866_v3 = vsel %vm546_vm1, %v5086_v62, %v3731_v38  ;;  %v418_v14 = vmul.f32 %v3894_v13, %v4851_v29  ;;  %1797 = vmatpush1.bf16.msra.mxu0 %v4784_v16  ;;  %v4418_v62 = vld [vmem:[%s6894_s4 + $0xf8] ss:$12 sps:$4 sm:$0xff]   ;;  %4478 = vpow2.f32 %v795_v12  ;;  %v3897_v32 = vunpack.c.l.bf16 %v4004_v1 }
  0x64   : > { %v5216_v17 = vpack.c.bf16 %v866_v3, %v865_v57  ;;  %v613_v0 = vmin.f32 %v5212_v52, 0.0  ;;  %v5229_v25 = vadd.f32 %v4867_v35, %v417_v36  ;;  %1798 = vmatprep.subr.bf16.mxu0 %v4793_v18  ;;  %v614_v16 = vmin.f32 %v5219_v21, 0.0 }
  0x65   : > { %2162 = vmatpush1.bf16.msra.mxu1 %v4417_v9  ;;  %v5236_v31 = vadd.f32 %v4867_v35, %v418_v14  ;;  %v3898_v18 = vunpack.c.h.bf16 %v4004_v1  ;;  %v419_v53 = vmul.f32 %v3897_v32, %v4851_v29  ;;  %v3901_v60 = vunpack.c.l.bf16 %v4005_v51 }
  0x66   : > { %1489 = vmatprep.mubr.bf16.mxu0 %v5216_v17  ;;  %2163 = vmatprep.subr.bf16.mxu1 %v6897_v2  ;;  %v685_v37 = vmul.f32 1.442695, %v613_v0  ;;  %v615_v7 = vmin.f32 %v5229_v25, 0.0  ;;  %v687_v44 = vmul.f32 1.442695, %v614_v16  ;;  %v3902_v12 = vunpack.c.h.bf16 %v4005_v51 }
  0x67   : > { %2093 = vmatmul.mubr.bf16.gmra.mrb[20].mxu1 %v5206_v6  ;;  %1799 = vmatpush1.bf16.msra.mxu0 %v4804_v20  ;;  %v616_v49 = vmin.f32 %v5236_v31, 0.0  ;;  %v420_v20 = vmul.f32 %v3898_v18, %v4851_v29  ;;  %v3905_v63 = vunpack.c.l.bf16 %v4006_v56  ;;  %v3906_v13 = vunpack.c.h.bf16 %v4006_v56 }
  0x68   : > { %v4469_v23 = vpop.eup %4468  ;;  %1490 = vmatmul.mubr.bf16.gmra.mrb[8].mxu0 %v5107_v30  ;;  %2102 = vmatprep.mubr.bf16.mxu1 %v6897_v2  ;;  %4480 = vpow2.f32 %v685_v37  ;;  %v689_v50 = vmul.f32 1.442695, %v615_v7  ;;  %vm603_vm6 = vcmp.gt.f32.partialorder %v5174_v15, 0.0  ;;  %vm604_vm7 = vcmp.gt.f32.partialorder %v5177_v10, 0.0 }
  0x69   : > { %v3786_v27 = vadd.f32 -1.0, %v4469_v23  ;;  %v4471_v5 = vpop.eup %4470  ;;  %2164 = vmatpush1.bf16.msra.mxu1 %v4418_v62  ;;  %4482 = vpow2.f32 %v687_v44  ;;  %1800 = vmatprep.subr.bf16.mxu0 %v4814_v22  ;;  %v691_v4 = vmul.f32 1.442695, %v616_v49  ;;  %v5270_v59 = vadd.f32 %v4867_v35, %v420_v20  ;;  %v4007_v49 = vld [vmem:[%s4832_s19 + $0x48] sm:$0xff]  }
  0x6a   : > { %v4473_v8 = vpop.eup %4472  ;;  %v3787_v42 = vadd.f32 -1.0, %v4471_v5  ;;  %2165 = vmatprep.subr.bf16.mxu1 %v6897_v2  ;;  %4484 = vpow2.f32 %v689_v50  ;;  %v421_v14 = vmul.f32 %v3901_v60, %v4851_v29  ;;  %v422_v62 = vmul.f32 %v3902_v12, %v4851_v29 }
  0x6b   : > { %v921_v11 = vsel %vm601_vm2, %v5121_v46, %v3786_v27  ;;  %v3732_v45 = vadd.f32 -1.0, %v4473_v8  ;;  %v4475_v46 = vpop.eup %4474  ;;  %1801 = vmatpush1.bf16.msra.mxu0 %v4824_v24  ;;  %v4420_v24 = vld [vmem:[%s6894_s4 + $0x128] ss:$12 sps:$4 sm:$0xff]   ;;  %4486 = vpow2.f32 %v691_v4  ;;  %v423_v0 = vmul.f32 %v3905_v63, %v4851_v29 }
  0x6c   : > { %v922_v55 = vsel %vm602_vm3, %v5134_v58, %v3787_v42  ;;  %v3733_v38 = vadd.f32 -1.0, %v4475_v46  ;;  %v5267_v58 = vadd.f32 %v4867_v35, %v419_v53  ;;  %1802 = vmatprep.subr.bf16.mxu0 %v4838_v26  ;;  %v618_v26 = vmin.f32 %v5270_v59, 0.0 }
  0x6d   : > { %v5261_v9 = vpack.c.bf16 %v922_v55, %v921_v11  ;;  %v867_v57 = vsel %vm547_vm4, %v5140_v61, %v3732_v45  ;;  %2166 = vmatpush1.bf16.msra.mxu1 %v4419_v54  ;;  %v4477_v61 = vpop.eup %4476  ;;  %v424_v27 = vmul.f32 %v3906_v13, %v4851_v29  ;;  %v5299_v37 = vadd.f32 %v4867_v35, %v421_v14  ;;  %v4421_v29 = vld [vmem:[%s6894_s4 + $0x140] ss:$12 sps:$4 sm:$0xff]   ;;  %v4422_v55 = vld [vmem:[%s6894_s4 + $0x158] ss:$12 sps:$4 sm:$0xff]  }
  0x6e   : > { %v868_v22 = vsel %vm548_vm5, %v5143_v41, %v3733_v38  ;;  %2167 = vmatprep.subr.bf16.mxu1 %v6897_v2  ;;  %v4479_v41 = vpop.eup %4478  ;;  %v3788_v36 = vadd.f32 -1.0, %v4477_v61  ;;  %v617_v1 = vmin.f32 %v5267_v58, 0.0  ;;  %v695_v5 = vmul.f32 1.442695, %v618_v26  ;;  %v5373_v26 = vld [vmem:[%s6893_s3] ss:$0 sm:$0xff] }
  0x6f   : > { %v5277_v3 = vpack.c.bf16 %v868_v22, %v867_v57  ;;  %2103 = vmatmul.mubr.bf16.gmra.mrb[24].mxu1 %v5261_v9  ;;  %v3789_v23 = vadd.f32 -1.0, %v4479_v41  ;;  %vm549_vm8 = vcmp.gt.f32.partialorder %v5212_v52, 0.0  ;;  %v5309_v18 = vadd.f32 %v4867_v35, %v422_v62  ;;  %1803 = vmatpush1.bf16.msra.mxu0 %v4846_v28 }
  0x70   : > { %2112 = vmatprep.mubr.bf16.mxu1 %v6897_v2  ;;  %v923_v16 = vsel %vm603_vm6, %v5174_v15, %v3788_v36  ;;  %v693_v32 = vmul.f32 1.442695, %v617_v1  ;;  %v5312_v15 = vadd.f32 %v4867_v35, %v423_v0  ;;  %vm550_vm9 = vcmp.gt.f32.partialorder %v5219_v21, 0.0  ;;  %1804 = vmatprep.subr.bf16.mxu0 %v4862_v34  ;;  %v5367_v36 = vld [vmem:[%s6894_s4 + $0x188] ss:$12 sps:$4 sm:$0xff]  }
  0x71   : > { %1499 = vmatprep.mubr.bf16.mxu0 %v5277_v3  ;;  %v924_v7 = vsel %vm604_vm7, %v5177_v10, %v3789_v23  ;;  %2168 = vmatpush1.bf16.msra.mxu1 %v4420_v24  ;;  %v619_v10 = vmin.f32 %v5299_v37, 0.0  ;;  %v5318_v42 = vadd.f32 %v4867_v35, %v424_v27  ;;  %v620_v45 = vmin.f32 %v5309_v18, 0.0  ;;  %v4009_v23 = vld [vmem:[%s4832_s19 + $0x58] sm:$0xff]  }
  0x72   : > { %1500 = vmatmul.mubr.bf16.gmra.mrb[12].mxu0 %v5166_v33  ;;  %v4481_v8 = vpop.eup %4480  ;;  %2169 = vmatprep.subr.bf16.mxu1 %v6897_v2  ;;  %4488 = vpow2.f32 %v693_v32  ;;  %v5321_v54 = vpack.c.bf16 %v924_v7, %v923_v16  ;;  %vm551_vm10 = vcmp.gt.f32.partialorder %v5229_v25, 0.0  ;;  %vm552_vm11 = vcmp.gt.f32.partialorder %v5236_v31, 0.0 }
  0x73   : > { %v4483_v11 = vpop.eup %4482  ;;  %v3734_v44 = vadd.f32 -1.0, %v4481_v8  ;;  %4490 = vpow2.f32 %v695_v5  ;;  %v697_v35 = vmul.f32 1.442695, %v619_v10  ;;  %v699_v53 = vmul.f32 1.442695, %v620_v45  ;;  %1805 = vmatpush1.bf16.msra.mxu0 %v4878_v39 }
  0x74   : > { %v4485_v50 = vpop.eup %4484  ;;  %v3735_v51 = vadd.f32 -1.0, %v4483_v11  ;;  %v621_v34 = vmin.f32 %v5312_v15, 0.0  ;;  %v622_v56 = vmin.f32 %v5318_v42, 0.0  ;;  %v3909_v38 = vunpack.c.l.bf16 %v4007_v49  ;;  %v5352_v39 = vld [vmem:[%s6892_s2] ss:$0 sm:$0xff] }
  0x75   : > { %v869_v28 = vsel %vm549_vm8, %v5212_v52, %v3734_v44  ;;  %2170 = vmatpush1.bf16.msra.mxu1 %v4421_v29  ;;  %v3736_v46 = vadd.f32 -1.0, %v4485_v50  ;;  %4492 = vpow2.f32 %v697_v35  ;;  %v4008_v52 = vld [vmem:[%s4832_s19 + $0x50] sm:$0xff]   ;;  %v4487_v57 = vpop.eup %4486  ;;  %v3910_v63 = vunpack.c.h.bf16 %v4007_v49 }
  0x76   : > { %v870_v20 = vsel %vm550_vm9, %v5219_v21, %v3735_v51  ;;  %2171 = vmatprep.subr.bf16.mxu1 %v6897_v2  ;;  %4494 = vpow2.f32 %v699_v53  ;;  %v701_v21 = vmul.f32 1.442695, %v621_v34  ;;  %v3737_v22 = vadd.f32 -1.0, %v4487_v57 }
  0x77   : > { %2113 = vmatmul.mubr.bf16.gmra.mrb[28].mxu1 %v5321_v54  ;;  %v5343_v4 = vpack.c.bf16 %v870_v20, %v869_v28  ;;  %v871_v60 = vsel %vm551_vm10, %v5229_v25, %v3736_v46  ;;  %v703_v12 = vmul.f32 1.442695, %v622_v56  ;;  %v425_v13 = vmul.f32 %v5352_v39, %v3909_v38  ;;  %v4423_v25 = vld [vmem:[%s6894_s4 + $0x170] ss:$12 sps:$4 sm:$0xff]   ;;  %v4010_v38 = vld [vmem:[%s4832_s19 + $0x60] sm:$0xff]  }
  0x78   : > { %2122 = vmatprep.mubr.bf16.mxu1 %v6897_v2  ;;  %v3913_v61 = vunpack.c.l.bf16 %v4008_v52  ;;  %v3914_v24 = vunpack.c.h.bf16 %v4008_v52  ;;  %v872_v41 = vsel %vm552_vm11, %v5236_v31, %v3737_v22  ;;  %4496 = vpow2.f32 %v701_v21 }
  0x79   : > { %1509 = vmatprep.mubr.bf16.mxu0 %v5343_v4  ;;  %2172 = vmatpush1.bf16.msra.mxu1 %v4422_v55  ;;  %v426_v1 = vmul.f32 %v5352_v39, %v3910_v63  ;;  %v5376_v14 = vadd.f32 %v5373_v26, %v425_v13  ;;  %v5379_v31 = vpack.c.bf16 %v872_v41, %v871_v60  ;;  %4498 = vpow2.f32 %v703_v12 }
  0x7a   : > { %1510 = vmatmul.mubr.bf16.gmra.mrb[16].mxu0 %v5216_v17  ;;  %2173 = vmatprep.subr.bf16.mxu1 %v6897_v2  ;;  %v427_v62 = vmul.f32 %v5352_v39, %v3913_v61  ;;  %v428_v0 = vmul.f32 %v5352_v39, %v3914_v24  ;;  %vm553_vm12 = vcmp.gt.f32.partialorder %v5267_v58, 0.0  ;;  %vm554_vm13 = vcmp.gt.f32.partialorder %v5270_v59, 0.0 }
  0x7b   : > { %v5385_v16 = vadd.f32 %v5373_v26, %v426_v1  ;;  %v623_v32 = vmin.f32 %v5376_v14, 0.0  ;;  %1519 = vmatprep.mubr.bf16.mxu0 %v5379_v31  ;;  %v3917_v29 = vunpack.c.l.bf16 %v4009_v23  ;;  %v3918_v50 = vunpack.c.h.bf16 %v4009_v23 }
  0x7c   : > { %v4489_v27 = vpop.eup %4488  ;;  %v5393_v44 = vadd.f32 %v5373_v26, %v427_v62  ;;  %v5398_v49 = vadd.f32 %v5373_v26, %v428_v0  ;;  %vm555_vm14 = vcmp.gt.f32.partialorder %v5299_v37, 0.0  ;;  %vm556_vm15 = vcmp.gt.f32.partialorder %v5309_v18, 0.0  ;;  %v4011_v0 = vld [vmem:[%s4832_s19 + $0x68] sm:$0xff]  }
  0x7d   : > { %v4491_v5 = vpop.eup %4490  ;;  %2174 = vmatpush1.bf16.msra.mxu1 %v4423_v25  ;;  %v3738_v7 = vadd.f32 -1.0, %v4489_v27  ;;  %v624_v10 = vmin.f32 %v5385_v16, 0.0  ;;  %v705_v11 = vmul.f32 1.442695, %v623_v32  ;;  %v429_v20 = vmul.f32 %v5352_v39, %v3917_v29  ;;  %v4425_v29 = vld [vmem:[%s6894_s4 + $0x1a0] ss:$12 sps:$4 sm:$0xff]  }
  0x7e   : > { %v3739_v8 = vadd.f32 -1.0, %v4491_v5  ;;  %4070 = vmatprep.subr.bf16.mxu1 %v5367_v36  ;;  %v625_v34 = vmin.f32 %v5393_v44, 0.0  ;;  %v430_v56 = vmul.f32 %v5352_v39, %v3918_v50  ;;  %v3921_v63 = vunpack.c.l.bf16 %v4010_v38 }
  0x7f   : > { %2123 = vmatmul.mubr.bf16.gmra.mrb[32].mxu1 %v6897_v2  ;;  %v873_v45 = vsel %vm553_vm12, %v5267_v58, %v3738_v7  ;;  %v4493_v51 = vpop.eup %4492  ;;  %v707_v28 = vmul.f32 1.442695, %v624_v10  ;;  %4500 = vpow2.f32 %v705_v11  ;;  %v5416_v12 = vadd.f32 %v5373_v26, %v429_v20 }
  0x80   : > { %2132 = vmatprep.mubr.bf16.mxu1 %v6897_v2  ;;  %v874_v35 = vsel %vm554_vm13, %v5270_v59, %v3739_v8  ;;  %v4495_v46 = vpop.eup %4494  ;;  %v3740_v53 = vadd.f32 -1.0, %v4493_v51  ;;  %v626_v59 = vmin.f32 %v5398_v49, 0.0  ;;  %v709_v22 = vmul.f32 1.442695, %v625_v34  ;;  %v4012_v34 = vld [vmem:[%s4832_s19 + $0x70] sm:$0xff]  }
  0x81   : > { %v5402_v55 = vpack.c.bf16 %v874_v35, %v873_v45  ;;  %v3741_v58 = vadd.f32 -1.0, %v4495_v46  ;;  %4502 = vpow2.f32 %v707_v28  ;;  %v5422_v61 = vadd.f32 %v5373_v26, %v430_v56  ;;  %v4426_v28 = vld [vmem:[%s6894_s4 + $0x1b8] ss:$12 sps:$4 sm:$0xff]  }
  0x82   : > { %1520 = vmatmul.mubr.bf16.gmra.mrb[20].mxu0 %v5277_v3  ;;  %v4497_v52 = vpop.eup %4496  ;;  %v875_v57 = vsel %vm555_vm14, %v5299_v37, %v3740_v53  ;;  %v711_v25 = vmul.f32 1.442695, %v626_v59  ;;  %v3922_v24 = vunpack.c.h.bf16 %v4010_v38  ;;  %vm557_vm0 = vcmp.gt.f32.partialorder %v5312_v15, 0.0 }
  0x83   : > { %1529 = vmatprep.mubr.bf16.mxu0 %v5402_v55  ;;  %v876_v60 = vsel %vm556_vm15, %v5309_v18, %v3741_v58  ;;  %v4499_v21 = vpop.eup %4498  ;;  %v3742_v37 = vadd.f32 -1.0, %v4497_v52  ;;  %vm558_vm1 = vcmp.gt.f32.partialorder %v5318_v42, 0.0  ;;  %4504 = vpow2.f32 %v709_v22  ;;  %v4427_v52 = vld [vmem:[%s6894_s4 + $0x1d0] ss:$12 sps:$4 sm:$0xff]  }
  0x84   : > { %v5419_v13 = vpack.c.bf16 %v876_v60, %v875_v57  ;;  %v3743_v18 = vadd.f32 -1.0, %v4499_v21  ;;  %v627_v41 = vmin.f32 %v5416_v12, 0.0  ;;  %v431_v1 = vmul.f32 %v5352_v39, %v3921_v63 }
  0x85   : > { %4506 = vpow2.f32 %v711_v25  ;;  %v628_v23 = vmin.f32 %v5422_v61, 0.0  ;;  %v432_v62 = vmul.f32 %v5352_v39, %v3922_v24  ;;  %v877_v32 = vsel %vm557_vm0, %v5312_v15, %v3742_v37  ;;  %v4428_v37 = vld [vmem:[%s6894_s4 + $0x1e8] ss:$12 sps:$4 sm:$0xff]  }
  0x86   : > { %v878_v5 = vsel %vm558_vm1, %v5318_v42, %v3743_v18  ;;  %v713_v8 = vmul.f32 1.442695, %v627_v41  ;;  %v5440_v10 = vadd.f32 %v5373_v26, %v431_v1  ;;  %v3925_v11 = vunpack.c.l.bf16 %v4011_v0 }
  0x87   : > { %2133 = vmatmul.mubr.bf16.gmra.mrb[36].mxu1 %v6897_v2  ;;  %v5443_v45 = vpack.c.bf16 %v878_v5, %v877_v32  ;;  %v715_v50 = vmul.f32 1.442695, %v628_v23  ;;  %v5446_v51 = vadd.f32 %v5373_v26, %v432_v62  ;;  %v3926_v15 = vunpack.c.h.bf16 %v4011_v0  ;;  %v4013_v62 = vld [vmem:[%s4832_s19 + $0x78] sm:$0xff]  }
  0x88   : > { %2175 = vmatprep.mubr.bf16.mxu1 %v5107_v30  ;;  %vm559_vm2 = vcmp.gt.f32.partialorder %v5376_v14, 0.0  ;;  %vm560_vm3 = vcmp.gt.f32.partialorder %v5385_v16, 0.0  ;;  %4508 = vpow2.f32 %v713_v8  ;;  %v629_v46 = vmin.f32 %v5440_v10, 0.0 }
  0x89   : > { %v4501_v27 = vpop.eup %4500  ;;  %4510 = vpow2.f32 %v715_v50  ;;  %v630_v53 = vmin.f32 %v5446_v51, 0.0  ;;  %v434_v58 = vmul.f32 %v5352_v39, %v3926_v15  ;;  %v3929_v21 = vunpack.c.l.bf16 %v4012_v34 }
  0x8a   : > { %1530 = vmatmul.mubr.bf16.gmra.mrb[24].mxu0 %v5343_v4  ;;  %v3744_v42 = vadd.f32 -1.0, %v4501_v27  ;;  %v717_v57 = vmul.f32 1.442695, %v629_v46  ;;  %vm561_vm4 = vcmp.gt.f32.partialorder %v5393_v44, 0.0  ;;  %vm562_vm5 = vcmp.gt.f32.partialorder %v5398_v49, 0.0 }
  0x8b   : > { %1539 = vmatprep.mubr.bf16.mxu0 %v5419_v13  ;;  %v4503_v7 = vpop.eup %4502  ;;  %v719_v63 = vmul.f32 1.442695, %v630_v53  ;;  %v435_v41 = vmul.f32 %v5352_v39, %v3929_v21  ;;  %v3933_v8 = vunpack.c.l.bf16 %v4013_v62  ;;  %vm563_vm6 = vcmp.gt.f32.partialorder %v5416_v12, 0.0 }
  0x8c   : > { %v3745_v35 = vadd.f32 -1.0, %v4503_v7  ;;  %v879_v59 = vsel %vm559_vm2, %v5376_v14, %v3744_v42  ;;  %v5474_v14 = vadd.f32 %v5373_v26, %v434_v58  ;;  %4512 = vpow2.f32 %v717_v57 }
  0x8d   : > { %v4505_v20 = vpop.eup %4504  ;;  %4514 = vpow2.f32 %v719_v63  ;;  %vm564_vm7 = vcmp.gt.f32.partialorder %v5422_v61, 0.0  ;;  %vm565_vm8 = vcmp.gt.f32.partialorder %v5440_v10, 0.0  ;;  %vm566_vm9 = vcmp.gt.f32.partialorder %v5446_v51, 0.0 }
  0x8e   : > { %v880_v56 = vsel %vm560_vm3, %v5385_v16, %v3745_v35  ;;  %v3930_v16 = vunpack.c.h.bf16 %v4012_v34  ;;  %v3746_v25 = vadd.f32 -1.0, %v4505_v20  ;;  %v632_v1 = vmin.f32 %v5474_v14, 0.0 }
  0x8f   : > { %2176 = vmatmul.mubr.bf16.vlgmr.msra.gmra.mrb[40].mxu1 %v6897_v2  ;;  %v4507_v38 = vpop.eup %4506  ;;  %v5471_v22 = vpack.c.bf16 %v880_v56, %v879_v59  ;;  %v437_v35 = vmul.f32 %v5352_v39, %v3933_v8  ;;  %vm568_vm11 = vcmp.gt.f32.partialorder %v5474_v14, 0.0 }
  0x90   : > { %4071 = vmatpush3.bf16.msra.mxu1 %v5367_v36  ;;  %2183 = vmatprep.mubr.bf16.mxu1 %v5166_v33  ;;  %v433_v36 = vmul.f32 %v5352_v39, %v3925_v11  ;;  %v3747_v24 = vadd.f32 -1.0, %v4507_v38  ;;  %v436_v23 = vmul.f32 %v5352_v39, %v3930_v16  ;;  %v881_v27 = vsel %vm561_vm4, %v5393_v44, %v3746_v25 }
  0x91   : > { %4072 = vmatprep.subr.bf16.mxu1 %v4425_v29  ;;  %v723_v50 = vmul.f32 1.442695, %v632_v1  ;;  %v3934_v44 = vunpack.c.h.bf16 %v4013_v62  ;;  %v5513_v56 = vadd.f32 %v5373_v26, %v437_v35  ;;  %v4016_v35 = vld [vmem:[%s4832_s19 + $0x90] sm:$0xff]  }
  0x92   : > { %1540 = vmatmul.mubr.bf16.gmra.mrb[28].mxu0 %v5379_v31  ;;  %v5468_v60 = vadd.f32 %v5373_v26, %v433_v36  ;;  %v4509_v0 = vpop.eup %4508  ;;  %v882_v32 = vsel %vm562_vm5, %v5398_v49, %v3747_v24  ;;  %v5498_v15 = vadd.f32 %v5373_v26, %v436_v23  ;;  %v4014_v36 = vld [vmem:[%s4832_s19 + $0x80] sm:$0xff]  }
  0x93   : > { %1549 = vmatprep.mubr.bf16.mxu0 %v5443_v45  ;;  %v4511_v5 = vpop.eup %4510  ;;  %v5495_v11 = vpack.c.bf16 %v882_v32, %v881_v27  ;;  %v3748_v49 = vadd.f32 -1.0, %v4509_v0  ;;  %v438_v46 = vmul.f32 %v5352_v39, %v3934_v44  ;;  %v3937_v38 = vunpack.c.l.bf16 %v4014_v36 }
  0x94   : > { %4073 = vmatpush3.bf16.msra.mxu1 %v4425_v29  ;;  %v631_v18 = vmin.f32 %v5468_v60, 0.0  ;;  %v5492_v29 = vadd.f32 %v5373_v26, %v435_v41  ;;  %v3749_v42 = vadd.f32 -1.0, %v4511_v5  ;;  %v3938_v63 = vunpack.c.h.bf16 %v4014_v36 }
  0x95   : > { %4074 = vmatprep.subr.bf16.mxu1 %v4426_v28  ;;  %v883_v58 = vsel %vm563_vm6, %v5416_v12, %v3748_v49  ;;  %v5519_v21 = vadd.f32 %v5373_v26, %v438_v46  ;;  %v439_v16 = vmul.f32 %v5352_v39, %v3937_v38  ;;  %vm567_vm10 = vcmp.gt.f32.partialorder %v5468_v60, 0.0 }
  0x96   : > { %v721_v7 = vmul.f32 1.442695, %v631_v18  ;;  %v4513_v53 = vpop.eup %4512  ;;  %v884_v34 = vsel %vm564_vm7, %v5422_v61, %v3749_v42  ;;  %v440_v24 = vmul.f32 %v5352_v39, %v3938_v63  ;;  %v3946_v63 = vunpack.c.h.bf16 %v4016_v35 }
  0x97   : > { %2184 = vmatmul.mubr.bf16.gmra.mrb[44].mxu1 %v6897_v2  ;;  %v4515_v20 = vpop.eup %4514  ;;  %v3750_v12 = vadd.f32 -1.0, %v4513_v53  ;;  %v636_v25 = vmin.f32 %v5519_v21, 0.0  ;;  %v5534_v0 = vadd.f32 %v5373_v26, %v439_v16  ;;  %vm569_vm12 = vcmp.gt.f32.partialorder %v5492_v29, 0.0 }
  0x98   : > { %2191 = vmatprep.mubr.bf16.mxu1 %v5216_v17  ;;  %4075 = vmatpush3.bf16.msra.mxu1 %v4426_v28  ;;  %4516 = vpow2.f32 %v721_v7  ;;  %v634_v28 = vmin.f32 %v5498_v15, 0.0  ;;  %v3751_v61 = vadd.f32 -1.0, %v4515_v20  ;;  %v5540_v7 = vadd.f32 %v5373_v26, %v440_v24 }
  0x99   : > { %4076 = vmatprep.subr.bf16.mxu1 %v4427_v52  ;;  %4518 = vpow2.f32 %v723_v50  ;;  %v885_v41 = vsel %vm565_vm8, %v5440_v10, %v3750_v12  ;;  %v731_v5 = vmul.f32 1.442695, %v636_v25  ;;  %v4429_v10 = vld [vmem:[%s6894_s4 + $0x200] ss:$12 sps:$4 sm:$0xff]   ;;  %v637_v44 = vmin.f32 %v5534_v0, 0.0  ;;  %v4017_v25 = vld [vmem:[%s4832_s19 + $0x98] sm:$0xff]  }
  0x9a   : > { %1550 = vmatmul.mubr.bf16.gmra.mrb[32].mxu0 %v5402_v55  ;;  %v727_v57 = vmul.f32 1.442695, %v634_v28  ;;  %v886_v1 = vsel %vm566_vm9, %v5446_v51, %v3751_v61  ;;  %v638_v42 = vmin.f32 %v5540_v7, 0.0  ;;  %v3945_v20 = vunpack.c.l.bf16 %v4016_v35 }
  0x9b   : > { %1559 = vmatprep.mubr.bf16.mxu0 %v5471_v22  ;;  %v5537_v32 = vpack.c.bf16 %v886_v1, %v885_v41  ;;  %vm570_vm13 = vcmp.gt.f32.partialorder %v5498_v15, 0.0  ;;  %v444_v16 = vmul.f32 %v5352_v39, %v3946_v63  ;;  %vm571_vm14 = vcmp.gt.f32.partialorder %v5513_v56, 0.0 }
  0x9c   : > { %4077 = vmatpush3.bf16.msra.mxu1 %v4427_v52  ;;  %v5516_v52 = vpack.c.bf16 %v884_v34, %v883_v58  ;;  %v733_v58 = vmul.f32 1.442695, %v637_v44  ;;  %v735_v38 = vmul.f32 1.442695, %v638_v42  ;;  %v443_v61 = vmul.f32 %v5352_v39, %v3945_v20  ;;  %v4018_v42 = vld [vmem:[%s4832_s19 + $0xa0] sm:$0xff]  }
  0x9d   : > { %4078 = vmatprep.subr.bf16.mxu1 %v4428_v37  ;;  %vm572_vm15 = vcmp.gt.f32.partialorder %v5519_v21, 0.0  ;;  %vm573_vm0 = vcmp.gt.f32.partialorder %v5534_v0, 0.0  ;;  %vm574_vm1 = vcmp.gt.f32.partialorder %v5540_v7, 0.0 }
  0x9f   : > { %2192 = vmatmul.mubr.bf16.gmra.mrb[48].mxu1 %v5107_v30  ;;  %v633_v30 = vmin.f32 %v5492_v29, 0.0 }
  0xa0   : > { %2199 = vmatprep.mubr.bf16.mxu1 %v5277_v3  ;;  %4079 = vmatpush3.bf16.msra.mxu1 %v4428_v37  ;;  %v4015_v37 = vld [vmem:[%s4832_s19 + $0x88] sm:$0xff]  }
  0xa1   : > { %v725_v59 = vmul.f32 1.442695, %v633_v30  ;;  %v3941_v27 = vunpack.c.l.bf16 %v4015_v37  ;;  %v3942_v8 = vunpack.c.h.bf16 %v4015_v37  ;;  %4080 = vmatprep.subr.bf16.mxu1 %v4429_v10 }
  0xa2   : > { %1560 = vmatmul.mubr.bf16.gmra.mrb[36].mxu0 %v5419_v13  ;;  %v4517_v18 = vpop.eup %4516 }
  0xa3   : > { %1569 = vmatprep.mubr.bf16.mxu0 %v5495_v11  ;;  %4520 = vpow2.f32 %v725_v59  ;;  %v4519_v23 = vpop.eup %4518  ;;  %v3752_v51 = vadd.f32 -1.0, %v4517_v18  ;;  %v441_v49 = vmul.f32 %v5352_v39, %v3941_v27  ;;  %v442_v30 = vmul.f32 %v5352_v39, %v3942_v8 }
  0xa4   : > { %4522 = vpow2.f32 %v727_v57  ;;  %v3753_v50 = vadd.f32 -1.0, %v4519_v23  ;;  %4081 = vmatpush3.bf16.msra.mxu1 %v4429_v10  ;;  %v5579_v23 = vadd.f32 %v5373_v26, %v443_v61  ;;  %v5585_v8 = vadd.f32 %v5373_v26, %v444_v16  ;;  %v4019_v16 = vld [vmem:[%s4832_s19 + $0xa8] sm:$0xff]  }
  0xa5   : > { %v887_v46 = vsel %vm567_vm10, %v5468_v60, %v3752_v51  ;;  %v5558_v34 = vadd.f32 %v5373_v26, %v441_v49  ;;  %v5564_v57 = vadd.f32 %v5373_v26, %v442_v30  ;;  %v3950_v10 = vunpack.c.h.bf16 %v4017_v25 }
  0xa6   : > { %v888_v36 = vsel %vm568_vm11, %v5474_v14, %v3753_v50  ;;  %v641_v51 = vmin.f32 %v5579_v23, 0.0  ;;  %v642_v44 = vmin.f32 %v5585_v8, 0.0  ;;  %vm577_vm4 = vcmp.gt.f32.partialorder %v5579_v23, 0.0 }
  0xa7   : > { %2200 = vmatmul.mubr.bf16.gmra.mrb[52].mxu1 %v5166_v33  ;;  %v635_v33 = vmin.f32 %v5513_v56, 0.0  ;;  %v5561_v59 = vpack.c.bf16 %v888_v36, %v887_v46  ;;  %v639_v12 = vmin.f32 %v5558_v34, 0.0  ;;  %v446_v49 = vmul.f32 %v5352_v39, %v3950_v10 }
  0xa8   : > { %2207 = vmatprep.mubr.bf16.mxu1 %v5343_v4  ;;  %v741_v36 = vmul.f32 1.442695, %v641_v51  ;;  %vm575_vm2 = vcmp.gt.f32.partialorder %v5558_v34, 0.0  ;;  %vm576_vm3 = vcmp.gt.f32.partialorder %v5564_v57, 0.0  ;;  %vm578_vm5 = vcmp.gt.f32.partialorder %v5585_v8, 0.0 }
  0xa9   : > { %v729_v62 = vmul.f32 1.442695, %v635_v33  ;;  %v640_v33 = vmin.f32 %v5564_v57, 0.0  ;;  %v737_v1 = vmul.f32 1.442695, %v639_v12  ;;  %v5606_v63 = vadd.f32 %v5373_v26, %v446_v49 }
  0xaa   : > { %1570 = vmatmul.mubr.bf16.gmra.mrb[40].mxu0 %v5443_v45 }
  0xab   : > { %1579 = vmatprep.mubr.bf16.mxu0 %v5516_v52  ;;  %4524 = vpow2.f32 %v729_v62  ;;  %v3949_v62 = vunpack.c.l.bf16 %v4017_v25  ;;  %v644_v61 = vmin.f32 %v5606_v63, 0.0  ;;  %vm580_vm7 = vcmp.gt.f32.partialorder %v5606_v63, 0.0 }
  0xac   : > { %4526 = vpow2.f32 %v731_v5  ;;  %v739_v5 = vmul.f32 1.442695, %v640_v33 }
  0xad   : > { %v4521_v28 = vpop.eup %4520  ;;  %4528 = vpow2.f32 %v733_v58  ;;  %v445_v50 = vmul.f32 %v5352_v39, %v3949_v62  ;;  %v3953_v58 = vunpack.c.l.bf16 %v4018_v42  ;;  %v3957_v62 = vunpack.c.l.bf16 %v4019_v16 }
  0xae   : > { %v4523_v53 = vpop.eup %4522  ;;  %v3754_v60 = vadd.f32 -1.0, %v4521_v28  ;;  %4530 = vpow2.f32 %v735_v38  ;;  %v743_v38 = vmul.f32 1.442695, %v642_v44  ;;  %v747_v10 = vmul.f32 1.442695, %v644_v61 }
  0xaf   : > { %2208 = vmatmul.mubr.bf16.gmra.mrb[56].mxu1 %v5216_v17  ;;  %v3755_v14 = vadd.f32 -1.0, %v4523_v53  ;;  %4532 = vpow2.f32 %v737_v1  ;;  %v5600_v53 = vadd.f32 %v5373_v26, %v445_v50  ;;  %v447_v12 = vmul.f32 %v5352_v39, %v3953_v58 }
  0xb0   : > { %2215 = vmatprep.mubr.bf16.mxu1 %v5379_v31  ;;  %v889_v37 = vsel %vm569_vm12, %v5492_v29, %v3754_v60  ;;  %4534 = vpow2.f32 %v739_v5  ;;  %v3954_v60 = vunpack.c.h.bf16 %v4018_v42  ;;  %v449_v44 = vmul.f32 %v5352_v39, %v3957_v62 }
  0xb1   : > { %v890_v18 = vsel %vm570_vm13, %v5498_v15, %v3755_v14  ;;  %4536 = vpow2.f32 %v741_v36  ;;  %v643_v14 = vmin.f32 %v5600_v53, 0.0  ;;  %v5621_v1 = vadd.f32 %v5373_v26, %v447_v12 }
  0xb2   : > { %1580 = vmatmul.mubr.bf16.gmra.mrb[44].mxu0 %v5471_v22  ;;  %v5582_v27 = vpack.c.bf16 %v890_v18, %v889_v37  ;;  %4538 = vpow2.f32 %v743_v38  ;;  %v448_v33 = vmul.f32 %v5352_v39, %v3954_v60  ;;  %v5645_v38 = vadd.f32 %v5373_v26, %v449_v44 }
  0xb3   : > { %1589 = vmatprep.mubr.bf16.mxu0 %v5537_v32  ;;  %v645_v50 = vmin.f32 %v5621_v1, 0.0  ;;  %vm579_vm6 = vcmp.gt.f32.partialorder %v5600_v53, 0.0  ;;  %vm581_vm8 = vcmp.gt.f32.partialorder %v5621_v1, 0.0 }
  0xb4   : > { %v647_v61 = vmin.f32 %v5645_v38, 0.0  ;;  %vm583_vm10 = vcmp.gt.f32.partialorder %v5645_v38, 0.0 }
  0xb5   : > { %v4525_v24 = vpop.eup %4524  ;;  %v749_v58 = vmul.f32 1.442695, %v645_v50 }
  0xb6   : > { %v4527_v41 = vpop.eup %4526  ;;  %v3756_v29 = vadd.f32 -1.0, %v4525_v24 }
  0xb7   : > { %2216 = vmatmul.mubr.bf16.gmra.mrb[60].mxu1 %v5277_v3  ;;  %v3757_v15 = vadd.f32 -1.0, %v4527_v41  ;;  %v4529_v30 = vpop.eup %4528  ;;  %v745_v41 = vmul.f32 1.442695, %v643_v14 }
  0xb8   : > { %2223 = vmatprep.mubr.bf16.mxu1 %v5402_v55  ;;  %v891_v35 = vsel %vm571_vm14, %v5513_v56, %v3756_v29  ;;  %v4531_v46 = vpop.eup %4530  ;;  %v3758_v56 = vadd.f32 -1.0, %v4529_v30  ;;  %v5627_v29 = vadd.f32 %v5373_v26, %v448_v33  ;;  %v4020_v30 = vld [vmem:[%s4832_s19 + $0xb0] sm:$0xff]  }
  0xb9   : > { %v892_v28 = vsel %vm572_vm15, %v5519_v21, %v3757_v15  ;;  %v3759_v21 = vadd.f32 -1.0, %v4531_v46  ;;  %v4533_v25 = vpop.eup %4532  ;;  %v3958_v15 = vunpack.c.h.bf16 %v4019_v16  ;;  %4540 = vpow2.f32 %v745_v41 }
  0xba   : > { %1590 = vmatmul.mubr.bf16.gmra.mrb[48].mxu0 %v5495_v11  ;;  %v5603_v20 = vpack.c.bf16 %v892_v28, %v891_v35  ;;  %v893_v24 = vsel %vm573_vm0, %v5534_v0, %v3758_v56  ;;  %v4535_v18 = vpop.eup %4534  ;;  %v4430_v0 = vld [vmem:[%s6894_s4 + $0x218] ss:$12 sps:$4 sm:$0xff]   ;;  %4542 = vpow2.f32 %v747_v10  ;;  %v646_v49 = vmin.f32 %v5627_v29, 0.0 }
  0xbb   : > { %1599 = vmatprep.mubr.bf16.mxu0 %v5561_v59  ;;  %v894_v37 = vsel %vm574_vm1, %v5540_v7, %v3759_v21  ;;  %v3760_v7 = vadd.f32 -1.0, %v4533_v25  ;;  %v3761_v51 = vadd.f32 -1.0, %v4535_v18  ;;  %4082 = vmatprep.subr.bf16.mxu1 %v4430_v0  ;;  %v450_v42 = vmul.f32 %v5352_v39, %v3958_v15  ;;  %v4537_v35 = vpop.eup %4536 }
  0xbc   : > { %v5624_v5 = vpack.c.bf16 %v894_v37, %v893_v24  ;;  %4083 = vmatpush3.bf16.msra.mxu1 %v4430_v0  ;;  %v4539_v36 = vpop.eup %4538  ;;  %v3961_v60 = vunpack.c.l.bf16 %v4020_v30  ;;  %v751_v21 = vmul.f32 1.442695, %v646_v49  ;;  %v3962_v12 = vunpack.c.h.bf16 %v4020_v30  ;;  %v4021_v24 = vld [vmem:[%s4832_s19 + $0xb8] sm:$0xff]  }
  0xbd   : > { %v895_v28 = vsel %vm575_vm2, %v5558_v34, %v3760_v7  ;;  %v896_v46 = vsel %vm576_vm3, %v5564_v57, %v3761_v51  ;;  %v5651_v14 = vadd.f32 %v5373_v26, %v450_v42  ;;  %v3762_v34 = vadd.f32 -1.0, %v4537_v35 }
  0xbe   : > { %v5648_v56 = vpack.c.bf16 %v896_v46, %v895_v28  ;;  %v3763_v57 = vadd.f32 -1.0, %v4539_v36  ;;  %4544 = vpow2.f32 %v749_v58  ;;  %v451_v33 = vmul.f32 %v5352_v39, %v3961_v60 }
  0xbf   : > { %2224 = vmatmul.mubr.bf16.gmra.mrb[64].mxu1 %v5343_v4  ;;  %4546 = vpow2.f32 %v751_v21  ;;  %v648_v16 = vmin.f32 %v5651_v14, 0.0  ;;  %v452_v25 = vmul.f32 %v5352_v39, %v3962_v12  ;;  %v897_v18 = vsel %vm577_vm4, %v5579_v23, %v3762_v34 }
  0xc0   : > { %2231 = vmatprep.mubr.bf16.mxu1 %v5419_v13  ;;  %v898_v41 = vsel %vm578_vm5, %v5585_v8, %v3763_v57  ;;  %v753_v10 = vmul.f32 1.442695, %v647_v61  ;;  %v5666_v15 = vadd.f32 %v5373_v26, %v451_v33  ;;  %v3965_v0 = vunpack.c.l.bf16 %v4021_v24 }
  0xc1   : > { %v5669_v7 = vpack.c.bf16 %v898_v41, %v897_v18  ;;  %v755_v51 = vmul.f32 1.442695, %v648_v16  ;;  %v5672_v50 = vadd.f32 %v5373_v26, %v452_v25  ;;  %v3966_v44 = vunpack.c.h.bf16 %v4021_v24  ;;  %v4431_v41 = vld [vmem:[%s6894_s4 + $0x230] ss:$12 sps:$4 sm:$0xff]  }
  0xc2   : > { %1600 = vmatmul.mubr.bf16.gmra.mrb[52].mxu0 %v5516_v52  ;;  %4548 = vpow2.f32 %v753_v10  ;;  %v649_v8 = vmin.f32 %v5666_v15, 0.0  ;;  %v453_v42 = vmul.f32 %v5352_v39, %v3965_v0  ;;  %vm582_vm9 = vcmp.gt.f32.partialorder %v5627_v29, 0.0  ;;  %4084 = vmatprep.subr.bf16.mxu1 %v4431_v41 }
  0xc3   : > { %1609 = vmatprep.mubr.bf16.mxu0 %v5582_v27  ;;  %v4541_v37 = vpop.eup %4540  ;;  %4550 = vpow2.f32 %v755_v51  ;;  %v650_v30 = vmin.f32 %v5672_v50, 0.0  ;;  %v454_v35 = vmul.f32 %v5352_v39, %v3966_v44  ;;  %vm584_vm11 = vcmp.gt.f32.partialorder %v5651_v14, 0.0  ;;  %4085 = vmatpush3.bf16.msra.mxu1 %v4431_v41 }
  0xc4   : > { %v4543_v62 = vpop.eup %4542  ;;  %v3764_v23 = vadd.f32 -1.0, %v4541_v37  ;;  %v757_v60 = vmul.f32 1.442695, %v649_v8  ;;  %v5686_v21 = vadd.f32 %v5373_v26, %v453_v42  ;;  %vm585_vm12 = vcmp.gt.f32.partialorder %v5666_v15, 0.0 }
  0xc5   : > { %v3765_v49 = vadd.f32 -1.0, %v4543_v62  ;;  %v759_v34 = vmul.f32 1.442695, %v650_v30  ;;  %v524_v57 = vadd.f32 %v5373_v26, %v454_v35  ;;  %vm586_vm13 = vcmp.gt.f32.partialorder %v5672_v50, 0.0 }
  0xc6   : > { %v899_v46 = vsel %vm579_vm6, %v5600_v53, %v3764_v23  ;;  %4552 = vpow2.f32 %v757_v60  ;;  %v651_v53 = vmin.f32 %v5686_v21, 0.0  ;;  %vm587_vm14 = vcmp.gt.f32.partialorder %v5686_v21, 0.0 }
  0xc7   : > { %2232 = vmatmul.mubr.bf16.gmra.mrb[68].mxu1 %v5379_v31  ;;  %v900_v36 = vsel %vm580_vm7, %v5606_v63, %v3765_v49  ;;  %4554 = vpow2.f32 %v759_v34  ;;  %v652_v63 = vmin.f32 %v524_v57, 0.0  ;;  %vm588_vm15 = vcmp.gt.f32.partialorder %v524_v57, 0.0 }
  0xc8   : > { %2239 = vmatprep.mubr.bf16.mxu1 %v5443_v45  ;;  %v4545_v28 = vpop.eup %4544  ;;  %v5689_v12 = vpack.c.bf16 %v900_v36, %v899_v46  ;;  %v761_v24 = vmul.f32 1.442695, %v651_v53  ;;  %vm2785_vm0 = vcmask 1040384   ;;  %vm3106_vm1 = vcmask 1046528  }
  0xc9   : > { %v4547_v58 = vpop.eup %4546  ;;  %v3766_v39 = vadd.f32 -1.0, %v4545_v28  ;;  %v763_v18 = vmul.f32 1.442695, %v652_v63  ;;  %vm3499_vm2 = vcmask 261120  }
  0xca   : > { %1610 = vmatmul.mubr.bf16.gmra.mrb[56].mxu0 %v5537_v32  ;;  %v3767_v61 = vadd.f32 -1.0, %v4547_v58  ;;  %4556 = vpow2.f32 %v761_v24 }
  0xcb   : > { %1619 = vmatprep.mubr.bf16.mxu0 %v5603_v20  ;;  %v901_v26 = vsel %vm581_vm8, %v5621_v1, %v3766_v39  ;;  %4558 = vpow2.f32 %v763_v18 }
  0xcc   : > { %v4549_v33 = vpop.eup %4548  ;;  %v902_v16 = vsel %vm582_vm9, %v5627_v29, %v3767_v61 }
  0xcd   : > { %v4551_v25 = vpop.eup %4550  ;;  %v5701_v37 = vpack.c.bf16 %v902_v16, %v901_v26  ;;  %v3768_v62 = vadd.f32 -1.0, %v4549_v33 }
  0xce   : > { %v3769_v10 = vadd.f32 -1.0, %v4551_v25 }
  0xcf   : > { %2240 = vmatmul.mubr.bf16.gmra.mrb[72].mxu1 %v5402_v55  ;;  %v903_v29 = vsel %vm583_vm10, %v5645_v38, %v3768_v62 }
  0xd0   : > { %2247 = vmatprep.mubr.bf16.mxu1 %v5471_v22  ;;  %v4553_v1 = vpop.eup %4552  ;;  %v904_v0 = vsel %vm584_vm11, %v5651_v14, %v3769_v10 }
  0xd1   : > { %v4555_v51 = vpop.eup %4554  ;;  %v5714_v44 = vpack.c.bf16 %v904_v0, %v903_v29  ;;  %v3770_v23 = vadd.f32 -1.0, %v4553_v1 }
  0xd2   : > { %1620 = vmatmul.mubr.bf16.gmra.mrb[60].mxu0 %v5561_v59  ;;  %v3771_v49 = vadd.f32 -1.0, %v4555_v51 }
  0xd3   : > { %1629 = vmatprep.mubr.bf16.mxu0 %v5624_v5  ;;  %v905_v14 = vsel %vm585_vm12, %v5666_v15, %v3770_v23 }
  0xd4   : > { %v4557_v38 = vpop.eup %4556  ;;  %v906_v8 = vsel %vm586_vm13, %v5672_v50, %v3771_v49 }
  0xd5   : > { %v4559_v42 = vpop.eup %4558  ;;  %v5724_v30 = vpack.c.bf16 %v906_v8, %v905_v14  ;;  %v3772_v35 = vadd.f32 -1.0, %v4557_v38 }
  0xd6   : > { %v3773_v28 = vadd.f32 -1.0, %v4559_v42 }
  0xd7   : > { %2248 = vmatmul.mubr.bf16.gmra.mrb[76].mxu1 %v5419_v13  ;;  %v907_v15 = vsel %vm587_vm14, %v5686_v21, %v3772_v35 }
  0xd8   : > { %2255 = vmatprep.mubr.bf16.mxu1 %v5495_v11  ;;  %v908_v46 = vsel %vm588_vm15, %v524_v57, %v3773_v28 }
  0xd9   : > { %v5732_v50 = vpack.c.bf16 %v908_v46, %v907_v15 }
  0xda   : > { %1630 = vmatmul.mubr.bf16.gmra.mrb[64].mxu0 %v5582_v27 }
  0xdb   : > { %1639 = vmatprep.mubr.bf16.mxu0 %v5648_v56 }
  0xdf   : > { %2256 = vmatmul.mubr.bf16.gmra.mrb[80].mxu1 %v5443_v45 }
  0xe0   : > { %2263 = vmatprep.mubr.bf16.mxu1 %v5516_v52 }
  0xe2   : > { %1640 = vmatmul.mubr.bf16.gmra.mrb[68].mxu0 %v5603_v20 }
  0xe3   : > { %1649 = vmatprep.mubr.bf16.mxu0 %v5669_v7 }
  0xe7   : > { %2264 = vmatmul.mubr.bf16.gmra.mrb[84].mxu1 %v5471_v22 }
  0xe8   : > { %2271 = vmatprep.mubr.bf16.mxu1 %v5537_v32 }
  0xea   : > { %1650 = vmatmul.mubr.bf16.gmra.mrb[72].mxu0 %v5624_v5 }
  0xeb   : > { %1659 = vmatprep.mubr.bf16.mxu0 %v5689_v12 }
  0xef   : > { %2272 = vmatmul.mubr.bf16.gmra.mrb[88].mxu1 %v5495_v11 }
  0xf0   : > { %2279 = vmatprep.mubr.bf16.mxu1 %v5561_v59 }
  0xf2   : > { %1660 = vmatmul.mubr.bf16.gmra.mrb[76].mxu0 %v5648_v56 }
  0xf3   : > { %1669 = vmatprep.mubr.bf16.mxu0 %v5701_v37 }
  0xf7   : > { %2280 = vmatmul.mubr.bf16.gmra.mrb[92].mxu1 %v5516_v52 }
  0xf8   : > { %2287 = vmatprep.mubr.bf16.mxu1 %v5582_v27 }
  0xfa   : > { %1670 = vmatmul.mubr.bf16.gmra.mrb[80].mxu0 %v5669_v7 }
  0xfb   : > { %1679 = vmatprep.mubr.bf16.mxu0 %v5714_v44 }
  0xff   : > { %2288 = vmatmul.mubr.bf16.gmra.mrb[96].mxu1 %v5537_v32 }
 0x100   : > { %2295 = vmatprep.mubr.bf16.mxu1 %v5603_v20 }
 0x102   : > { %1680 = vmatmul.mubr.bf16.gmra.mrb[84].mxu0 %v5689_v12 }
 0x103   : > { %1689 = vmatprep.mubr.bf16.mxu0 %v5724_v30 }
 0x107   : > { %2296 = vmatmul.mubr.bf16.gmra.mrb[100].mxu1 %v5561_v59 }
 0x108   : > { %2303 = vmatprep.mubr.bf16.mxu1 %v5624_v5 }
 0x10a   : > { %1690 = vmatmul.mubr.bf16.gmra.mrb[88].mxu0 %v5701_v37 }
 0x10b   : > { %1699 = vmatprep.mubr.bf16.mxu0 %v5732_v50 }
 0x10f   : > { %2304 = vmatmul.mubr.bf16.gmra.mrb[104].mxu1 %v5582_v27 }
 0x110   : > { %2311 = vmatprep.mubr.bf16.mxu1 %v5648_v56  ;;  %v5739_v36 = vpop.f32.mrb[0].mxu1 }
 0x111   : > { %v5742_v58 = vpop.f32.mrb[1].mxu1 }
 0x112   : > { %1700 = vmatmul.mubr.bf16.gmra.mrb[92].mxu0 %v5714_v44  ;;  %v5745_v60 = vpop.f32.mrb[2].mxu1 }
 0x113   : > { %1709 = vmatprep.mubr.bf16.mxu0 %v4970_v40  ;;  %v5747_v21 = vpop.f32.mrb[3].mxu1 }
 0x117   : > { %2312 = vmatmul.mubr.bf16.gmra.mrb[108].mxu1 %v5603_v20 }
 0x118   : > { %2319 = vmatprep.mubr.bf16.mxu1 %v5669_v7  ;;  %v5751_v34 = vpop.f32.mrb[4].mxu1 }
 0x119   : > { %v5754_v57 = vpop.f32.mrb[5].mxu1 }
 0x11a   : > { %1710 = vmatmul.mubr.bf16.gmra.mrb[96].mxu0 %v5724_v30  ;;  %v5757_v39 = vpop.f32.mrb[6].mxu1 }
 0x11b   : > { %1719 = vmatprep.mubr.bf16.mxu0 %v5014_v47  ;;  %v5759_v61 = vpop.f32.mrb[7].mxu1 }
 0x11f   : > { %2320 = vmatmul.mubr.bf16.gmra.mrb[112].mxu1 %v5624_v5 }
 0x120   : > { %2327 = vmatprep.mubr.bf16.mxu1 %v5689_v12 }
 0x121   : > { %v5763_v53 = vpop.f32.mrb[8].mxu1 }
 0x122   : > { %1720 = vmatmul.mubr.bf16.gmra.mrb[100].mxu0 %v5732_v50  ;;  %v5766_v63 = vpop.f32.mrb[9].mxu1 }
 0x123   : > { %1729 = vmatprep.mubr.bf16.mxu0 %v5068_v48  ;;  %v5769_v33 = vpop.f32.mrb[10].mxu1 }
 0x124   : > { %v5771_v26 = vpop.f32.mrb[11].mxu1 }
 0x127   : > { %2328 = vmatmul.mubr.bf16.gmra.mrb[116].mxu1 %v5648_v56 }
 0x128   : > { %2335 = vmatprep.mubr.bf16.mxu1 %v5701_v37 }
 0x129   : > { %v5775_v16 = vpop.f32.mrb[12].mxu1 }
 0x12a   : > { %1730 = vmatmul.mubr.bf16.gmra.mrb[104].mxu0 %v4970_v40  ;;  %v5778_v25 = vpop.f32.mrb[13].mxu1 }
 0x12b   : > { %1739 = vmatprep.mubr.bf16.mxu0 %v5111_v43  ;;  %v5781_v24 = vpop.f32.mrb[14].mxu1 }
 0x12c   : > { %v5783_v18 = vpop.f32.mrb[15].mxu1 }
 0x12f   : > { %2336 = vmatmul.mubr.bf16.gmra.mrb[120].mxu1 %v5669_v7 }
 0x130   : > { %2343 = vmatprep.mubr.bf16.mxu1 %v5714_v44 }
 0x131   : > { %v5787_v41 = vpop.f32.mrb[16].mxu1 }
 0x132   : > { %1740 = vmatmul.mubr.bf16.gmra.mrb[108].mxu0 %v5014_v47  ;;  %v5790_v62 = vpop.f32.mrb[17].mxu1 }
 0x133   : > { %1749 = vmatprep.mubr.bf16.mxu0 %v5152_v19  ;;  %v5793_v10 = vpop.f32.mrb[18].mxu1 }
 0x134   : > { %v5795_v1 = vpop.f32.mrb[19].mxu1 }
 0x137   : > { %2344 = vmatmul.mubr.bf16.gmra.mrb[124].mxu1 %v5689_v12 }
 0x138   : > { %2351 = vmatprep.mubr.bf16.mxu1 %v5724_v30 }
 0x13a   : > { %v5799_v29 = vpop.f32.mrb[20].mxu1  ;;  %1750 = vmatmul.mubr.bf16.gmra.mrb[112].mxu0 %v5068_v48 }
 0x13b   : > { %v5802_v0 = vpop.f32.mrb[21].mxu1  ;;  %1759 = vmatprep.mubr.bf16.mxu0 %v5206_v6 }
 0x13c   : > { %v5805_v51 = vpop.f32.mrb[22].mxu1 }
 0x13d   : > { %v5807_v23 = vpop.f32.mrb[23].mxu1 }
 0x13f   : > { %2352 = vmatmul.mubr.bf16.gmra.mrb[128].mxu1 %v5701_v37 }
 0x140   : > { %2359 = vmatprep.mubr.bf16.mxu1 %v5732_v50 }
 0x142   : > { %v5811_v49 = vpop.f32.mrb[24].mxu1  ;;  %1760 = vmatmul.mubr.bf16.gmra.mrb[116].mxu0 %v5111_v43 }
 0x143   : > { %v5814_v38 = vpop.f32.mrb[25].mxu1  ;;  %1769 = vmatprep.mubr.bf16.mxu0 %v5261_v9 }
 0x144   : > { %v5817_v14 = vpop.f32.mrb[26].mxu1 }
 0x145   : > { %6901 = vst [vmem:[#allocation5_spill] sm:$0xff] %v5817_v14  ;;  %v5819_v8 = vpop.f32.mrb[27].mxu1 }
 0x146   : > { %6902 = vst [vmem:[#allocation6_spill] sm:$0xff] %v5819_v8 }
 0x147   : > { %2360 = vmatmul.mubr.bf16.gmra.mrb[132].mxu1 %v5714_v44 }
 0x148   : > { %2367 = vmatprep.mubr.bf16.mxu1 %v4970_v40 }
 0x14a   : > { %v5823_v42 = vpop.f32.mrb[28].mxu1  ;;  %1770 = vmatmul.mubr.bf16.gmra.mrb[120].mxu0 %v5152_v19 }
 0x14b   : > { %6903 = vst [vmem:[#allocation7_spill] sm:$0xff] %v5823_v42  ;;  %v5826_v35 = vpop.f32.mrb[29].mxu1  ;;  %1779 = vmatprep.mubr.bf16.mxu0 %v5321_v54  ;;  %v6909_v42 = vmov 0  }
 0x14c   : > { %6904 = vst [vmem:[#allocation8_spill] sm:$0xff] %v5826_v35  ;;  %v5829_v28 = vpop.f32.mrb[30].mxu1 }
 0x14d   : > { %6905 = vst [vmem:[#allocation9_spill] sm:$0xff] %v5829_v28  ;;  %v5831_v15 = vpop.f32.mrb[31].mxu1 }
 0x14e   : > { %6906 = vst [vmem:[#allocation10_spill] sm:$0xff] %v5831_v15 }
 0x14f   : > { %2368 = vmatmul.mubr.bf16.gmra.mrb[136].mxu1 %v5724_v30 }
 0x150   : > { %2375 = vmatprep.mubr.bf16.mxu1 %v5014_v47 }
 0x152   : > { %v5835_v46 = vpop.f32.mrb[32].mxu1  ;;  %1780 = vmatmul.mubr.bf16.gmra.mrb[124].mxu0 %v5206_v6 }
 0x153   : > { %6907 = vst [vmem:[#allocation11_spill] sm:$0xff] %v5835_v46  ;;  %v5838_v2 = vpop.f32.mrb[33].mxu1  ;;  %1822 = vmatprep.mubr.bf16.mxu0 %v6909_v42 }
 0x154   : > { %6908 = vst [vmem:[#allocation12_spill] sm:$0xff] %v5838_v2  ;;  %v5841_v8 = vpop.f32.mrb[34].mxu1 }
 0x155   : > { %6910 = vst [vmem:[#allocation13_spill] sm:$0xff] %v5841_v8  ;;  %v5843_v35 = vpop.f32.mrb[35].mxu1 }
 0x156   : > { %6911 = vst [vmem:[#allocation14_spill] sm:$0xff] %v5843_v35 }
 0x157   : > { %2376 = vmatmul.mubr.bf16.gmra.mrb[140].mxu1 %v5732_v50 }
 0x158   : > { %2383 = vmatprep.mubr.bf16.mxu1 %v5068_v48 }
 0x15a   : > { %v5847_v15 = vpop.f32.mrb[36].mxu1  ;;  %1823 = vmatmul.mubr.bf16.vlgmr.msra.gmra.mrb[0].mxu0 %v5216_v17 }
 0x15b   : > { %6912 = vst [vmem:[#allocation15_spill] sm:$0xff] %v5847_v15  ;;  %v5850_v28 = vpop.f32.mrb[37].mxu1  ;;  %1832 = vmatprep.mubr.bf16.mxu0 %v6909_v42 }
 0x15c   : > { %6913 = vst [vmem:[#allocation16_spill] sm:$0xff] %v5850_v28  ;;  %v5853_v46 = vpop.f32.mrb[38].mxu1 }
 0x15d   : > { %6914 = vst [vmem:[#allocation17_spill] sm:$0xff] %v5853_v46  ;;  %v5855_v2 = vpop.f32.mrb[39].mxu1 }
 0x15e   : > { %6915 = vst [vmem:[#allocation18_spill] sm:$0xff] %v5855_v2 }
 0x15f   : > { %2384 = vmatmul.mubr.bf16.gmra.mrb[144].mxu1 %v4970_v40 }
 0x160   : > { %2391 = vmatprep.mubr.bf16.mxu1 %v5111_v43 }
 0x162   : > { %v5859_v35 = vpop.f32.mrb[40].mxu1  ;;  %1833 = vmatmul.mubr.bf16.gmra.mrb[4].mxu0 %v5277_v3 }
 0x163   : > { %6916 = vst [vmem:[#allocation19_spill] sm:$0xff] %v5859_v35  ;;  %v2179_v8 = vpop.f32.mrb[41].mxu1  ;;  %1842 = vmatprep.mubr.bf16.mxu0 %v6909_v42 }
 0x164   : > { %v5863_v15 = vpop.f32.mrb[42].mxu1 }
 0x165   : > { %6917 = vst [vmem:[#allocation20_spill] sm:$0xff] %v5863_v15  ;;  %v2182_v28 = vpop.f32.mrb[43].mxu1 }
 0x167   : > { %2392 = vmatmul.mubr.bf16.gmra.mrb[148].mxu1 %v5014_v47 }
 0x168   : > { %2399 = vmatprep.mubr.bf16.mxu1 %v5152_v19 }
 0x16a   : > { %v5867_v46 = vpop.f32.mrb[44].mxu1  ;;  %1843 = vmatmul.mubr.bf16.gmra.mrb[8].mxu0 %v5343_v4 }
 0x16b   : > { %6918 = vst [vmem:[#allocation21_spill] sm:$0xff] %v5867_v46  ;;  %v2187_v2 = vpop.f32.mrb[45].mxu1  ;;  %1852 = vmatprep.mubr.bf16.mxu0 %v6909_v42 }
 0x16c   : > { %v5871_v35 = vpop.f32.mrb[46].mxu1 }
 0x16d   : > { %6919 = vst [vmem:[#allocation22_spill] sm:$0xff] %v5871_v35  ;;  %v2190_v14 = vpop.f32.mrb[47].mxu1 }
 0x16f   : > { %2400 = vmatmul.mubr.bf16.gmra.mrb[152].mxu1 %v5068_v48 }
 0x170   : > { %2407 = vmatprep.mubr.bf16.mxu1 %v5206_v6 }
 0x172   : > { %v5875_v8 = vpop.f32.mrb[48].mxu1  ;;  %1853 = vmatmul.mubr.bf16.gmra.mrb[12].mxu0 %v5379_v31 }
 0x173   : > { %6920 = vst [vmem:[#allocation23_spill] sm:$0xff] %v5875_v8  ;;  %v2195_v28 = vpop.f32.mrb[49].mxu1  ;;  %1862 = vmatprep.mubr.bf16.mxu0 %v6909_v42 }
 0x174   : > { %v5879_v15 = vpop.f32.mrb[50].mxu1 }
 0x175   : > { %6921 = vst [vmem:[#allocation24_spill] sm:$0xff] %v5879_v15  ;;  %v2198_v46 = vpop.f32.mrb[51].mxu1 }
 0x177   : > { %2408 = vmatmul.mubr.bf16.gmra.mrb[156].mxu1 %v5111_v43 }
 0x178   : > { %2415 = vmatprep.mubr.bf16.mxu1 %v5261_v9 }
 0x17a   : > { %v5883_v2 = vpop.f32.mrb[52].mxu1  ;;  %1863 = vmatmul.mubr.bf16.gmra.mrb[16].mxu0 %v5402_v55 }
 0x17b   : > { %6922 = vst [vmem:[#allocation25_spill] sm:$0xff] %v5883_v2  ;;  %v2203_v14 = vpop.f32.mrb[53].mxu1  ;;  %1872 = vmatprep.mubr.bf16.mxu0 %v6909_v42 }
 0x17c   : > { %v5887_v8 = vpop.f32.mrb[54].mxu1 }
 0x17d   : > { %6923 = vst [vmem:[#allocation26_spill] sm:$0xff] %v5887_v8  ;;  %v2206_v35 = vpop.f32.mrb[55].mxu1 }
 0x17f   : > { %2416 = vmatmul.mubr.bf16.gmra.mrb[160].mxu1 %v5152_v19 }
 0x180   : > { %2423 = vmatprep.mubr.bf16.mxu1 %v5321_v54 }
 0x182   : > { %v5891_v28 = vpop.f32.mrb[56].mxu1  ;;  %1873 = vmatmul.mubr.bf16.gmra.mrb[20].mxu0 %v5419_v13 }
 0x183   : > { %6924 = vst [vmem:[#allocation27_spill] sm:$0xff] %v5891_v28  ;;  %v2211_v46 = vpop.f32.mrb[57].mxu1  ;;  %1882 = vmatprep.mubr.bf16.mxu0 %v6909_v42 }
 0x184   : > { %v5895_v15 = vpop.f32.mrb[58].mxu1 }
 0x185   : > { %6925 = vst [vmem:[#allocation28_spill] sm:$0xff] %v5895_v15  ;;  %v2214_v2 = vpop.f32.mrb[59].mxu1 }
 0x187   : > { %2424 = vmatmul.mubr.bf16.gmra.mrb[164].mxu1 %v5206_v6 }
 0x188   : > { %4086 = vmatprep.mubr.bf16.mxu1 %v5216_v17 }
 0x18a   : > { %v5899_v14 = vpop.f32.mrb[60].mxu1  ;;  %1883 = vmatmul.mubr.bf16.gmra.mrb[24].mxu0 %v5443_v45 }
 0x18b   : > { %v2219_v35 = vpop.f32.mrb[61].mxu1  ;;  %1892 = vmatprep.mubr.bf16.mxu0 %v6909_v42 }
 0x18c   : > { %v5903_v28 = vpop.f32.mrb[62].mxu1 }
 0x18d   : > { %v2222_v8 = vpop.f32.mrb[63].mxu1 }
 0x18f   : > { %4087 = vmatmul.mubr.bf16.vlgmr.msra.gmra.mrb[168].mxu1 %v5277_v3 }
 0x190   : > { %4090 = vmatprep.mubr.bf16.mxu1 %v5343_v4 }
 0x192   : > { %v5907_v46 = vpop.f32.mrb[64].mxu1  ;;  %1893 = vmatmul.mubr.bf16.gmra.mrb[28].mxu0 %v5471_v22 }
 0x193   : > { %v2227_v2 = vpop.f32.mrb[65].mxu1  ;;  %1902 = vmatprep.mubr.bf16.mxu0 %v6909_v42 }
 0x194   : > { %v5911_v17 = vpop.f32.mrb[66].mxu1 }
 0x195   : > { %v2230_v15 = vpop.f32.mrb[67].mxu1 }
 0x197   : > { %4091 = vmatmul.mubr.bf16.gmra.mrb[172].mxu1 %v5379_v31 }
 0x198   : > { %4094 = vmatprep.mubr.bf16.mxu1 %v5402_v55 }
 0x19a   : > { %v5915_v35 = vpop.f32.mrb[68].mxu1  ;;  %1903 = vmatmul.mubr.bf16.gmra.mrb[32].mxu0 %v5495_v11 }
 0x19b   : > { %v2235_v3 = vpop.f32.mrb[69].mxu1  ;;  %1912 = vmatprep.mubr.bf16.mxu0 %v6909_v42 }
 0x19c   : > { %v5919_v4 = vpop.f32.mrb[70].mxu1 }
 0x19d   : > { %v2238_v8 = vpop.f32.mrb[71].mxu1 }
 0x19f   : > { %4095 = vmatmul.mubr.bf16.gmra.mrb[176].mxu1 %v5419_v13 }
 0x1a0   : > { %4098 = vmatprep.mubr.bf16.mxu1 %v5443_v45 }
 0x1a2   : > { %v5923_v2 = vpop.f32.mrb[72].mxu1  ;;  %1913 = vmatmul.mubr.bf16.gmra.mrb[36].mxu0 %v5516_v52 }
 0x1a3   : > { %v2243_v31 = vpop.f32.mrb[73].mxu1  ;;  %1922 = vmatprep.mubr.bf16.mxu0 %v6909_v42 }
 0x1a4   : > { %v5927_v55 = vpop.f32.mrb[74].mxu1 }
 0x1a5   : > { %v2246_v15 = vpop.f32.mrb[75].mxu1 }
 0x1a7   : > { %4099 = vmatmul.mubr.bf16.gmra.mrb[180].mxu1 %v5471_v22 }
 0x1a8   : > { %4102 = vmatprep.mubr.bf16.mxu1 %v5495_v11 }
 0x1aa   : > { %v5931_v3 = vpop.f32.mrb[76].mxu1  ;;  %1923 = vmatmul.mubr.bf16.gmra.mrb[40].mxu0 %v5537_v32 }
 0x1ab   : > { %v2251_v13 = vpop.f32.mrb[77].mxu1  ;;  %1932 = vmatprep.mubr.bf16.mxu0 %v6909_v42 }
 0x1ac   : > { %v5935_v45 = vpop.f32.mrb[78].mxu1 }
 0x1ad   : > { %v2254_v8 = vpop.f32.mrb[79].mxu1 }
 0x1af   : > { %4103 = vmatmul.mubr.bf16.gmra.mrb[184].mxu1 %v5516_v52 }
 0x1b0   : > { %4106 = vmatprep.mubr.bf16.mxu1 %v5537_v32 }
 0x1b2   : > { %v5939_v31 = vpop.f32.mrb[80].mxu1  ;;  %1933 = vmatmul.mubr.bf16.gmra.mrb[44].mxu0 %v5561_v59 }
 0x1b3   : > { %v2259_v22 = vpop.f32.mrb[81].mxu1  ;;  %1942 = vmatprep.mubr.bf16.mxu0 %v6909_v42 }
 0x1b4   : > { %v5943_v11 = vpop.f32.mrb[82].mxu1 }
 0x1b5   : > { %6926 = vst [vmem:[#allocation29_spill] sm:$0xff] %v5943_v11  ;;  %v2262_v15 = vpop.f32.mrb[83].mxu1 }
 0x1b7   : > { %4107 = vmatmul.mubr.bf16.gmra.mrb[188].mxu1 %v5561_v59 }
 0x1b8   : > { %4110 = vmatprep.mubr.bf16.mxu1 %v5582_v27 }
 0x1ba   : > { %v5947_v13 = vpop.f32.mrb[84].mxu1  ;;  %1943 = vmatmul.mubr.bf16.gmra.mrb[48].mxu0 %v5582_v27 }
 0x1bb   : > { %v2267_v52 = vpop.f32.mrb[85].mxu1  ;;  %1952 = vmatprep.mubr.bf16.mxu0 %v6909_v42 }
 0x1bc   : > { %v5951_v32 = vpop.f32.mrb[86].mxu1 }
 0x1bd   : > { %6927 = vst [vmem:[#allocation30_spill] sm:$0xff] %v5951_v32  ;;  %v2270_v8 = vpop.f32.mrb[87].mxu1 }
 0x1bf   : > { %4111 = vmatmul.mubr.bf16.gmra.mrb[192].mxu1 %v5603_v20 }
 0x1c0   : > { %4114 = vmatprep.mubr.bf16.mxu1 %v5624_v5 }
 0x1c2   : > { %v5955_v22 = vpop.f32.mrb[88].mxu1  ;;  %1953 = vmatmul.mubr.bf16.gmra.mrb[52].mxu0 %v5603_v20 }
 0x1c3   : > { %6928 = vst [vmem:[#allocation31_spill] sm:$0xff] %v5955_v22  ;;  %v2275_v59 = vpop.f32.mrb[89].mxu1  ;;  %1962 = vmatprep.mubr.bf16.mxu0 %v6909_v42 }
 0x1c4   : > { %v5959_v15 = vpop.f32.mrb[90].mxu1 }
 0x1c5   : > { %6929 = vst [vmem:[#allocation32_spill] sm:$0xff] %v5959_v15  ;;  %v2278_v27 = vpop.f32.mrb[91].mxu1 }
 0x1c7   : > { %4115 = vmatmul.mubr.bf16.gmra.mrb[196].mxu1 %v5648_v56 }
 0x1c8   : > { %4118 = vmatprep.mubr.bf16.mxu1 %v5669_v7 }
 0x1ca   : > { %v5963_v52 = vpop.f32.mrb[92].mxu1  ;;  %1963 = vmatmul.mubr.bf16.gmra.mrb[56].mxu0 %v5624_v5 }
 0x1cb   : > { %6930 = vst [vmem:[#allocation33_spill] sm:$0xff] %v5963_v52  ;;  %v2283_v8 = vpop.f32.mrb[93].mxu1  ;;  %1972 = vmatprep.mubr.bf16.mxu0 %v6909_v42 }
 0x1cc   : > { %v5967_v22 = vpop.f32.mrb[94].mxu1 }
 0x1cd   : > { %6931 = vst [vmem:[#allocation34_spill] sm:$0xff] %v5967_v22  ;;  %v2286_v20 = vpop.f32.mrb[95].mxu1 }
 0x1cf   : > { %4119 = vmatmul.mubr.bf16.gmra.mrb[200].mxu1 %v5689_v12 }
 0x1d0   : > { %4122 = vmatprep.mubr.bf16.mxu1 %v5701_v37 }
 0x1d2   : > { %v5971_v59 = vpop.f32.mrb[96].mxu1  ;;  %1973 = vmatmul.mubr.bf16.gmra.mrb[60].mxu0 %v5648_v56 }
 0x1d3   : > { %6932 = vst [vmem:[#allocation35_spill] sm:$0xff] %v5971_v59  ;;  %v2291_v27 = vpop.f32.mrb[97].mxu1  ;;  %1982 = vmatprep.mubr.bf16.mxu0 %v6909_v42 }
 0x1d4   : > { %v5975_v15 = vpop.f32.mrb[98].mxu1 }
 0x1d5   : > { %6933 = vst [vmem:[#allocation36_spill] sm:$0xff] %v5975_v15  ;;  %v2294_v5 = vpop.f32.mrb[99].mxu1 }
 0x1d7   : > { %4123 = vmatmul.mubr.bf16.gmra.mrb[204].mxu1 %v5714_v44 }
 0x1d8   : > { %4126 = vmatprep.mubr.bf16.mxu1 %v5724_v30 }
 0x1da   : > { %v5979_v8 = vpop.f32.mrb[100].mxu1  ;;  %1983 = vmatmul.mubr.bf16.gmra.mrb[64].mxu0 %v5669_v7 }
 0x1db   : > { %6934 = vst [vmem:[#allocation37_spill] sm:$0xff] %v5979_v8  ;;  %v2299_v20 = vpop.f32.mrb[101].mxu1  ;;  %1992 = vmatprep.mubr.bf16.mxu0 %v6909_v42 }
 0x1dc   : > { %v5983_v59 = vpop.f32.mrb[102].mxu1 }
 0x1dd   : > { %6935 = vst [vmem:[#allocation38_spill] sm:$0xff] %v5983_v59  ;;  %v2302_v56 = vpop.f32.mrb[103].mxu1  ;;  %v1691_v27 = vpop.f32.mrb[88].mxu0 }
 0x1de   : > { %v2045_v22 = vadd.f32 %v5739_v36, %v1691_v27  ;;  %v1693_v52 = vpop.f32.mrb[89].mxu0 }
 0x1df   : > { %4127 = vmatmul.mubr.bf16.gmra.mrb[208].mxu1 %v5732_v50  ;;  %v2047_v5 = vadd.f32 %v5742_v58, %v1693_v52  ;;  %v1695_v15 = vpop.f32.mrb[90].mxu0 }
 0x1e0   : > { %v2863_v11 = vrot.slane %v2045_v22, 7  ;;  %v2049_v8 = vadd.f32 %v5745_v60, %v1695_v15  ;;  %v1697_v7 = vpop.f32.mrb[91].mxu0  ;;  %4130 = vmatprep.mubr.bf16.mxu1 %v4970_v40 }
 0x1e1   : > { %v2051_v20 = vadd.f32 %v5747_v21, %v1697_v7 }
 0x1e2   : > { %v2973_v56 = vsel %vm2785_vm0, 0.0, %v2863_v11  ;;  %v5992_v59 = vpop.f32.mrb[104].mxu1  ;;  %v2864_v36 = vrot.slane %v2049_v8, 7  ;;  %1993 = vmatmul.mubr.bf16.gmra.mrb[68].mxu0 %v5689_v12 }
 0x1e3   : > { %v5995_v27 = vadd.f32 %v2973_v56, %v2047_v5  ;;  %v2307_v32 = vpop.f32.mrb[105].mxu1  ;;  %2002 = vmatprep.mubr.bf16.mxu0 %v6909_v42 }
 0x1e4   : > { %v5998_v58 = vpop.f32.mrb[106].mxu1  ;;  %v2865_v60 = vsel %vm2785_vm0, %v2863_v11, %v2864_v36 }
 0x1e5   : > { %6936 = vst [vmem:[#allocation39_spill] sm:$0xff] %v5995_v27  ;;  %v6001_v22 = vadd.f32 %v2865_v60, %v2051_v20  ;;  %v2310_v40 = vpop.f32.mrb[107].mxu1  ;;  %v1701_v21 = vpop.f32.mrb[92].mxu0  ;;  %v3437_v27 = vld [vmem:[%s6222_s28 + $0x18] sm:$0xff] }
 0x1e6   : > { %v2055_v15 = vadd.f32 %v5751_v34, %v1701_v21  ;;  %v1703_v52 = vpop.f32.mrb[93].mxu0  ;;  %3505 = vst [vmem:[%s6243_s10 + $0x30] sm:$0xff] %v3437_v27  ;;  %v3444_v27 = vld [vmem:[%s6222_s28 + $0x50] sm:$0xff] }
 0x1e7   : > { %6937 = vst [vmem:[#allocation40_spill] sm:$0xff] %v6001_v22  ;;  %4131 = vmatmul.mubr.bf16.gmra.mrb[212].mxu1 %v5014_v47  ;;  %v2057_v12 = vadd.f32 %v5754_v57, %v1703_v52  ;;  %v1705_v8 = vpop.f32.mrb[94].mxu0  ;;  %3519 = vst [vmem:[%s6243_s10 + $0xa0] sm:$0xff] %v3444_v27 }
 0x1e8   : > { %v2866_v5 = vrot.slane %v2055_v15, 7  ;;  %v2059_v32 = vadd.f32 %v5757_v39, %v1705_v8  ;;  %v1707_v7 = vpop.f32.mrb[95].mxu0  ;;  %4134 = vmatprep.mubr.bf16.mxu1 %v5068_v48 }
 0x1e9   : > { %v2061_v11 = vadd.f32 %v5759_v61, %v1707_v7 }
 0x1ea   : > { %v6009_v20 = vpop.f32.mrb[108].mxu1  ;;  %v2867_v56 = vsel %vm2785_vm0, %v2864_v36, %v2866_v5  ;;  %v2868_v60 = vrot.slane %v2059_v32, 7  ;;  %2003 = vmatmul.mubr.bf16.gmra.mrb[72].mxu0 %v5701_v37 }
 0x1eb   : > { %v6013_v34 = vadd.f32 %v2867_v56, %v2057_v12  ;;  %v2315_v47 = vpop.f32.mrb[109].mxu1  ;;  %2012 = vmatprep.mubr.bf16.mxu0 %v6909_v42 }
 0x1ec   : > { %v6016_v57 = vpop.f32.mrb[110].mxu1  ;;  %v2869_v39 = vsel %vm2785_vm0, %v2866_v5, %v2868_v60 }
 0x1ed   : > { %6938 = vst [vmem:[#allocation41_spill] sm:$0xff] %v6013_v34  ;;  %v6019_v40 = vadd.f32 %v2869_v39, %v2061_v11  ;;  %v2318_v48 = vpop.f32.mrb[111].mxu1  ;;  %v1711_v61 = vpop.f32.mrb[96].mxu0  ;;  %v3440_v34 = vld [vmem:[%s6222_s28 + $0x30] sm:$0xff] }
 0x1ee   : > { %v2065_v21 = vadd.f32 %v5763_v53, %v1711_v61  ;;  %v1713_v15 = vpop.f32.mrb[97].mxu0  ;;  %3511 = vst [vmem:[%s6243_s10 + $0x60] sm:$0xff] %v3440_v34  ;;  %v3447_v34 = vld [vmem:[%s6222_s28 + $0x68] sm:$0xff] }
 0x1ef   : > { %6939 = vst [vmem:[#allocation42_spill] sm:$0xff] %v6019_v40  ;;  %4135 = vmatmul.mubr.bf16.gmra.mrb[216].mxu1 %v5111_v43  ;;  %v2067_v37 = vadd.f32 %v5766_v63, %v1713_v15  ;;  %v1715_v36 = vpop.f32.mrb[98].mxu0  ;;  %v3438_v40 = vld [vmem:[%s6222_s28 + $0x20] sm:$0xff]  ;;  %3525 = vst [vmem:[%s6243_s10 + $0xd0] sm:$0xff] %v3447_v34  ;;  %v3456_v34 = vld [vmem:[%s6222_s28 + $0xb0] sm:$0xff] }
 0x1f0   : > { %v2870_v52 = vrot.slane %v2065_v21, 7  ;;  %v2069_v12 = vadd.f32 %v5769_v33, %v1715_v36  ;;  %v1717_v8 = vpop.f32.mrb[99].mxu0  ;;  %4138 = vmatprep.mubr.bf16.mxu1 %v5152_v19  ;;  %3507 = vst [vmem:[%s6243_s10 + $0x40] sm:$0xff] %v3438_v40  ;;  %v3445_v40 = vld [vmem:[%s6222_s28 + $0x58] sm:$0xff]  ;;  %3543 = vst [vmem:[%s6243_s10 + $0x160] sm:$0xff] %v3456_v34  ;;  %v3464_v34 = vld [vmem:[%s6222_s28 + $0xf0] sm:$0xff] }
 0x1f1   : > { %v2071_v5 = vadd.f32 %v5771_v26, %v1717_v8  ;;  %3521 = vst [vmem:[%s6243_s10 + $0xb0] sm:$0xff] %v3445_v40  ;;  %v3452_v40 = vld [vmem:[%s6222_s28 + $0x90] sm:$0xff]  ;;  %3559 = vst [vmem:[%s6243_s10 + $0x1e0] sm:$0xff] %v3464_v34  ;;  %v3474_v34 = vld [vmem:[%s6222_s28 + $0x140] sm:$0xff] }
 0x1f2   : > { %v2974_v32 = vsel %vm2785_vm0, 0.0, %v2870_v52  ;;  %v6028_v7 = vpop.f32.mrb[112].mxu1  ;;  %v2871_v11 = vrot.slane %v2069_v12, 7  ;;  %2013 = vmatmul.mubr.bf16.gmra.mrb[76].mxu0 %v5714_v44  ;;  %3535 = vst [vmem:[%s6243_s10 + $0x120] sm:$0xff] %v3452_v40  ;;  %3579 = vst [vmem:[%s6243_s10 + $0x280] sm:$0xff] %v3474_v34 }
 0x1f3   : > { %v6031_v53 = vadd.f32 %v2974_v32, %v2067_v37  ;;  %v2323_v43 = vpop.f32.mrb[113].mxu1  ;;  %2022 = vmatprep.mubr.bf16.mxu0 %v6909_v42 }
 0x1f4   : > { %v6034_v63 = vpop.f32.mrb[114].mxu1  ;;  %v2872_v33 = vsel %vm2785_vm0, %v2870_v52, %v2871_v11 }
 0x1f5   : > { %6940 = vst [vmem:[#allocation43_spill] sm:$0xff] %v6031_v53  ;;  %v6037_v56 = vadd.f32 %v2872_v33, %v2071_v5  ;;  %v2326_v19 = vpop.f32.mrb[115].mxu1  ;;  %v1721_v26 = vpop.f32.mrb[100].mxu0 }
 0x1f6   : > { %v2075_v60 = vadd.f32 %v5775_v16, %v1721_v26  ;;  %v1723_v47 = vpop.f32.mrb[101].mxu0 }
 0x1f7   : > { %6941 = vst [vmem:[#allocation44_spill] sm:$0xff] %v6037_v56  ;;  %4139 = vmatmul.mubr.bf16.gmra.mrb[220].mxu1 %v5206_v6  ;;  %v2077_v44 = vadd.f32 %v5778_v25, %v1723_v47  ;;  %v1725_v39 = vpop.f32.mrb[102].mxu0 }
 0x1f8   : > { %v2873_v48 = vrot.slane %v2075_v60, 7  ;;  %v2079_v61 = vadd.f32 %v5781_v24, %v1725_v39  ;;  %v1727_v21 = vpop.f32.mrb[103].mxu0  ;;  %4142 = vmatprep.mubr.bf16.mxu1 %v5261_v9 }
 0x1f9   : > { %v2081_v15 = vadd.f32 %v5783_v18, %v1727_v21 }
 0x1fa   : > { %v6045_v37 = vpop.f32.mrb[116].mxu1  ;;  %v2874_v36 = vsel %vm2785_vm0, %v2871_v11, %v2873_v48  ;;  %v2875_v52 = vrot.slane %v2079_v61, 7  ;;  %2023 = vmatmul.mubr.bf16.gmra.mrb[80].mxu0 %v5724_v30 }
 0x1fb   : > { %v6049_v16 = vadd.f32 %v2874_v36, %v2077_v44  ;;  %v2331_v6 = vpop.f32.mrb[117].mxu1  ;;  %2032 = vmatprep.mubr.bf16.mxu0 %v6909_v42 }
 0x1fc   : > { %v6052_v25 = vpop.f32.mrb[118].mxu1  ;;  %v2876_v24 = vsel %vm2785_vm0, %v2873_v48, %v2875_v52 }
 0x1fd   : > { %6942 = vst [vmem:[#allocation45_spill] sm:$0xff] %v6049_v16  ;;  %v6055_v12 = vadd.f32 %v2876_v24, %v2081_v15  ;;  %v2334_v9 = vpop.f32.mrb[119].mxu1  ;;  %v1731_v18 = vpop.f32.mrb[104].mxu0 }
 0x1fe   : > { %v2085_v8 = vadd.f32 %v5787_v41, %v1731_v18  ;;  %v1733_v5 = vpop.f32.mrb[105].mxu0 }
 0x1ff   : > { %6943 = vst [vmem:[#allocation46_spill] sm:$0xff] %v6055_v12  ;;  %4143 = vmatmul.mubr.bf16.gmra.mrb[224].mxu1 %v5321_v54  ;;  %v2087_v30 = vadd.f32 %v5790_v62, %v1733_v5  ;;  %v1735_v32 = vpop.f32.mrb[106].mxu0 }
 0x200   : > { %v2877_v11 = vrot.slane %v2085_v8, 7  ;;  %v2089_v43 = vadd.f32 %v5793_v10, %v1735_v32  ;;  %v1737_v33 = vpop.f32.mrb[107].mxu0  ;;  %4146 = vmatprep.mubr.bf16.mxu1 %v6909_v42 }
 0x201   : > { %v2091_v19 = vadd.f32 %v5795_v1, %v1737_v33 }
 0x202   : > { %v2975_v26 = vsel %vm2785_vm0, 0.0, %v2877_v11  ;;  %v6064_v60 = vpop.f32.mrb[120].mxu1  ;;  %v2878_v47 = vrot.slane %v2089_v43, 7  ;;  %2033 = vmatmul.mubr.bf16.gmra.mrb[84].mxu0 %v5732_v50 }
 0x203   : > { %v6067_v41 = vadd.f32 %v2975_v26, %v2087_v30  ;;  %v2339_v54 = vpop.f32.mrb[121].mxu1 }
 0x204   : > { %v6069_v62 = vpop.f32.mrb[122].mxu1  ;;  %v2879_v44 = vsel %vm2785_vm0, %v2877_v11, %v2878_v47  ;;  %v6949_v54 = vld [vmem:[#allocation6_spill] sm:$0xff] }
 0x205   : > { %6944 = vst [vmem:[#allocation47_spill] sm:$0xff] %v6067_v41  ;;  %v6072_v10 = vadd.f32 %v2879_v44, %v2091_v19  ;;  %v2342_v39 = vpop.f32.mrb[123].mxu1  ;;  %v1741_v48 = vpop.f32.mrb[108].mxu0  ;;  %v6948_v19 = vld [vmem:[#allocation5_spill] sm:$0xff] }
 0x206   : > { %v2095_v1 = vadd.f32 %v5799_v29, %v1741_v48  ;;  %v1743_v61 = vpop.f32.mrb[109].mxu0 }
 0x207   : > { %6945 = vst [vmem:[#allocation48_spill] sm:$0xff] %v6072_v10  ;;  %4147 = vmatmul.mubr.bf16.gmra.mrb[228].mxu1 %v6909_v42  ;;  %v2097_v21 = vadd.f32 %v5802_v0, %v1743_v61  ;;  %v1745_v15 = vpop.f32.mrb[110].mxu0 }
 0x208   : > { %v2880_v50 = vrot.slane %v2095_v1, 7  ;;  %v2099_v36 = vadd.f32 %v5805_v51, %v1745_v15  ;;  %v1747_v52 = vpop.f32.mrb[111].mxu0 }
 0x209   : > { %v2101_v6 = vadd.f32 %v5807_v23, %v1747_v52  ;;  %v6953_v52 = vld [vmem:[#allocation7_spill] sm:$0xff] }
 0x20a   : > { %v6079_v24 = vpop.f32.mrb[124].mxu1  ;;  %v2881_v9 = vsel %vm2785_vm0, %v2878_v47, %v2880_v50  ;;  %v2882_v18 = vrot.slane %v2099_v36, 7 }
 0x20b   : > { %v6082_v8 = vadd.f32 %v2881_v9, %v2097_v21  ;;  %v2347_v29 = vpop.f32.mrb[125].mxu1 }
 0x20c   : > { %v6084_v5 = vpop.f32.mrb[126].mxu1  ;;  %v2883_v42 = vsel %vm2785_vm0, %v2880_v50, %v2882_v18  ;;  %v6954_v18 = vld [vmem:[#allocation8_spill] sm:$0xff] }
 0x20d   : > { %6946 = vst [vmem:[#allocation49_spill] sm:$0xff] %v6082_v8  ;;  %v6087_v0 = vadd.f32 %v2883_v42, %v2101_v6  ;;  %v2350_v30 = vpop.f32.mrb[127].mxu1  ;;  %v1751_v32 = vpop.f32.mrb[112].mxu0 }
 0x20e   : > { %v2105_v51 = vadd.f32 %v5811_v49, %v1751_v32  ;;  %v1753_v11 = vpop.f32.mrb[113].mxu0  ;;  %v6955_v32 = vld [vmem:[#allocation9_spill] sm:$0xff] }
 0x20f   : > { %6947 = vst [vmem:[#allocation50_spill] sm:$0xff] %v6087_v0  ;;  %v2107_v23 = vadd.f32 %v5814_v38, %v1753_v11  ;;  %v1755_v43 = vpop.f32.mrb[114].mxu0 }
 0x210   : > { %v2884_v33 = vrot.slane %v2105_v51, 7  ;;  %v2109_v26 = vadd.f32 %v6948_v19, %v1755_v43  ;;  %v1757_v47 = vpop.f32.mrb[115].mxu0 }
 0x211   : > { %v2111_v44 = vadd.f32 %v6949_v54, %v1757_v47 }
 0x212   : > { %v2976_v39 = vsel %vm2785_vm0, 0.0, %v2884_v33  ;;  %v6094_v48 = vpop.f32.mrb[128].mxu1  ;;  %v2885_v1 = vrot.slane %v2109_v26, 7 }
 0x213   : > { %v6096_v61 = vadd.f32 %v2976_v39, %v2107_v23  ;;  %v2355_v21 = vpop.f32.mrb[129].mxu1  ;;  %v6956_v23 = vld [vmem:[#allocation10_spill] sm:$0xff] }
 0x214   : > { %v6098_v15 = vpop.f32.mrb[130].mxu1  ;;  %v2886_v49 = vsel %vm2785_vm0, %v2884_v33, %v2885_v1 }
 0x215   : > { %6950 = vst [vmem:[#allocation5_spill] sm:$0xff] %v6096_v61  ;;  %6951 = vst [vmem:[#allocation6_spill] sm:$0xff] %v6098_v15  ;;  %v6101_v38 = vadd.f32 %v2886_v49, %v2111_v44  ;;  %v2358_v50 = vpop.f32.mrb[131].mxu1  ;;  %v1761_v36 = vpop.f32.mrb[116].mxu0  ;;  %v6969_v61 = vld [vmem:[#allocation17_spill] sm:$0xff]  ;;  %v3441_v15 = vld [vmem:[%s6222_s28 + $0x38] sm:$0xff] }
 0x216   : > { %v2115_v6 = vadd.f32 %v6953_v52, %v1761_v36  ;;  %v1763_v9 = vpop.f32.mrb[117].mxu0  ;;  %v6959_v36 = vld [vmem:[#allocation11_spill] sm:$0xff]  ;;  %3513 = vst [vmem:[%s6243_s10 + $0x70] sm:$0xff] %v3441_v15 }
 0x217   : > { %6952 = vst [vmem:[#allocation51_spill] sm:$0xff] %v6101_v38  ;;  %v2117_v29 = vadd.f32 %v6954_v18, %v1763_v9  ;;  %v1765_v42 = vpop.f32.mrb[118].mxu0  ;;  %v6960_v9 = vld [vmem:[#allocation12_spill] sm:$0xff]  ;;  %v3448_v15 = vld [vmem:[%s6222_s28 + $0x70] sm:$0xff] }
 0x218   : > { %v2887_v30 = vrot.slane %v2115_v6, 7  ;;  %v2119_v51 = vadd.f32 %v6955_v32, %v1765_v42  ;;  %v1767_v11 = vpop.f32.mrb[119].mxu0  ;;  %3527 = vst [vmem:[%s6243_s10 + $0xe0] sm:$0xff] %v3448_v15  ;;  %v3457_v15 = vld [vmem:[%s6222_s28 + $0xb8] sm:$0xff] }
 0x219   : > { %v2121_v43 = vadd.f32 %v6956_v23, %v1767_v11  ;;  %v6962_v11 = vld [vmem:[#allocation14_spill] sm:$0xff]  ;;  %3545 = vst [vmem:[%s6243_s10 + $0x170] sm:$0xff] %v3457_v15  ;;  %v3465_v15 = vld [vmem:[%s6222_s28 + $0xf8] sm:$0xff] }
 0x21a   : > { %v6107_v19 = vpop.f32.mrb[132].mxu1  ;;  %v2888_v33 = vsel %vm2785_vm0, %v2885_v1, %v2887_v30  ;;  %v2889_v26 = vrot.slane %v2119_v51, 7  ;;  %v6961_v1 = vld [vmem:[#allocation13_spill] sm:$0xff]  ;;  %3561 = vst [vmem:[%s6243_s10 + $0x1f0] sm:$0xff] %v3465_v15  ;;  %v6996_v15 = vld [vmem:[#allocation28_spill] sm:$0xff] }
 0x21b   : > { %v6110_v47 = vadd.f32 %v2888_v33, %v2117_v29  ;;  %v2363_v54 = vpop.f32.mrb[133].mxu1 }
 0x21c   : > { %v6112_v44 = vpop.f32.mrb[134].mxu1  ;;  %v2890_v39 = vsel %vm2785_vm0, %v2887_v30, %v2889_v26 }
 0x21d   : > { %6957 = vst [vmem:[#allocation7_spill] sm:$0xff] %v6110_v47  ;;  %v6115_v21 = vadd.f32 %v2890_v39, %v2121_v43  ;;  %v2366_v49 = vpop.f32.mrb[135].mxu1  ;;  %v1771_v50 = vpop.f32.mrb[120].mxu0 }
 0x21e   : > { %v2125_v52 = vadd.f32 %v6959_v36, %v1771_v50  ;;  %v1773_v6 = vpop.f32.mrb[121].mxu0 }
 0x21f   : > { %6958 = vst [vmem:[#allocation8_spill] sm:$0xff] %v6115_v21  ;;  %v2127_v18 = vadd.f32 %v6960_v9, %v1773_v6  ;;  %v1775_v42 = vpop.f32.mrb[122].mxu0  ;;  %v6967_v6 = vld [vmem:[#allocation15_spill] sm:$0xff] }
 0x220   : > { %v2891_v32 = vrot.slane %v2125_v52, 7  ;;  %v2129_v51 = vadd.f32 %v6961_v1, %v1775_v42  ;;  %v1777_v29 = vpop.f32.mrb[123].mxu0  ;;  %v6968_v1 = vld [vmem:[#allocation16_spill] sm:$0xff] }
 0x221   : > { %v2131_v23 = vadd.f32 %v6962_v11, %v1777_v29 }
 0x222   : > { %v2977_v33 = vsel %vm2785_vm0, 0.0, %v2891_v32  ;;  %v6122_v54 = vpop.f32.mrb[136].mxu1  ;;  %v2892_v30 = vrot.slane %v2129_v51, 7 }
 0x223   : > { %6963 = vst [vmem:[#allocation9_spill] sm:$0xff] %v6122_v54  ;;  %v6124_v43 = vadd.f32 %v2977_v33, %v2127_v18  ;;  %v2371_v26 = vpop.f32.mrb[137].mxu1  ;;  %v6970_v33 = vld [vmem:[#allocation18_spill] sm:$0xff] }
 0x224   : > { %v6126_v39 = vpop.f32.mrb[138].mxu1  ;;  %v2893_v49 = vsel %vm2785_vm0, %v2891_v32, %v2892_v30 }
 0x225   : > { %6964 = vst [vmem:[#allocation10_spill] sm:$0xff] %v6124_v43  ;;  %6965 = vst [vmem:[#allocation11_spill] sm:$0xff] %v6126_v39  ;;  %v6129_v50 = vadd.f32 %v2893_v49, %v2131_v23  ;;  %v2374_v36 = vpop.f32.mrb[139].mxu1  ;;  %v1781_v52 = vpop.f32.mrb[124].mxu0 }
 0x226   : > { %v2135_v9 = vadd.f32 %v6967_v6, %v1781_v52  ;;  %v1783_v42 = vpop.f32.mrb[125].mxu0 }
 0x227   : > { %6966 = vst [vmem:[#allocation12_spill] sm:$0xff] %v6129_v50  ;;  %v2137_v29 = vadd.f32 %v6968_v1, %v1783_v42  ;;  %v1785_v11 = vpop.f32.mrb[126].mxu0 }
 0x228   : > { %v2894_v38 = vrot.slane %v2135_v9, 7  ;;  %v2139_v51 = vadd.f32 %v6969_v61, %v1785_v11  ;;  %v1787_v18 = vpop.f32.mrb[127].mxu0 }
 0x229   : > { %v2141_v26 = vadd.f32 %v6970_v33, %v1787_v18 }
 0x22a   : > { %v6135_v43 = vpop.f32.mrb[140].mxu1  ;;  %v2895_v32 = vsel %vm2785_vm0, %v2892_v30, %v2894_v38  ;;  %v2896_v23 = vrot.slane %v2139_v51, 7 }
 0x22b   : > { %6971 = vst [vmem:[#allocation13_spill] sm:$0xff] %v6135_v43  ;;  %v6138_v49 = vadd.f32 %v2895_v32, %v2137_v29  ;;  %v2379_v36 = vpop.f32.mrb[141].mxu1 }
 0x22c   : > { %v6140_v50 = vpop.f32.mrb[142].mxu1  ;;  %v2897_v52 = vsel %vm2785_vm0, %v2894_v38, %v2896_v23 }
 0x22d   : > { %6972 = vst [vmem:[#allocation14_spill] sm:$0xff] %v6138_v49  ;;  %6973 = vst [vmem:[#allocation15_spill] sm:$0xff] %v6140_v50  ;;  %v6143_v6 = vadd.f32 %v2897_v52, %v2141_v26  ;;  %v2382_v9 = vpop.f32.mrb[143].mxu1  ;;  %v1824_v42 = vpop.f32.mrb[0].mxu0 }
 0x22e   : > { %v2786_v61 = vrot.slane %v1824_v42, 7  ;;  %v1826_v1 = vpop.f32.mrb[1].mxu0 }
 0x22f   : > { %6974 = vst [vmem:[#allocation16_spill] sm:$0xff] %v6143_v6  ;;  %v1828_v11 = vpop.f32.mrb[2].mxu0 }
 0x230   : > { %v2962_v18 = vsel %vm2785_vm0, 0.0, %v2786_v61  ;;  %v2787_v33 = vrot.slane %v1828_v11, 7  ;;  %v1830_v21 = vpop.f32.mrb[3].mxu0 }
 0x231   : > { %v6146_v30 = vadd.f32 %v2962_v18, %v1826_v1 }
 0x232   : > { %v6148_v29 = vpop.f32.mrb[144].mxu1  ;;  %v2788_v51 = vsel %vm2785_vm0, %v2786_v61, %v2787_v33 }
 0x233   : > { %6975 = vst [vmem:[#allocation17_spill] sm:$0xff] %v6148_v29  ;;  %v2387_v32 = vpop.f32.mrb[145].mxu1  ;;  %v6151_v36 = vadd.f32 %v2788_v51, %v1830_v21 }
 0x234   : > { %v6153_v38 = vpop.f32.mrb[146].mxu1 }
 0x235   : > { %6976 = vst [vmem:[#allocation18_spill] sm:$0xff] %v6153_v38  ;;  %v2390_v26 = vpop.f32.mrb[147].mxu1  ;;  %v1834_v23 = vpop.f32.mrb[4].mxu0 }
 0x236   : > { %v2789_v52 = vrot.slane %v1834_v23, 7  ;;  %v1836_v9 = vpop.f32.mrb[5].mxu0 }
 0x237   : > { %v1838_v42 = vpop.f32.mrb[6].mxu0 }
 0x238   : > { %v2790_v6 = vsel %vm2785_vm0, %v2787_v33, %v2789_v52  ;;  %v2791_v11 = vrot.slane %v1838_v42, 7  ;;  %v1840_v49 = vpop.f32.mrb[7].mxu0 }
 0x239   : > { %v6156_v1 = vadd.f32 %v2790_v6, %v1836_v9 }
 0x23a   : > { %v6158_v18 = vpop.f32.mrb[148].mxu1  ;;  %v2792_v61 = vsel %vm2785_vm0, %v2789_v52, %v2791_v11 }
 0x23b   : > { %6977 = vst [vmem:[#allocation52_spill] sm:$0xff] %v6158_v18  ;;  %v2395_v32 = vpop.f32.mrb[149].mxu1  ;;  %v6161_v21 = vadd.f32 %v2792_v61, %v1840_v49 }
 0x23c   : > { %v6163_v51 = vpop.f32.mrb[150].mxu1 }
 0x23d   : > { %6978 = vst [vmem:[#allocation53_spill] sm:$0xff] %v6163_v51  ;;  %v2398_v26 = vpop.f32.mrb[151].mxu1  ;;  %v1844_v47 = vpop.f32.mrb[8].mxu0 }
 0x23e   : > { %v2793_v23 = vrot.slane %v1844_v47, 7  ;;  %v1846_v10 = vpop.f32.mrb[9].mxu0 }
 0x23f   : > { %v1848_v41 = vpop.f32.mrb[10].mxu0 }
 0x240   : > { %v2963_v33 = vsel %vm2785_vm0, 0.0, %v2793_v23  ;;  %v2794_v42 = vrot.slane %v1848_v41, 7  ;;  %v1850_v0 = vpop.f32.mrb[11].mxu0 }
 0x241   : > { %v6166_v6 = vadd.f32 %v2963_v33, %v1846_v10 }
 0x242   : > { %v6168_v9 = vpop.f32.mrb[152].mxu1  ;;  %v2795_v52 = vsel %vm2785_vm0, %v2793_v23, %v2794_v42 }
 0x243   : > { %6979 = vst [vmem:[#allocation54_spill] sm:$0xff] %v6168_v9  ;;  %v2403_v11 = vpop.f32.mrb[153].mxu1  ;;  %v6171_v49 = vadd.f32 %v2795_v52, %v1850_v0 }
 0x244   : > { %v6173_v61 = vpop.f32.mrb[154].mxu1 }
 0x245   : > { %6980 = vst [vmem:[#allocation55_spill] sm:$0xff] %v6173_v61  ;;  %v2406_v32 = vpop.f32.mrb[155].mxu1  ;;  %v1854_v26 = vpop.f32.mrb[12].mxu0 }
 0x246   : > { %v2796_v47 = vrot.slane %v1854_v26, 7  ;;  %v1856_v8 = vpop.f32.mrb[13].mxu0 }
 0x247   : > { %v1858_v38 = vpop.f32.mrb[14].mxu0 }
 0x248   : > { %v2797_v51 = vsel %vm2785_vm0, %v2794_v42, %v2796_v47  ;;  %v2798_v41 = vrot.slane %v1858_v38, 7  ;;  %v1860_v29 = vpop.f32.mrb[15].mxu0 }
 0x249   : > { %v6176_v10 = vadd.f32 %v2797_v51, %v1856_v8 }
 0x24a   : > { %v6178_v33 = vpop.f32.mrb[156].mxu1  ;;  %v2799_v23 = vsel %vm2785_vm0, %v2796_v47, %v2798_v41 }
 0x24b   : > { %6981 = vst [vmem:[#allocation56_spill] sm:$0xff] %v6178_v33  ;;  %v2411_v11 = vpop.f32.mrb[157].mxu1  ;;  %v6181_v0 = vadd.f32 %v2799_v23, %v1860_v29 }
 0x24c   : > { %v6183_v52 = vpop.f32.mrb[158].mxu1 }
 0x24d   : > { %6982 = vst [vmem:[#allocation57_spill] sm:$0xff] %v6183_v52  ;;  %v2414_v32 = vpop.f32.mrb[159].mxu1  ;;  %v1864_v61 = vpop.f32.mrb[16].mxu0 }
 0x24e   : > { %v2800_v26 = vrot.slane %v1864_v61, 7  ;;  %v1866_v9 = vpop.f32.mrb[17].mxu0 }
 0x24f   : > { %v1868_v18 = vpop.f32.mrb[18].mxu0 }
 0x250   : > { %v2964_v42 = vsel %vm2785_vm0, 0.0, %v2800_v26  ;;  %v2801_v38 = vrot.slane %v1868_v18, 7  ;;  %v1870_v56 = vpop.f32.mrb[19].mxu0 }
 0x251   : > { %v6186_v8 = vadd.f32 %v2964_v42, %v1866_v9 }
 0x252   : > { %v6188_v51 = vpop.f32.mrb[160].mxu1  ;;  %v2802_v47 = vsel %vm2785_vm0, %v2800_v26, %v2801_v38 }
 0x253   : > { %6983 = vst [vmem:[#allocation58_spill] sm:$0xff] %v6188_v51  ;;  %v2419_v41 = vpop.f32.mrb[161].mxu1  ;;  %v6191_v29 = vadd.f32 %v2802_v47, %v1870_v56 }
 0x254   : > { %v6193_v23 = vpop.f32.mrb[162].mxu1 }
 0x255   : > { %6984 = vst [vmem:[#allocation59_spill] sm:$0xff] %v6193_v23  ;;  %v2422_v11 = vpop.f32.mrb[163].mxu1  ;;  %v1874_v32 = vpop.f32.mrb[20].mxu0 }
 0x256   : > { %v2803_v61 = vrot.slane %v1874_v32, 7  ;;  %v1876_v52 = vpop.f32.mrb[21].mxu0 }
 0x257   : > { %v1878_v33 = vpop.f32.mrb[22].mxu0 }
 0x258   : > { %v2804_v53 = vsel %vm2785_vm0, %v2801_v38, %v2803_v61  ;;  %v2805_v18 = vrot.slane %v1878_v33, 7  ;;  %v1880_v9 = vpop.f32.mrb[23].mxu0 }
 0x259   : > { %v6196_v42 = vadd.f32 %v2804_v53, %v1876_v52 }
 0x25a   : > { %v6198_v51 = vpop.f32.mrb[164].mxu1  ;;  %v2806_v56 = vsel %vm2785_vm0, %v2803_v61, %v2805_v18 }
 0x25b   : > { %6985 = vst [vmem:[#allocation60_spill] sm:$0xff] %v6198_v51  ;;  %v2427_v26 = vpop.f32.mrb[165].mxu1  ;;  %v6201_v47 = vadd.f32 %v2806_v56, %v1880_v9  ;;  %v6987_v9 = vld [vmem:[#allocation21_spill] sm:$0xff] }
 0x25c   : > { %v6203_v41 = vpop.f32.mrb[166].mxu1 }
 0x25d   : > { %6986 = vst [vmem:[#allocation61_spill] sm:$0xff] %v6203_v41  ;;  %v2430_v11 = vpop.f32.mrb[167].mxu1  ;;  %v1884_v32 = vpop.f32.mrb[24].mxu0 }
 0x25e   : > { %v2807_v23 = vrot.slane %v1884_v32, 7  ;;  %v1886_v38 = vpop.f32.mrb[25].mxu0  ;;  %v6988_v32 = vld [vmem:[#allocation19_spill] sm:$0xff] }
 0x25f   : > { %v1888_v12 = vpop.f32.mrb[26].mxu0 }
 0x260   : > { %v2965_v33 = vsel %vm2785_vm0, 0.0, %v2807_v23  ;;  %v2808_v53 = vrot.slane %v1888_v12, 7  ;;  %v1890_v52 = vpop.f32.mrb[27].mxu0  ;;  %v6989_v12 = vld [vmem:[#allocation22_spill] sm:$0xff] }
 0x261   : > { %v6207_v16 = vadd.f32 %v2965_v33, %v1886_v38 }
 0x262   : > { %v4088_v61 = vpop.f32.mrb[168].mxu1  ;;  %v2809_v18 = vsel %vm2785_vm0, %v2807_v23, %v2808_v53 }
 0x263   : > { %v2475_v56 = vadd.f32 %v4088_v61, %v6987_v9  ;;  %v2466_v26 = vpop.f32.mrb[169].mxu1  ;;  %v6216_v11 = vadd.f32 %v2809_v18, %v1890_v52  ;;  %v6990_v61 = vld [vmem:[#allocation20_spill] sm:$0xff] }
 0x264   : > { %v2467_v41 = vadd.f32 %v2466_v26, %v6988_v32  ;;  %v4089_v51 = vpop.f32.mrb[170].mxu1 }
 0x265   : > { %v2478_v38 = vadd.f32 %v4089_v51, %v6989_v12  ;;  %v2469_v23 = vpop.f32.mrb[171].mxu1  ;;  %v1894_v33 = vpop.f32.mrb[28].mxu0  ;;  %v3110_v39 = vrot.slane %v2475_v56, 1  ;;  %v6229_v51 = vld [vmem:[%s6895_s5] ss:$0 sm:$0xff]  ;;  %v3436_v56 = vld [vmem:[%s6222_s28 + $0x10] sm:$0xff] }
 0x266   : > { %v2470_v9 = vadd.f32 %v2469_v23, %v6990_v61  ;;  %v2810_v52 = vrot.slane %v1894_v33, 7  ;;  %v1896_v18 = vpop.f32.mrb[29].mxu0  ;;  %v3107_v26 = vrot.slane %v2467_v41, 1  ;;  %v3434_v33 = vld [vmem:[%s6222_s28] sm:$0xff]  ;;  %v3435_v61 = vld [vmem:[%s6222_s28 + $0x8] sm:$0xff]  ;;  %3503 = vst [vmem:[%s6243_s10 + $0x20] sm:$0xff] %v3436_v56 }
 0x267   : > { %v3112_v32 = vrot.slane %v2478_v38, 1  ;;  %v1898_v12 = vpop.f32.mrb[30].mxu0  ;;  %3498 = vst [vmem:[%s6243_s10] sm:$0xff] %v3434_v33  ;;  %3501 = vst [vmem:[%s6243_s10 + $0x10] sm:$0xff] %v3435_v61  ;;  %v3442_v33 = vld [vmem:[%s6222_s28 + $0x40] sm:$0xff]  ;;  %v3443_v56 = vld [vmem:[%s6222_s28 + $0x48] sm:$0xff] }
 0x268   : > { %v3108_v50 = vrot.slane %v2470_v9, 1  ;;  %v2811_v54 = vsel %vm2785_vm0, %v2808_v53, %v2810_v52  ;;  %v2812_v43 = vrot.slane %v1898_v12, 7  ;;  %v1900_v23 = vpop.f32.mrb[31].mxu0  ;;  %v3439_v9 = vld [vmem:[%s6222_s28 + $0x28] sm:$0xff]  ;;  %v6991_v61 = vld [vmem:[#allocation25_spill] sm:$0xff]  ;;  %3515 = vst [vmem:[%s6243_s10 + $0x80] sm:$0xff] %v3442_v33 }
 0x269   : > { %v3113_v41 = vsel %vm3106_vm1, %v3110_v39, %v3112_v32  ;;  %v3283_v38 = vsel %vm3106_vm1, %v3112_v32, 0.0  ;;  %v6237_v22 = vadd.f32 %v2811_v54, %v1896_v18  ;;  %3509 = vst [vmem:[%s6243_s10 + $0x50] sm:$0xff] %v3439_v9  ;;  %3517 = vst [vmem:[%s6243_s10 + $0x90] sm:$0xff] %v3443_v56  ;;  %v3449_v33 = vld [vmem:[%s6222_s28 + $0x78] sm:$0xff] }
 0x26a   : > { %v3301_v53 = vadd.f32 %v3113_v41, %v6156_v1  ;;  %v3302_v54 = vadd.f32 %v3283_v38, %v6161_v21  ;;  %v3109_v18 = vsel %vm3106_vm1, %v3107_v26, %v3108_v50  ;;  %v3111_v32 = vsel %vm3106_vm1, %v3108_v50, %v3110_v39  ;;  %v4092_v12 = vpop.f32.mrb[172].mxu1  ;;  %v6992_v41 = vld [vmem:[#allocation23_spill] sm:$0xff]  ;;  %3529 = vst [vmem:[%s6243_s10 + $0xf0] sm:$0xff] %v3449_v33 }
 0x26b   : > { %v3299_v1 = vadd.f32 %v3109_v18, %v6146_v30  ;;  %v3300_v21 = vadd.f32 %v3111_v32, %v6151_v36  ;;  %v6261_v26 = vadd.f32 %v4092_v12, %v6991_v61  ;;  %v2482_v39 = vpop.f32.mrb[173].mxu1  ;;  %v2813_v50 = vsel %vm2785_vm0, %v2810_v52, %v2812_v43  ;;  %v3446_v52 = vld [vmem:[%s6222_s28 + $0x60] sm:$0xff]  ;;  %v6993_v18 = vld [vmem:[#allocation26_spill] sm:$0xff] }
 0x26c   : > { %v3372_v30 = vadd.f32 %v6229_v51, %v3301_v53  ;;  %v3373_v36 = vadd.f32 %v6229_v51, %v3302_v54  ;;  %v6273_v38 = vadd.f32 %v2482_v39, %v6992_v41  ;;  %v4093_v9 = vpop.f32.mrb[174].mxu1  ;;  %v6275_v43 = vadd.f32 %v2813_v50, %v1900_v23  ;;  %v3450_v61 = vld [vmem:[%s6222_s28 + $0x80] sm:$0xff]  ;;  %v3451_v39 = vld [vmem:[%s6222_s28 + $0x88] sm:$0xff]  ;;  %3523 = vst [vmem:[%s6243_s10 + $0xc0] sm:$0xff] %v3446_v52  ;;  %v3453_v41 = vld [vmem:[%s6222_s28 + $0x98] sm:$0xff] }
 0x26d   : > { %v3370_v53 = vadd.f32 %v6229_v51, %v3299_v1  ;;  %v3371_v54 = vadd.f32 %v6229_v51, %v3300_v21  ;;  %v2494_v32 = vadd.f32 %v4093_v9, %v6993_v18  ;;  %v2485_v23 = vpop.f32.mrb[175].mxu1  ;;  %v6286_v12 = vpop.f32.mrb[32].mxu0  ;;  %v3117_v1 = vrot.slane %v6261_v26, 1  ;;  %v6994_v21 = vld [vmem:[#allocation24_spill] sm:$0xff]  ;;  %v3454_v9 = vld [vmem:[%s6222_s28 + $0xa0] sm:$0xff]  ;;  %3531 = vst [vmem:[%s6243_s10 + $0x100] sm:$0xff] %v3450_v61 }
 0x26e   : > { %3504 = vst.msk [vmem:[%s6243_s10 + $0x28] sm:$0xff] %vm3499_vm2, %v3372_v30  ;;  %3506 = vst.msk [vmem:[%s6243_s10 + $0x38] sm:$0xff] %vm3499_vm2, %v3373_v36  ;;  %v2486_v50 = vadd.f32 %v2485_v23, %v6994_v21  ;;  %v2814_v56 = vrot.slane %v6286_v12, 7  ;;  %v1906_v27 = vpop.f32.mrb[33].mxu0  ;;  %v3114_v26 = vrot.slane %v6273_v38, 1  ;;  %v3455_v52 = vld [vmem:[%s6222_s28 + $0xa8] sm:$0xff] }
 0x26f   : > { %3533 = vst [vmem:[%s6243_s10 + $0x110] sm:$0xff] %v3451_v39  ;;  %3500 = vst.msk [vmem:[%s6243_s10 + $0x8] sm:$0xff] %vm3499_vm2, %v3370_v53  ;;  %v3119_v30 = vrot.slane %v2494_v32, 1  ;;  %v6312_v36 = vpop.f32.mrb[34].mxu0  ;;  %v3458_v32 = vld [vmem:[%s6222_s28 + $0xc0] sm:$0xff]  ;;  %v3459_v23 = vld [vmem:[%s6222_s28 + $0xc8] sm:$0xff] }
 0x270   : > { %3502 = vst.msk [vmem:[%s6243_s10 + $0x18] sm:$0xff] %vm3499_vm2, %v3371_v54  ;;  %3537 = vst [vmem:[%s6243_s10 + $0x130] sm:$0xff] %v3453_v41  ;;  %v3115_v53 = vrot.slane %v2486_v50, 1  ;;  %v2966_v54 = vsel %vm2785_vm0, 0.0, %v2814_v56  ;;  %v2815_v38 = vrot.slane %v6312_v36, 7  ;;  %v1910_v18 = vpop.f32.mrb[35].mxu0 }
 0x271   : > { %3539 = vst [vmem:[%s6243_s10 + $0x140] sm:$0xff] %v3454_v9  ;;  %3541 = vst [vmem:[%s6243_s10 + $0x150] sm:$0xff] %v3455_v52  ;;  %v3120_v12 = vsel %vm3106_vm1, %v3117_v1, %v3119_v30  ;;  %v3284_v33 = vsel %vm3106_vm1, %v3119_v30, 0.0  ;;  %v6329_v61 = vadd.f32 %v2966_v54, %v1906_v27  ;;  %v3460_v39 = vld [vmem:[%s6222_s28 + $0xd0] sm:$0xff]  ;;  %v3461_v21 = vld [vmem:[%s6222_s28 + $0xd8] sm:$0xff] }
 0x272   : > { %v3462_v50 = vld [vmem:[%s6222_s28 + $0xe0] sm:$0xff]  ;;  %3547 = vst [vmem:[%s6243_s10 + $0x180] sm:$0xff] %v3458_v32  ;;  %3549 = vst [vmem:[%s6243_s10 + $0x190] sm:$0xff] %v3459_v23  ;;  %v3305_v40 = vadd.f32 %v3120_v12, %v6176_v10  ;;  %v3306_v41 = vadd.f32 %v3284_v33, %v6181_v0  ;;  %v3116_v9 = vsel %vm3106_vm1, %v3114_v26, %v3115_v53  ;;  %v4096_v27 = vpop.f32.mrb[176].mxu1  ;;  %v3463_v52 = vld [vmem:[%s6222_s28 + $0xe8] sm:$0xff] }
 0x273   : > { %v3118_v30 = vsel %vm3106_vm1, %v3115_v53, %v3117_v1  ;;  %3551 = vst [vmem:[%s6243_s10 + $0x1a0] sm:$0xff] %v3460_v39  ;;  %3553 = vst [vmem:[%s6243_s10 + $0x1b0] sm:$0xff] %v3461_v21  ;;  %v3303_v10 = vadd.f32 %v3116_v9, %v6166_v6  ;;  %v6349_v26 = vadd.f32 %v4096_v27, %v5899_v14  ;;  %v2498_v1 = vpop.f32.mrb[177].mxu1  ;;  %v3466_v54 = vld [vmem:[%s6222_s28 + $0x100] sm:$0xff]  ;;  %v3467_v32 = vld [vmem:[%s6222_s28 + $0x108] sm:$0xff] }
 0x274   : > { %3555 = vst [vmem:[%s6243_s10 + $0x1c0] sm:$0xff] %v3462_v50  ;;  %v3304_v0 = vadd.f32 %v3118_v30, %v6171_v49  ;;  %v2816_v53 = vsel %vm2785_vm0, %v2814_v56, %v2815_v38  ;;  %v3468_v23 = vld [vmem:[%s6222_s28 + $0x110] sm:$0xff]  ;;  %3557 = vst [vmem:[%s6243_s10 + $0x1d0] sm:$0xff] %v3463_v52  ;;  %v3376_v6 = vadd.f32 %v6229_v51, %v3305_v40  ;;  %v4097_v33 = vpop.f32.mrb[178].mxu1  ;;  %v3469_v39 = vld [vmem:[%s6222_s28 + $0x118] sm:$0xff] }
 0x275   : > { %v3377_v14 = vadd.f32 %v6229_v51, %v3306_v41  ;;  %v6995_v49 = vld [vmem:[#allocation27_spill] sm:$0xff]  ;;  %v6365_v56 = vadd.f32 %v2816_v53, %v1910_v18  ;;  %v3470_v21 = vld [vmem:[%s6222_s28 + $0x120] sm:$0xff]  ;;  %v3471_v50 = vld [vmem:[%s6222_s28 + $0x128] sm:$0xff]  ;;  %3563 = vst [vmem:[%s6243_s10 + $0x200] sm:$0xff] %v3466_v54  ;;  %v3374_v40 = vadd.f32 %v6229_v51, %v3303_v10  ;;  %v2510_v9 = vadd.f32 %v4097_v33, %v5903_v28  ;;  %v2501_v18 = vpop.f32.mrb[179].mxu1  ;;  %v6376_v30 = vpop.f32.mrb[36].mxu0 }
 0x276   : > { %v6363_v12 = vadd.f32 %v2498_v1, %v6995_v49  ;;  %3565 = vst [vmem:[%s6243_s10 + $0x210] sm:$0xff] %v3467_v32  ;;  %3567 = vst [vmem:[%s6243_s10 + $0x220] sm:$0xff] %v3468_v23  ;;  %v3375_v41 = vadd.f32 %v6229_v51, %v3304_v0  ;;  %v3472_v27 = vld [vmem:[%s6222_s28 + $0x130] sm:$0xff]  ;;  %v3473_v52 = vld [vmem:[%s6222_s28 + $0x138] sm:$0xff]  ;;  %v3124_v28 = vrot.slane %v6349_v26, 1  ;;  %v2502_v10 = vadd.f32 %v2501_v18, %v6996_v15  ;;  %v1916_v1 = vpop.f32.mrb[37].mxu0 }
 0x277   : > { %3569 = vst [vmem:[%s6243_s10 + $0x230] sm:$0xff] %v3469_v39  ;;  %3571 = vst [vmem:[%s6243_s10 + $0x240] sm:$0xff] %v3470_v21  ;;  %v2817_v0 = vrot.slane %v6376_v30, 7  ;;  %v3475_v53 = vld [vmem:[%s6222_s28 + $0x148] sm:$0xff]  ;;  %v3476_v54 = vld [vmem:[%s6222_s28 + $0x150] sm:$0xff]  ;;  %v3126_v23 = vrot.slane %v2510_v9, 1 }
 0x278   : > { %3573 = vst [vmem:[%s6243_s10 + $0x250] sm:$0xff] %v3471_v50  ;;  %3512 = vst.msk [vmem:[%s6243_s10 + $0x68] sm:$0xff] %vm3499_vm2, %v3376_v6  ;;  %v3477_v32 = vld [vmem:[%s6222_s28 + $0x158] sm:$0xff]  ;;  %v3121_v26 = vrot.slane %v6363_v12, 1  ;;  %v1918_v6 = vpop.f32.mrb[38].mxu0  ;;  %v3479_v49 = vld [vmem:[%s6222_s28 + $0x168] sm:$0xff] }
 0x279   : > { %3514 = vst.msk [vmem:[%s6243_s10 + $0x78] sm:$0xff] %vm3499_vm2, %v3377_v14  ;;  %3575 = vst [vmem:[%s6243_s10 + $0x260] sm:$0xff] %v3472_v27  ;;  %v3478_v14 = vld [vmem:[%s6222_s28 + $0x160] sm:$0xff]  ;;  %v3480_v33 = vld [vmem:[%s6222_s28 + $0x170] sm:$0xff]  ;;  %v3122_v39 = vrot.slane %v2502_v10, 1  ;;  %v2818_v12 = vsel %vm2785_vm0, %v2815_v38, %v2817_v0  ;;  %v2819_v21 = vrot.slane %v1918_v6, 7  ;;  %v3127_v18 = vsel %vm3106_vm1, %v3124_v28, %v3126_v23 }
 0x27a   : > { %3577 = vst [vmem:[%s6243_s10 + $0x270] sm:$0xff] %v3473_v52  ;;  %3508 = vst.msk [vmem:[%s6243_s10 + $0x48] sm:$0xff] %vm3499_vm2, %v3374_v40  ;;  %v1920_v50 = vpop.f32.mrb[39].mxu0  ;;  %v3481_v40 = vld [vmem:[%s6222_s28 + $0x178] sm:$0xff]  ;;  %v3483_v9 = vld [vmem:[%s6222_s28 + $0x188] sm:$0xff]  ;;  %v3285_v36 = vsel %vm3106_vm1, %v3126_v23, 0.0  ;;  %v6419_v30 = vadd.f32 %v2818_v12, %v1916_v1  ;;  %v3309_v34 = vadd.f32 %v3127_v18, %v6196_v42 }
 0x27b   : > { %3510 = vst.msk [vmem:[%s6243_s10 + $0x58] sm:$0xff] %vm3499_vm2, %v3375_v41  ;;  %3581 = vst [vmem:[%s6243_s10 + $0x290] sm:$0xff] %v3475_v53  ;;  %v3482_v41 = vld [vmem:[%s6222_s28 + $0x180] sm:$0xff]  ;;  %v3484_v38 = vld [vmem:[%s6222_s28 + $0x190] sm:$0xff]  ;;  %v3310_v15 = vadd.f32 %v3285_v36, %v6201_v47  ;;  %v3123_v10 = vsel %vm3106_vm1, %v3121_v26, %v3122_v39  ;;  %v3125_v1 = vsel %vm3106_vm1, %v3122_v39, %v3124_v28  ;;  %v4100_v53 = vpop.f32.mrb[180].mxu1 }
 0x27c   : > { %3583 = vst [vmem:[%s6243_s10 + $0x2a0] sm:$0xff] %v3476_v54  ;;  %3585 = vst [vmem:[%s6243_s10 + $0x2b0] sm:$0xff] %v3477_v32  ;;  %v3485_v27 = vld [vmem:[%s6222_s28 + $0x198] sm:$0xff]  ;;  %v3486_v52 = vld [vmem:[%s6222_s28 + $0x1a0] sm:$0xff]  ;;  %v3307_v42 = vadd.f32 %v3123_v10, %v6186_v8  ;;  %v3308_v47 = vadd.f32 %v3125_v1, %v6191_v29  ;;  %v2523_v26 = vadd.f32 %v4100_v53, %v5915_v35  ;;  %v2514_v28 = vpop.f32.mrb[181].mxu1 }
 0x27d   : > { %3587 = vst [vmem:[%s6243_s10 + $0x2c0] sm:$0xff] %v3478_v14  ;;  %3589 = vst [vmem:[%s6243_s10 + $0x2d0] sm:$0xff] %v3479_v49  ;;  %v3487_v54 = vld [vmem:[%s6222_s28 + $0x1a8] sm:$0xff]  ;;  %v3488_v32 = vld [vmem:[%s6222_s28 + $0x1b0] sm:$0xff]  ;;  %v2820_v6 = vsel %vm2785_vm0, %v2817_v0, %v2819_v21  ;;  %v3380_v8 = vadd.f32 %v6229_v51, %v3309_v34  ;;  %v3381_v29 = vadd.f32 %v6229_v51, %v3310_v15  ;;  %v4101_v39 = vpop.f32.mrb[182].mxu1  ;;  %v1924_v18 = vpop.f32.mrb[40].mxu0 }
 0x27e   : > { %3591 = vst [vmem:[%s6243_s10 + $0x2e0] sm:$0xff] %v3480_v33  ;;  %3593 = vst [vmem:[%s6243_s10 + $0x2f0] sm:$0xff] %v3481_v40  ;;  %v3489_v23 = vld [vmem:[%s6222_s28 + $0x1b8] sm:$0xff]  ;;  %v3490_v14 = vld [vmem:[%s6222_s28 + $0x1c0] sm:$0xff]  ;;  %v2515_v35 = vadd.f32 %v2514_v28, %v5907_v46  ;;  %v6450_v0 = vadd.f32 %v2820_v6, %v1920_v50  ;;  %v3379_v46 = vadd.f32 %v6229_v51, %v3308_v47  ;;  %v2517_v50 = vpop.f32.mrb[183].mxu1  ;;  %v1926_v34 = vpop.f32.mrb[41].mxu0 }
 0x27f   : > { %3595 = vst [vmem:[%s6243_s10 + $0x300] sm:$0xff] %v3482_v41  ;;  %3597 = vst [vmem:[%s6243_s10 + $0x310] sm:$0xff] %v3483_v9  ;;  %v3491_v49 = vld [vmem:[%s6222_s28 + $0x1c8] sm:$0xff]  ;;  %v3492_v33 = vld [vmem:[%s6222_s28 + $0x1d0] sm:$0xff]  ;;  %v3378_v41 = vadd.f32 %v6229_v51, %v3307_v42  ;;  %v2526_v9 = vadd.f32 %v4101_v39, %v5919_v4  ;;  %v3131_v4 = vrot.slane %v2523_v26, 1  ;;  %v1928_v10 = vpop.f32.mrb[42].mxu0 }
 0x280   : > { %3599 = vst [vmem:[%s6243_s10 + $0x320] sm:$0xff] %v3484_v38  ;;  %3601 = vst [vmem:[%s6243_s10 + $0x330] sm:$0xff] %v3485_v27  ;;  %v3493_v12 = vld [vmem:[%s6222_s28 + $0x1d8] sm:$0xff]  ;;  %v3494_v21 = vld [vmem:[%s6222_s28 + $0x1e0] sm:$0xff]  ;;  %v2518_v27 = vadd.f32 %v2517_v50, %v5911_v17  ;;  %v3128_v1 = vrot.slane %v2515_v35, 1 }
 0x281   : > { %3603 = vst [vmem:[%s6243_s10 + $0x340] sm:$0xff] %v3486_v52  ;;  %3605 = vst [vmem:[%s6243_s10 + $0x350] sm:$0xff] %v3487_v54  ;;  %v3495_v40 = vld [vmem:[%s6222_s28 + $0x1e8] sm:$0xff]  ;;  %v3496_v36 = vld [vmem:[%s6222_s28 + $0x1f0] sm:$0xff]  ;;  %v2821_v52 = vrot.slane %v1924_v18, 7  ;;  %v3133_v15 = vrot.slane %v2526_v9, 1 }
 0x282   : > { %3607 = vst [vmem:[%s6243_s10 + $0x360] sm:$0xff] %v3488_v32  ;;  %3609 = vst [vmem:[%s6243_s10 + $0x370] sm:$0xff] %v3489_v23  ;;  %v3497_v38 = vld [vmem:[%s6222_s28 + $0x1f8] sm:$0xff]  ;;  %v3129_v53 = vrot.slane %v2518_v27, 1  ;;  %v2822_v32 = vrot.slane %v1928_v10, 7  ;;  %v1930_v23 = vpop.f32.mrb[43].mxu0 }
 0x283   : > { %3611 = vst [vmem:[%s6243_s10 + $0x380] sm:$0xff] %v3490_v14  ;;  %3613 = vst [vmem:[%s6243_s10 + $0x390] sm:$0xff] %v3491_v49  ;;  %v2967_v54 = vsel %vm2785_vm0, 0.0, %v2821_v52  ;;  %v3134_v42 = vsel %vm3106_vm1, %v3131_v4, %v3133_v15  ;;  %v3286_v17 = vsel %vm3106_vm1, %v3133_v15, 0.0  ;;  %v4104_v49 = vpop.f32.mrb[184].mxu1  ;;  %s4569_s28 = scalar_lea.vmem %s4568_s26, 32768 }
 0x284   : > { %3615 = vst [vmem:[%s6243_s10 + $0x3a0] sm:$0xff] %v3492_v33  ;;  %3617 = vst [vmem:[%s6243_s10 + $0x3b0] sm:$0xff] %v3493_v12  ;;  %v6480_v47 = vadd.f32 %v2967_v54, %v1926_v34  ;;  %v3313_v28 = vadd.f32 %v3134_v42, %v6237_v22  ;;  %v3314_v6 = vadd.f32 %v3286_v17, %v6275_v43  ;;  %v2530_v35 = vpop.f32.mrb[185].mxu1  ;;  %p4571_p1 = scmp.lt.s32.totalorder %s4569_s28, %s4563_s18 }
 0x285   : > { %3619 = vst [vmem:[%s6243_s10 + $0x3c0] sm:$0xff] %v3494_v21  ;;  %3621 = vst [vmem:[%s6243_s10 + $0x3d0] sm:$0xff] %v3495_v40  ;;  %v3130_v26 = vsel %vm3106_vm1, %v3128_v1, %v3129_v53  ;;  %v3132_v14 = vsel %vm3106_vm1, %v3129_v53, %v3131_v4  ;;  %v2823_v39 = vsel %vm2785_vm0, %v2821_v52, %v2822_v32  ;;  %v4105_v21 = vpop.f32.mrb[186].mxu1 }
 0x286   : > { %3520 = vst.msk [vmem:[%s6243_s10 + $0xa8] sm:$0xff] %vm3499_vm2, %v3380_v8  ;;  %3522 = vst.msk [vmem:[%s6243_s10 + $0xb8] sm:$0xff] %vm3499_vm2, %v3381_v29  ;;  %v3311_v33 = vadd.f32 %v3130_v26, %v6207_v16  ;;  %v3312_v8 = vadd.f32 %v3132_v14, %v6216_v11  ;;  %v2539_v29 = vadd.f32 %v4104_v49, %v5931_v3  ;;  %p4572_p2 = por %p4571_p1, %p4570_p0 }
 0x287   : > { %3623 = vst [vmem:[%s6243_s10 + $0x3e0] sm:$0xff] %v3496_v36  ;;  %3625 = vst [vmem:[%s6243_s10 + $0x3f0] sm:$0xff] %v3497_v38  ;;  %v3384_v22 = vadd.f32 %v6229_v51, %v3313_v28  ;;  %v3385_v43 = vadd.f32 %v6229_v51, %v3314_v6  ;;  %v2531_v12 = vadd.f32 %v2530_v35, %v5923_v2 }
 0x288   : > { %3516 = vst.msk [vmem:[%s6243_s10 + $0x88] sm:$0xff] %vm3499_vm2, %v3378_v41  ;;  %3518 = vst.msk [vmem:[%s6243_s10 + $0x98] sm:$0xff] %vm3499_vm2, %v3379_v46  ;;  %v6493_v40 = vadd.f32 %v2823_v39, %v1930_v23  ;;  %v3382_v16 = vadd.f32 %v6229_v51, %v3311_v33  ;;  %v3383_v11 = vadd.f32 %v6229_v51, %v3312_v8  ;;  %v2533_v41 = vpop.f32.mrb[187].mxu1  ;;  %v1934_v46 = vpop.f32.mrb[44].mxu0  ;;  %v3138_v2 = vrot.slane %v2539_v29, 1  ;;  %v6998_v39 = vld [vmem:[#allocation29_spill] sm:$0xff]  ;;  %p4573_p3 = pnand %p4572_p2, %p4566_p13 }
 0x289   : > { %v2542_v3 = vadd.f32 %v4105_v21, %v5935_v45  ;;  %3528 = vst.msk [vmem:[%s6243_s10 + $0xe8] sm:$0xff] %vm3499_vm2, %v3384_v22  ;;  %3530 = vst.msk [vmem:[%s6243_s10 + $0xf8] sm:$0xff] %vm3499_vm2, %v3385_v43  ;;  %v2534_v9 = vadd.f32 %v2533_v41, %v5927_v55  ;;  %v2824_v50 = vrot.slane %v1934_v46, 7  ;;  %v1936_v18 = vpop.f32.mrb[45].mxu0  ;;  %v3135_v27 = vrot.slane %v2531_v12, 1 }
 0x28a   : > { %3524 = vst.msk [vmem:[%s6243_s10 + $0xc8] sm:$0xff] %vm3499_vm2, %v3382_v16  ;;  %3526 = vst.msk [vmem:[%s6243_s10 + $0xd8] sm:$0xff] %vm3499_vm2, %v3383_v11  ;;  %v1938_v38 = vpop.f32.mrb[46].mxu0  ;;  %v4108_v42 = vpop.f32.mrb[188].mxu1 }
 0x28b   : > { %v3140_v36 = vrot.slane %v2542_v3, 1  ;;  %v3136_v52 = vrot.slane %v2534_v9, 1  ;;  %v2825_v45 = vsel %vm2785_vm0, %v2822_v32, %v2824_v50  ;;  %v2826_v34 = vrot.slane %v1938_v38, 7  ;;  %v1940_v4 = vpop.f32.mrb[47].mxu0  ;;  %v2546_v6 = vpop.f32.mrb[189].mxu1 }
 0x28c   : > { %v3000_v55 = vadd.f32 %v2825_v45, %v1936_v18  ;;  %v2555_v28 = vadd.f32 %v4108_v42, %v5947_v13  ;;  %v2547_v14 = vadd.f32 %v2546_v6, %v5939_v31  ;;  %v4109_v49 = vpop.f32.mrb[190].mxu1 }
 0x28d   : > { %v3141_v15 = vsel %vm3106_vm1, %v3138_v2, %v3140_v36  ;;  %v3287_v10 = vsel %vm3106_vm1, %v3140_v36, 0.0  ;;  %v3137_v54 = vsel %vm3106_vm1, %v3135_v27, %v3136_v52  ;;  %v3139_v23 = vsel %vm3106_vm1, %v3136_v52, %v3138_v2  ;;  %v2549_v13 = vpop.f32.mrb[191].mxu1  ;;  %v1944_v35 = vpop.f32.mrb[48].mxu0 }
 0x28e   : > { %v3317_v1 = vadd.f32 %v3141_v15, %v6419_v30  ;;  %v3318_v53 = vadd.f32 %v3287_v10, %v6450_v0  ;;  %v3315_v17 = vadd.f32 %v3137_v54, %v6329_v61  ;;  %v3316_v32 = vadd.f32 %v3139_v23, %v6365_v56  ;;  %v6997_v56 = vld [vmem:[#allocation30_spill] sm:$0xff]  ;;  %v1946_v12 = vpop.f32.mrb[49].mxu0  ;;  %v6999_v15 = vld [vmem:[#allocation33_spill] sm:$0xff]  ;;  %v7000_v23 = vld [vmem:[#allocation31_spill] sm:$0xff] }
 0x28f   : > { %v2827_v26 = vsel %vm2785_vm0, %v2824_v50, %v2826_v34  ;;  %v2558_v29 = vadd.f32 %v4109_v49, %v6997_v56  ;;  %v2550_v22 = vadd.f32 %v2549_v13, %v6998_v39  ;;  %v2828_v43 = vrot.slane %v1944_v35, 7  ;;  %v1948_v16 = vpop.f32.mrb[50].mxu0 }
 0x290   : > { %v3388_v30 = vadd.f32 %v6229_v51, %v3317_v1  ;;  %v3389_v0 = vadd.f32 %v6229_v51, %v3318_v53  ;;  %v3001_v33 = vadd.f32 %v2827_v26, %v1940_v4  ;;  %v3386_v61 = vadd.f32 %v6229_v51, %v3315_v17  ;;  %v1950_v9 = vpop.f32.mrb[51].mxu0 }
 0x291   : > { %v3387_v8 = vadd.f32 %v6229_v51, %v3316_v32  ;;  %v3145_v31 = vrot.slane %v2555_v28, 1  ;;  %v3147_v21 = vrot.slane %v2558_v29, 1  ;;  %v3142_v11 = vrot.slane %v2547_v14, 1 }
 0x292   : > { %3536 = vst.msk [vmem:[%s6243_s10 + $0x128] sm:$0xff] %vm3499_vm2, %v3388_v30  ;;  %3538 = vst.msk [vmem:[%s6243_s10 + $0x138] sm:$0xff] %vm3499_vm2, %v3389_v0  ;;  %v3143_v3 = vrot.slane %v2550_v22, 1  ;;  %v2968_v41 = vsel %vm2785_vm0, 0.0, %v2828_v43  ;;  %v2829_v46 = vrot.slane %v1948_v16, 7  ;;  %v4112_v45 = vpop.f32.mrb[192].mxu1 }
 0x293   : > { %3532 = vst.msk [vmem:[%s6243_s10 + $0x108] sm:$0xff] %vm3499_vm2, %v3386_v61  ;;  %3534 = vst.msk [vmem:[%s6243_s10 + $0x118] sm:$0xff] %vm3499_vm2, %v3387_v8  ;;  %v3148_v50 = vsel %vm3106_vm1, %v3145_v31, %v3147_v21  ;;  %v3288_v18 = vsel %vm3106_vm1, %v3147_v21, 0.0  ;;  %v3002_v2 = vadd.f32 %v2968_v41, %v1946_v12  ;;  %v2571_v10 = vadd.f32 %v4112_v45, %v6999_v15  ;;  %v2562_v1 = vpop.f32.mrb[193].mxu1  ;;  %v7002_v0 = vld [vmem:[#allocation32_spill] sm:$0xff] }
 0x294   : > { %v3321_v36 = vadd.f32 %v3148_v50, %v3000_v55  ;;  %v3322_v38 = vadd.f32 %v3288_v18, %v3001_v33  ;;  %v3144_v27 = vsel %vm3106_vm1, %v3142_v11, %v3143_v3  ;;  %v3146_v52 = vsel %vm3106_vm1, %v3143_v3, %v3145_v31  ;;  %v4113_v17 = vpop.f32.mrb[194].mxu1 }
 0x295   : > { %v3319_v34 = vadd.f32 %v3144_v27, %v6480_v47  ;;  %v3320_v4 = vadd.f32 %v3146_v52, %v6493_v40  ;;  %v2830_v53 = vsel %vm2785_vm0, %v2828_v43, %v2829_v46  ;;  %v2563_v42 = vadd.f32 %v2562_v1, %v7000_v23  ;;  %v7001_v40 = vld [vmem:[#allocation34_spill] sm:$0xff]  ;;  %v2565_v26 = vpop.f32.mrb[195].mxu1  ;;  %v1954_v30 = vpop.f32.mrb[52].mxu0 }
 0x296   : > { %v3392_v55 = vadd.f32 %v6229_v51, %v3321_v36  ;;  %v3393_v54 = vadd.f32 %v6229_v51, %v3322_v38  ;;  %v3003_v32 = vadd.f32 %v2830_v53, %v1950_v9  ;;  %v2574_v6 = vadd.f32 %v4113_v17, %v7001_v40  ;;  %v1956_v33 = vpop.f32.mrb[53].mxu0  ;;  %v7003_v9 = vld [vmem:[#allocation37_spill] sm:$0xff]  ;;  %v7004_v36 = vld [vmem:[#allocation35_spill] sm:$0xff]  ;;  %v7005_v1 = vld [vmem:[#allocation38_spill] sm:$0xff] }
 0x297   : > { %v3390_v47 = vadd.f32 %v6229_v51, %v3319_v34  ;;  %v3391_v28 = vadd.f32 %v6229_v51, %v3320_v4  ;;  %v2566_v14 = vadd.f32 %v2565_v26, %v7002_v0  ;;  %v2831_v49 = vrot.slane %v1954_v30, 7  ;;  %v1958_v56 = vpop.f32.mrb[54].mxu0 }
 0x298   : > { %3544 = vst.msk [vmem:[%s6243_s10 + $0x168] sm:$0xff] %vm3499_vm2, %v3392_v55  ;;  %3546 = vst.msk [vmem:[%s6243_s10 + $0x178] sm:$0xff] %vm3499_vm2, %v3393_v54  ;;  %v3152_v61 = vrot.slane %v2571_v10, 1  ;;  %v3154_v8 = vrot.slane %v2574_v6, 1  ;;  %v3149_v29 = vrot.slane %v2563_v42, 1  ;;  %v2833_v39 = vrot.slane %v1958_v56, 7 }
 0x299   : > { %3540 = vst.msk [vmem:[%s6243_s10 + $0x148] sm:$0xff] %vm3499_vm2, %v3390_v47  ;;  %3542 = vst.msk [vmem:[%s6243_s10 + $0x158] sm:$0xff] %vm3499_vm2, %v3391_v28  ;;  %v3150_v13 = vrot.slane %v2566_v14, 1  ;;  %v2832_v35 = vsel %vm2785_vm0, %v2829_v46, %v2831_v49  ;;  %v1960_v22 = vpop.f32.mrb[55].mxu0  ;;  %v7006_v54 = vld [vmem:[#allocation36_spill] sm:$0xff] }
 0x29a   : > { %v3004_v43 = vadd.f32 %v2832_v35, %v1956_v33  ;;  %v3155_v12 = vsel %vm3106_vm1, %v3152_v61, %v3154_v8  ;;  %v4116_v16 = vpop.f32.mrb[196].mxu1  ;;  %v2834_v11 = vsel %vm2785_vm0, %v2831_v49, %v2833_v39  ;;  %v3289_v45 = vsel %vm3106_vm1, %v3154_v8, 0.0 }
 0x29b   : > { %v3151_v31 = vsel %vm3106_vm1, %v3149_v29, %v3150_v13  ;;  %v3153_v21 = vsel %vm3106_vm1, %v3150_v13, %v3152_v61  ;;  %v2587_v50 = vadd.f32 %v4116_v16, %v7003_v9  ;;  %v2578_v46 = vpop.f32.mrb[197].mxu1  ;;  %v3005_v52 = vadd.f32 %v2834_v11, %v1960_v22 }
 0x29c   : > { %v3323_v3 = vadd.f32 %v3151_v31, %v3002_v2  ;;  %v3324_v41 = vadd.f32 %v3153_v21, %v3003_v32  ;;  %v3325_v18 = vadd.f32 %v3155_v12, %v3004_v43  ;;  %v2579_v38 = vadd.f32 %v2578_v46, %v7004_v36  ;;  %v4117_v27 = vpop.f32.mrb[198].mxu1 }
 0x29d   : > { %v2581_v15 = vpop.f32.mrb[199].mxu1  ;;  %v1964_v10 = vpop.f32.mrb[56].mxu0  ;;  %v2590_v53 = vadd.f32 %v4117_v27, %v7005_v1  ;;  %v3326_v55 = vadd.f32 %v3289_v45, %v3005_v52  ;;  %v3159_v0 = vrot.slane %v2587_v50, 1 }
 0x29e   : > { %v3394_v34 = vadd.f32 %v6229_v51, %v3323_v3  ;;  %v3395_v4 = vadd.f32 %v6229_v51, %v3324_v41  ;;  %v3396_v2 = vadd.f32 %v6229_v51, %v3325_v18  ;;  %v2582_v23 = vadd.f32 %v2581_v15, %v7006_v54  ;;  %v1966_v42 = vpop.f32.mrb[57].mxu0 }
 0x29f   : > { %v3156_v17 = vrot.slane %v2579_v38, 1  ;;  %v2835_v32 = vrot.slane %v1964_v10, 7  ;;  %v1968_v47 = vpop.f32.mrb[58].mxu0  ;;  %v3161_v28 = vrot.slane %v2590_v53, 1  ;;  %v3397_v40 = vadd.f32 %v6229_v51, %v3326_v55 }
 0x2a0   : > { %3548 = vst.msk [vmem:[%s6243_s10 + $0x188] sm:$0xff] %vm3499_vm2, %v3394_v34  ;;  %3550 = vst.msk [vmem:[%s6243_s10 + $0x198] sm:$0xff] %vm3499_vm2, %v3395_v4  ;;  %v3157_v6 = vrot.slane %v2582_v23, 1  ;;  %v2836_v26 = vrot.slane %v1968_v47, 7  ;;  %v1970_v30 = vpop.f32.mrb[59].mxu0 }
 0x2a1   : > { %3552 = vst.msk [vmem:[%s6243_s10 + $0x1a8] sm:$0xff] %vm3499_vm2, %v3396_v2  ;;  %v2969_v14 = vsel %vm2785_vm0, 0.0, %v2835_v32  ;;  %3554 = vst.msk [vmem:[%s6243_s10 + $0x1b8] sm:$0xff] %vm3499_vm2, %v3397_v40  ;;  %v3162_v39 = vsel %vm3106_vm1, %v3159_v0, %v3161_v28  ;;  %v3290_v54 = vsel %vm3106_vm1, %v3161_v28, 0.0 }
 0x2a2   : > { %v4120_v49 = vpop.f32.mrb[200].mxu1  ;;  %v3006_v33 = vadd.f32 %v2969_v14, %v1966_v42  ;;  %v3158_v61 = vsel %vm3106_vm1, %v3156_v17, %v3157_v6  ;;  %v2837_v8 = vsel %vm2785_vm0, %v2835_v32, %v2836_v26  ;;  %v3160_v35 = vsel %vm3106_vm1, %v3157_v6, %v3159_v0 }
 0x2a3   : > { %v2603_v56 = vadd.f32 %v4120_v49, %v6009_v20  ;;  %v2594_v29 = vpop.f32.mrb[201].mxu1  ;;  %v3007_v13 = vadd.f32 %v2837_v8, %v1970_v30 }
 0x2a4   : > { %v3327_v22 = vadd.f32 %v3158_v61, %v3006_v33  ;;  %v2595_v43 = vadd.f32 %v2594_v29, %v5992_v59  ;;  %v4121_v12 = vpop.f32.mrb[202].mxu1 }
 0x2a5   : > { %v6587_v31 = vadd.f32 %v4121_v12, %v6016_v57  ;;  %v3328_v21 = vadd.f32 %v3160_v35, %v3007_v13  ;;  %v2597_v16 = vpop.f32.mrb[203].mxu1  ;;  %v1974_v11 = vpop.f32.mrb[60].mxu0  ;;  %v3166_v50 = vrot.slane %v2603_v56, 1 }
 0x2a6   : > { %v3398_v20 = vadd.f32 %v6229_v51, %v3327_v22  ;;  %v2598_v3 = vadd.f32 %v2597_v16, %v5998_v58  ;;  %v2838_v41 = vrot.slane %v1974_v11, 7  ;;  %v1976_v9 = vpop.f32.mrb[61].mxu0  ;;  %v3163_v57 = vrot.slane %v2595_v43, 1 }
 0x2a7   : > { %v3168_v18 = vrot.slane %v6587_v31, 1  ;;  %v3399_v46 = vadd.f32 %v6229_v51, %v3328_v21  ;;  %v1978_v59 = vpop.f32.mrb[62].mxu0 }
 0x2a8   : > { %3556 = vst.msk [vmem:[%s6243_s10 + $0x1c8] sm:$0xff] %vm3499_vm2, %v3398_v20  ;;  %v3164_v36 = vrot.slane %v2598_v3, 1  ;;  %v2839_v38 = vsel %vm2785_vm0, %v2836_v26, %v2838_v41  ;;  %v2840_v27 = vrot.slane %v1978_v59, 7  ;;  %v1980_v52 = vpop.f32.mrb[63].mxu0 }
 0x2a9   : > { %3558 = vst.msk [vmem:[%s6243_s10 + $0x1d8] sm:$0xff] %vm3499_vm2, %v3399_v46  ;;  %v3008_v45 = vadd.f32 %v2839_v38, %v1976_v9  ;;  %v6601_v58 = vsel %vm3106_vm1, %v3166_v50, %v3168_v18 }
 0x2aa   : > { %v4124_v34 = vpop.f32.mrb[204].mxu1  ;;  %v2841_v4 = vsel %vm2785_vm0, %v2838_v41, %v2840_v27  ;;  %v3165_v2 = vsel %vm3106_vm1, %v3163_v57, %v3164_v36  ;;  %v3167_v15 = vsel %vm3106_vm1, %v3164_v36, %v3166_v50 }
 0x2ab   : > { %v2619_v10 = vadd.f32 %v4124_v34, %v6045_v37  ;;  %v3329_v1 = vadd.f32 %v3162_v39, %v3008_v45  ;;  %v2610_v53 = vpop.f32.mrb[205].mxu1  ;;  %v3009_v55 = vadd.f32 %v2841_v4, %v1980_v52 }
 0x2ac   : > { %v2611_v23 = vadd.f32 %v2610_v53, %v6028_v7  ;;  %v4125_v42 = vpop.f32.mrb[206].mxu1 }
 0x2ad   : > { %v3400_v17 = vadd.f32 %v6229_v51, %v3329_v1  ;;  %v6611_v32 = vadd.f32 %v4125_v42, %v6052_v25  ;;  %v3330_v47 = vadd.f32 %v3290_v54, %v3009_v55  ;;  %v2613_v40 = vpop.f32.mrb[207].mxu1  ;;  %v1984_v6 = vpop.f32.mrb[64].mxu0  ;;  %v3173_v0 = vrot.slane %v2619_v10, 1 }
 0x2ae   : > { %v2614_v37 = vadd.f32 %v2613_v40, %v6034_v63  ;;  %v2842_v26 = vrot.slane %v1984_v6, 7  ;;  %v1986_v30 = vpop.f32.mrb[65].mxu0  ;;  %v3170_v49 = vrot.slane %v2611_v23, 1  ;;  %v3291_v42 = vsel %vm3106_vm1, %v3168_v18, 0.0 }
 0x2af   : > { %3560 = vst.msk [vmem:[%s6243_s10 + $0x1e8] sm:$0xff] %vm3499_vm2, %v3400_v17  ;;  %v3175_v28 = vrot.slane %v6611_v32, 1  ;;  %v3401_v7 = vadd.f32 %v6229_v51, %v3330_v47  ;;  %v1988_v14 = vpop.f32.mrb[66].mxu0 }
 0x2b0   : > { %v3171_v33 = vrot.slane %v2614_v37, 1  ;;  %v2970_v25 = vsel %vm2785_vm0, 0.0, %v2842_v26  ;;  %v2843_v61 = vrot.slane %v1988_v14, 7  ;;  %v1990_v8 = vpop.f32.mrb[67].mxu0 }
 0x2b1   : > { %3562 = vst.msk [vmem:[%s6243_s10 + $0x1f8] sm:$0xff] %vm3499_vm2, %v3401_v7  ;;  %v3010_v56 = vadd.f32 %v2970_v25, %v1986_v30  ;;  %v6624_v63 = vsel %vm3106_vm1, %v3173_v0, %v3175_v28 }
 0x2b2   : > { %v4128_v29 = vpop.f32.mrb[208].mxu1  ;;  %v2844_v13 = vsel %vm2785_vm0, %v2842_v26, %v2843_v61  ;;  %v6628_v35 = vsel %vm3106_vm1, %v3170_v49, %v3171_v33  ;;  %v6631_v39 = vsel %vm3106_vm1, %v3171_v33, %v3173_v0 }
 0x2b3   : > { %v2635_v22 = vadd.f32 %v4128_v29, %v6079_v24  ;;  %v3331_v43 = vadd.f32 %v3165_v2, %v3010_v56  ;;  %v2626_v12 = vpop.f32.mrb[209].mxu1  ;;  %v3011_v21 = vadd.f32 %v2844_v13, %v1990_v8  ;;  %v7008_v13 = vld [vmem:[#allocation41_spill] sm:$0xff] }
 0x2b4   : > { %v2627_v16 = vadd.f32 %v2626_v12, %v6064_v60  ;;  %v4129_v11 = vpop.f32.mrb[210].mxu1 }
 0x2b5   : > { %v3402_v20 = vadd.f32 %v6229_v51, %v3331_v43  ;;  %v6637_v3 = vadd.f32 %v4129_v11, %v6084_v5  ;;  %v3332_v41 = vadd.f32 %v3167_v15, %v3011_v21  ;;  %v2629_v9 = vpop.f32.mrb[211].mxu1  ;;  %v1994_v50 = vpop.f32.mrb[68].mxu0  ;;  %v3180_v24 = vrot.slane %v2635_v22, 1  ;;  %v7009_v43 = vld [vmem:[#allocation42_spill] sm:$0xff] }
 0x2b6   : > { %v2630_v46 = vadd.f32 %v2629_v9, %v6069_v62  ;;  %v2845_v59 = vrot.slane %v1994_v50, 7  ;;  %v1996_v57 = vpop.f32.mrb[69].mxu0  ;;  %v3177_v27 = vrot.slane %v2627_v16, 1  ;;  %v7011_v9 = vld [vmem:[#allocation40_spill] sm:$0xff] }
 0x2b7   : > { %3564 = vst.msk [vmem:[%s6243_s10 + $0x208] sm:$0xff] %vm3499_vm2, %v3402_v20  ;;  %v3182_v36 = vrot.slane %v6637_v3, 1  ;;  %v3403_v60 = vadd.f32 %v6229_v51, %v3332_v41  ;;  %v1998_v38 = vpop.f32.mrb[70].mxu0  ;;  %v7010_v20 = vld [vmem:[#allocation39_spill] sm:$0xff]  ;;  %v7040_v3 = vld [vmem:[#allocation14_spill] sm:$0xff] }
 0x2b8   : > { %v3178_v52 = vrot.slane %v2630_v46, 1  ;;  %v2846_v5 = vsel %vm2785_vm0, %v2843_v61, %v2845_v59  ;;  %v2847_v45 = vrot.slane %v1998_v38, 7  ;;  %v2000_v34 = vpop.f32.mrb[71].mxu0  ;;  %v7012_v46 = vld [vmem:[#allocation13_spill] sm:$0xff] }
 0x2b9   : > { %3566 = vst.msk [vmem:[%s6243_s10 + $0x218] sm:$0xff] %vm3499_vm2, %v3403_v60  ;;  %v3012_v4 = vadd.f32 %v2846_v5, %v1996_v57  ;;  %v6650_v62 = vsel %vm3106_vm1, %v3180_v24, %v3182_v36 }
 0x2ba   : > { %v4132_v2 = vpop.f32.mrb[212].mxu1  ;;  %v2848_v15 = vsel %vm2785_vm0, %v2845_v59, %v2847_v45  ;;  %v6654_v10 = vsel %vm3106_vm1, %v3177_v27, %v3178_v52  ;;  %v6657_v1 = vsel %vm3106_vm1, %v3178_v52, %v3180_v24  ;;  %v7013_v27 = vld [vmem:[#allocation9_spill] sm:$0xff] }
 0x2bb   : > { %v2651_v53 = vadd.f32 %v4132_v2, %v6107_v19  ;;  %v3333_v55 = vadd.f32 %v6601_v58, %v3012_v4  ;;  %v2642_v54 = vpop.f32.mrb[213].mxu1  ;;  %v3013_v23 = vadd.f32 %v2848_v15, %v2000_v34  ;;  %v7007_v19 = vld [vmem:[#allocation6_spill] sm:$0xff] }
 0x2bc   : > { %v2643_v17 = vadd.f32 %v2642_v54, %v6094_v48  ;;  %v4133_v47 = vpop.f32.mrb[214].mxu1  ;;  %v6673_v48 = vld [vmem:[%s6895_s5] ss:$0 sm:$0xff] }
 0x2bd   : > { %v3404_v40 = vadd.f32 %v6229_v51, %v3333_v55  ;;  %v2654_v6 = vadd.f32 %v4133_v47, %v6112_v44  ;;  %v3334_v37 = vadd.f32 %v3291_v42, %v3013_v23  ;;  %v2645_v26 = vpop.f32.mrb[215].mxu1  ;;  %v2004_v30 = vpop.f32.mrb[72].mxu0  ;;  %v3187_v14 = vrot.slane %v2651_v53, 1  ;;  %v7014_v53 = vld [vmem:[#allocation15_spill] sm:$0xff] }
 0x2be   : > { %v2646_v0 = vadd.f32 %v2645_v26, %v7007_v19  ;;  %v2849_v58 = vrot.slane %v2004_v30, 7  ;;  %v2006_v7 = vpop.f32.mrb[73].mxu0  ;;  %v3184_v18 = vrot.slane %v2643_v17, 1  ;;  %v7015_v23 = vld [vmem:[#allocation11_spill] sm:$0xff] }
 0x2bf   : > { %3568 = vst.msk [vmem:[%s6243_s10 + $0x228] sm:$0xff] %vm3499_vm2, %v3404_v40  ;;  %v3189_v31 = vrot.slane %v2654_v6, 1  ;;  %v3405_v51 = vadd.f32 %v6673_v48, %v3334_v37  ;;  %v2008_v44 = vpop.f32.mrb[74].mxu0 }
 0x2c0   : > { %v3185_v49 = vrot.slane %v2646_v0, 1  ;;  %v2971_v33 = vsel %vm2785_vm0, 0.0, %v2849_v58  ;;  %v2850_v25 = vrot.slane %v2008_v44, 7  ;;  %v2010_v61 = vpop.f32.mrb[75].mxu0 }
 0x2c1   : > { %v3190_v8 = vsel %vm3106_vm1, %v3187_v14, %v3189_v31  ;;  %v3294_v56 = vsel %vm3106_vm1, %v3189_v31, 0.0  ;;  %3570 = vst.msk [vmem:[%s6243_s10 + $0x238] sm:$0xff] %vm3499_vm2, %v3405_v51  ;;  %v3014_v29 = vadd.f32 %v2971_v33, %v2006_v7 }
 0x2c2   : > { %v3345_v22 = vadd.f32 %v3190_v8, %v7008_v13  ;;  %v3346_v12 = vadd.f32 %v3294_v56, %v7009_v43  ;;  %v3186_v21 = vsel %vm3106_vm1, %v3184_v18, %v3185_v49  ;;  %v3188_v16 = vsel %vm3106_vm1, %v3185_v49, %v3187_v14  ;;  %v4136_v11 = vpop.f32.mrb[216].mxu1  ;;  %v7016_v49 = vld [vmem:[#allocation45_spill] sm:$0xff]  ;;  %v7018_v56 = vld [vmem:[#allocation43_spill] sm:$0xff]  ;;  %v7020_v43 = vld [vmem:[#allocation52_spill] sm:$0xff] }
 0x2c3   : > { %v3343_v41 = vadd.f32 %v3186_v21, %v7010_v20  ;;  %v3344_v50 = vadd.f32 %v3188_v16, %v7011_v9  ;;  %v2667_v59 = vadd.f32 %v4136_v11, %v7012_v46  ;;  %v3335_v57 = vadd.f32 %v6628_v35, %v3014_v29  ;;  %v2658_v24 = vpop.f32.mrb[217].mxu1  ;;  %v7021_v16 = vld [vmem:[#allocation17_spill] sm:$0xff] }
 0x2c4   : > { %v3416_v60 = vadd.f32 %v6673_v48, %v3345_v22  ;;  %v3417_v38 = vadd.f32 %v6673_v48, %v3346_v12  ;;  %v2659_v52 = vadd.f32 %v2658_v24, %v7013_v27  ;;  %v4137_v5 = vpop.f32.mrb[218].mxu1  ;;  %v2851_v45 = vsel %vm2785_vm0, %v2849_v58, %v2850_v25  ;;  %v7022_v46 = vld [vmem:[#allocation53_spill] sm:$0xff] }
 0x2c5   : > { %v3414_v34 = vadd.f32 %v6673_v48, %v3343_v41  ;;  %v3415_v4 = vadd.f32 %v6673_v48, %v3344_v50  ;;  %v3406_v2 = vadd.f32 %v6673_v48, %v3335_v57  ;;  %v2661_v35 = vpop.f32.mrb[219].mxu1  ;;  %v2014_v15 = vpop.f32.mrb[76].mxu0  ;;  %v2670_v55 = vadd.f32 %v4137_v5, %v7014_v53 }
 0x2c6   : > { %3592 = vst.msk [vmem:[%s6243_s10 + $0x2e8] sm:$0xff] %vm3499_vm2, %v3416_v60  ;;  %3594 = vst.msk [vmem:[%s6243_s10 + $0x2f8] sm:$0xff] %vm3499_vm2, %v3417_v38  ;;  %v3015_v54 = vadd.f32 %v2851_v45, %v2010_v61  ;;  %v2662_v42 = vadd.f32 %v2661_v35, %v7015_v23  ;;  %v2016_v17 = vpop.f32.mrb[77].mxu0  ;;  %v3194_v47 = vrot.slane %v2667_v59, 1  ;;  %v2852_v40 = vrot.slane %v2014_v15, 7  ;;  %v7017_v61 = vld [vmem:[#allocation46_spill] sm:$0xff] }
 0x2c7   : > { %3588 = vst.msk [vmem:[%s6243_s10 + $0x2c8] sm:$0xff] %vm3499_vm2, %v3414_v34  ;;  %3590 = vst.msk [vmem:[%s6243_s10 + $0x2d8] sm:$0xff] %vm3499_vm2, %v3415_v4  ;;  %v2018_v6 = vpop.f32.mrb[78].mxu0  ;;  %v3191_v37 = vrot.slane %v2659_v52, 1  ;;  %v3196_v26 = vrot.slane %v2670_v55, 1  ;;  %v3292_v60 = vsel %vm3106_vm1, %v3175_v28, 0.0 }
 0x2c8   : > { %3572 = vst.msk [vmem:[%s6243_s10 + $0x248] sm:$0xff] %vm3499_vm2, %v3406_v2  ;;  %v3336_v30 = vadd.f32 %v6631_v39, %v3015_v54  ;;  %v3192_v19 = vrot.slane %v2662_v42, 1  ;;  %v2020_v0 = vpop.f32.mrb[79].mxu0  ;;  %v2853_v58 = vsel %vm2785_vm0, %v2850_v25, %v2852_v40  ;;  %v2854_v7 = vrot.slane %v2018_v6, 7  ;;  %v7019_v25 = vld [vmem:[#allocation44_spill] sm:$0xff]  ;;  %v7023_v4 = vld [vmem:[#allocation18_spill] sm:$0xff] }
 0x2c9   : > { %v3197_v14 = vsel %vm3106_vm1, %v3194_v47, %v3196_v26  ;;  %v3295_v31 = vsel %vm3106_vm1, %v3196_v26, 0.0  ;;  %v3016_v21 = vadd.f32 %v2853_v58, %v2016_v17  ;;  %v7025_v6 = vld [vmem:[#allocation50_spill] sm:$0xff] }
 0x2ca   : > { %v3407_v51 = vadd.f32 %v6673_v48, %v3336_v30  ;;  %v3193_v44 = vsel %vm3106_vm1, %v3191_v37, %v3192_v19  ;;  %v4140_v18 = vpop.f32.mrb[220].mxu1  ;;  %v3349_v33 = vadd.f32 %v3197_v14, %v7016_v49  ;;  %v3350_v8 = vadd.f32 %v3295_v31, %v7017_v61 }
 0x2cb   : > { %v3195_v39 = vsel %vm3106_vm1, %v3192_v19, %v3194_v47  ;;  %v3347_v29 = vadd.f32 %v3193_v44, %v7018_v56  ;;  %v2674_v13 = vpop.f32.mrb[221].mxu1  ;;  %v2683_v12 = vadd.f32 %v4140_v18, %v7020_v43  ;;  %v3337_v52 = vadd.f32 %v6624_v63, %v3016_v21  ;;  %v7024_v47 = vld [vmem:[#allocation49_spill] sm:$0xff] }
 0x2cc   : > { %3574 = vst.msk [vmem:[%s6243_s10 + $0x258] sm:$0xff] %vm3499_vm2, %v3407_v51  ;;  %v3348_v22 = vadd.f32 %v3195_v39, %v7019_v25  ;;  %v2675_v11 = vadd.f32 %v2674_v13, %v7021_v16  ;;  %v4141_v20 = vpop.f32.mrb[222].mxu1  ;;  %v3420_v41 = vadd.f32 %v6673_v48, %v3349_v33  ;;  %v3421_v9 = vadd.f32 %v6673_v48, %v3350_v8  ;;  %v7027_v33 = vld [vmem:[#allocation47_spill] sm:$0xff]  ;;  %v7028_v39 = vld [vmem:[#allocation48_spill] sm:$0xff]  ;;  %v7029_v13 = vld [vmem:[#allocation54_spill] sm:$0xff] }
 0x2cd   : > { %v3418_v50 = vadd.f32 %v6673_v48, %v3347_v29  ;;  %v2686_v59 = vadd.f32 %v4141_v20, %v7022_v46  ;;  %v2677_v57 = vpop.f32.mrb[223].mxu1  ;;  %v2024_v24 = vpop.f32.mrb[80].mxu0  ;;  %v3201_v27 = vrot.slane %v2683_v12, 1  ;;  %v2855_v34 = vsel %vm2785_vm0, %v2852_v40, %v2854_v7  ;;  %v7026_v7 = vld [vmem:[#allocation56_spill] sm:$0xff]  ;;  %v7030_v21 = vld [vmem:[#allocation57_spill] sm:$0xff]  ;;  %v7031_v20 = vld [vmem:[#allocation55_spill] sm:$0xff] }
 0x2ce   : > { %v3419_v38 = vadd.f32 %v6673_v48, %v3348_v22  ;;  %v2026_v5 = vpop.f32.mrb[81].mxu0  ;;  %3600 = vst.msk [vmem:[%s6243_s10 + $0x328] sm:$0xff] %vm3499_vm2, %v3420_v41  ;;  %3602 = vst.msk [vmem:[%s6243_s10 + $0x338] sm:$0xff] %vm3499_vm2, %v3421_v9  ;;  %v2678_v32 = vadd.f32 %v2677_v57, %v7023_v4  ;;  %v2856_v2 = vrot.slane %v2024_v24, 7  ;;  %v3408_v35 = vadd.f32 %v6673_v48, %v3337_v52 }
 0x2cf   : > { %3596 = vst.msk [vmem:[%s6243_s10 + $0x308] sm:$0xff] %vm3499_vm2, %v3418_v50  ;;  %v3203_v45 = vrot.slane %v2686_v59, 1  ;;  %v2028_v28 = vpop.f32.mrb[82].mxu0  ;;  %v3198_v63 = vrot.slane %v2675_v11, 1  ;;  %v3017_v15 = vadd.f32 %v2855_v34, %v2020_v0 }
 0x2d0   : > { %3598 = vst.msk [vmem:[%s6243_s10 + $0x318] sm:$0xff] %vm3499_vm2, %v3419_v38  ;;  %v2857_v53 = vrot.slane %v2028_v28, 7  ;;  %v2030_v55 = vpop.f32.mrb[83].mxu0  ;;  %v3199_v42 = vrot.slane %v2678_v32, 1  ;;  %v2972_v17 = vsel %vm2785_vm0, 0.0, %v2856_v2  ;;  %3576 = vst.msk [vmem:[%s6243_s10 + $0x268] sm:$0xff] %vm3499_vm2, %v3408_v35 }
 0x2d1   : > { %v3204_v54 = vsel %vm3106_vm1, %v3201_v27, %v3203_v45  ;;  %v3296_v23 = vsel %vm3106_vm1, %v3203_v45, 0.0  ;;  %v3338_v26 = vadd.f32 %v3292_v60, %v3017_v15  ;;  %v3018_v19 = vadd.f32 %v2972_v17, %v2026_v5 }
 0x2d2   : > { %v3353_v40 = vadd.f32 %v3204_v54, %v7024_v47  ;;  %v3354_v37 = vadd.f32 %v3296_v23, %v7025_v6  ;;  %v4144_v30 = vpop.f32.mrb[224].mxu1  ;;  %v3200_v0 = vsel %vm3106_vm1, %v3198_v63, %v3199_v42  ;;  %v3202_v58 = vsel %vm3106_vm1, %v3199_v42, %v3201_v27  ;;  %v7033_v63 = vld [vmem:[#allocation8_spill] sm:$0xff]  ;;  %v7034_v54 = vld [vmem:[#allocation5_spill] sm:$0xff]  ;;  %v7035_v42 = vld [vmem:[#allocation51_spill] sm:$0xff] }
 0x2d3   : > { %v2699_v14 = vadd.f32 %v4144_v30, %v7026_v7  ;;  %v2690_v31 = vpop.f32.mrb[225].mxu1  ;;  %v2858_v51 = vsel %vm2785_vm0, %v2856_v2, %v2857_v53  ;;  %v3409_v49 = vadd.f32 %v6673_v48, %v3338_v26  ;;  %v3351_v61 = vadd.f32 %v3200_v0, %v7027_v33  ;;  %v7036_v47 = vld [vmem:[#allocation60_spill] sm:$0xff]  ;;  %v7038_v7 = vld [vmem:[#allocation61_spill] sm:$0xff] }
 0x2d4   : > { %v3424_v44 = vadd.f32 %v6673_v48, %v3353_v40  ;;  %v3425_v18 = vadd.f32 %v6673_v48, %v3354_v37  ;;  %v4145_v8 = vpop.f32.mrb[226].mxu1  ;;  %v3352_v56 = vadd.f32 %v3202_v58, %v7028_v39  ;;  %v3339_v29 = vadd.f32 %v6654_v10, %v3018_v19  ;;  %v7037_v37 = vld [vmem:[#allocation58_spill] sm:$0xff] }
 0x2d5   : > { %v2691_v25 = vadd.f32 %v2690_v31, %v7029_v13  ;;  %v2693_v22 = vpop.f32.mrb[227].mxu1  ;;  %v2034_v43 = vpop.f32.mrb[84].mxu0  ;;  %3578 = vst.msk [vmem:[%s6243_s10 + $0x278] sm:$0xff] %vm3499_vm2, %v3409_v49  ;;  %v3422_v12 = vadd.f32 %v6673_v48, %v3351_v61  ;;  %v2702_v16 = vadd.f32 %v4145_v8, %v7030_v21  ;;  %v3019_v11 = vadd.f32 %v2858_v51, %v2030_v55  ;;  %v7039_v61 = vld [vmem:[#allocation59_spill] sm:$0xff] }
 0x2d6   : > { %3608 = vst.msk [vmem:[%s6243_s10 + $0x368] sm:$0xff] %vm3499_vm2, %v3424_v44  ;;  %3610 = vst.msk [vmem:[%s6243_s10 + $0x378] sm:$0xff] %vm3499_vm2, %v3425_v18  ;;  %v2694_v10 = vadd.f32 %v2693_v22, %v7031_v20  ;;  %v2036_v41 = vpop.f32.mrb[85].mxu0  ;;  %v3423_v9 = vadd.f32 %v6673_v48, %v3352_v56  ;;  %v3208_v50 = vrot.slane %v2699_v14, 1  ;;  %v3410_v46 = vadd.f32 %v6673_v48, %v3339_v29 }
 0x2d7   : > { %v2859_v59 = vrot.slane %v2034_v43, 7  ;;  %v2038_v57 = vpop.f32.mrb[86].mxu0  ;;  %3604 = vst.msk [vmem:[%s6243_s10 + $0x348] sm:$0xff] %vm3499_vm2, %v3422_v12  ;;  %v3205_v24 = vrot.slane %v2691_v25, 1  ;;  %v3210_v60 = vrot.slane %v2702_v16, 1  ;;  %v3340_v38 = vadd.f32 %v6657_v1, %v3019_v11  ;;  %v7032_v1 = vld [vmem:[#allocation7_spill] sm:$0xff] }
 0x2d8   : > { %v3206_v27 = vrot.slane %v2694_v10, 1  ;;  %v2040_v52 = vpop.f32.mrb[87].mxu0  ;;  %3606 = vst.msk [vmem:[%s6243_s10 + $0x358] sm:$0xff] %vm3499_vm2, %v3423_v9  ;;  %3580 = vst.msk [vmem:[%s6243_s10 + $0x288] sm:$0xff] %vm3499_vm2, %v3410_v46  ;;  %v2861_v45 = vrot.slane %v2038_v57, 7  ;;  %v3293_v39 = vsel %vm3106_vm1, %v3182_v36, 0.0 }
 0x2d9   : > { %v2860_v5 = vsel %vm2785_vm0, %v2857_v53, %v2859_v59  ;;  %v3211_v34 = vsel %vm3106_vm1, %v3208_v50, %v3210_v60  ;;  %v3297_v4 = vsel %vm3106_vm1, %v3210_v60, 0.0  ;;  %v3411_v32 = vadd.f32 %v6673_v48, %v3340_v38  ;;  %v7041_v12 = vld [vmem:[#allocation16_spill] sm:$0xff]  ;;  %v7042_v9 = vld [vmem:[#allocation10_spill] sm:$0xff] }
 0x2da   : > { %v3207_v2 = vsel %vm3106_vm1, %v3205_v24, %v3206_v27  ;;  %v4148_v28 = vpop.f32.mrb[228].mxu1  ;;  %v3357_v35 = vadd.f32 %v3211_v34, %v7032_v1  ;;  %v3358_v15 = vadd.f32 %v3297_v4, %v7033_v63  ;;  %v3209_v55 = vsel %vm3106_vm1, %v3206_v27, %v3208_v50  ;;  %v7043_v46 = vld [vmem:[#allocation12_spill] sm:$0xff] }
 0x2db   : > { %v3355_v23 = vadd.f32 %v3207_v2, %v7034_v54  ;;  %v2706_v53 = vpop.f32.mrb[229].mxu1  ;;  %3582 = vst.msk [vmem:[%s6243_s10 + $0x298] sm:$0xff] %vm3499_vm2, %v3411_v32  ;;  %v3356_v17 = vadd.f32 %v3209_v55, %v7035_v42  ;;  %v2715_v40 = vadd.f32 %v4148_v28, %v7036_v47  ;;  %v3020_v6 = vadd.f32 %v2860_v5, %v2036_v41 }
 0x2dc   : > { %v2707_v26 = vadd.f32 %v2706_v53, %v7037_v37  ;;  %v4149_v30 = vpop.f32.mrb[230].mxu1  ;;  %v3428_v19 = vadd.f32 %v6673_v48, %v3357_v35  ;;  %v3429_v0 = vadd.f32 %v6673_v48, %v3358_v15  ;;  %v2862_v33 = vsel %vm2785_vm0, %v2859_v59, %v2861_v45 }
 0x2dd   : > { %v3426_v58 = vadd.f32 %v6673_v48, %v3355_v23  ;;  %v2718_v14 = vadd.f32 %v4149_v30, %v7038_v7  ;;  %v2709_v31 = vpop.f32.mrb[231].mxu1  ;;  %v3427_v51 = vadd.f32 %v6673_v48, %v3356_v17  ;;  %v3341_v44 = vadd.f32 %v6650_v62, %v3020_v6 }
 0x2de   : > { %3616 = vst.msk [vmem:[%s6243_s10 + $0x3a8] sm:$0xff] %vm3499_vm2, %v3428_v19  ;;  %3618 = vst.msk [vmem:[%s6243_s10 + $0x3b8] sm:$0xff] %vm3499_vm2, %v3429_v0  ;;  %v3215_v18 = vrot.slane %v2715_v40, 1  ;;  %v2710_v8 = vadd.f32 %v2709_v31, %v7039_v61  ;;  %v3021_v56 = vadd.f32 %v2862_v33, %v2040_v52  ;;  %v3212_v29 = vrot.slane %v2707_v26, 1 }
 0x2df   : > { %3612 = vst.msk [vmem:[%s6243_s10 + $0x388] sm:$0xff] %vm3499_vm2, %v3426_v58  ;;  %v3217_v49 = vrot.slane %v2718_v14, 1  ;;  %3614 = vst.msk [vmem:[%s6243_s10 + $0x398] sm:$0xff] %vm3499_vm2, %v3427_v51  ;;  %v3412_v62 = vadd.f32 %v6673_v48, %v3341_v44 }
 0x2e0   : > { %v3213_v22 = vrot.slane %v2710_v8, 1  ;;  %v3342_v21 = vadd.f32 %v3293_v39, %v3021_v56 }
 0x2e1   : > { %v3218_v13 = vsel %vm3106_vm1, %v3215_v18, %v3217_v49  ;;  %v3298_v25 = vsel %vm3106_vm1, %v3217_v49, 0.0  ;;  %3584 = vst.msk [vmem:[%s6243_s10 + $0x2a8] sm:$0xff] %vm3499_vm2, %v3412_v62 }
 0x2e2   : > { %v3361_v43 = vadd.f32 %v3218_v13, %v7040_v3  ;;  %v3362_v36 = vadd.f32 %v3298_v25, %v7041_v12  ;;  %v3214_v16 = vsel %vm3106_vm1, %v3212_v29, %v3213_v22  ;;  %v3216_v11 = vsel %vm3106_vm1, %v3213_v22, %v3215_v18 }
 0x2e3   : > { %v3413_v41 = vadd.f32 %v6673_v48, %v3342_v21  ;;  %v3359_v50 = vadd.f32 %v3214_v16, %v7042_v9  ;;  %v3360_v59 = vadd.f32 %v3216_v11, %v7043_v46 }
 0x2e4   : > { %v3432_v20 = vadd.f32 %v6673_v48, %v3361_v43  ;;  %v3433_v10 = vadd.f32 %v6673_v48, %v3362_v36 }
 0x2e5   : > { %3586 = vst.msk [vmem:[%s6243_s10 + $0x2b8] sm:$0xff] %vm3499_vm2, %v3413_v41  ;;  %v3430_v57 = vadd.f32 %v6673_v48, %v3359_v50  ;;  %v3431_v24 = vadd.f32 %v6673_v48, %v3360_v59 }
 0x2e6   : > { %3624 = vst.msk [vmem:[%s6243_s10 + $0x3e8] sm:$0xff] %vm3499_vm2, %v3432_v20  ;;  %3626 = vst.msk [vmem:[%s6243_s10 + $0x3f8] sm:$0xff] %vm3499_vm2, %v3433_v10 }
 0x2e7   : > { %3620 = vst.msk [vmem:[%s6243_s10 + $0x3c8] sm:$0xff] %vm3499_vm2, %v3430_v57  ;;  %3622 = vst.msk [vmem:[%s6243_s10 + $0x3d8] sm:$0xff] %vm3499_vm2, %v3431_v24 }
 0x2e8   : > { %4576 = shalt.err (!%p4573_p3)
}
 0x2e9   : > { %s4577_s16 = scalar_lea.hbm %s6838_s14, 16384  ;;  %s4581_s10 = scalar_lea.hbm %s6896_s6, 32768 }
 0x2ea   : > { %p4578_p4 = scmp.ne.s32.totalorder %s6838_s14, %s4577_s16  ;;  %p4582_p9 = scmp.lt.u32.totalorder %s6838_s14, %s6896_s6 }
 0x2eb   : > { %p4583_p10 = scmp.lt.u32.totalorder %s4581_s10, %s4577_s16  ;;  %p4585_p12 = scmp.lt.u32.totalorder %s4577_s16, %s6838_s14 }
 0x2ec   : > { %p4579_p7 = pnand %p4578_p4, %p4704_p5 }
 0x2ed   : > { %p4584_p11 = por %p4583_p10, %p4582_p9 }
 0x2ee   : > { %p4580_p8 = pneg %p4579_p7 }
 0x2ef   : > { %p4586_p13 = por %p4585_p12, %p4584_p11 }
 0x2f1   : > { %p4587_p0 = pnand %p4586_p13, %p4580_p8 }
 0x2f3   : > { %4590 = shalt.err (!%p4587_p0)
}
 0x2f4   : > { %s4629_s12 = smov 256   ;;  %s4630_s25 = smov 16  }
 0x2f5   : > { %4294 = dma.vmem_to_hbm [thread:$0]  (%p4704_p5), %s6840_s13, 16384, %s6838_s14, %s6849_s17, %s4629_s12, %s4629_s12, %s4630_s25  }
 0x2f6 PF: > { %p4300_p1 = scmp.ge.s32.totalorder %s4625_s24, 2  ;;  %s3656_s19 = sand.u32 1, %s4613_s21  }
 0x2f7   : > { %s3657_s18 = scalar_lea.sflag [#allocation3], %s3656_s19 }
 0x2f8   : > { %p4297_p2 = pnand %p4300_p1, %p4708_p6 }
 0x2fa   : > { %4608 = dma.done.wait (!%p4297_p2), %s3657_s18, 16384  }
 0x2fb   : > { %4610 = vsyncadd (!%p4297_p2), %s3657_s18, 4294950912  ;;  %p16_p3 = scmp.ge.s32.totalorder %s4691_s27, 4   ;;  %s7044_s21 = smov %s4617_s22 }
 0x2fc   : > { %s7045_s22 = smov %s4621_s23  ;;  %s7046_s23 = smov %s4702_s30 }
 0x2fd   : > { %s7047_s24 = smov %s4691_s27  ;;  %18 = sbr.rel (!%p16_p3) target bundleno = 3 (0x3), region = 82 }
 0x304   :  { %3662 = vsyncpa [#allocation3], 1 }
 0x305   :  { %3664 = vsyncpa [#allocation3 + $0x1], 1 }

</bundles_post_ra>
